<compile_context>
chip_gen: v5e
topology: v5e:2x2
jax: 0.10.0
libtpu: 0.0.40
codegen_flags: <defaults>
</compile_context>

<pallas_src>
import functools

import jax
import jax.numpy as jnp
from jax import lax
from jax.experimental import pallas as pl
from jax.experimental.pallas import tpu as pltpu

_PATCH_W = 0.75       # AttnBlock6_b.patch_weight
_GLOBAL_W = 0.25      # 1 - patch_weight
_NEG_SLOPE = 0.01     # nn.LeakyReLU default (module uses the default)
_GN_EPS = 1e-5


def _gn_stats(y):
    """One-pass GroupNorm(1) stats: mean and rsqrt(var+eps) over the sample."""
    mu = jnp.mean(y)
    var = jnp.mean(y * y) - mu * mu
    return mu, lax.rsqrt(var + _GN_EPS)


def _leaky_relu(y):
    return jnp.where(y >= 0, y, _NEG_SLOPE * y)


# --------------------------------------------------------------------------
# Kernel 0: need_attention=False path  (Conv -> GroupNorm(1) -> LeakyReLU)
# --------------------------------------------------------------------------
def _conv_gn_act_kernel(xcol_ref, wc_ref, gw_ref, gb_ref, out_ref):
    y0 = jnp.dot(wc_ref[...], xcol_ref[0],
                 preferred_element_type=jnp.float32)               # (Cout, S)
    mu, rstd = _gn_stats(y0)
    y = (y0 - mu) * rstd * gw_ref[...] + gb_ref[...]
    out_ref[0] = _leaky_relu(y)


# --------------------------------------------------------------------------
# Kernel 1: conv + GroupNorm(1) + fused q/k/(proj o v) 1x1 convs
#           + pooled GLOBAL attention path (softmax at pooled resolution,
#             upsample via matmul) folded into the residual.
# --------------------------------------------------------------------------
def _conv_gn_qkpv_global_kernel(xcol_ref, wc_ref, wqkpv_ref, bqkpv_ref,
                                pool_ref, up_ref, z_ref, qkpv_ref,
                                *, C, scale_global):
    # Conv as im2col matmul (bf16 operands, f32 accumulation).
    y0 = jnp.dot(wc_ref[...], xcol_ref[0],
                 preferred_element_type=jnp.float32)               # (C, S)

    # GroupNorm(1); affine folded into the qkpv weights in the wrapper.
    mu, rstd = _gn_stats(y0)
    xn = ((y0 - mu) * rstd).astype(jnp.bfloat16)

    # Fused q / k / (proj_out o v) 1x1 convs: one (3C,C)x(C,S) MXU matmul.
    qkpv = jnp.dot(wqkpv_ref[...], xn,
                   preferred_element_type=jnp.float32) + bqkpv_ref[...]
    qkpv_ref[0] = qkpv.astype(jnp.bfloat16)

    # AdaptiveAvgPool2d as a single matmul against the (S, tg2) pooling matrix.
    pooled = jnp.dot(qkpv.astype(jnp.bfloat16), pool_ref[...],
                     preferred_element_type=jnp.float32)           # (3C, tg2)
    qp = pooled[0:C].astype(jnp.bfloat16)
    kp = pooled[C:2 * C].astype(jnp.bfloat16)
    pvp = pooled[2 * C:3 * C].astype(jnp.bfloat16)                 # = proj(pool(v))

    # Global attention at pooled resolution (softmax in f32).
    glog = lax.dot_general(qp, kp, (((0,), (0,)), ((), ())),
                           preferred_element_type=jnp.float32)     # (tg2, tg2)
    glog = glog * scale_global
    glog = glog - jnp.max(glog, axis=-1, keepdims=True)
    g = jnp.exp(glog)
    g = g * pl.reciprocal(jnp.sum(g, axis=-1, keepdims=True), approx=True)
    h_pg = lax.dot_general(pvp, g.astype(jnp.bfloat16),
                           (((1,), (1,)), ((), ())),
                           preferred_element_type=jnp.float32)     # (C, tg2) = proj(h_glob)

    # Nearest upsample as a matmul against the (tg2, S) indicator matrix and
    # fold the 0.25-weighted global contribution straight into the residual,
    # so only pooled-resolution global data was ever materialized.
    up_g = jnp.dot(h_pg.astype(jnp.bfloat16), up_ref[...],
                   preferred_element_type=jnp.float32)             # (C, S)
    z_ref[0] = (y0 + _GLOBAL_W * up_g).astype(jnp.bfloat16)


# --------------------------------------------------------------------------
# Kernel 2: patch attention + combine + GroupNorm(1) + LeakyReLU,
#           entirely in the patch layout (C*shn, p2).
# --------------------------------------------------------------------------
def _patch_attn_combine_kernel(qkpv_ref, z_ref, g2w_ref, g2b_ref, out_ref,
                               *, CSH, scale_patch):
    a = qkpv_ref[0]                                                # (3*CSH, p2) bf16
    q_r = a[0:CSH]
    k_r = a[CSH:2 * CSH]
    pv_r = a[2 * CSH:3 * CSH]                                      # proj already folded into v

    # QK^T without any wrapper transpose: contract dim 0 (the C*shn axis).
    logits = lax.dot_general(q_r, k_r, (((0,), (0,)), ((), ())),
                             preferred_element_type=jnp.float32)   # (p2, p2)
    logits = logits * scale_patch
    logits = logits - jnp.max(logits, axis=-1, keepdims=True)
    w = jnp.exp(logits)
    w = w * pl.reciprocal(jnp.sum(w, axis=-1, keepdims=True), approx=True)

    h_pp = lax.dot_general(pv_r, w.astype(jnp.bfloat16),
                           (((1,), (1,)), ((), ())),
                           preferred_element_type=jnp.float32)     # (CSH, p2) = proj(h_patch)

    # residual (+ global part already inside z) + GroupNorm(1) + LeakyReLU.
    y1 = z_ref[0].astype(jnp.float32) + _PATCH_W * h_pp
    mu, rstd = _gn_stats(y1)
    y2 = (y1 - mu) * rstd * g2w_ref[...] + g2b_ref[...]
    out_ref[0] = _leaky_relu(y2)


# --------------------------------------------------------------------------
# Wrapper-side (one-time) layout / weight prep.
# --------------------------------------------------------------------------
def _round_up(v, m):
    return (v + m - 1) // m * m


def _im2col(x, kk):
    """(B, Cin, H, W) -> (B, K*K*Cin, H*W) for a 'same'-padded odd KxK conv."""
    B, Cin, H, W = x.shape
    pad = (kk - 1) // 2
    xp = jnp.pad(x, ((0, 0), (0, 0), (pad, pad), (pad, pad)))
    taps = [xp[:, :, kh:kh + H, kw:kw + W] for kh in range(kk) for kw in range(kk)]
    return jnp.stack(taps, axis=1).reshape(B, kk * kk * Cin, H * W)


def _pool_up_matrices(H, W, tg, r):
    """Exact AdaptiveAvgPool2d (uniform r x r bins) and nearest-upsample matrices."""
    ys = jnp.arange(H) // r
    xs = jnp.arange(W) // r
    bins = (ys[:, None] * tg + xs[None, :]).reshape(-1)            # (S,)
    onehot = (bins[:, None] == jnp.arange(tg * tg)[None, :])       # (S, tg2)
    pool_m = (onehot.astype(jnp.float32) / float(r * r)).astype(jnp.bfloat16)
    up_m = onehot.T.astype(jnp.bfloat16)                           # (tg2, S)
    return pool_m, up_m


def attn_conv2d_forward(x, params, *, conv_kernel, need_attention, patched_size):
    B, Cin, H, W = x.shape
    Cout = params["conv_w"].shape[0]
    S = H * W
    assert conv_kernel % 2 == 1, "padding='same' implemented for odd kernels"

    # im2col + flattened conv weight; contraction dim padded to 16 (bf16 pack).
    xcol = _im2col(x, conv_kernel)                                   # (B, KKCin, S)
    wc = params["conv_w"].transpose(0, 2, 3, 1).reshape(Cout, -1)    # (Cout, KKCin)
    kkc = xcol.shape[1]
    kkcp = _round_up(kkc, 16)
    xcol = jnp.pad(xcol, ((0, 0), (0, kkcp - kkc), (0, 0))).astype(jnp.bfloat16)
    wc = jnp.pad(wc, ((0, 0), (0, kkcp - kkc))).astype(jnp.bfloat16)

    cparams = pltpu.CompilerParams(dimension_semantics=("parallel",))

    if not need_attention:
        cost0 = pl.CostEstimate(
            flops=2 * B * Cout * kkcp * S,
            transcendentals=0,
            bytes_accessed=xcol.size * 2 + wc.size * 2 + B * Cout * S * 4)
        out = pl.pallas_call(
            _conv_gn_act_kernel,
            out_shape=jax.ShapeDtypeStruct((B, Cout, S), jnp.float32),
            grid=(B,),
            in_specs=[
                pl.BlockSpec((1, kkcp, S), lambda b: (b, 0, 0)),
                pl.BlockSpec((Cout, kkcp), lambda b: (0, 0)),
                pl.BlockSpec((Cout, 1), lambda b: (0, 0)),
                pl.BlockSpec((Cout, 1), lambda b: (0, 0)),
            ],
            out_specs=pl.BlockSpec((1, Cout, S), lambda b: (b, 0, 0)),
            compiler_params=cparams,
            cost_estimate=cost0,
        )(xcol, wc, params["gn2_w"].reshape(Cout, 1), params["gn2_b"].reshape(Cout, 1))
        return out.reshape(B, Cout, H, W)

    # ------------------- AttnBlock6_b (need_pool branch) -------------------
    size = H
    assert H == W and size % patched_size == 0
    p2 = patched_size * patched_size
    shn = S // p2                      # split_head_num
    tg = 4 * patched_size              # target_global
    assert size % tg == 0              # adaptive avg pool == uniform r x r mean
    r = size // tg
    tg2 = tg * tg
    CSH = Cout * shn

    # Fold proj_out into the v branch (linear, commutes with pool/upsample/
    # attention-apply), then fold GroupNorm(1)'s affine into the fused
    # q/k/pv weights and bias.  One-time prep, outside the grid.
    w_pv = params["proj_w"] @ params["v_w"]
    b_pv = params["proj_w"] @ params["v_b"]
    w_qkpv = jnp.concatenate([params["q_w"], params["k_w"], w_pv], axis=0)   # (3C, C)
    b_qkpv = jnp.concatenate([params["q_b"], params["k_b"], b_pv])           # (3C,)
    w_qkpv = (w_qkpv * params["gn1_w"][None, :]).astype(jnp.bfloat16)
    b_qkpv = (b_qkpv + jnp.concatenate(
        [params["q_w"], params["k_w"], w_pv], axis=0) @ params["gn1_b"]
    ).reshape(3 * Cout, 1).astype(jnp.float32)

    pool_m, up_m = _pool_up_matrices(H, W, tg, r)

    # --- kernel 1: conv + GN1 + fused q/k/pv + full global path -------------
    cost1 = pl.CostEstimate(
        flops=2 * B * (Cout * kkcp * S + 3 * Cout * Cout * S + 3 * Cout * S * tg2
                       + 2 * Cout * tg2 * tg2 + Cout * tg2 * S),
        transcendentals=B * tg2 * tg2,
        bytes_accessed=(xcol.size + wc.size + w_qkpv.size + pool_m.size + up_m.size) * 2
                       + b_qkpv.size * 4 + B * 4 * Cout * S * 2)
    z, qkpv = pl.pallas_call(
        functools.partial(_conv_gn_qkpv_global_kernel, C=Cout,
                          scale_global=float(Cout) ** -0.5),
        out_shape=(jax.ShapeDtypeStruct((B, Cout, S), jnp.bfloat16),
                   jax.ShapeDtypeStruct((B, 3 * Cout, S), jnp.bfloat16)),
        grid=(B,),
        in_specs=[
            pl.BlockSpec((1, kkcp, S), lambda b: (b, 0, 0)),
            pl.BlockSpec((Cout, kkcp), lambda b: (0, 0)),
            pl.BlockSpec((3 * Cout, Cout), lambda b: (0, 0)),
            pl.BlockSpec((3 * Cout, 1), lambda b: (0, 0)),
            pl.BlockSpec((S, tg2), lambda b: (0, 0)),
            pl.BlockSpec((tg2, S), lambda b: (0, 0)),
        ],
        out_specs=(pl.BlockSpec((1, Cout, S), lambda b: (b, 0, 0)),
                   pl.BlockSpec((1, 3 * Cout, S), lambda b: (b, 0, 0))),
        compiler_params=cparams,
        cost_estimate=cost1,
    )(xcol, wc, w_qkpv, b_qkpv, pool_m, up_m)

    # Free row-major metadata reshapes into the patch layout (no transposes,
    # no copies of (B,C,S)-scale data).
    qkpv_r = qkpv.reshape(B, 3 * CSH, p2)
    z_r = z.reshape(B, CSH, p2)
    g2w_r = jnp.repeat(params["gn2_w"], shn).reshape(CSH, 1)
    g2b_r = jnp.repeat(params["gn2_b"], shn).reshape(CSH, 1)

    # --- kernel 2: patch attention + combine + GN2 + LeakyReLU --------------
    cost2 = pl.CostEstimate(
        flops=4 * B * CSH * p2 * p2,
        transcendentals=B * p2 * p2,
        bytes_accessed=B * (4 * CSH * p2 * 2 + CSH * p2 * 4))
    out = pl.pallas_call(
        functools.partial(_patch_attn_combine_kernel, CSH=CSH,
                          scale_patch=float(CSH) ** -0.5),
        out_shape=jax.ShapeDtypeStruct((B, CSH, p2), jnp.float32),
        grid=(B,),
        in_specs=[
            pl.BlockSpec((1, 3 * CSH, p2), lambda b: (b, 0, 0)),
            pl.BlockSpec((1, CSH, p2), lambda b: (b, 0, 0)),
            pl.BlockSpec((CSH, 1), lambda b: (0, 0)),
            pl.BlockSpec((CSH, 1), lambda b: (0, 0)),
        ],
        out_specs=pl.BlockSpec((1, CSH, p2), lambda b: (b, 0, 0)),
        compiler_params=cparams,
        cost_estimate=cost2,
    )(qkpv_r, z_r, g2w_r, g2b_r)

    # Final free reshape back to image layout.
    return out.reshape(B, Cout, H, W)


# --------------------------------------------------------------------------
# Pure-JAX f32 reference mirroring the PyTorch forward exactly.
# --------------------------------------------------------------------------
def attn_conv2d_ref(x, params, *, conv_kernel, need_attention, patched_size):
    del conv_kernel
    y0 = lax.conv_general_dilated(
        x, params["conv_w"], window_strides=(1, 1), padding="SAME",
        dimension_numbers=("NCHW", "OIHW", "NCHW"))

    def gn(t, w, b):
        mu = t.mean(axis=(1, 2, 3), keepdims=True)
        var = ((t - mu) ** 2).mean(axis=(1, 2, 3), keepdims=True)
        return (t - mu) / jnp.sqrt(var + 1e-5) * w.reshape(1, -1, 1, 1) + b.reshape(1, -1, 1, 1)

    def lrelu(t):
        return jnp.where(t >= 0, t, 0.01 * t)

    if not need_attention:
        return lrelu(gn(y0, params["gn2_w"], params["gn2_b"]))

    B, C, H, W = y0.shape
    S = H * W
    p2 = patched_size ** 2
    shn = S // p2
    tg = 4 * patched_size
    r = H // tg

    xn = gn(y0, params["gn1_w"], params["gn1_b"])

    def c1(t, w, b=None):
        o = jnp.einsum("oc,bchw->bohw", w, t)
        return o if b is None else o + b.reshape(1, -1, 1, 1)

    q = c1(xn, params["q_w"], params["q_b"])
    k = c1(xn, params["k_w"], params["k_b"])
    v = c1(xn, params["v_w"], params["v_b"])

    # cal_bmm_patch
    qr, kr, vr = (t.reshape(B, C * shn, p2) for t in (q, k, v))
    w_in = jnp.einsum("bmi,bmj->bij", qr, kr) * float(C * shn) ** -0.5
    w_in = jax.nn.softmax(w_in, axis=2)
    h_patch = jnp.einsum("bmj,bij->bmi", vr, w_in).reshape(B, C, H, W)

    # cal_bmm_global
    def pool(t):
        return t.reshape(B, C, tg, r, tg, r).mean(axis=(3, 5)).reshape(B, C, tg * tg)

    qg, kg, vg = pool(q), pool(k), pool(v)
    wg = jnp.einsum("bci,bcj->bij", qg, kg) * float(C) ** -0.5
    wg = jax.nn.softmax(wg, axis=2)
    hg = jnp.einsum("bcj,bij->bci", vg, wg).reshape(B, C, tg, tg)
    h_global = jnp.repeat(jnp.repeat(hg, r, axis=2), r, axis=3)

    h_in = 0.75 * h_patch + 0.25 * h_global
    y1 = y0 + c1(h_in, params["proj_w"])
    return lrelu(gn(y1, params["gn2_w"], params["gn2_b"]))


# --------------------------------------------------------------------------
if __name__ == "__main__":
    B, Cin, Cout, H, W = 2, 4, 8, 32, 32
    conv_kernel = 3
    patched_size = 4     # attn_size=32, patched=4 -> n=16>1 -> need_pool branch

    key = jax.random.PRNGKey(0)
    ks = jax.random.split(key, 13)
    rnd = lambda kk, s, sc=0.1: sc * jax.random.normal(kk, s, jnp.float32)

    # 1x1-conv weights stored as (Cout, Cin) (squeezed Conv2d kernels).
    params = {
        "conv_w": rnd(ks[0], (Cout, Cin, conv_kernel, conv_kernel)),
        "gn1_w": 1.0 + rnd(ks[1], (Cout,)),
        "gn1_b": rnd(ks[2], (Cout,)),
        "q_w": rnd(ks[3], (Cout, Cout)), "q_b": rnd(ks[4], (Cout,)),
        "k_w": rnd(ks[5], (Cout, Cout)), "k_b": rnd(ks[6], (Cout,)),
        "v_w": rnd(ks[7], (Cout, Cout)), "v_b": rnd(ks[8], (Cout,)),
        "proj_w": rnd(ks[9], (Cout, Cout)),
        "gn2_w": 1.0 + rnd(ks[10], (Cout,)),
        "gn2_b": rnd(ks[11], (Cout,)),
    }
    x = jax.random.normal(ks[12], (B, Cin, H, W), jnp.float32)

    # --- need_attention=True (full AttnBlock6_b path) ---
    fwd = jax.jit(functools.partial(attn_conv2d_forward, conv_kernel=conv_kernel,
                                    need_attention=True, patched_size=patched_size))
    out = jax.block_until_ready(fwd(x, params))
    ref = jax.block_until_ready(
        attn_conv2d_ref(x, params, conv_kernel=conv_kernel,
                        need_attention=True, patched_size=patched_size))
    assert out.shape == (B, Cout, H, W), out.shape
    assert jnp.allclose(out, ref, rtol=3e-2, atol=3e-2), float(jnp.max(jnp.abs(out - ref)))

    # --- default config: need_attention=False (Conv -> GroupNorm -> LeakyReLU) ---
    fwd0 = jax.jit(functools.partial(attn_conv2d_forward, conv_kernel=conv_kernel,
                                     need_attention=False, patched_size=patched_size))
    out0 = jax.block_until_ready(fwd0(x, params))
    ref0 = attn_conv2d_ref(x, params, conv_kernel=conv_kernel,
                           need_attention=False, patched_size=patched_size)
    assert jnp.allclose(out0, ref0, rtol=3e-2, atol=3e-2), float(jnp.max(jnp.abs(out0 - ref0)))

    print("KERNEL_OK")
</pallas_src>

<mosaic_0001>
module attributes {stable_mosaic.version = 11 : i64} {
  func.func @_conv_gn_qkpv_global_kernel(%arg0: i32, %arg1: memref<1x48x1024xbf16, #tpu.memory_space<vmem>>, %arg2: memref<8x48xbf16, #tpu.memory_space<vmem>>, %arg3: memref<24x8xbf16, #tpu.memory_space<vmem>>, %arg4: memref<24x1xf32, #tpu.memory_space<vmem>>, %arg5: memref<1024x256xbf16, #tpu.memory_space<vmem>>, %arg6: memref<256x1024xbf16, #tpu.memory_space<vmem>>, %arg7: memref<1x8x1024xbf16, #tpu.memory_space<vmem>>, %arg8: memref<1x24x1024xbf16, #tpu.memory_space<vmem>>) attributes {dimension_semantics = [#tpu.dimension_semantics<parallel>], iteration_bounds = array<i64: 2>, scalar_prefetch = 0 : i64, scratch_operands = 0 : i64, tpu.core_type = #tpu.core_type<tc>, window_params = [{transform_indices = @transform_0, window_bounds = array<i64: 1, 48, 1024>}, {pipeline_mode = #tpu.pipeline_mode<synchronous>, transform_indices = @transform_1, window_bounds = array<i64: 8, 48>}, {pipeline_mode = #tpu.pipeline_mode<synchronous>, transform_indices = @transform_2, window_bounds = array<i64: 24, 8>}, {pipeline_mode = #tpu.pipeline_mode<synchronous>, transform_indices = @transform_3, window_bounds = array<i64: 24, 1>}, {pipeline_mode = #tpu.pipeline_mode<synchronous>, transform_indices = @transform_4, window_bounds = array<i64: 1024, 256>}, {pipeline_mode = #tpu.pipeline_mode<synchronous>, transform_indices = @transform_5, window_bounds = array<i64: 256, 1024>}, {transform_indices = @transform_6, window_bounds = array<i64: 1, 8, 1024>}, {transform_indices = @transform_7, window_bounds = array<i64: 1, 24, 1024>}]} {
    %c0 = arith.constant 0 : index
    %c0_0 = arith.constant 0 : index
    %0 = vector.load %arg2[%c0, %c0_0] : memref<8x48xbf16, #tpu.memory_space<vmem>>, vector<8x48xbf16>
    %c0_1 = arith.constant 0 : index
    %c0_2 = arith.constant 0 : index
    %c0_3 = arith.constant 0 : index
    %1 = vector.load %arg1[%c0_1, %c0_2, %c0_3] : memref<1x48x1024xbf16, #tpu.memory_space<vmem>>, vector<1x48x1024xbf16>
    %2 = vector.shape_cast %1 : vector<1x48x1024xbf16> to vector<48x1024xbf16>
    %cst = arith.constant dense<0.000000e+00> : vector<8x1024xf32>
    %3 = tpu.matmul %0, %2, %cst {dimension_numbers = #tpu.dot_dimension_numbers<[1], [0], [0], [1], [0, 0, 1, 1], [], []>} : vector<8x48xbf16>, vector<48x1024xbf16>, vector<8x1024xf32> -> vector<8x1024xf32>
    %4 = vector.shape_cast %3 : vector<8x1024xf32> to vector<1x8x1024xf32>
    %cst_4 = arith.constant dense<0.000000e+00> : vector<1xf32>
    %5 = vector.multi_reduction <add>, %4, %cst_4 [1, 2] : vector<1x8x1024xf32> to vector<1xf32>
    %6 = vector.shape_cast %5 : vector<1xf32> to vector<1x1x1xf32>
    %7 = vector.extract %6[0, 0, 0] : f32 from vector<1x1x1xf32>
    %cst_5 = arith.constant 8.192000e+03 : f32
    %8 = arith.divf %7, %cst_5 : f32
    %9 = arith.mulf %3, %3 : vector<8x1024xf32>
    %10 = vector.shape_cast %9 : vector<8x1024xf32> to vector<1x8x1024xf32>
    %cst_6 = arith.constant dense<0.000000e+00> : vector<1xf32>
    %11 = vector.multi_reduction <add>, %10, %cst_6 [1, 2] : vector<1x8x1024xf32> to vector<1xf32>
    %12 = vector.shape_cast %11 : vector<1xf32> to vector<1x1x1xf32>
    %13 = vector.extract %12[0, 0, 0] : f32 from vector<1x1x1xf32>
    %cst_7 = arith.constant 8.192000e+03 : f32
    %14 = arith.divf %13, %cst_7 : f32
    %15 = arith.mulf %8, %8 : f32
    %16 = arith.subf %14, %15 : f32
    %cst_8 = arith.constant 9.99999974E-6 : f32
    %17 = arith.addf %16, %cst_8 : f32
    %18 = math.rsqrt %17 : f32
    %19 = vector.broadcast %8 : f32 to vector<8x1024xf32>
    %20 = arith.subf %3, %19 : vector<8x1024xf32>
    %21 = vector.broadcast %18 : f32 to vector<8x1024xf32>
    %22 = arith.mulf %20, %21 : vector<8x1024xf32>
    %23 = arith.truncf %22 : vector<8x1024xf32> to vector<8x1024xbf16>
    %c0_9 = arith.constant 0 : index
    %c0_10 = arith.constant 0 : index
    %24 = vector.load %arg3[%c0_9, %c0_10] : memref<24x8xbf16, #tpu.memory_space<vmem>>, vector<24x8xbf16>
    %cst_11 = arith.constant dense<0.000000e+00> : vector<24x1024xf32>
    %25 = tpu.matmul %24, %23, %cst_11 {dimension_numbers = #tpu.dot_dimension_numbers<[1], [0], [0], [1], [0, 0, 1, 1], [], []>} : vector<24x8xbf16>, vector<8x1024xbf16>, vector<24x1024xf32> -> vector<24x1024xf32>
    %c0_12 = arith.constant 0 : index
    %c0_13 = arith.constant 0 : index
    %26 = vector.load %arg4[%c0_12, %c0_13] : memref<24x1xf32, #tpu.memory_space<vmem>>, vector<24x1xf32>
    %27 = vector.broadcast %26 : vector<24x1xf32> to vector<24x1024xf32>
    %28 = arith.addf %25, %27 : vector<24x1024xf32>
    %29 = arith.truncf %28 : vector<24x1024xf32> to vector<24x1024xbf16>
    %c0_14 = arith.constant 0 : index
    %c0_15 = arith.constant 0 : index
    %c0_16 = arith.constant 0 : index
    %30 = vector.load %arg8[%c0_14, %c0_15, %c0_16] : memref<1x24x1024xbf16, #tpu.memory_space<vmem>>, vector<1x24x1024xbf16>
    %31 = vector.shape_cast %30 : vector<1x24x1024xbf16> to vector<24x1024xbf16>
    %32 = vector.shape_cast %29 : vector<24x1024xbf16> to vector<1x24x1024xbf16>
    tpu.vector_store %arg8[%c0_14, %c0_15, %c0_16], %32 {strides = array<i32>} : memref<1x24x1024xbf16, #tpu.memory_space<vmem>>, vector<1x24x1024xbf16>,
    %33 = arith.truncf %28 : vector<24x1024xf32> to vector<24x1024xbf16>
    %c0_17 = arith.constant 0 : index
    %c0_18 = arith.constant 0 : index
    %34 = vector.load %arg5[%c0_17, %c0_18] : memref<1024x256xbf16, #tpu.memory_space<vmem>>, vector<1024x256xbf16>
    %cst_19 = arith.constant dense<0.000000e+00> : vector<24x256xf32>
    %35 = tpu.matmul %33, %34, %cst_19 {dimension_numbers = #tpu.dot_dimension_numbers<[1], [0], [0], [1], [0, 0, 1, 1], [], []>} : vector<24x1024xbf16>, vector<1024x256xbf16>, vector<24x256xf32> -> vector<24x256xf32>
    %36 = vector.extract_strided_slice %35 {offsets = [0, 0], sizes = [8, 256], strides = [1, 1]} : vector<24x256xf32> to vector<8x256xf32>
    %37 = arith.truncf %36 : vector<8x256xf32> to vector<8x256xbf16>
    %38 = vector.extract_strided_slice %35 {offsets = [8, 0], sizes = [8, 256], strides = [1, 1]} : vector<24x256xf32> to vector<8x256xf32>
    %39 = arith.truncf %38 : vector<8x256xf32> to vector<8x256xbf16>
    %40 = vector.extract_strided_slice %35 {offsets = [16, 0], sizes = [8, 256], strides = [1, 1]} : vector<24x256xf32> to vector<8x256xf32>
    %41 = arith.truncf %40 : vector<8x256xf32> to vector<8x256xbf16>
    %cst_20 = arith.constant dense<0.000000e+00> : vector<256x256xf32>
    %42 = tpu.matmul %37, %39, %cst_20 {dimension_numbers = #tpu.dot_dimension_numbers<[0], [0], [1], [1], [0, 1, 1, 1], [], []>} : vector<8x256xbf16>, vector<8x256xbf16>, vector<256x256xf32> -> vector<256x256xf32>
    %cst_21 = arith.constant 0.353553385 : f32
    %43 = vector.broadcast %cst_21 : f32 to vector<256x256xf32>
    %44 = arith.mulf %42, %43 : vector<256x256xf32>
    %cst_22 = arith.constant dense<0xFF800000> : vector<256xf32>
    %45 = vector.multi_reduction <maximumf>, %44, %cst_22 [1] : vector<256x256xf32> to vector<256xf32>
    %46 = vector.shape_cast %45 : vector<256xf32> to vector<256x1xf32>
    %47 = vector.broadcast %46 : vector<256x1xf32> to vector<256x256xf32>
    %48 = arith.subf %44, %47 : vector<256x256xf32>
    %49 = math.exp %48 : vector<256x256xf32>
    %cst_23 = arith.constant dense<0.000000e+00> : vector<256xf32>
    %50 = vector.multi_reduction <add>, %49, %cst_23 [1] : vector<256x256xf32> to vector<256xf32>
    %51 = vector.shape_cast %50 : vector<256xf32> to vector<256x1xf32>
    %52 = tpu.reciprocal %51 {approx = true} : vector<256x1xf32> -> vector<256x1xf32>
    %53 = vector.broadcast %52 : vector<256x1xf32> to vector<256x256xf32>
    %54 = arith.mulf %49, %53 : vector<256x256xf32>
    %55 = arith.truncf %54 : vector<256x256xf32> to vector<256x256xbf16>
    %cst_24 = arith.constant dense<0.000000e+00> : vector<8x256xf32>
    %56 = tpu.matmul %41, %55, %cst_24 {dimension_numbers = #tpu.dot_dimension_numbers<[1], [1], [0], [0], [0, 0, 1, 0], [], []>} : vector<8x256xbf16>, vector<256x256xbf16>, vector<8x256xf32> -> vector<8x256xf32>
    %57 = arith.truncf %56 : vector<8x256xf32> to vector<8x256xbf16>
    %c0_25 = arith.constant 0 : index
    %c0_26 = arith.constant 0 : index
    %58 = vector.load %arg6[%c0_25, %c0_26] : memref<256x1024xbf16, #tpu.memory_space<vmem>>, vector<256x1024xbf16>
    %cst_27 = arith.constant dense<0.000000e+00> : vector<8x1024xf32>
    %59 = tpu.matmul %57, %58, %cst_27 {dimension_numbers = #tpu.dot_dimension_numbers<[1], [0], [0], [1], [0, 0, 1, 1], [], []>} : vector<8x256xbf16>, vector<256x1024xbf16>, vector<8x1024xf32> -> vector<8x1024xf32>
    %cst_28 = arith.constant 2.500000e-01 : f32
    %60 = vector.broadcast %cst_28 : f32 to vector<8x1024xf32>
    %61 = arith.mulf %60, %59 : vector<8x1024xf32>
    %62 = arith.addf %3, %61 : vector<8x1024xf32>
    %63 = arith.truncf %62 : vector<8x1024xf32> to vector<8x1024xbf16>
    %c0_29 = arith.constant 0 : index
    %c0_30 = arith.constant 0 : index
    %c0_31 = arith.constant 0 : index
    %64 = vector.load %arg7[%c0_29, %c0_30, %c0_31] : memref<1x8x1024xbf16, #tpu.memory_space<vmem>>, vector<1x8x1024xbf16>
    %65 = vector.shape_cast %64 : vector<1x8x1024xbf16> to vector<8x1024xbf16>
    %66 = vector.shape_cast %63 : vector<8x1024xbf16> to vector<1x8x1024xbf16>
    tpu.vector_store %arg7[%c0_29, %c0_30, %c0_31], %66 {strides = array<i32>} : memref<1x8x1024xbf16, #tpu.memory_space<vmem>>, vector<1x8x1024xbf16>,
    return
  }
  func.func @transform_0(%arg0: i32) -> (i32, i32, i32) {
    %c0_i32 = arith.constant 0 : i32
    %c0_i32_0 = arith.constant 0 : i32
    %c0_i32_1 = arith.constant 0 : i32
    return %arg0, %c0_i32, %c0_i32_0 : i32, i32, i32
  }
  func.func @transform_1(%arg0: i32) -> (i32, i32) {
    %c0_i32 = arith.constant 0 : i32
    %c0_i32_0 = arith.constant 0 : i32
    %c0_i32_1 = arith.constant 0 : i32
    return %c0_i32, %c0_i32_0 : i32, i32
  }
  func.func @transform_2(%arg0: i32) -> (i32, i32) {
    %c0_i32 = arith.constant 0 : i32
    %c0_i32_0 = arith.constant 0 : i32
    %c0_i32_1 = arith.constant 0 : i32
    return %c0_i32, %c0_i32_0 : i32, i32
  }
  func.func @transform_3(%arg0: i32) -> (i32, i32) {
    %c0_i32 = arith.constant 0 : i32
    %c0_i32_0 = arith.constant 0 : i32
    %c0_i32_1 = arith.constant 0 : i32
    return %c0_i32, %c0_i32_0 : i32, i32
  }
  func.func @transform_4(%arg0: i32) -> (i32, i32) {
    %c0_i32 = arith.constant 0 : i32
    %c0_i32_0 = arith.constant 0 : i32
    %c0_i32_1 = arith.constant 0 : i32
    return %c0_i32, %c0_i32_0 : i32, i32
  }
  func.func @transform_5(%arg0: i32) -> (i32, i32) {
    %c0_i32 = arith.constant 0 : i32
    %c0_i32_0 = arith.constant 0 : i32
    %c0_i32_1 = arith.constant 0 : i32
    return %c0_i32, %c0_i32_0 : i32, i32
  }
  func.func @transform_6(%arg0: i32) -> (i32, i32, i32) {
    %c0_i32 = arith.constant 0 : i32
    %c0_i32_0 = arith.constant 0 : i32
    %c0_i32_1 = arith.constant 0 : i32
    return %arg0, %c0_i32, %c0_i32_0 : i32, i32, i32
  }
  func.func @transform_7(%arg0: i32) -> (i32, i32, i32) {
    %c0_i32 = arith.constant 0 : i32
    %c0_i32_0 = arith.constant 0 : i32
    %c0_i32_1 = arith.constant 0 : i32
    return %arg0, %c0_i32, %c0_i32_0 : i32, i32, i32
  }
}

module attributes {stable_mosaic.version = 11 : i64} {
  func.func @_patch_attn_combine_kernel(%arg0: i32, %arg1: memref<1x1536x16xbf16, #tpu.memory_space<vmem>>, %arg2: memref<1x512x16xbf16, #tpu.memory_space<vmem>>, %arg3: memref<512x1xf32, #tpu.memory_space<vmem>>, %arg4: memref<512x1xf32, #tpu.memory_space<vmem>>, %arg5: memref<1x512x16xf32, #tpu.memory_space<vmem>>) attributes {dimension_semantics = [#tpu.dimension_semantics<parallel>], iteration_bounds = array<i64: 2>, scalar_prefetch = 0 : i64, scratch_operands = 0 : i64, tpu.core_type = #tpu.core_type<tc>, window_params = [{transform_indices = @transform_0, window_bounds = array<i64: 1, 1536, 16>}, {transform_indices = @transform_1, window_bounds = array<i64: 1, 512, 16>}, {pipeline_mode = #tpu.pipeline_mode<synchronous>, transform_indices = @transform_2, window_bounds = array<i64: 512, 1>}, {pipeline_mode = #tpu.pipeline_mode<synchronous>, transform_indices = @transform_3, window_bounds = array<i64: 512, 1>}, {transform_indices = @transform_4, window_bounds = array<i64: 1, 512, 16>}]} {
    %c0 = arith.constant 0 : index
    %c0_0 = arith.constant 0 : index
    %c0_1 = arith.constant 0 : index
    %0 = vector.load %arg1[%c0, %c0_0, %c0_1] : memref<1x1536x16xbf16, #tpu.memory_space<vmem>>, vector<1x1536x16xbf16>
    %1 = vector.shape_cast %0 : vector<1x1536x16xbf16> to vector<1536x16xbf16>
    %2 = vector.extract_strided_slice %1 {offsets = [0, 0], sizes = [512, 16], strides = [1, 1]} : vector<1536x16xbf16> to vector<512x16xbf16>
    %3 = vector.extract_strided_slice %1 {offsets = [512, 0], sizes = [512, 16], strides = [1, 1]} : vector<1536x16xbf16> to vector<512x16xbf16>
    %4 = vector.extract_strided_slice %1 {offsets = [1024, 0], sizes = [512, 16], strides = [1, 1]} : vector<1536x16xbf16> to vector<512x16xbf16>
    %cst = arith.constant dense<0.000000e+00> : vector<16x16xf32>
    %5 = tpu.matmul %2, %3, %cst {dimension_numbers = #tpu.dot_dimension_numbers<[0], [0], [1], [1], [0, 1, 1, 1], [], []>} : vector<512x16xbf16>, vector<512x16xbf16>, vector<16x16xf32> -> vector<16x16xf32>
    %cst_2 = arith.constant 0.0441941731 : f32
    %6 = vector.broadcast %cst_2 : f32 to vector<16x16xf32>
    %7 = arith.mulf %5, %6 : vector<16x16xf32>
    %cst_3 = arith.constant dense<0xFF800000> : vector<16xf32>
    %8 = vector.multi_reduction <maximumf>, %7, %cst_3 [1] : vector<16x16xf32> to vector<16xf32>
    %9 = vector.shape_cast %8 : vector<16xf32> to vector<16x1xf32>
    %10 = vector.broadcast %9 : vector<16x1xf32> to vector<16x16xf32>
    %11 = arith.subf %7, %10 : vector<16x16xf32>
    %12 = math.exp %11 : vector<16x16xf32>
    %cst_4 = arith.constant dense<0.000000e+00> : vector<16xf32>
    %13 = vector.multi_reduction <add>, %12, %cst_4 [1] : vector<16x16xf32> to vector<16xf32>
    %14 = vector.shape_cast %13 : vector<16xf32> to vector<16x1xf32>
    %15 = tpu.reciprocal %14 {approx = true} : vector<16x1xf32> -> vector<16x1xf32>
    %16 = vector.broadcast %15 : vector<16x1xf32> to vector<16x16xf32>
    %17 = arith.mulf %12, %16 : vector<16x16xf32>
    %18 = arith.truncf %17 : vector<16x16xf32> to vector<16x16xbf16>
    %cst_5 = arith.constant dense<0.000000e+00> : vector<512x16xf32>
    %19 = tpu.matmul %4, %18, %cst_5 {dimension_numbers = #tpu.dot_dimension_numbers<[1], [1], [0], [0], [0, 0, 1, 0], [], []>} : vector<512x16xbf16>, vector<16x16xbf16>, vector<512x16xf32> -> vector<512x16xf32>
    %c0_6 = arith.constant 0 : index
    %c0_7 = arith.constant 0 : index
    %c0_8 = arith.constant 0 : index
    %20 = vector.load %arg2[%c0_6, %c0_7, %c0_8] : memref<1x512x16xbf16, #tpu.memory_space<vmem>>, vector<1x512x16xbf16>
    %21 = vector.shape_cast %20 : vector<1x512x16xbf16> to vector<512x16xbf16>
    %22 = arith.extf %21 : vector<512x16xbf16> to vector<512x16xf32>
    %cst_9 = arith.constant 7.500000e-01 : f32
    %23 = vector.broadcast %cst_9 : f32 to vector<512x16xf32>
    %24 = arith.mulf %23, %19 : vector<512x16xf32>
    %25 = arith.addf %22, %24 : vector<512x16xf32>
    %26 = vector.shape_cast %25 : vector<512x16xf32> to vector<1x512x16xf32>
    %cst_10 = arith.constant dense<0.000000e+00> : vector<1xf32>
    %27 = vector.multi_reduction <add>, %26, %cst_10 [1, 2] : vector<1x512x16xf32> to vector<1xf32>
    %28 = vector.shape_cast %27 : vector<1xf32> to vector<1x1x1xf32>
    %29 = vector.extract %28[0, 0, 0] : f32 from vector<1x1x1xf32>
    %cst_11 = arith.constant 8.192000e+03 : f32
    %30 = arith.divf %29, %cst_11 : f32
    %31 = arith.mulf %25, %25 : vector<512x16xf32>
    %32 = vector.shape_cast %31 : vector<512x16xf32> to vector<1x512x16xf32>
    %cst_12 = arith.constant dense<0.000000e+00> : vector<1xf32>
    %33 = vector.multi_reduction <add>, %32, %cst_12 [1, 2] : vector<1x512x16xf32> to vector<1xf32>
    %34 = vector.shape_cast %33 : vector<1xf32> to vector<1x1x1xf32>
    %35 = vector.extract %34[0, 0, 0] : f32 from vector<1x1x1xf32>
    %cst_13 = arith.constant 8.192000e+03 : f32
    %36 = arith.divf %35, %cst_13 : f32
    %37 = arith.mulf %30, %30 : f32
    %38 = arith.subf %36, %37 : f32
    %cst_14 = arith.constant 9.99999974E-6 : f32
    %39 = arith.addf %38, %cst_14 : f32
    %40 = math.rsqrt %39 : f32
    %41 = vector.broadcast %30 : f32 to vector<512x16xf32>
    %42 = arith.subf %25, %41 : vector<512x16xf32>
    %43 = vector.broadcast %40 : f32 to vector<512x16xf32>
    %44 = arith.mulf %42, %43 : vector<512x16xf32>
    %c0_15 = arith.constant 0 : index
    %c0_16 = arith.constant 0 : index
    %45 = vector.load %arg3[%c0_15, %c0_16] : memref<512x1xf32, #tpu.memory_space<vmem>>, vector<512x1xf32>
    %46 = vector.broadcast %45 : vector<512x1xf32> to vector<512x16xf32>
    %47 = arith.mulf %44, %46 : vector<512x16xf32>
    %c0_17 = arith.constant 0 : index
    %c0_18 = arith.constant 0 : index
    %48 = vector.load %arg4[%c0_17, %c0_18] : memref<512x1xf32, #tpu.memory_space<vmem>>, vector<512x1xf32>
    %49 = vector.broadcast %48 : vector<512x1xf32> to vector<512x16xf32>
    %50 = arith.addf %47, %49 : vector<512x16xf32>
    %cst_19 = arith.constant 0.000000e+00 : f32
    %51 = vector.broadcast %cst_19 : f32 to vector<512x16xf32>
    %52 = arith.cmpf oge, %50, %51 : vector<512x16xf32>
    %cst_20 = arith.constant 0.00999999977 : f32
    %53 = vector.broadcast %cst_20 : f32 to vector<512x16xf32>
    %54 = arith.mulf %53, %50 : vector<512x16xf32>
    %55 = arith.select %52, %50, %54 : vector<512x16xi1>, vector<512x16xf32>
    %c0_21 = arith.constant 0 : index
    %c0_22 = arith.constant 0 : index
    %c0_23 = arith.constant 0 : index
    %56 = vector.load %arg5[%c0_21, %c0_22, %c0_23] : memref<1x512x16xf32, #tpu.memory_space<vmem>>, vector<1x512x16xf32>
    %57 = vector.shape_cast %56 : vector<1x512x16xf32> to vector<512x16xf32>
    %58 = vector.shape_cast %55 : vector<512x16xf32> to vector<1x512x16xf32>
    tpu.vector_store %arg5[%c0_21, %c0_22, %c0_23], %58 {strides = array<i32>} : memref<1x512x16xf32, #tpu.memory_space<vmem>>, vector<1x512x16xf32>,
    return
  }
  func.func @transform_0(%arg0: i32) -> (i32, i32, i32) {
    %c0_i32 = arith.constant 0 : i32
    %c0_i32_0 = arith.constant 0 : i32
    %c0_i32_1 = arith.constant 0 : i32
    return %arg0, %c0_i32, %c0_i32_0 : i32, i32, i32
  }
  func.func @transform_1(%arg0: i32) -> (i32, i32, i32) {
    %c0_i32 = arith.constant 0 : i32
    %c0_i32_0 = arith.constant 0 : i32
    %c0_i32_1 = arith.constant 0 : i32
    return %arg0, %c0_i32, %c0_i32_0 : i32, i32, i32
  }
  func.func @transform_2(%arg0: i32) -> (i32, i32) {
    %c0_i32 = arith.constant 0 : i32
    %c0_i32_0 = arith.constant 0 : i32
    %c0_i32_1 = arith.constant 0 : i32
    return %c0_i32, %c0_i32_0 : i32, i32
  }
  func.func @transform_3(%arg0: i32) -> (i32, i32) {
    %c0_i32 = arith.constant 0 : i32
    %c0_i32_0 = arith.constant 0 : i32
    %c0_i32_1 = arith.constant 0 : i32
    return %c0_i32, %c0_i32_0 : i32, i32
  }
  func.func @transform_4(%arg0: i32) -> (i32, i32, i32) {
    %c0_i32 = arith.constant 0 : i32
    %c0_i32_0 = arith.constant 0 : i32
    %c0_i32_1 = arith.constant 0 : i32
    return %arg0, %c0_i32, %c0_i32_0 : i32, i32, i32
  }
}

</mosaic_0001>

<bundles_post_ra>
// kernel: attn_conv2d_forward.2
= control target key start
LH: loop header
LB: loop body
LE: loop exit
PB: predicated region body
PF: predicated region fallthrough
CT: control target
= control target key end

     0   :  { %s5720_s24 = smov 0   ;;  %s8321_s0 = inlined_call_operand.vmem [shape: bf16[2,48,1024], index: 0, kind: input, shape index: {}]   ;;  %s8322_s1 = inlined_call_operand.vmem [shape: bf16[8,48], index: 1, kind: input, shape index: {}]   ;;  %s8323_s2 = inlined_call_operand.vmem [shape: bf16[24,8], index: 2, kind: input, shape index: {}]   ;;  %s8324_s3 = inlined_call_operand.vmem [shape: f32[24,1], index: 3, kind: input, shape index: {}]   ;;  %s8325_s4 = inlined_call_operand.vmem [shape: bf16[1024,256], index: 4, kind: input, shape index: {}]   ;;  %s8326_s5 = inlined_call_operand.vmem [shape: bf16[256,1024], index: 5, kind: input, shape index: {}]   ;;  %s8327_s6 = inlined_call_operand.vmem [shape: bf16[2,8,1024], index: 6, kind: output, shape index: {0}]   ;;  %s8328_s7 = inlined_call_operand.vmem [shape: bf16[2,24,1024], index: 7, kind: output, shape index: {1}]  }
   0x1 LB: > { %s3978_s25 = sadd.s32 4294967295, %s5676_s24   ;;  %p3982_p0 = scmp.ge.s32.totalorder %s5676_s24, 1  ;;  %s5676_s24 = sphi %s5720_s24, %s18_s24  }
   0x2   : > { %p240_p1 = scmp.lt.s32.totalorder %s5676_s24, 3 }
   0x4   : > { %p241_p2 = pnand %p3982_p0, %p240_p1 }
   0x6   : > { %244 = sbr.rel (%p241_p2) target bundleno = 2180 (0x884), region = 44 }
   0xb   : > { %p277_p3 = scmp.lt.s32.totalorder %s3978_s25, 1  ;;  %vm438_vm0 = vcmask 392192   ;;  %v293_v39 = vld [vmem:[%s8322_s1] sm:$0xf]  ;;  %vm681_vm5 = vcmask 1043456   ;;  %vm674_vm6 = vcmask 64512  }
   0xd   : > { %s8447_s25 = smov (!%p277_p3, %s3978_s25), 1 }
   0xe   : > { %s5451_s26 = smul.u32 192, %s8447_s25  ;;  %s5169_s19 = sshll.u32 %s8447_s25, 5 }
  0x10   : > { %s5734_s29 = scalar_lea.vmem %s8321_s0, %s5451_s26 }
  0x11   : > { %v4053_v0 = vld [vmem:[%s5734_s29 + $0x80] sm:$0xf]  ;;  %v5186_v2 = vld [vmem:[%s5734_s29 + $0x84] sm:$0xf]  ;;  %v4061_v5 = vld [vmem:[%s5734_s29 + $0x88] sm:$0xf] }
  0x12   : > { %v5190_v1 = vld [vmem:[%s5734_s29 + $0x9c] sm:$0xf0]  ;;  %v4055_v4 = vld [vmem:[%s5734_s29 + $0xa0] sm:$0xf0]  ;;  %v5191_v6 = vld [vmem:[%s5734_s29 + $0xa4] sm:$0xf0] }
  0x13   : > { %v4054_v3 = vor.u32 %v5190_v1, %v4053_v0  ;;  %v4058_v7 = vor.u32 %v5186_v2, %v4055_v4  ;;  %v4062_v8 = vor.u32 %v5191_v6, %v4061_v5  ;;  %v5187_v9 = vld [vmem:[%s5734_s29 + $0x8c] sm:$0xf]  ;;  %v4021_v11 = vld [vmem:[%s5734_s29 + $0x40] sm:$0xf]  ;;  %v5178_v14 = vld [vmem:[%s5734_s29 + $0x44] sm:$0xf] }
  0x14   : > { %v4063_v10 = vld [vmem:[%s5734_s29 + $0xa8] sm:$0xf0]  ;;  %v5182_v13 = vld [vmem:[%s5734_s29 + $0x5c] sm:$0xf0]  ;;  %v4023_v15 = vld [vmem:[%s5734_s29 + $0x60] sm:$0xf0] }
  0x15   : > { %447 = vmatpush.bf16.msra.mxu0 %v4054_v3  ;;  %v4066_v12 = vor.u32 %v5187_v9, %v4063_v10  ;;  %460 = vmatpush.bf16.msra.mxu1 %v4058_v7  ;;  %v4022_v16 = vor.u32 %v5182_v13, %v4021_v11  ;;  %v4026_v17 = vor.u32 %v5178_v14, %v4023_v15  ;;  %v4029_v18 = vld [vmem:[%s5734_s29 + $0x48] sm:$0xf]  ;;  %v5179_v20 = vld [vmem:[%s5734_s29 + $0x4c] sm:$0xf]  ;;  %v3989_v23 = vld [vmem:[%s5734_s29] sm:$0xf] }
  0x16   : > { %473 = vmatpush.bf16.msra.mxu2 %v4062_v8  ;;  %v5183_v19 = vld [vmem:[%s5734_s29 + $0x64] sm:$0xf0]  ;;  %v4031_v22 = vld [vmem:[%s5734_s29 + $0x68] sm:$0xf0]  ;;  %v5174_v24 = vld [vmem:[%s5734_s29 + $0x1c] sm:$0xf0] }
  0x17   : > { %486 = vmatpush.bf16.msra.mxu3 %v4066_v12  ;;  %v4030_v21 = vor.u32 %v5183_v19, %v4029_v18  ;;  %v4034_v25 = vor.u32 %v5179_v20, %v4031_v22  ;;  %v5170_v26 = vld [vmem:[%s5734_s29 + $0x4] sm:$0xf]  ;;  %v3997_v28 = vld [vmem:[%s5734_s29 + $0x8] sm:$0xf]  ;;  %v3990_v29 = vor.u32 %v5174_v24, %v3989_v23  ;;  %v5171_v31 = vld [vmem:[%s5734_s29 + $0xc] sm:$0xf] }
  0x18   : > { %v3991_v27 = vld [vmem:[%s5734_s29 + $0x20] sm:$0xf0]  ;;  %v5175_v30 = vld [vmem:[%s5734_s29 + $0x24] sm:$0xf0]  ;;  %v3999_v32 = vld [vmem:[%s5734_s29 + $0x28] sm:$0xf0] }
  0x19   : > { %448 = vmatpush.bf16.msra.mxu0 %v4022_v16  ;;  %461 = vmatpush.bf16.msra.mxu1 %v4026_v17  ;;  %v3994_v33 = vor.u32 %v5170_v26, %v3991_v27  ;;  %v3998_v34 = vor.u32 %v5175_v30, %v3997_v28  ;;  %v4069_v35 = vld [vmem:[%s5734_s29 + $0x90] sm:$0xf]  ;;  %v5188_v37 = vld [vmem:[%s5734_s29 + $0x94] sm:$0xf]  ;;  %v4002_v38 = vor.u32 %v5171_v31, %v3999_v32  ;;  %v4077_v42 = vld [vmem:[%s5734_s29 + $0x98] sm:$0xf] }
  0x1a   : > { %474 = vmatpush.bf16.msra.mxu2 %v4030_v21  ;;  %v5192_v36 = vld [vmem:[%s5734_s29 + $0xac] sm:$0xf0]  ;;  %v4071_v41 = vld [vmem:[%s5734_s29 + $0xb0] sm:$0xf0]  ;;  %v5193_v43 = vld [vmem:[%s5734_s29 + $0xb4] sm:$0xf0] }
  0x1b   : > { %487 = vmatpush.bf16.msra.mxu3 %v4034_v25  ;;  %v4070_v40 = vor.u32 %v5192_v36, %v4069_v35  ;;  %v4074_v44 = vor.u32 %v5188_v37, %v4071_v41  ;;  %v5189_v45 = vld [vmem:[%s5734_s29 + $0x9c] sm:$0xf]  ;;  %v4037_v47 = vld [vmem:[%s5734_s29 + $0x50] sm:$0xf]  ;;  %v5180_v49 = vld [vmem:[%s5734_s29 + $0x54] sm:$0xf]  ;;  %v4078_v51 = vor.u32 %v5193_v43, %v4077_v42 }
  0x1c   : > { %v4079_v46 = vld [vmem:[%s5734_s29 + $0xb8] sm:$0xf0]  ;;  %v5184_v48 = vld [vmem:[%s5734_s29 + $0x6c] sm:$0xf0]  ;;  %v4039_v50 = vld [vmem:[%s5734_s29 + $0x70] sm:$0xf0] }
  0x1d   : > { %449 = vmatpush.bf16.msra.mxu0 %v3990_v29  ;;  %462 = vmatpush.bf16.msra.mxu1 %v3994_v33  ;;  %v4082_v52 = vor.u32 %v5189_v45, %v4079_v46  ;;  %v4038_v53 = vor.u32 %v5184_v48, %v4037_v47  ;;  %v4045_v54 = vld [vmem:[%s5734_s29 + $0x58] sm:$0xf]  ;;  %v5181_v56 = vld [vmem:[%s5734_s29 + $0x5c] sm:$0xf]  ;;  %v4042_v57 = vor.u32 %v5180_v49, %v4039_v50  ;;  %v4005_v59 = vld [vmem:[%s5734_s29 + $0x10] sm:$0xf] }
  0x1e   : > { %475 = vmatpush.bf16.msra.mxu2 %v3998_v34  ;;  %v5185_v55 = vld [vmem:[%s5734_s29 + $0x74] sm:$0xf0]  ;;  %v4047_v58 = vld [vmem:[%s5734_s29 + $0x78] sm:$0xf0]  ;;  %v5176_v60 = vld [vmem:[%s5734_s29 + $0x2c] sm:$0xf0] }
  0x1f   : > { %488 = vmatpush.bf16.msra.mxu3 %v4002_v38  ;;  %v5172_v61 = vld [vmem:[%s5734_s29 + $0x14] sm:$0xf]  ;;  %v4046_v63 = vor.u32 %v5185_v55, %v4045_v54  ;;  %v4050_v0 = vor.u32 %v5181_v56, %v4047_v58  ;;  %v4006_v1 = vor.u32 %v5176_v60, %v4005_v59  ;;  %v4013_v2 = vld [vmem:[%s5734_s29 + $0x18] sm:$0xf]  ;;  %v5173_v5 = vld [vmem:[%s5734_s29 + $0x1c] sm:$0xf] }
  0x20   : > { %4083 = vmatmul.msk.bf16.vlgmr.msra.gmra.mxu0 %vm438_vm0, %v293_v39  ;;  %4084 = vmatmul.msk.bf16.vlgmr.msra.gmra.mxu1 %vm438_vm0, %v293_v39  ;;  %v4007_v62 = vld [vmem:[%s5734_s29 + $0x30] sm:$0xf0]  ;;  %v5177_v3 = vld [vmem:[%s5734_s29 + $0x34] sm:$0xf0]  ;;  %v4015_v6 = vld [vmem:[%s5734_s29 + $0x38] sm:$0xf0] }
  0x21   : > { %499 = vmatpush.bf16.msrb.mxu0 %v4070_v40  ;;  %512 = vmatpush.bf16.msrb.mxu1 %v4074_v44  ;;  %v4010_v4 = vor.u32 %v5172_v61, %v4007_v62  ;;  %v4014_v7 = vor.u32 %v5177_v3, %v4013_v2  ;;  %v4018_v8 = vor.u32 %v5173_v5, %v4015_v6  ;;  %v5678_v47 = vmov 8192.0  }
  0x22   : > { %4085 = vmatmul.msk.bf16.vlgmr.msra.gmra.mxu2 %vm438_vm0, %v293_v39  ;;  %4086 = vmatmul.msk.bf16.vlgmr.msra.gmra.mxu3 %vm438_vm0, %v293_v39  ;;  %5474 = vrcp.f32 %v5678_v47 }
  0x23   : > { %525 = vmatpush.bf16.msrb.mxu2 %v4078_v51  ;;  %538 = vmatpush.bf16.msrb.mxu3 %v4082_v52 }
  0x25   : > { %500 = vmatpush.bf16.msrb.mxu0 %v4038_v53  ;;  %513 = vmatpush.bf16.msrb.mxu1 %v4042_v57 }
  0x27   : > { %526 = vmatpush.bf16.msrb.mxu2 %v4046_v63  ;;  %539 = vmatpush.bf16.msrb.mxu3 %v4050_v0 }
  0x28   : > { %v5475_v48 = vpop.eup %5474 }
  0x29   : > { %501 = vmatpush.bf16.msrb.mxu0 %v4006_v1  ;;  %514 = vmatpush.bf16.msrb.mxu1 %v4010_v4  ;;  %v563_v49 = vmul.f32 8192.0, %v5475_v48  ;;  %vm567_vm1 = vweird.f32 %v5475_v48 }
  0x2b   : > { %527 = vmatpush.bf16.msrb.mxu2 %v4014_v7  ;;  %540 = vmatpush.bf16.msrb.mxu3 %v4018_v8  ;;  %v564_v50 = vsub.f32 1.0, %v563_v49 }
  0x2d   : > { %v565_v54 = vmul.f32 %v5475_v48, %v564_v50 }
  0x2f   : > { %v566_v57 = vadd.f32 %v5475_v48, %v565_v54 }
  0x30   : > { %4087 = vmatmul.msk.bf16.vlgmr.msrb.gmra.mxu0 %vm438_vm0, %v293_v39  ;;  %4088 = vmatmul.msk.bf16.vlgmr.msrb.gmra.mxu1 %vm438_vm0, %v293_v39 }
  0x31   : > { %v568_v63 = vsel %vm567_vm1, %v5475_v48, %v566_v57  ;;  %v5860_v57 = vld [vmem:[%s8323_s2] sm:$0xff] }
  0x32   : > { %4089 = vmatmul.msk.bf16.vlgmr.msrb.gmra.mxu2 %vm438_vm0, %v293_v39  ;;  %4090 = vmatmul.msk.bf16.vlgmr.msrb.gmra.mxu3 %vm438_vm0, %v293_v39 }
  0x9d   : > { %v5795_v9 = vpop.f32.mrf.mxu0  ;;  %v5797_v10 = vpop.f32.mrf.mxu1 }
  0x9e   : > { %8366 = vst [vmem:[#allocation2_spill] sm:$0xff] %v5795_v9  ;;  %v546_v15 = vadd.f32 %v5797_v10, %v5795_v9  ;;  %v571_v16 = vmul.f32 %v5795_v9, %v5795_v9  ;;  %v572_v17 = vmul.f32 %v5797_v10, %v5797_v10 }
  0x9f   : > { %8367 = vst [vmem:[#allocation3_spill] sm:$0xff] %v5797_v10 }
  0xa0   : > { %v579_v21 = vadd.f32 %v572_v17, %v571_v16  ;;  %v648_v16 = vld [vmem:[%s8324_s3] sm:$0xff]  ;;  %v5679_v17 = vmov 0  }
  0xa1   : > { %5471 = vset.pattern.permute.xlu1 %v5679_v17  ;;  %5472 = vset.pattern.permute.xlu2 %v5679_v17 }
  0xa2   : > { %653 = vperm.xlu1 %5471, %v648_v16   ;;  %5473 = vset.pattern.permute.xlu0 %v5679_v17 }
  0xa5   : > { %v5799_v11 = vpop.f32.mrf.mxu2  ;;  %v5801_v12 = vpop.f32.mrf.mxu3 }
  0xa6   : > { %8368 = vst [vmem:[#allocation4_spill] sm:$0xff] %v5799_v11  ;;  %v453_v13 = vpop.f32.mrf.mxu0  ;;  %v466_v14 = vpop.f32.mrf.mxu1  ;;  %v547_v18 = vadd.f32 %v546_v15, %v5799_v11  ;;  %v573_v19 = vmul.f32 %v5799_v11, %v5799_v11  ;;  %v574_v27 = vmul.f32 %v5801_v12, %v5801_v12 }
  0xa7   : > { %8369 = vst [vmem:[#allocation5_spill] sm:$0xff] %v5801_v12 }
  0xa8   : > { %v548_v22 = vadd.f32 %v547_v18, %v5801_v12  ;;  %v580_v26 = vadd.f32 %v579_v21, %v573_v19  ;;  %v649_v19 = vld [vmem:[%s8324_s3 + $0x8] sm:$0xff] }
  0xaa   : > { %v581_v30 = vadd.f32 %v580_v26, %v574_v27  ;;  %658 = vperm.xlu1 %5471, %v649_v19   ;;  %v4153_v19 = vld [vmem:[%s8325_s4 + $0x50] sm:$0xf] }
  0xad   : > { %v479_v20 = vpop.f32.mrf.mxu2  ;;  %v492_v23 = vpop.f32.mrf.mxu3 }
  0xae   : > { %v5813_v24 = vpop.f32.mrf.mxu0  ;;  %v5815_v25 = vpop.f32.mrf.mxu1 }
  0xaf   : > { %8370 = vst [vmem:[#allocation6_spill] sm:$0xff] %v5813_v24  ;;  %v549_v28 = vadd.f32 %v548_v22, %v5813_v24  ;;  %v575_v29 = vmul.f32 %v5813_v24, %v5813_v24  ;;  %v576_v33 = vmul.f32 %v5815_v25, %v5815_v25 }
  0xb0   : > { %8371 = vst [vmem:[#allocation7_spill] sm:$0xff] %v5815_v25 }
  0xb1   : > { %v550_v31 = vadd.f32 %v549_v28, %v5815_v25  ;;  %v582_v37 = vadd.f32 %v581_v30, %v575_v29 }
  0xb3   : > { %v583_v41 = vadd.f32 %v582_v37, %v576_v33 }
  0xb5   : > { %v5823_v32 = vpop.f32.mrf.mxu2  ;;  %v5827_v34 = vpop.f32.mrf.mxu3 }
  0xb6   : > { %8372 = vst [vmem:[#allocation8_spill] sm:$0xff] %v5823_v32  ;;  %v505_v35 = vpop.f32.mrf.mxu0  ;;  %v551_v36 = vadd.f32 %v550_v31, %v5823_v32  ;;  %v518_v38 = vpop.f32.mrf.mxu1  ;;  %v577_v40 = vmul.f32 %v5823_v32, %v5823_v32  ;;  %v578_v42 = vmul.f32 %v5827_v34, %v5827_v34 }
  0xb7   : > { %8373 = vst [vmem:[#allocation9_spill] sm:$0xff] %v5827_v34 }
  0xb8   : > { %v552_v39 = vadd.f32 %v551_v36, %v5827_v34  ;;  %v584_v43 = vadd.f32 %v583_v41, %v577_v40 }
  0xba   : > { %553 = vadd.xlane.f32.xlu0 %v552_v39  ;;  %v585_v46 = vadd.f32 %v584_v43, %v578_v42 }
  0xbd   : > { %v531_v44 = vpop.f32.mrf.mxu2  ;;  %v544_v45 = vpop.f32.mrf.mxu3 }
  0xc2   : > { %586 = vadd.xlane.f32.xlu0 %v585_v46 }
 0x12d   : > { %v554_v51 = vpop.xlane.xlu0 %553 }
 0x12e   : > { %v555_v52 = vrot.slane %v554_v51, 4 }
 0x130   : > { %v556_v53 = vadd.f32 %v555_v52, %v554_v51 }
 0x132   : > { %v557_v55 = vrot.slane %v556_v53, 2 }
 0x134   : > { %v558_v56 = vadd.f32 %v557_v55, %v556_v53 }
 0x135   : > { %v587_v58 = vpop.xlane.xlu0 %586 }
 0x136   : > { %v588_v59 = vrot.slane %v587_v58, 4  ;;  %v559_v60 = vrot.slane %v558_v56, 1 }
 0x138   : > { %v589_v61 = vadd.f32 %v588_v59, %v587_v58  ;;  %v560_v62 = vadd.f32 %v559_v60, %v558_v56  ;;  %v647_v58 = vld [vmem:[%s8323_s2 + $0x8] sm:$0xf] }
 0x139   : > { %v671_v59 = vunpack.c.l.b16 %v647_v58  ;;  %v5252_v58 = vld [vmem:[%s8325_s4 + $0x1c4] sm:$0xf0] }
 0x13a   : > { %v590_v0 = vrot.slane %v589_v61, 2  ;;  %5453 = vpush %v560_v62  ;;  %v4169_v62 = vld [vmem:[%s8325_s4 + $0x70] sm:$0xf] }
 0x13b   : > { %5455 = vpush %v568_v63  ;;  %v673_v60 = vpack.c.b16 %v671_v59, %v671_v59  ;;  %v5210_v63 = vld [vmem:[%s8325_s4 + $0x74] sm:$0xf0] }
 0x13c   : > { %v591_v1 = vadd.f32 %v590_v0, %v589_v61  ;;  %v650_v61 = vld [vmem:[%s8324_s3 + $0x10] sm:$0xff]  ;;  %v4170_v0 = vor.u32 %v5210_v63, %v4169_v62  ;;  %v4193_v62 = vld [vmem:[%s8325_s4 + $0xa0] sm:$0xf] }
 0x13d   : > { %663 = vperm.xlu2 %5472, %v650_v61   ;;  %v5200_v61 = vld [vmem:[%s8325_s4 + $0x24] sm:$0xf0] }
 0x13e   : > { %v592_v2 = vrot.slane %v591_v1, 1 }
 0x140   : > { %v593_v3 = vadd.f32 %v592_v2, %v591_v1  ;;  %v4233_v1 = vld [vmem:[%s8325_s4 + $0xf0] sm:$0xf]  ;;  %v5226_v2 = vld [vmem:[%s8325_s4 + $0xf4] sm:$0xf0] }
 0x142   : > { %5457 = vpush %v593_v3  ;;  %v4161_v3 = vld [vmem:[%s8325_s4 + $0x60] sm:$0xf] }
 0x16b   : > { %s5454_s9 = spop %5453 }
 0x16c   : > { %s5456_s10 = spop %5455 }
 0x16d   : > { %s570_s11 = smul.f32 %s5456_s10, %s5454_s9 }
 0x16f   : > { %s604_s12 = smul.f32 %s570_s11, %s570_s11  ;;  %v619_v18 = vstv %s570_s11 }
 0x170   : > { %v620_v20 = vsub.f32 %v5795_v9, %v619_v18  ;;  %v621_v21 = vsub.f32 %v5797_v10, %v619_v18  ;;  %v622_v22 = vsub.f32 %v5799_v11, %v619_v18  ;;  %v623_v23 = vsub.f32 %v5801_v12, %v619_v18 }
 0x171   : > { %v624_v26 = vsub.f32 %v5813_v24, %v619_v18  ;;  %v625_v27 = vsub.f32 %v5815_v25, %v619_v18  ;;  %v626_v29 = vsub.f32 %v5823_v32, %v619_v18  ;;  %v627_v30 = vsub.f32 %v5827_v34, %v619_v18  ;;  %v5258_v18 = vld [vmem:[%s8325_s4 + $0x1f4] sm:$0xf0] }
 0x173   : > { %s5458_s13 = spop %5457 }
 0x174   : > { %s603_s14 = smul.f32 %s5458_s13, %s5456_s10 }
 0x175   : > { %s5452_s13 = smul.u32 96, %s8447_s25 }
 0x176   : > { %s605_s15 = ssub.f32 %s603_s14, %s604_s12 }
 0x177   : > { %s6188_s14 = scalar_lea.vmem %s8328_s7, %s5452_s13 }
 0x178   : > { %s606_s16 = sadd.f32 1e-05, %s605_s15 }
 0x17a   : > { %v607_v4 = vstv %s606_s16 }
 0x17b   : > { %5476 = vrsqrt.f32 %v607_v4  ;;  %vm614_vm3 = vweird.f32 %v607_v4 }
 0x181   : > { %v5477_v5 = vpop.eup %5476 }
 0x182   : > { %v609_v6 = vmul.f32 %v5477_v5, %v607_v4  ;;  %vm615_vm2 = vweird.f32 %v5477_v5  ;;  %v4234_v4 = vor.u32 %v5226_v2, %v4233_v1  ;;  %v4265_v2 = vld [vmem:[%s8325_s4 + $0x130] sm:$0xf] }
 0x183   : > { %vm616_vm4 = vmor %vm614_vm3, %vm615_vm2 }
 0x184   : > { %v610_v7 = vmul.f32 %v5477_v5, %v609_v6  ;;  %v4225_v6 = vld [vmem:[%s8325_s4 + $0xe0] sm:$0xf] }
 0x186   : > { %v611_v8 = vmul.f32 0.5, %v610_v7  ;;  %v5224_v7 = vld [vmem:[%s8325_s4 + $0xe4] sm:$0xf0] }
 0x187   : > { %v4226_v16 = vor.u32 %v5224_v7, %v4225_v6  ;;  %v5250_v6 = vld [vmem:[%s8325_s4 + $0x1b4] sm:$0xf0] }
 0x188   : > { %v612_v13 = vsub.f32 1.5, %v611_v8 }
 0x18a   : > { %v613_v14 = vmul.f32 %v5477_v5, %v612_v13  ;;  %v4297_v13 = vld [vmem:[%s8325_s4 + $0x170] sm:$0xf] }
 0x18c   : > { %v617_v15 = vsel %vm616_vm4, %v5477_v5, %v613_v14  ;;  %v5208_v5 = vld [vmem:[%s8325_s4 + $0x64] sm:$0xf0]  ;;  %v5242_v14 = vld [vmem:[%s8325_s4 + $0x174] sm:$0xf0] }
 0x18d   : > { %5459 = vpush %v617_v15  ;;  %v4162_v8 = vor.u32 %v5208_v5, %v4161_v3  ;;  %v4361_v15 = vld [vmem:[%s8325_s4 + $0x1f0] sm:$0xf]  ;;  %v4298_v17 = vor.u32 %v5242_v14, %v4297_v13  ;;  %v5234_v3 = vld [vmem:[%s8325_s4 + $0x134] sm:$0xf0] }
 0x18e   : > { %v4266_v5 = vor.u32 %v5234_v3, %v4265_v2  ;;  %v5198_v13 = vld [vmem:[%s8325_s4 + $0x14] sm:$0xf0]  ;;  %v4185_v14 = vld [vmem:[%s8325_s4 + $0x90] sm:$0xf] }
 0x18f   : > { %v4473_v2 = vld [vmem:[%s8325_s4 + $0x2d0] sm:$0xf] }
 0x1be   : > { %s5460_s21 = spop %5459 }
 0x1bf   : > { %v628_v28 = vstv %s5460_s21  ;;  %s8306_s21 = scalar_lea.vmem %s8327_s6, %s5169_s19 }
 0x1c0   : > { %v629_v31 = vmul.f32 %v628_v28, %v620_v20  ;;  %v630_v33 = vmul.f32 %v628_v28, %v621_v21  ;;  %v631_v35 = vmul.f32 %v628_v28, %v622_v22  ;;  %v632_v36 = vmul.f32 %v628_v28, %v623_v23  ;;  %v5206_v20 = vld [vmem:[%s8325_s4 + $0x54] sm:$0xf0]  ;;  %v4217_v22 = vld [vmem:[%s8325_s4 + $0xd0] sm:$0xf] }
 0x1c1   : > { %v633_v37 = vmul.f32 %v628_v28, %v624_v26  ;;  %v634_v38 = vmul.f32 %v628_v28, %v625_v27  ;;  %v635_v39 = vmul.f32 %v628_v28, %v626_v29  ;;  %v636_v40 = vmul.f32 %v628_v28, %v627_v30  ;;  %v5222_v23 = vld [vmem:[%s8325_s4 + $0xd4] sm:$0xf0]  ;;  %v4289_v26 = vld [vmem:[%s8325_s4 + $0x160] sm:$0xf]  ;;  %v5240_v27 = vld [vmem:[%s8325_s4 + $0x164] sm:$0xf0] }
 0x1c2   : > { %v637_v41 = vpack.c.bf16 %v629_v31, %v629_v31  ;;  %v638_v42 = vpack.c.bf16 %v630_v33, %v630_v33  ;;  %v639_v43 = vpack.c.bf16 %v631_v35, %v631_v35  ;;  %v640_v44 = vpack.c.bf16 %v632_v36, %v632_v36  ;;  %v4353_v28 = vld [vmem:[%s8325_s4 + $0x1e0] sm:$0xf]  ;;  %v5256_v29 = vld [vmem:[%s8325_s4 + $0x1e4] sm:$0xf0] }
 0x1c3   : > { %v641_v45 = vpack.c.bf16 %v633_v37, %v633_v37  ;;  %v642_v46 = vpack.c.bf16 %v634_v38, %v634_v38  ;;  %v643_v47 = vpack.c.bf16 %v635_v39, %v635_v39  ;;  %v644_v48 = vpack.c.bf16 %v636_v40, %v636_v40  ;;  %v4145_v36 = vld [vmem:[%s8325_s4 + $0x40] sm:$0xf]  ;;  %v5204_v37 = vld [vmem:[%s8325_s4 + $0x44] sm:$0xf0] }
 0x1c4   : > { %v683_v49 = vsel %vm681_vm5, %v637_v41, 0  ;;  %v686_v50 = vsel %vm681_vm5, %v638_v42, 0  ;;  %v689_v51 = vsel %vm681_vm5, %v639_v43, 0  ;;  %v692_v52 = vsel %vm681_vm5, %v640_v44, 0  ;;  %v4209_v38 = vld [vmem:[%s8325_s4 + $0xc0] sm:$0xf] }
 0x1c5   : > { %713 = vmatpush.bf16.msra.mxu0 %v683_v49  ;;  %731 = vmatpush.bf16.msra.mxu1 %v686_v50  ;;  %v695_v53 = vsel %vm681_vm5, %v641_v45, 0  ;;  %v698_v54 = vsel %vm681_vm5, %v642_v46, 0  ;;  %v701_v55 = vsel %vm681_vm5, %v643_v47, 0  ;;  %v704_v56 = vsel %vm681_vm5, %v644_v48, 0  ;;  %v5220_v40 = vld [vmem:[%s8325_s4 + $0xc4] sm:$0xf0] }
 0x1c6   : > { %749 = vmatpush.bf16.msra.mxu2 %v689_v51  ;;  %767 = vmatpush.bf16.msra.mxu3 %v692_v52  ;;  %v4362_v21 = vor.u32 %v5258_v18, %v4361_v15  ;;  %v4154_v30 = vor.u32 %v5206_v20, %v4153_v19  ;;  %v4290_v31 = vor.u32 %v5240_v27, %v4289_v26  ;;  %v4281_v42 = vld [vmem:[%s8325_s4 + $0x150] sm:$0xf]  ;;  %v5238_v43 = vld [vmem:[%s8325_s4 + $0x154] sm:$0xf0]  ;;  %v4257_v18 = vld [vmem:[%s8325_s4 + $0x120] sm:$0xf] }
 0x1c7   : > { %v4354_v33 = vor.u32 %v5256_v29, %v4353_v28  ;;  %v4218_v35 = vor.u32 %v5222_v23, %v4217_v22  ;;  %v4146_v39 = vor.u32 %v5204_v37, %v4145_v36  ;;  %v4210_v41 = vor.u32 %v5220_v40, %v4209_v38  ;;  %v4345_v44 = vld [vmem:[%s8325_s4 + $0x1d0] sm:$0xf]  ;;  %v5254_v46 = vld [vmem:[%s8325_s4 + $0x1d4] sm:$0xf0]  ;;  %v5232_v19 = vld [vmem:[%s8325_s4 + $0x124] sm:$0xf0] }
 0x1c8   : > { %4095 = vmatmul.msk.bf16.vlgmr.msra.gmra.mxu0 %vm674_vm6, %v5860_v57  ;;  %4097 = vmatmul.msk.bf16.vlgmr.msra.gmra.mxu1 %vm674_vm6, %v5860_v57  ;;  %v4282_v45 = vor.u32 %v5238_v43, %v4281_v42  ;;  %v4346_v47 = vor.u32 %v5254_v46, %v4345_v44  ;;  %v4137_v48 = vld [vmem:[%s8325_s4 + $0x30] sm:$0xf]  ;;  %v5202_v49 = vld [vmem:[%s8325_s4 + $0x34] sm:$0xf0]  ;;  %v4321_v20 = vld [vmem:[%s8325_s4 + $0x1a0] sm:$0xf] }
 0x1c9   : > { %785 = vmatpush.bf16.msrb.mxu0 %v695_v53  ;;  %803 = vmatpush.bf16.msrb.mxu1 %v698_v54  ;;  %v4201_v50 = vld [vmem:[%s8325_s4 + $0xb0] sm:$0xf]  ;;  %v4138_v51 = vor.u32 %v5202_v49, %v4137_v48  ;;  %v5218_v52 = vld [vmem:[%s8325_s4 + $0xb4] sm:$0xf0]  ;;  %v4273_v54 = vld [vmem:[%s8325_s4 + $0x140] sm:$0xf] }
 0x1ca   : > { %821 = vmatpush.bf16.msrb.mxu2 %v701_v55  ;;  %839 = vmatpush.bf16.msrb.mxu3 %v704_v56  ;;  %v4202_v53 = vor.u32 %v5218_v52, %v4201_v50  ;;  %v5236_v55 = vld [vmem:[%s8325_s4 + $0x144] sm:$0xf0]  ;;  %v4337_v56 = vld [vmem:[%s8325_s4 + $0x1c0] sm:$0xf]  ;;  %v4313_v36 = vld [vmem:[%s8325_s4 + $0x190] sm:$0xf] }
 0x1cb   : > { %4099 = vmatmul.msk.bf16.vlgmr.msra.gmra.mxu2 %vm674_vm6, %v5860_v57  ;;  %4101 = vmatmul.msk.bf16.vlgmr.msra.gmra.mxu3 %vm674_vm6, %v5860_v57  ;;  %v4338_v59 = vor.u32 %v5252_v58, %v4337_v56  ;;  %v5248_v22 = vld [vmem:[%s8325_s4 + $0x1a4] sm:$0xf0]  ;;  %v4113_v26 = vld [vmem:[%s8325_s4] sm:$0xf]  ;;  %v5246_v38 = vld [vmem:[%s8325_s4 + $0x194] sm:$0xf0] }
 0x1cc   : > { %v4322_v23 = vor.u32 %v5248_v22, %v4321_v20  ;;  %v5196_v27 = vld [vmem:[%s8325_s4 + $0x4] sm:$0xf0]  ;;  %v4177_v28 = vld [vmem:[%s8325_s4 + $0x80] sm:$0xf]  ;;  %v4425_v40 = vld [vmem:[%s8325_s4 + $0x270] sm:$0xf] }
 0x1cd   : > { %1710 = vmatpush.bf16.msra.mxu0 %v4170_v0  ;;  %1728 = vmatpush.bf16.msra.mxu1 %v4234_v4  ;;  %v5216_v0 = vld [vmem:[%s8325_s4 + $0xa4] sm:$0xf0]  ;;  %v4329_v4 = vld [vmem:[%s8325_s4 + $0x1b0] sm:$0xf]  ;;  %v4114_v29 = vor.u32 %v5196_v27, %v4113_v26  ;;  %v5290_v44 = vld [vmem:[%s8325_s4 + $0x2f4] sm:$0xf0] }
 0x1ce   : > { %1746 = vmatpush.bf16.msra.mxu2 %v4298_v17  ;;  %1764 = vmatpush.bf16.msra.mxu3 %v4362_v21  ;;  %v4194_v1 = vor.u32 %v5216_v0, %v4193_v62  ;;  %v4330_v7 = vor.u32 %v5250_v6, %v4329_v4  ;;  %v4258_v21 = vor.u32 %v5232_v19, %v4257_v18  ;;  %v4489_v42 = vld [vmem:[%s8325_s4 + $0x2f0] sm:$0xf]  ;;  %v4241_v46 = vld [vmem:[%s8325_s4 + $0x100] sm:$0xf]  ;;  %v5244_v50 = vld [vmem:[%s8325_s4 + $0x184] sm:$0xf0] }
 0x1cf   : > { %v4305_v48 = vld [vmem:[%s8325_s4 + $0x180] sm:$0xf]  ;;  %v5288_v56 = vld [vmem:[%s8325_s4 + $0x2e4] sm:$0xf0]  ;;  %v4553_v58 = vld [vmem:[%s8325_s4 + $0x370] sm:$0xf] }
 0x1d0   : > { %v4417_v52 = vld [vmem:[%s8325_s4 + $0x260] sm:$0xf]  ;;  %v5322_v62 = vld [vmem:[%s8325_s4 + $0x3f4] sm:$0xf0]  ;;  %v4409_v0 = vld [vmem:[%s8325_s4 + $0x250] sm:$0xf] }
 0x1d1   : > { %1711 = vmatpush.bf16.msra.mxu0 %v4162_v8  ;;  %1729 = vmatpush.bf16.msra.mxu1 %v4226_v16  ;;  %v4121_v8 = vld [vmem:[%s8325_s4 + $0x10] sm:$0xf]  ;;  %v5214_v16 = vld [vmem:[%s8325_s4 + $0x94] sm:$0xf0]  ;;  %v4545_v6 = vld [vmem:[%s8325_s4 + $0x360] sm:$0xf] }
 0x1d2   : > { %1747 = vmatpush.bf16.msra.mxu2 %v4290_v31  ;;  %1765 = vmatpush.bf16.msra.mxu3 %v4354_v33  ;;  %v4122_v15 = vor.u32 %v5198_v13, %v4121_v8  ;;  %v4186_v17 = vor.u32 %v5214_v16, %v4185_v14  ;;  %v4249_v33 = vld [vmem:[%s8325_s4 + $0x110] sm:$0xf]  ;;  %v5286_v4 = vld [vmem:[%s8325_s4 + $0x2d4] sm:$0xf0]  ;;  %v4609_v8 = vld [vmem:[%s8325_s4 + $0x3e0] sm:$0xf] }
 0x1d3   : > { %v5320_v14 = vld [vmem:[%s8325_s4 + $0x3e4] sm:$0xf0]  ;;  %v4465_v19 = vld [vmem:[%s8325_s4 + $0x2c0] sm:$0xf]  ;;  %v5302_v26 = vld [vmem:[%s8325_s4 + $0x354] sm:$0xf0] }
 0x1d4   : > { %v4610_v16 = vor.u32 %v5320_v14, %v4609_v8  ;;  %v5268_v18 = vld [vmem:[%s8325_s4 + $0x244] sm:$0xf0]  ;;  %v4601_v27 = vld [vmem:[%s8325_s4 + $0x3d0] sm:$0xf] }
 0x1d5   : > { %1712 = vmatpush.bf16.msra.mxu0 %v4154_v30  ;;  %1730 = vmatpush.bf16.msra.mxu1 %v4218_v35  ;;  %v5212_v30 = vld [vmem:[%s8325_s4 + $0x84] sm:$0xf0]  ;;  %v5230_v35 = vld [vmem:[%s8325_s4 + $0x114] sm:$0xf0] }
 0x1d6   : > { %1748 = vmatpush.bf16.msra.mxu2 %v4282_v45  ;;  %1766 = vmatpush.bf16.msra.mxu3 %v4346_v47  ;;  %v4178_v31 = vor.u32 %v5212_v30, %v4177_v28  ;;  %v4250_v37 = vor.u32 %v5230_v35, %v4249_v33  ;;  %v4490_v45 = vor.u32 %v5290_v44, %v4489_v42  ;;  %v5228_v47 = vld [vmem:[%s8325_s4 + $0x104] sm:$0xf0]  ;;  %v4393_v35 = vld [vmem:[%s8325_s4 + $0x230] sm:$0xf] }
 0x1d7   : > { %v4242_v49 = vor.u32 %v5228_v47, %v4241_v46  ;;  %v5300_v44 = vld [vmem:[%s8325_s4 + $0x344] sm:$0xf0] }
 0x1d8   : > { %4096 = vmatmul.msk.bf16.gmra.mxu0 %vm674_vm6, %v673_v60  ;;  %4098 = vmatmul.msk.bf16.gmra.mxu1 %vm674_vm6, %v673_v60 }
 0x1d9   : > { %1713 = vmatpush.bf16.msra.mxu0 %v4146_v39  ;;  %1731 = vmatpush.bf16.msra.mxu1 %v4210_v41  ;;  %v4314_v39 = vor.u32 %v5246_v38, %v4313_v36  ;;  %v5274_v41 = vld [vmem:[%s8325_s4 + $0x274] sm:$0xf0] }
 0x1da   : > { %1767 = vmatpush.bf16.msra.mxu3 %v4338_v59  ;;  %v4426_v43 = vor.u32 %v5274_v41, %v4425_v40  ;;  %v5306_v59 = vld [vmem:[%s8325_s4 + $0x374] sm:$0xf0] }
 0x1db   : > { %4100 = vmatmul.msk.bf16.gmra.mxu2 %vm674_vm6, %v673_v60  ;;  %4102 = vmatmul.msk.bf16.gmra.mxu3 %vm674_vm6, %v673_v60  ;;  %v5266_v36 = vld [vmem:[%s8325_s4 + $0x234] sm:$0xf0] }
 0x1dc   : > { %v4394_v40 = vor.u32 %v5266_v36, %v4393_v35  ;;  %v5282_v41 = vld [vmem:[%s8325_s4 + $0x2b4] sm:$0xf0] }
 0x1dd   : > { %1714 = vmatpush.bf16.msra.mxu0 %v4138_v51  ;;  %1732 = vmatpush.bf16.msra.mxu1 %v4202_v53  ;;  %v4306_v51 = vor.u32 %v5244_v50, %v4305_v48  ;;  %v5272_v53 = vld [vmem:[%s8325_s4 + $0x264] sm:$0xf0]  ;;  %v4385_v50 = vld [vmem:[%s8325_s4 + $0x220] sm:$0xf] }
 0x1de   : > { %1768 = vmatpush.bf16.msra.mxu3 %v4330_v7  ;;  %v5304_v7 = vld [vmem:[%s8325_s4 + $0x364] sm:$0xf0] }
 0x1df   : > { %v4546_v13 = vor.u32 %v5304_v7, %v4545_v6  ;;  %v5316_v48 = vld [vmem:[%s8325_s4 + $0x3c4] sm:$0xf0]  ;;  %v5262_v6 = vld [vmem:[%s8325_s4 + $0x214] sm:$0xf0]  ;;  %v4441_v7 = vld [vmem:[%s8325_s4 + $0x290] sm:$0xf] }
 0x1e1   : > { %1733 = vmatpush.bf16.msra.mxu1 %v4194_v1  ;;  %v5270_v1 = vld [vmem:[%s8325_s4 + $0x254] sm:$0xf0] }
 0x1e2   : > { %1769 = vmatpush.bf16.msra.mxu3 %v4322_v23  ;;  %v4410_v3 = vor.u32 %v5270_v1, %v4409_v0  ;;  %v4537_v23 = vld [vmem:[%s8325_s4 + $0x350] sm:$0xf] }
 0x1e3   : > { %v4538_v28 = vor.u32 %v5302_v26, %v4537_v23  ;;  %v5312_v26 = vld [vmem:[%s8325_s4 + $0x3a4] sm:$0xf0] }
 0x1e5   : > { %1734 = vmatpush.bf16.msra.mxu1 %v4186_v17  ;;  %v4401_v17 = vld [vmem:[%s8325_s4 + $0x240] sm:$0xf] }
 0x1e6   : > { %1770 = vmatpush.bf16.msra.mxu3 %v4314_v39  ;;  %v4402_v20 = vor.u32 %v5268_v18, %v4401_v17 }
 0x1e8   : > { %4103 = vmatmul.msk.bf16.vlgmr.msrb.gmra.mxu0 %vm674_vm6, %v5860_v57  ;;  %4105 = vmatmul.msk.bf16.vlgmr.msrb.gmra.mxu1 %vm674_vm6, %v5860_v57 }
 0x1e9   : > { %1735 = vmatpush.bf16.msra.mxu1 %v4178_v31 }
 0x1ea   : > { %1771 = vmatpush.bf16.msra.mxu3 %v4306_v51  ;;  %v5264_v51 = vld [vmem:[%s8325_s4 + $0x224] sm:$0xf0] }
 0x1eb   : > { %4107 = vmatmul.msk.bf16.vlgmr.msrb.gmra.mxu2 %vm674_vm6, %v5860_v57  ;;  %4109 = vmatmul.msk.bf16.vlgmr.msrb.gmra.mxu3 %vm674_vm6, %v5860_v57  ;;  %v4274_v57 = vor.u32 %v5236_v55, %v4273_v54  ;;  %v4481_v54 = vld [vmem:[%s8325_s4 + $0x2e0] sm:$0xf]  ;;  %v4418_v55 = vor.u32 %v5272_v53, %v4417_v52  ;;  %v4386_v53 = vor.u32 %v5264_v51, %v4385_v50 }
 0x1ec   : > { %v4449_v52 = vld [vmem:[%s8325_s4 + $0x2a0] sm:$0xf] }
 0x1ed   : > { %1749 = vmatpush.bf16.msra.mxu2 %v4274_v57  ;;  %1800 = vmatpush.bf16.msrb.mxu1 %v4490_v45  ;;  %v4482_v57 = vor.u32 %v5288_v56, %v4481_v54  ;;  %v4593_v45 = vld [vmem:[%s8325_s4 + $0x3c0] sm:$0xf]  ;;  %v5280_v54 = vld [vmem:[%s8325_s4 + $0x2a4] sm:$0xf0] }
 0x1ee   : > { %v4450_v56 = vor.u32 %v5280_v54, %v4449_v52 }
 0x1f1   : > { %1750 = vmatpush.bf16.msra.mxu2 %v4266_v5  ;;  %1801 = vmatpush.bf16.msrb.mxu1 %v4482_v57  ;;  %v4474_v5 = vor.u32 %v5286_v4, %v4473_v2  ;;  %v4521_v57 = vld [vmem:[%s8325_s4 + $0x330] sm:$0xf] }
 0x1f5   : > { %1751 = vmatpush.bf16.msra.mxu2 %v4258_v21  ;;  %1802 = vmatpush.bf16.msrb.mxu1 %v4474_v5  ;;  %v5284_v21 = vld [vmem:[%s8325_s4 + $0x2c4] sm:$0xf0]  ;;  %v4377_v5 = vld [vmem:[%s8325_s4 + $0x210] sm:$0xf] }
 0x1f6   : > { %v4466_v22 = vor.u32 %v5284_v21, %v4465_v19  ;;  %v4378_v14 = vor.u32 %v5262_v6, %v4377_v5  ;;  %v4513_v19 = vld [vmem:[%s8325_s4 + $0x320] sm:$0xf] }
 0x1f7   : > { %v4577_v21 = vld [vmem:[%s8325_s4 + $0x3a0] sm:$0xf] }
 0x1f8   : > { %4104 = vmatmul.msk.bf16.gmra.mxu0 %vm674_vm6, %v673_v60  ;;  %4106 = vmatmul.msk.bf16.gmra.mxu1 %vm674_vm6, %v673_v60 }
 0x1f9   : > { %1752 = vmatpush.bf16.msra.mxu2 %v4250_v37  ;;  %1803 = vmatpush.bf16.msrb.mxu1 %v4466_v22  ;;  %v4457_v37 = vld [vmem:[%s8325_s4 + $0x2b0] sm:$0xf] }
 0x1fa   : > { %v4458_v42 = vor.u32 %v5282_v41, %v4457_v37  ;;  %v4433_v37 = vld [vmem:[%s8325_s4 + $0x280] sm:$0xf]  ;;  %v4505_v41 = vld [vmem:[%s8325_s4 + $0x310] sm:$0xf] }
 0x1fb   : > { %4108 = vmatmul.msk.bf16.gmra.mxu2 %vm674_vm6, %v673_v60  ;;  %4110 = vmatmul.msk.bf16.gmra.mxu3 %vm674_vm6, %v673_v60  ;;  %v4129_v60 = vld [vmem:[%s8325_s4 + $0x20] sm:$0xf] }
 0x1fc   : > { %v4130_v63 = vor.u32 %v5200_v61, %v4129_v60  ;;  %v4617_v60 = vld [vmem:[%s8325_s4 + $0x3f0] sm:$0xf]  ;;  %v4554_v61 = vor.u32 %v5306_v59, %v4553_v58  ;;  %v5298_v58 = vld [vmem:[%s8325_s4 + $0x334] sm:$0xf0] }
 0x1fd   : > { %1753 = vmatpush.bf16.msra.mxu2 %v4242_v49  ;;  %1804 = vmatpush.bf16.msrb.mxu1 %v4458_v42  ;;  %v4594_v49 = vor.u32 %v5316_v48, %v4593_v45  ;;  %v4585_v59 = vld [vmem:[%s8325_s4 + $0x3b0] sm:$0xf]  ;;  %v5294_v42 = vld [vmem:[%s8325_s4 + $0x314] sm:$0xf0] }
 0x1fe   : > { %1715 = vmatpush.bf16.msra.mxu0 %v4130_v63  ;;  %v4618_v63 = vor.u32 %v5322_v62, %v4617_v60  ;;  %v4522_v62 = vor.u32 %v5298_v58, %v4521_v57  ;;  %v4506_v48 = vor.u32 %v5294_v42, %v4505_v41  ;;  %v4171_v57 = vld [vmem:[%s8325_s4 + $0x78] sm:$0xf0]  ;;  %v5225_v58 = vld [vmem:[%s8325_s4 + $0xf4] sm:$0xf] }
 0x1ff   : > { %v5205_v42 = vld [vmem:[%s8325_s4 + $0x54] sm:$0xf] }
 0x200   : > { %1836 = vmatpush.bf16.msrb.mxu3 %v4618_v63  ;;  %v5314_v63 = vld [vmem:[%s8325_s4 + $0x3b4] sm:$0xf0] }
 0x201   : > { %1818 = vmatpush.bf16.msrb.mxu2 %v4554_v61  ;;  %1805 = vmatpush.bf16.msrb.mxu1 %v4450_v56  ;;  %v4586_v4 = vor.u32 %v5314_v63, %v4585_v59  ;;  %v5209_v56 = vld [vmem:[%s8325_s4 + $0x74] sm:$0xf] }
 0x202   : > { %1716 = vmatpush.bf16.msra.mxu0 %v4122_v15  ;;  %v6144_v15 = vpop.permute.xlu1 %653 }
 0x204   : > { %1837 = vmatpush.bf16.msrb.mxu3 %v4610_v16  ;;  %v5278_v16 = vld [vmem:[%s8325_s4 + $0x294] sm:$0xf0] }
 0x205   : > { %1819 = vmatpush.bf16.msrb.mxu2 %v4546_v13  ;;  %v4442_v18 = vor.u32 %v5278_v16, %v4441_v7  ;;  %v5308_v7 = vld [vmem:[%s8325_s4 + $0x384] sm:$0xf0] }
 0x206   : > { %1717 = vmatpush.bf16.msra.mxu0 %v4114_v29  ;;  %v5318_v29 = vld [vmem:[%s8325_s4 + $0x3d4] sm:$0xf0] }
 0x207   : > { %v4602_v33 = vor.u32 %v5318_v29, %v4601_v27  ;;  %1806 = vmatpush.bf16.msrb.mxu1 %v4442_v18  ;;  %v4369_v29 = vld [vmem:[%s8325_s4 + $0x200] sm:$0xf]  ;;  %v5207_v18 = vld [vmem:[%s8325_s4 + $0x64] sm:$0xf] }
 0x209   : > { %1820 = vmatpush.bf16.msrb.mxu2 %v4538_v28  ;;  %1838 = vmatpush.bf16.msrb.mxu3 %v4602_v33  ;;  %v4578_v28 = vor.u32 %v5312_v26, %v4577_v21  ;;  %v5223_v21 = vld [vmem:[%s8325_s4 + $0xe4] sm:$0xf] }
 0x20a   : > { %1782 = vmatpush.bf16.msrb.mxu0 %v4426_v43  ;;  %v4529_v43 = vld [vmem:[%s8325_s4 + $0x340] sm:$0xf] }
 0x20b   : > { %v4530_v47 = vor.u32 %v5300_v44, %v4529_v43  ;;  %v4569_v43 = vld [vmem:[%s8325_s4 + $0x390] sm:$0xf] }
 0x20d   : > { %1821 = vmatpush.bf16.msrb.mxu2 %v4530_v47  ;;  %1839 = vmatpush.bf16.msrb.mxu3 %v4594_v49  ;;  %v5310_v49 = vld [vmem:[%s8325_s4 + $0x394] sm:$0xf0] }
 0x20e   : > { %1783 = vmatpush.bf16.msrb.mxu0 %v4418_v55  ;;  %v6218_v55 = vpop.permute.xlu1 %658  ;;  %v4570_v54 = vor.u32 %v5310_v49, %v4569_v43  ;;  %v4155_v43 = vld [vmem:[%s8325_s4 + $0x58] sm:$0xf0] }
 0x20f   : > { %v4158_v49 = vor.u32 %v5205_v42, %v4155_v43 }
 0x211   : > { %1822 = vmatpush.bf16.msrb.mxu2 %v4522_v62  ;;  %1840 = vmatpush.bf16.msrb.mxu3 %v4586_v4  ;;  %v4235_v62 = vld [vmem:[%s8325_s4 + $0xf8] sm:$0xf0] }
 0x212   : > { %1784 = vmatpush.bf16.msrb.mxu0 %v4410_v3 }
 0x215   : > { %1841 = vmatpush.bf16.msrb.mxu3 %v4578_v28  ;;  %v4299_v28 = vld [vmem:[%s8325_s4 + $0x178] sm:$0xf0] }
 0x216   : > { %1785 = vmatpush.bf16.msrb.mxu0 %v4402_v20  ;;  %v5296_v20 = vld [vmem:[%s8325_s4 + $0x324] sm:$0xf0] }
 0x217   : > { %v4514_v23 = vor.u32 %v5296_v20, %v4513_v19  ;;  %v4163_v19 = vld [vmem:[%s8325_s4 + $0x68] sm:$0xf0] }
 0x218   : > { %v4166_v20 = vor.u32 %v5207_v18, %v4163_v19 }
 0x219   : > { %1823 = vmatpush.bf16.msrb.mxu2 %v4514_v23  ;;  %1842 = vmatpush.bf16.msrb.mxu3 %v4570_v54  ;;  %v4291_v54 = vld [vmem:[%s8325_s4 + $0x168] sm:$0xf0] }
 0x21a   : > { %1786 = vmatpush.bf16.msrb.mxu0 %v4394_v40 }
 0x21d   : > { %1824 = vmatpush.bf16.msrb.mxu2 %v4506_v48 }
 0x21e   : > { %1787 = vmatpush.bf16.msrb.mxu0 %v4386_v53 }
 0x222   : > { %1788 = vmatpush.bf16.msrb.mxu0 %v4378_v14 }
 0x245   : > { %v715_v30 = vpop.f32.mrf.mxu0  ;;  %v733_v31 = vpop.f32.mrf.mxu1 }
 0x246   : > { %v716_v38 = vadd.f32 %v715_v30, %v6144_v15  ;;  %v734_v39 = vadd.f32 %v733_v31, %v6144_v15  ;;  %v5260_v30 = vld [vmem:[%s8325_s4 + $0x204] sm:$0xf0] }
 0x247   : > { %v4370_v36 = vor.u32 %v5260_v30, %v4369_v29  ;;  %v5257_v29 = vld [vmem:[%s8325_s4 + $0x1f4] sm:$0xf] }
 0x248   : > { %v6199_v46 = vpack.c.bf16 %v734_v39, %v716_v38  ;;  %v5276_v38 = vld [vmem:[%s8325_s4 + $0x284] sm:$0xf0]  ;;  %v6279_v39 = vpop.permute.xlu2 %663 }
 0x249   : > { %v4434_v40 = vor.u32 %v5276_v38, %v4433_v37  ;;  %1789 = vmatpush.bf16.msrb.mxu0 %v4370_v36 }
 0x24a   : > { %862 = vst [vmem:[%s6188_s14] sm:$0xff] %v6199_v46  ;;  %v1014_v27 = vunpack.c.l.b16 %v6199_v46  ;;  %v1015_v31 = vunpack.c.h.b16 %v6199_v46 }
 0x24b   : > { %1807 = vmatpush.bf16.msrb.mxu1 %v4434_v40 }
 0x24d   : > { %v717_v2 = vpop.f32.mrf.mxu0  ;;  %v735_v3 = vpop.f32.mrf.mxu1 }
 0x24e   : > { %v751_v60 = vpop.f32.mrf.mxu2  ;;  %v769_v61 = vpop.f32.mrf.mxu3  ;;  %v718_v8 = vadd.f32 %v717_v2, %v6218_v55  ;;  %v736_v13 = vadd.f32 %v735_v3, %v6218_v55  ;;  %v5292_v2 = vld [vmem:[%s8325_s4 + $0x304] sm:$0xf0]  ;;  %v4561_v3 = vld [vmem:[%s8325_s4 + $0x380] sm:$0xf] }
 0x24f   : > { %v752_v0 = vadd.f32 %v751_v60, %v6144_v15  ;;  %v770_v1 = vadd.f32 %v769_v61, %v6144_v15  ;;  %v4174_v61 = vor.u32 %v5209_v56, %v4171_v57  ;;  %v4562_v16 = vor.u32 %v5308_v7, %v4561_v3  ;;  %v5255_v56 = vld [vmem:[%s8325_s4 + $0x1e4] sm:$0xf] }
 0x250   : > { %v854_v22 = vpack.c.bf16 %v736_v13, %v718_v8 }
 0x251   : > { %v6248_v17 = vpack.c.bf16 %v770_v1, %v752_v0  ;;  %v4238_v0 = vor.u32 %v5225_v58, %v4235_v62  ;;  %v4497_v1 = vld [vmem:[%s8325_s4 + $0x300] sm:$0xf]  ;;  %1843 = vmatpush.bf16.msrb.mxu3 %v4562_v16  ;;  %v4355_v58 = vld [vmem:[%s8325_s4 + $0x1e8] sm:$0xf0] }
 0x252   : > { %866 = vst [vmem:[%s6188_s14 + $0x20] sm:$0xff] %v854_v22  ;;  %v1022_v33 = vunpack.c.l.b16 %v854_v22  ;;  %v1023_v35 = vunpack.c.h.b16 %v854_v22  ;;  %v4498_v6 = vor.u32 %v5292_v2, %v4497_v1  ;;  %v5219_v1 = vld [vmem:[%s8325_s4 + $0xc4] sm:$0xf]  ;;  %v4211_v2 = vld [vmem:[%s8325_s4 + $0xc8] sm:$0xf0] }
 0x253   : > { %863 = vst [vmem:[%s6188_s14 + $0x8] sm:$0xff] %v6248_v17  ;;  %v1016_v4 = vunpack.c.l.b16 %v6248_v17  ;;  %v1017_v8 = vunpack.c.h.b16 %v6248_v17  ;;  %v4227_v17 = vld [vmem:[%s8325_s4 + $0xe8] sm:$0xf0]  ;;  %v4214_v3 = vor.u32 %v5219_v1, %v4211_v2 }
 0x254   : > { %v6290_v46 = vpack.c.b16 %v1022_v33, %v1014_v27  ;;  %v6292_v47 = vpack.c.b16 %v1023_v35, %v1015_v31  ;;  %1825 = vmatpush.bf16.msrb.mxu2 %v4498_v6  ;;  %v4230_v26 = vor.u32 %v5223_v21, %v4227_v17  ;;  %v5241_v27 = vld [vmem:[%s8325_s4 + $0x174] sm:$0xf]  ;;  %v4363_v35 = vld [vmem:[%s8325_s4 + $0x1f8] sm:$0xf0] }
 0x255   : > { %v720_v52 = vpop.f32.mrf.mxu0  ;;  %v738_v53 = vpop.f32.mrf.mxu1  ;;  %v4302_v33 = vor.u32 %v5241_v27, %v4299_v28  ;;  %v4366_v41 = vor.u32 %v5257_v29, %v4363_v35  ;;  %v5253_v6 = vld [vmem:[%s8325_s4 + $0x1d4] sm:$0xf]  ;;  %v4139_v21 = vld [vmem:[%s8325_s4 + $0x38] sm:$0xf0] }
 0x256   : > { %v753_v44 = vpop.f32.mrf.mxu2  ;;  %v771_v45 = vpop.f32.mrf.mxu3  ;;  %1718 = vmatmul.bf16.vlgmr.msra.gmra.mxu0 %v6290_v46  ;;  %1736 = vmatmul.bf16.vlgmr.msra.gmra.mxu1 %v6292_v47  ;;  %v721_v59 = vadd.f32 %v720_v52, %v6279_v39  ;;  %v739_v60 = vadd.f32 %v738_v53, %v6279_v39  ;;  %v5239_v53 = vld [vmem:[%s8325_s4 + $0x164] sm:$0xf]  ;;  %v5217_v17 = vld [vmem:[%s8325_s4 + $0xb4] sm:$0xf]  ;;  %v4203_v29 = vld [vmem:[%s8325_s4 + $0xb8] sm:$0xf0] }
 0x257   : > { %v754_v50 = vadd.f32 %v753_v44, %v6218_v55  ;;  %v772_v51 = vadd.f32 %v771_v45, %v6218_v55  ;;  %1854 = vmatpush.bf16.msra.mxu0 %v4174_v61  ;;  %1872 = vmatpush.bf16.msra.mxu1 %v4238_v0  ;;  %v5221_v44 = vld [vmem:[%s8325_s4 + $0xd4] sm:$0xf]  ;;  %v4294_v57 = vor.u32 %v5239_v53, %v4291_v54  ;;  %v4147_v61 = vld [vmem:[%s8325_s4 + $0x48] sm:$0xf0]  ;;  %v4267_v54 = vld [vmem:[%s8325_s4 + $0x138] sm:$0xf0] }
 0x258   : > { %v858_v5 = vpack.c.bf16 %v739_v60, %v721_v59  ;;  %v4358_v59 = vor.u32 %v5255_v56, %v4355_v58  ;;  %v5203_v60 = vld [vmem:[%s8325_s4 + $0x44] sm:$0xf]  ;;  %v5233_v53 = vld [vmem:[%s8325_s4 + $0x134] sm:$0xf] }
 0x259   : > { %v855_v63 = vpack.c.bf16 %v772_v51, %v754_v50  ;;  %v4219_v50 = vld [vmem:[%s8325_s4 + $0xd8] sm:$0xf0]  ;;  %v4150_v0 = vor.u32 %v5203_v60, %v4147_v61  ;;  %v5249_v56 = vld [vmem:[%s8325_s4 + $0x1b4] sm:$0xf] }
 0x25a   : > { %870 = vst [vmem:[%s6188_s14 + $0x40] sm:$0xff] %v858_v5  ;;  %v1030_v45 = vunpack.c.l.b16 %v858_v5  ;;  %v1031_v48 = vunpack.c.h.b16 %v858_v5  ;;  %v4222_v52 = vor.u32 %v5221_v44, %v4219_v50  ;;  %v4283_v5 = vld [vmem:[%s8325_s4 + $0x158] sm:$0xf0]  ;;  %v4131_v44 = vld [vmem:[%s8325_s4 + $0x28] sm:$0xf0] }
 0x25b   : > { %867 = vst [vmem:[%s6188_s14 + $0x28] sm:$0xff] %v855_v63  ;;  %v1024_v13 = vunpack.c.l.b16 %v855_v63  ;;  %v1025_v14 = vunpack.c.h.b16 %v855_v63  ;;  %1855 = vmatpush.bf16.msra.mxu0 %v4166_v20  ;;  %1873 = vmatpush.bf16.msra.mxu1 %v4230_v26  ;;  %v5201_v20 = vld [vmem:[%s8325_s4 + $0x34] sm:$0xf]  ;;  %v4331_v60 = vld [vmem:[%s8325_s4 + $0x1b8] sm:$0xf0] }
 0x25c   : > { %v6397_v62 = vpack.c.b16 %v1030_v45, %v1030_v45  ;;  %v6399_v63 = vpack.c.b16 %v1031_v48, %v1031_v48  ;;  %v4142_v28 = vor.u32 %v5201_v20, %v4139_v21  ;;  %v5215_v45 = vld [vmem:[%s8325_s4 + $0xa4] sm:$0xf]  ;;  %v4195_v48 = vld [vmem:[%s8325_s4 + $0xa8] sm:$0xf0] }
 0x25d   : > { %v6343_v22 = vpack.c.b16 %v1024_v13, %v1016_v4  ;;  %v6345_v23 = vpack.c.b16 %v1025_v14, %v1017_v8  ;;  %v722_v38 = vpop.f32.mrf.mxu0  ;;  %v740_v40 = vpop.f32.mrf.mxu1  ;;  %v5237_v4 = vld [vmem:[%s8325_s4 + $0x154] sm:$0xf]  ;;  %v4347_v14 = vld [vmem:[%s8325_s4 + $0x1d8] sm:$0xf0]  ;;  %v5247_v21 = vld [vmem:[%s8325_s4 + $0x1a4] sm:$0xf] }
 0x25e   : > { %v756_v30 = vpop.f32.mrf.mxu2  ;;  %v774_v31 = vpop.f32.mrf.mxu3  ;;  %v4286_v13 = vor.u32 %v5237_v4, %v4283_v5  ;;  %v4350_v19 = vor.u32 %v5253_v6, %v4347_v14  ;;  %v5251_v38 = vld [vmem:[%s8325_s4 + $0x1c4] sm:$0xf]  ;;  %v4339_v40 = vld [vmem:[%s8325_s4 + $0x1c8] sm:$0xf0]  ;;  %v5197_v4 = vld [vmem:[%s8325_s4 + $0x14] sm:$0xf] }
 0x25f   : > { %v757_v36 = vadd.f32 %v756_v30, %v6279_v39  ;;  %v775_v37 = vadd.f32 %v774_v31, %v6279_v39  ;;  %1754 = vmatmul.bf16.vlgmr.msra.gmra.mxu2 %v6343_v22  ;;  %1772 = vmatmul.bf16.vlgmr.msra.gmra.mxu3 %v6345_v23  ;;  %v5235_v30 = vld [vmem:[%s8325_s4 + $0x144] sm:$0xf]  ;;  %v4275_v31 = vld [vmem:[%s8325_s4 + $0x148] sm:$0xf0]  ;;  %v4342_v43 = vor.u32 %v5251_v38, %v4339_v40  ;;  %v4123_v5 = vld [vmem:[%s8325_s4 + $0x18] sm:$0xf0] }
 0x260   : > { %1890 = vmatpush.bf16.msra.mxu2 %v4302_v33  ;;  %1908 = vmatpush.bf16.msra.mxu3 %v4366_v41  ;;  %v5199_v41 = vld [vmem:[%s8325_s4 + $0x24] sm:$0xf]  ;;  %v5213_v6 = vld [vmem:[%s8325_s4 + $0x94] sm:$0xf] }
 0x261   : > { %v6375_v51 = vpack.c.bf16 %v775_v37, %v757_v36  ;;  %1856 = vmatpush.bf16.msra.mxu0 %v4158_v49  ;;  %1874 = vmatpush.bf16.msra.mxu1 %v4222_v52  ;;  %v4206_v36 = vor.u32 %v5217_v17, %v4203_v29  ;;  %v4278_v37 = vor.u32 %v5235_v30, %v4275_v31  ;;  %v5231_v14 = vld [vmem:[%s8325_s4 + $0x124] sm:$0xf]  ;;  %v4323_v17 = vld [vmem:[%s8325_s4 + $0x1a8] sm:$0xf0] }
 0x262   : > { %v4134_v49 = vor.u32 %v5199_v41, %v4131_v44  ;;  %v4198_v52 = vor.u32 %v5215_v45, %v4195_v48  ;;  %v4115_v29 = vld [vmem:[%s8325_s4 + $0x8] sm:$0xf0]  ;;  %v5211_v30 = vld [vmem:[%s8325_s4 + $0x84] sm:$0xf]  ;;  %v4315_v44 = vld [vmem:[%s8325_s4 + $0x198] sm:$0xf0] }
 0x263   : > { %871 = vst [vmem:[%s6188_s14 + $0x48] sm:$0xff] %v6375_v51  ;;  %v1032_v33 = vunpack.c.l.b16 %v6375_v51  ;;  %v1033_v35 = vunpack.c.h.b16 %v6375_v51  ;;  %v4179_v31 = vld [vmem:[%s8325_s4 + $0x88] sm:$0xf0] }
 0x264   : > { %1891 = vmatpush.bf16.msra.mxu2 %v4294_v57  ;;  %1909 = vmatpush.bf16.msra.mxu3 %v4358_v59  ;;  %v4270_v59 = vor.u32 %v5233_v53, %v4267_v54  ;;  %v4182_v45 = vor.u32 %v5211_v30, %v4179_v31 }
 0x265   : > { %1857 = vmatpush.bf16.msra.mxu0 %v4150_v0  ;;  %v787_v16 = vpop.f32.mrf.mxu0  ;;  %v805_v18 = vpop.f32.mrf.mxu1  ;;  %1875 = vmatpush.bf16.msra.mxu1 %v4214_v3  ;;  %v6465_v50 = vpack.c.b16 %v1032_v33, %v1032_v33  ;;  %v6467_v51 = vpack.c.b16 %v1033_v35, %v1033_v35  ;;  %v4334_v3 = vor.u32 %v5249_v56, %v4331_v60  ;;  %v5229_v35 = vld [vmem:[%s8325_s4 + $0x114] sm:$0xf] }
 0x266   : > { %v758_v7 = vpop.f32.mrf.mxu2  ;;  %v776_v8 = vpop.f32.mrf.mxu3  ;;  %v788_v26 = vadd.f32 %v787_v16, %v6144_v15  ;;  %v806_v27 = vadd.f32 %v805_v18, %v6144_v15  ;;  %1723 = vmatmul.bf16.gmra.mxu0 %v6397_v62  ;;  %1741 = vmatmul.bf16.gmra.mxu1 %v6399_v63  ;;  %v4259_v16 = vld [vmem:[%s8325_s4 + $0x128] sm:$0xf0]  ;;  %v5273_v60 = vld [vmem:[%s8325_s4 + $0x274] sm:$0xf] }
 0x267   : > { %v4126_v8 = vor.u32 %v5197_v4, %v4123_v5  ;;  %v4262_v20 = vor.u32 %v5231_v14, %v4259_v16  ;;  %v5227_v4 = vld [vmem:[%s8325_s4 + $0x104] sm:$0xf]  ;;  %v4243_v5 = vld [vmem:[%s8325_s4 + $0x108] sm:$0xf0] }
 0x268   : > { %1892 = vmatpush.bf16.msra.mxu2 %v4286_v13  ;;  %v6452_v42 = vpack.c.bf16 %v806_v27, %v788_v26  ;;  %1910 = vmatpush.bf16.msra.mxu3 %v4350_v19  ;;  %v4187_v13 = vld [vmem:[%s8325_s4 + $0x98] sm:$0xf0]  ;;  %v5195_v26 = vld [vmem:[%s8325_s4 + $0x4] sm:$0xf] }
 0x269   : > { %1858 = vmatpush.bf16.msra.mxu0 %v4142_v28  ;;  %1876 = vmatpush.bf16.msra.mxu1 %v4206_v36  ;;  %v4190_v19 = vor.u32 %v5213_v6, %v4187_v13  ;;  %v4326_v28 = vor.u32 %v5247_v21, %v4323_v17  ;;  %v4118_v33 = vor.u32 %v5195_v26, %v4115_v29  ;;  %v4251_v36 = vld [vmem:[%s8325_s4 + $0x118] sm:$0xf0]  ;;  %v4307_v13 = vld [vmem:[%s8325_s4 + $0x188] sm:$0xf0]  ;;  %v5271_v14 = vld [vmem:[%s8325_s4 + $0x264] sm:$0xf] }
 0x26a   : > { %864 = vst [vmem:[%s6188_s14 + $0x10] sm:$0xff] %v6452_v42  ;;  %v1019_v38 = vunpack.c.h.b16 %v6452_v42  ;;  %v4254_v48 = vor.u32 %v5229_v35, %v4251_v36  ;;  %v4419_v21 = vld [vmem:[%s8325_s4 + $0x268] sm:$0xf0]  ;;  %v5287_v17 = vld [vmem:[%s8325_s4 + $0x2e4] sm:$0xf] }
 0x26b   : > { %v4483_v26 = vld [vmem:[%s8325_s4 + $0x2e8] sm:$0xf0]  ;;  %v4422_v30 = vor.u32 %v5271_v14, %v4419_v21  ;;  %v5305_v36 = vld [vmem:[%s8325_s4 + $0x374] sm:$0xf] }
 0x26c   : > { %1893 = vmatpush.bf16.msra.mxu2 %v4278_v37  ;;  %1911 = vmatpush.bf16.msra.mxu3 %v4342_v43  ;;  %v1018_v37 = vunpack.c.l.b16 %v6452_v42  ;;  %v5245_v43 = vld [vmem:[%s8325_s4 + $0x194] sm:$0xf]  ;;  %v4486_v31 = vor.u32 %v5287_v17, %v4483_v26 }
 0x26d   : > { %1859 = vmatpush.bf16.msra.mxu0 %v4134_v49  ;;  %v789_v1 = vpop.f32.mrf.mxu0  ;;  %v807_v2 = vpop.f32.mrf.mxu1  ;;  %1877 = vmatpush.bf16.msra.mxu1 %v4198_v52  ;;  %v4318_v54 = vor.u32 %v5245_v43, %v4315_v44  ;;  %v4619_v43 = vld [vmem:[%s8325_s4 + $0x3f8] sm:$0xf0]  ;;  %v5301_v14 = vld [vmem:[%s8325_s4 + $0x354] sm:$0xf] }
 0x26e   : > { %v823_v57 = vpop.f32.mrf.mxu2  ;;  %v841_v58 = vpop.f32.mrf.mxu3  ;;  %v808_v7 = vadd.f32 %v807_v2, %v6218_v55 }
 0x26f   : > { %v824_v61 = vadd.f32 %v823_v57, %v6144_v15  ;;  %v842_v0 = vadd.f32 %v841_v58, %v6144_v15  ;;  %1759 = vmatmul.bf16.gmra.mxu2 %v6465_v50  ;;  %1777 = vmatmul.bf16.gmra.mxu3 %v6467_v51  ;;  %v790_v15 = vadd.f32 %v789_v1, %v6218_v55 }
 0x270   : > { %1894 = vmatpush.bf16.msra.mxu2 %v4270_v59  ;;  %1912 = vmatpush.bf16.msra.mxu3 %v4334_v3  ;;  %v4491_v3 = vld [vmem:[%s8325_s4 + $0x2f8] sm:$0xf0] }
 0x271   : > { %v6505_v18 = vpack.c.bf16 %v842_v0, %v824_v61  ;;  %v856_v27 = vpack.c.bf16 %v808_v7, %v790_v15  ;;  %1860 = vmatpush.bf16.msra.mxu0 %v4126_v8  ;;  %1878 = vmatpush.bf16.msra.mxu1 %v4190_v19  ;;  %v4427_v61 = vld [vmem:[%s8325_s4 + $0x278] sm:$0xf0]  ;;  %v5289_v0 = vld [vmem:[%s8325_s4 + $0x2f4] sm:$0xf]  ;;  %v4246_v7 = vor.u32 %v5227_v4, %v4243_v5  ;;  %v5243_v8 = vld [vmem:[%s8325_s4 + $0x184] sm:$0xf] }
 0x272   : > { %v4494_v15 = vor.u32 %v5289_v0, %v4491_v3  ;;  %v5267_v3 = vld [vmem:[%s8325_s4 + $0x244] sm:$0xf] }
 0x273   : > { %865 = vst [vmem:[%s6188_s14 + $0x18] sm:$0xff] %v6505_v18  ;;  %v1026_v40 = vunpack.c.l.b16 %v856_v27  ;;  %v1027_v41 = vunpack.c.h.b16 %v856_v27  ;;  %v1020_v16 = vunpack.c.l.b16 %v6505_v18 }
 0x274   : > { %868 = vst [vmem:[%s6188_s14 + $0x30] sm:$0xff] %v856_v27  ;;  %1895 = vmatpush.bf16.msra.mxu2 %v4262_v20  ;;  %1913 = vmatpush.bf16.msra.mxu3 %v4326_v28  ;;  %v4310_v20 = vor.u32 %v5243_v8, %v4307_v13  ;;  %v1021_v27 = vunpack.c.h.b16 %v6505_v18  ;;  %v4555_v18 = vld [vmem:[%s8325_s4 + $0x378] sm:$0xf0]  ;;  %v4467_v8 = vld [vmem:[%s8325_s4 + $0x2c8] sm:$0xf0] }
 0x275   : > { %v6542_v53 = vpack.c.b16 %v1026_v40, %v1018_v37  ;;  %v6544_v42 = vpack.c.b16 %v1027_v41, %v1019_v38  ;;  %1861 = vmatpush.bf16.msra.mxu0 %v4118_v33  ;;  %v792_v58 = vpop.f32.mrf.mxu0  ;;  %v810_v59 = vpop.f32.mrf.mxu1  ;;  %1879 = vmatpush.bf16.msra.mxu1 %v4182_v45  ;;  %v5321_v37 = vld [vmem:[%s8325_s4 + $0x3f4] sm:$0xf]  ;;  %v4558_v41 = vor.u32 %v5305_v36, %v4555_v18  ;;  %v4395_v36 = vld [vmem:[%s8325_s4 + $0x238] sm:$0xf0] }
 0x276   : > { %v825_v49 = vpop.f32.mrf.mxu2  ;;  %v843_v52 = vpop.f32.mrf.mxu3  ;;  %v793_v1 = vadd.f32 %v792_v58, %v6279_v39  ;;  %v811_v2 = vadd.f32 %v810_v59, %v6279_v39  ;;  %v4475_v58 = vld [vmem:[%s8325_s4 + $0x2d8] sm:$0xf0]  ;;  %v5303_v59 = vld [vmem:[%s8325_s4 + $0x364] sm:$0xf]  ;;  %v5281_v18 = vld [vmem:[%s8325_s4 + $0x2b4] sm:$0xf] }
 0x277   : > { %v826_v56 = vadd.f32 %v825_v49, %v6218_v55  ;;  %v844_v57 = vadd.f32 %v843_v52, %v6218_v55  ;;  %1790 = vmatmul.bf16.vlgmr.msrb.gmra.mxu0 %v6542_v53  ;;  %1808 = vmatmul.bf16.vlgmr.msrb.gmra.mxu1 %v6544_v42  ;;  %v4430_v55 = vor.u32 %v5273_v60, %v4427_v61  ;;  %v4547_v60 = vld [vmem:[%s8325_s4 + $0x368] sm:$0xf0] }
 0x278   : > { %1896 = vmatpush.bf16.msra.mxu2 %v4254_v48  ;;  %v6580_v19 = vpack.c.bf16 %v811_v2, %v793_v1  ;;  %1914 = vmatpush.bf16.msra.mxu3 %v4318_v54  ;;  %v4622_v52 = vor.u32 %v5321_v37, %v4619_v43  ;;  %v5269_v54 = vld [vmem:[%s8325_s4 + $0x254] sm:$0xf]  ;;  %v4550_v1 = vor.u32 %v5303_v59, %v4547_v60  ;;  %v5319_v2 = vld [vmem:[%s8325_s4 + $0x3e4] sm:$0xf] }
 0x279   : > { %v857_v6 = vpack.c.bf16 %v844_v57, %v826_v56  ;;  %1926 = vmatpush.bf16.msrb.mxu0 %v4430_v55  ;;  %1944 = vmatpush.bf16.msrb.mxu1 %v4494_v15  ;;  %v4411_v56 = vld [vmem:[%s8325_s4 + $0x258] sm:$0xf0]  ;;  %v5285_v57 = vld [vmem:[%s8325_s4 + $0x2d4] sm:$0xf]  ;;  %v4611_v55 = vld [vmem:[%s8325_s4 + $0x3e8] sm:$0xf0] }
 0x27a   : > { %872 = vst [vmem:[%s6188_s14 + $0x50] sm:$0xff] %v6580_v19  ;;  %v4478_v0 = vor.u32 %v5285_v57, %v4475_v58  ;;  %v1034_v4 = vunpack.c.l.b16 %v6580_v19  ;;  %v1035_v5 = vunpack.c.h.b16 %v6580_v19  ;;  %v4403_v15 = vld [vmem:[%s8325_s4 + $0x248] sm:$0xf0]  ;;  %v5317_v19 = vld [vmem:[%s8325_s4 + $0x3d4] sm:$0xf] }
 0x27b   : > { %869 = vst [vmem:[%s6188_s14 + $0x38] sm:$0xff] %v857_v6  ;;  %v1028_v28 = vunpack.c.l.b16 %v857_v6  ;;  %v1029_v29 = vunpack.c.h.b16 %v857_v6  ;;  %v4614_v6 = vor.u32 %v5319_v2, %v4611_v55  ;;  %v4406_v13 = vor.u32 %v5267_v3, %v4403_v15  ;;  %v4387_v57 = vld [vmem:[%s8325_s4 + $0x228] sm:$0xf0]  ;;  %v4523_v2 = vld [vmem:[%s8325_s4 + $0x338] sm:$0xf0] }
 0x27c   : > { %1897 = vmatpush.bf16.msra.mxu2 %v4246_v7  ;;  %1915 = vmatpush.bf16.msra.mxu3 %v4310_v20  ;;  %v5283_v7 = vld [vmem:[%s8325_s4 + $0x2c4] sm:$0xf]  ;;  %v4603_v20 = vld [vmem:[%s8325_s4 + $0x3d8] sm:$0xf0]  ;;  %v4451_v58 = vld [vmem:[%s8325_s4 + $0x2a8] sm:$0xf0] }
 0x27d   : > { %v6595_v33 = vpack.c.b16 %v1028_v28, %v1020_v16  ;;  %v6597_v35 = vpack.c.b16 %v1029_v29, %v1021_v27  ;;  %1927 = vmatpush.bf16.msrb.mxu0 %v4422_v30  ;;  %v794_v48 = vpop.f32.mrf.mxu0  ;;  %v812_v49 = vpop.f32.mrf.mxu1  ;;  %1945 = vmatpush.bf16.msrb.mxu1 %v4486_v31  ;;  %v4539_v16 = vld [vmem:[%s8325_s4 + $0x358] sm:$0xf0]  ;;  %v4470_v21 = vor.u32 %v5283_v7, %v4467_v8  ;;  %v5265_v31 = vld [vmem:[%s8325_s4 + $0x234] sm:$0xf] }
 0x27e   : > { %v828_v38 = vpop.f32.mrf.mxu2  ;;  %v846_v40 = vpop.f32.mrf.mxu3  ;;  %v4542_v17 = vor.u32 %v5301_v14, %v4539_v16  ;;  %v6666_v28 = vpack.c.b16 %v1034_v4, %v1034_v4  ;;  %v6668_v29 = vpack.c.b16 %v1035_v5, %v1035_v5  ;;  %v4606_v30 = vor.u32 %v5317_v19, %v4603_v20  ;;  %v5315_v49 = vld [vmem:[%s8325_s4 + $0x3c4] sm:$0xf]  ;;  %v5313_v55 = vld [vmem:[%s8325_s4 + $0x3b4] sm:$0xf]  ;;  %v4587_v4 = vld [vmem:[%s8325_s4 + $0x3b8] sm:$0xf0] }
 0x27f   : > { %v829_v44 = vadd.f32 %v828_v38, %v6279_v39  ;;  %v847_v45 = vadd.f32 %v846_v40, %v6279_v39  ;;  %1826 = vmatmul.bf16.vlgmr.msrb.gmra.mxu2 %v6595_v33  ;;  %1844 = vmatmul.bf16.vlgmr.msrb.gmra.mxu3 %v6597_v35  ;;  %v4414_v39 = vor.u32 %v5269_v54, %v4411_v56  ;;  %v4459_v38 = vld [vmem:[%s8325_s4 + $0x2b8] sm:$0xf0]  ;;  %v5299_v40 = vld [vmem:[%s8325_s4 + $0x344] sm:$0xf]  ;;  %v5277_v7 = vld [vmem:[%s8325_s4 + $0x294] sm:$0xf] }
 0x280   : > { %1962 = vmatpush.bf16.msrb.mxu2 %v4558_v41  ;;  %1980 = vmatpush.bf16.msrb.mxu3 %v4622_v52  ;;  %v4398_v37 = vor.u32 %v5265_v31, %v4395_v36  ;;  %v4531_v41 = vld [vmem:[%s8325_s4 + $0x348] sm:$0xf0]  ;;  %v5263_v54 = vld [vmem:[%s8325_s4 + $0x224] sm:$0xf]  ;;  %v4590_v5 = vor.u32 %v5313_v55, %v4587_v4  ;;  %v4379_v15 = vld [vmem:[%s8325_s4 + $0x218] sm:$0xf0] }
 0x281   : > { %v861_v61 = vpack.c.bf16 %v847_v45, %v829_v44  ;;  %1928 = vmatpush.bf16.msrb.mxu0 %v4414_v39  ;;  %1946 = vmatpush.bf16.msrb.mxu1 %v4478_v0  ;;  %v4462_v45 = vor.u32 %v5281_v18, %v4459_v38  ;;  %v4534_v48 = vor.u32 %v5299_v40, %v4531_v41  ;;  %v4595_v52 = vld [vmem:[%s8325_s4 + $0x3c8] sm:$0xf0]  ;;  %v5279_v39 = vld [vmem:[%s8325_s4 + $0x2a4] sm:$0xf]  ;;  %v4507_v38 = vld [vmem:[%s8325_s4 + $0x318] sm:$0xf0] }
 0x282   : > { %v4598_v56 = vor.u32 %v5315_v49, %v4595_v52  ;;  %v4390_v59 = vor.u32 %v5263_v54, %v4387_v57  ;;  %v4454_v0 = vor.u32 %v5279_v39, %v4451_v58  ;;  %v5295_v14 = vld [vmem:[%s8325_s4 + $0x324] sm:$0xf]  ;;  %v4515_v16 = vld [vmem:[%s8325_s4 + $0x328] sm:$0xf0]  ;;  %v5309_v40 = vld [vmem:[%s8325_s4 + $0x394] sm:$0xf] }
 0x283   : > { %873 = vst [vmem:[%s6188_s14 + $0x58] sm:$0xff] %v861_v61  ;;  %v1036_v43 = vunpack.c.l.b16 %v861_v61  ;;  %v1037_v44 = vunpack.c.h.b16 %v861_v61  ;;  %v4518_v20 = vor.u32 %v5295_v14, %v4515_v16  ;;  %v5275_v31 = vld [vmem:[%s8325_s4 + $0x284] sm:$0xf]  ;;  %v4435_v36 = vld [vmem:[%s8325_s4 + $0x288] sm:$0xf0] }
 0x284   : > { %1963 = vmatpush.bf16.msrb.mxu2 %v4550_v1  ;;  %1981 = vmatpush.bf16.msrb.mxu3 %v4614_v6  ;;  %v5297_v1 = vld [vmem:[%s8325_s4 + $0x334] sm:$0xf]  ;;  %v4571_v41 = vld [vmem:[%s8325_s4 + $0x398] sm:$0xf0]  ;;  %v4499_v49 = vld [vmem:[%s8325_s4 + $0x308] sm:$0xf0] }
 0x285   : > { %1929 = vmatpush.bf16.msrb.mxu0 %v4406_v13  ;;  %1947 = vmatpush.bf16.msrb.mxu1 %v4470_v21  ;;  %v6708_v60 = vpack.c.b16 %v1036_v43, %v1036_v43  ;;  %v6710_v61 = vpack.c.b16 %v1037_v44, %v1037_v44  ;;  %v4526_v3 = vor.u32 %v5297_v1, %v4523_v2  ;;  %v5261_v6 = vld [vmem:[%s8325_s4 + $0x214] sm:$0xf]  ;;  %v4443_v13 = vld [vmem:[%s8325_s4 + $0x298] sm:$0xf0]  ;;  %v5311_v21 = vld [vmem:[%s8325_s4 + $0x3a4] sm:$0xf] }
 0x286   : > { %v830_v26 = vpop.f32.mrf.mxu2  ;;  %v848_v27 = vpop.f32.mrf.mxu3  ;;  %v4382_v8 = vor.u32 %v5261_v6, %v4379_v15  ;;  %v4446_v19 = vor.u32 %v5277_v7, %v4443_v13  ;;  %v4438_v43 = vor.u32 %v5275_v31, %v4435_v36  ;;  %v5307_v52 = vld [vmem:[%s8325_s4 + $0x384] sm:$0xf] }
 0x287   : > { %1795 = vmatmul.bf16.gmra.mxu0 %v6666_v28  ;;  %1813 = vmatmul.bf16.gmra.mxu1 %v6668_v29  ;;  %v5259_v26 = vld [vmem:[%s8325_s4 + $0x204] sm:$0xf] }
 0x288   : > { %1964 = vmatpush.bf16.msrb.mxu2 %v4542_v17  ;;  %1982 = vmatpush.bf16.msrb.mxu3 %v4606_v30  ;;  %v4579_v17 = vld [vmem:[%s8325_s4 + $0x3a8] sm:$0xf0] }
 0x289   : > { %1930 = vmatpush.bf16.msrb.mxu0 %v4398_v37  ;;  %1948 = vmatpush.bf16.msrb.mxu1 %v4462_v45  ;;  %v4582_v27 = vor.u32 %v5311_v21, %v4579_v17  ;;  %v4371_v30 = vld [vmem:[%s8325_s4 + $0x208] sm:$0xf0]  ;;  %v5293_v37 = vld [vmem:[%s8325_s4 + $0x314] sm:$0xf]  ;;  %v4574_v45 = vor.u32 %v5309_v40, %v4571_v41 }
 0x28a   : > { %v4374_v18 = vor.u32 %v5259_v26, %v4371_v30  ;;  %v4510_v44 = vor.u32 %v5293_v37, %v4507_v38 }
 0x28c   : > { %1965 = vmatpush.bf16.msrb.mxu2 %v4534_v48  ;;  %1983 = vmatpush.bf16.msrb.mxu3 %v4598_v56  ;;  %v5291_v48 = vld [vmem:[%s8325_s4 + $0x304] sm:$0xf] }
 0x28d   : > { %1931 = vmatpush.bf16.msrb.mxu0 %v4390_v59  ;;  %1949 = vmatpush.bf16.msrb.mxu1 %v4454_v0  ;;  %v4502_v54 = vor.u32 %v5291_v48, %v4499_v49 }
 0x28f   : > { %1831 = vmatmul.bf16.gmra.mxu2 %v6708_v60  ;;  %1849 = vmatmul.bf16.gmra.mxu3 %v6710_v61 }
 0x290   : > { %1966 = vmatpush.bf16.msrb.mxu2 %v4526_v3  ;;  %1984 = vmatpush.bf16.msrb.mxu3 %v4590_v5 }
 0x291   : > { %1932 = vmatpush.bf16.msrb.mxu0 %v4382_v8  ;;  %1950 = vmatpush.bf16.msrb.mxu1 %v4446_v19 }
 0x294   : > { %1967 = vmatpush.bf16.msrb.mxu2 %v4518_v20  ;;  %1985 = vmatpush.bf16.msrb.mxu3 %v4582_v27 }
 0x295   : > { %1933 = vmatpush.bf16.msrb.mxu0 %v4374_v18  ;;  %1951 = vmatpush.bf16.msrb.mxu1 %v4438_v43 }
 0x297   : > { %1862 = vmatmul.bf16.vlgmr.msra.gmra.mxu0 %v6290_v46  ;;  %1880 = vmatmul.bf16.vlgmr.msra.gmra.mxu1 %v6292_v47  ;;  %v4563_v46 = vld [vmem:[%s8325_s4 + $0x388] sm:$0xf0] }
 0x298   : > { %1968 = vmatpush.bf16.msrb.mxu2 %v4510_v44  ;;  %1986 = vmatpush.bf16.msrb.mxu3 %v4574_v45  ;;  %v4566_v47 = vor.u32 %v5307_v52, %v4563_v46 }
 0x29c   : > { %1969 = vmatpush.bf16.msrb.mxu2 %v4502_v54  ;;  %1987 = vmatpush.bf16.msrb.mxu3 %v4566_v47 }
 0x29f   : > { %1898 = vmatmul.bf16.vlgmr.msra.gmra.mxu2 %v6343_v22  ;;  %1916 = vmatmul.bf16.vlgmr.msra.gmra.mxu3 %v6345_v23 }
 0x2a7   : > { %1867 = vmatmul.bf16.gmra.mxu0 %v6397_v62  ;;  %1885 = vmatmul.bf16.gmra.mxu1 %v6399_v63 }
 0x2af   : > { %1903 = vmatmul.bf16.gmra.mxu2 %v6465_v50  ;;  %1921 = vmatmul.bf16.gmra.mxu3 %v6467_v51 }
 0x2b7   : > { %1934 = vmatmul.bf16.vlgmr.msrb.gmra.mxu0 %v6542_v53  ;;  %1952 = vmatmul.bf16.vlgmr.msrb.gmra.mxu1 %v6544_v42 }
 0x2bf   : > { %1970 = vmatmul.bf16.vlgmr.msrb.gmra.mxu2 %v6595_v33  ;;  %1988 = vmatmul.bf16.vlgmr.msrb.gmra.mxu3 %v6597_v35 }
 0x2c7   : > { %1939 = vmatmul.bf16.gmra.mxu0 %v6666_v28  ;;  %1957 = vmatmul.bf16.gmra.mxu1 %v6668_v29 }
 0x2cf   : > { %1975 = vmatmul.bf16.gmra.mxu2 %v6708_v60  ;;  %1993 = vmatmul.bf16.gmra.mxu3 %v6710_v61 }
 0x2d3   : > { %v1719_v22 = vpop.f32.mrf.mxu0  ;;  %v1737_v23 = vpop.f32.mrf.mxu1 }
 0x2d4   : > { %v1738_v62 = vadd.f32 %v1737_v23, %v1719_v22 }
 0x2db   : > { %v1721_v63 = vpop.f32.mrf.mxu0  ;;  %v1739_v50 = vpop.f32.mrf.mxu1 }
 0x2dc   : > { %v1740_v6 = vadd.f32 %v1739_v50, %v1721_v63 }
 0x2e2   : > { %v1755_v51 = vpop.f32.mrf.mxu2  ;;  %v1773_v53 = vpop.f32.mrf.mxu3 }
 0x2e3   : > { %v1756_v42 = vadd.f32 %v1755_v51, %v1738_v62  ;;  %v1724_v33 = vpop.f32.mrf.mxu0  ;;  %v1742_v57 = vpop.f32.mrf.mxu1 }
 0x2e4   : > { %v1743_v35 = vadd.f32 %v1742_v57, %v1724_v33 }
 0x2e5   : > { %v1774_v56 = vadd.f32 %v1773_v53, %v1756_v42 }
 0x2ea   : > { %v1757_v39 = vpop.f32.mrf.mxu2  ;;  %v1775_v28 = vpop.f32.mrf.mxu3 }
 0x2eb   : > { %v1726_v58 = vpop.f32.mrf.mxu0  ;;  %v1744_v29 = vpop.f32.mrf.mxu1  ;;  %v1758_v8 = vadd.f32 %v1757_v39, %v1740_v6 }
 0x2ed   : > { %v1776_v16 = vadd.f32 %v1775_v28, %v1758_v8 }
 0x2f2   : > { %v1760_v59 = vpop.f32.mrf.mxu2  ;;  %v1778_v60 = vpop.f32.mrf.mxu3 }
 0x2f3   : > { %v1761_v0 = vadd.f32 %v1760_v59, %v1743_v35 }
 0x2f4   : > { %v1791_v1 = vpop.f32.mrf.mxu0  ;;  %v1809_v2 = vpop.f32.mrf.mxu1 }
 0x2f5   : > { %v1779_v61 = vadd.f32 %v1778_v60, %v1761_v0  ;;  %v1792_v55 = vadd.f32 %v1791_v1, %v1774_v56 }
 0x2f7   : > { %v1810_v3 = vadd.f32 %v1809_v2, %v1792_v55 }
 0x2fa   : > { %v1762_v4 = vpop.f32.mrf.mxu2  ;;  %v1780_v5 = vpop.f32.mrf.mxu3 }
 0x2fc   : > { %v1793_v15 = vpop.f32.mrf.mxu0  ;;  %v1811_v7 = vpop.f32.mrf.mxu1 }
 0x2fd   : > { %v1794_v20 = vadd.f32 %v1793_v15, %v1776_v16 }
 0x2ff   : > { %v1812_v31 = vadd.f32 %v1811_v7, %v1794_v20 }
 0x302   : > { %v1827_v13 = vpop.f32.mrf.mxu2  ;;  %v1845_v14 = vpop.f32.mrf.mxu3 }
 0x303   : > { %v1828_v19 = vadd.f32 %v1827_v13, %v1810_v3 }
 0x304   : > { %v1796_v17 = vpop.f32.mrf.mxu0  ;;  %v1814_v26 = vpop.f32.mrf.mxu1 }
 0x305   : > { %v6802_v21 = vadd.f32 %v1845_v14, %v1828_v19  ;;  %v1797_v27 = vadd.f32 %v1796_v17, %v1779_v61 }
 0x307   : > { %v1815_v30 = vadd.f32 %v1814_v26, %v1797_v27 }
 0x30a   : > { %v1829_v36 = vpop.f32.mrf.mxu2  ;;  %v1847_v18 = vpop.f32.mrf.mxu3 }
 0x30b   : > { %v1830_v37 = vadd.f32 %v1829_v36, %v1812_v31 }
 0x30c   : > { %v1798_v40 = vpop.f32.mrf.mxu0  ;;  %v1816_v41 = vpop.f32.mrf.mxu1 }
 0x30d   : > { %v1848_v38 = vadd.f32 %v1847_v18, %v1830_v37 }
 0x30f   : > { %v2000_v43 = vpack.c.bf16 %v1848_v38, %v1848_v38 }
 0x311   : > { %v2077_v44 = vsel %vm681_vm5, %v2000_v43, 0 }
 0x312   : > { %v1832_v45 = vpop.f32.mrf.mxu2  ;;  %v1850_v48 = vpop.f32.mrf.mxu3  ;;  %2089 = vmatpush.bf16.msra.mxu0 %v2077_v44 }
 0x313   : > { %v1833_v49 = vadd.f32 %v1832_v45, %v1815_v30  ;;  %v1998_v30 = vpack.c.bf16 %v6802_v21, %v6802_v21 }
 0x314   : > { %v1863_v54 = vpop.f32.mrf.mxu0  ;;  %v1881_v46 = vpop.f32.mrf.mxu1 }
 0x315   : > { %v6805_v52 = vadd.f32 %v1850_v48, %v1833_v49  ;;  %v1882_v29 = vadd.f32 %v1881_v46, %v1863_v54 }
 0x317   : > { %8374 = vst [vmem:[#allocation10_spill] sm:$0xff] %v6805_v52 }
 0x31a   : > { %v1834_v47 = vpop.f32.mrf.mxu2  ;;  %v1852_v22 = vpop.f32.mrf.mxu3 }
 0x31c   : > { %v1865_v23 = vpop.f32.mrf.mxu0  ;;  %v1883_v62 = vpop.f32.mrf.mxu1 }
 0x31d   : > { %v1884_v3 = vadd.f32 %v1883_v62, %v1865_v23 }
 0x322   : > { %v1899_v63 = vpop.f32.mrf.mxu2  ;;  %v1917_v50 = vpop.f32.mrf.mxu3 }
 0x323   : > { %v1900_v61 = vadd.f32 %v1899_v63, %v1882_v29 }
 0x324   : > { %v1868_v51 = vpop.f32.mrf.mxu0  ;;  %v1886_v53 = vpop.f32.mrf.mxu1 }
 0x325   : > { %v1887_v42 = vadd.f32 %v1886_v53, %v1868_v51  ;;  %v1918_v55 = vadd.f32 %v1917_v50, %v1900_v61 }
 0x32a   : > { %v1901_v56 = vpop.f32.mrf.mxu2  ;;  %v1919_v33 = vpop.f32.mrf.mxu3 }
 0x32b   : > { %v1902_v15 = vadd.f32 %v1901_v56, %v1884_v3 }
 0x32c   : > { %v1870_v57 = vpop.f32.mrf.mxu0  ;;  %v1888_v35 = vpop.f32.mrf.mxu1 }
 0x32d   : > { %v1920_v14 = vadd.f32 %v1919_v33, %v1902_v15 }
 0x332   : > { %v1904_v39 = vpop.f32.mrf.mxu2  ;;  %v1922_v28 = vpop.f32.mrf.mxu3 }
 0x333   : > { %v1905_v58 = vadd.f32 %v1904_v39, %v1887_v42 }
 0x334   : > { %v1935_v60 = vpop.f32.mrf.mxu0  ;;  %v1953_v0 = vpop.f32.mrf.mxu1 }
 0x335   : > { %v1923_v59 = vadd.f32 %v1922_v28, %v1905_v58  ;;  %v1936_v4 = vadd.f32 %v1935_v60, %v1918_v55 }
 0x337   : > { %v1954_v7 = vadd.f32 %v1953_v0, %v1936_v4 }
 0x33a   : > { %v1906_v1 = vpop.f32.mrf.mxu2  ;;  %v1924_v2 = vpop.f32.mrf.mxu3 }
 0x33c   : > { %v1937_v5 = vpop.f32.mrf.mxu0  ;;  %v1955_v6 = vpop.f32.mrf.mxu1 }
 0x33d   : > { %v1938_v19 = vadd.f32 %v1937_v5, %v1920_v14 }
 0x33f   : > { %v1956_v18 = vadd.f32 %v1955_v6, %v1938_v19 }
 0x342   : > { %v1971_v8 = vpop.f32.mrf.mxu2  ;;  %v1989_v13 = vpop.f32.mrf.mxu3 }
 0x343   : > { %v1972_v16 = vadd.f32 %v1971_v8, %v1954_v7 }
 0x344   : > { %v1940_v17 = vpop.f32.mrf.mxu0  ;;  %v1958_v26 = vpop.f32.mrf.mxu1 }
 0x345   : > { %v1990_v20 = vadd.f32 %v1989_v13, %v1972_v16  ;;  %v1941_v27 = vadd.f32 %v1940_v17, %v1923_v59 }
 0x347   : > { %v1999_v31 = vpack.c.bf16 %v1990_v20, %v1990_v20  ;;  %v1959_v36 = vadd.f32 %v1958_v26, %v1941_v27 }
 0x349   : > { %2004 = vxpose.binary.xlu2.c.b16.start.end [1/2] (short) %v1999_v31, %v1998_v30, 128 }
 0x34a   : > { %v1973_v37 = vpop.f32.mrf.mxu2  ;;  %v1991_v38 = vpop.f32.mrf.mxu3 }
 0x34b   : > { %v1974_v40 = vadd.f32 %v1973_v37, %v1956_v18 }
 0x34c   : > { %v1942_v43 = vpop.f32.mrf.mxu0  ;;  %v1960_v44 = vpop.f32.mrf.mxu1 }
 0x34d   : > { %v1992_v41 = vadd.f32 %v1991_v38, %v1974_v40 }
 0x34f   : > { %v2001_v45 = vpack.c.bf16 %v1992_v41, %v1992_v41 }
 0x351   : > { %v2080_v48 = vsel %vm681_vm5, %v2001_v45, 0 }
 0x352   : > { %v1976_v49 = vpop.f32.mrf.mxu2  ;;  %v1994_v54 = vpop.f32.mrf.mxu3  ;;  %2178 = vmatpush.bf16.msra.mxu1 %v2080_v48 }
 0x353   : > { %v1977_v46 = vadd.f32 %v1976_v49, %v1959_v36 }
 0x355   : > { %v6810_v47 = vadd.f32 %v1994_v54, %v1977_v46 }
 0x357   : > { %8375 = vst [vmem:[#allocation11_spill] sm:$0xff] %v6810_v47 }
 0x35a   : > { %v1978_v21 = vpop.f32.mrf.mxu2  ;;  %v1996_v22 = vpop.f32.mrf.mxu3 }
 0x3ea   : > { %v2012_v23 = vpop.trf.xlu2 }
 0x3eb   : > { %4623 = vmatmul.msk.bf16.vlgmr.msra.gmra.mxu0 %vm674_vm6, %v2012_v23  ;;  %4639 = vmatmul.msk.bf16.vlgmr.msra.gmra.mxu1 %vm674_vm6, %v2012_v23 }
 0x3f2   : > { %v2013_v62 = vpop.trf.xlu2 }
 0x3fa   : > { %v2014_v63 = vpop.trf.xlu2 }
 0x3fb   : > { %4624 = vmatmul.msk.bf16.gmra.mxu0 %vm674_vm6, %v2014_v63  ;;  %4640 = vmatmul.msk.bf16.gmra.mxu1 %vm674_vm6, %v2014_v63 }
 0x402   : > { %v2015_v50 = vpop.trf.xlu2 }
 0x40a   : > { %v2016_v51 = vpop.trf.xlu2 }
 0x40b   : > { %4625 = vmatmul.msk.bf16.gmra.mxu0 %vm674_vm6, %v2016_v51  ;;  %4641 = vmatmul.msk.bf16.gmra.mxu1 %vm674_vm6, %v2016_v51 }
 0x412   : > { %v2017_v53 = vpop.trf.xlu2 }
 0x41a   : > { %v2018_v42 = vpop.trf.xlu2 }
 0x41b   : > { %4626 = vmatmul.msk.bf16.gmra.mxu0 %vm674_vm6, %v2018_v42  ;;  %4642 = vmatmul.msk.bf16.gmra.mxu1 %vm674_vm6, %v2018_v42 }
 0x422   : > { %v2019_v56 = vpop.trf.xlu2 }
 0x42a   : > { %v2020_v33 = vpop.trf.xlu2 }
 0x42b   : > { %4627 = vmatmul.msk.bf16.gmra.mxu0 %vm674_vm6, %v2020_v33  ;;  %4643 = vmatmul.msk.bf16.gmra.mxu1 %vm674_vm6, %v2020_v33 }
 0x432   : > { %v2021_v57 = vpop.trf.xlu2 }
 0x43a   : > { %v2022_v35 = vpop.trf.xlu2 }
 0x43b   : > { %4628 = vmatmul.msk.bf16.gmra.mxu0 %vm674_vm6, %v2022_v35  ;;  %4644 = vmatmul.msk.bf16.gmra.mxu1 %vm674_vm6, %v2022_v35 }
 0x442   : > { %v2023_v39 = vpop.trf.xlu2 }
 0x44a   : > { %v2024_v28 = vpop.trf.xlu2 }
 0x44b   : > { %4629 = vmatmul.msk.bf16.gmra.mxu0 %vm674_vm6, %v2024_v28  ;;  %4645 = vmatmul.msk.bf16.gmra.mxu1 %vm674_vm6, %v2024_v28 }
 0x452   : > { %v6826_v58 = vpop.trf.xlu2 }
 0x45a   : > { %v2026_v29 = vpop.trf.xlu2 }
 0x45b   : > { %4630 = vmatmul.msk.bf16.gmra.mxu0 %vm674_vm6, %v2026_v29  ;;  %4646 = vmatmul.msk.bf16.gmra.mxu1 %vm674_vm6, %v2026_v29 }
 0x468   : > { %v2091_v59 = vpop.f32.mrf.mxu0  ;;  %v6830_v60 = vpop.f32.mrf.mxu1 }
 0x469   : > { %v6894_v42 = vmul.f32 0.35355338, %v2091_v59 }
 0x46b   : > { %4631 = vmatmul.msk.bf16.gmra.mxu0 %vm674_vm6, %v2013_v62  ;;  %4647 = vmatmul.msk.bf16.gmra.mxu1 %vm674_vm6, %v2013_v62 }
 0x470   : > { %v6834_v0 = vpop.f32.mrf.mxu0  ;;  %v6836_v61 = vpop.f32.mrf.mxu1 }
 0x478   : > { %v2096_v1 = vpop.f32.mrf.mxu0  ;;  %v2185_v2 = vpop.f32.mrf.mxu1 }
 0x479   : > { %v6876_v49 = vmul.f32 0.35355338, %v2096_v1  ;;  %v6878_v54 = vmul.f32 0.35355338, %v2185_v2 }
 0x47b   : > { %4632 = vmatmul.msk.bf16.gmra.mxu0 %vm674_vm6, %v2015_v50  ;;  %4648 = vmatmul.msk.bf16.gmra.mxu1 %vm674_vm6, %v2015_v50  ;;  %v2330_v50 = vmax.f32 %v6876_v49, %v6878_v54 }
 0x480   : > { %v6840_v55 = vpop.f32.mrf.mxu0  ;;  %v6842_v3 = vpop.f32.mrf.mxu1 }
 0x488   : > { %v2101_v4 = vpop.f32.mrf.mxu0  ;;  %v2190_v5 = vpop.f32.mrf.mxu1 }
 0x489   : > { %v6862_v37 = vmul.f32 0.35355338, %v2101_v4  ;;  %v6864_v38 = vmul.f32 0.35355338, %v2190_v5  ;;  %v6921_v5 = vmul.f32 0.35355338, %v6842_v3 }
 0x48b   : > { %4633 = vmatmul.msk.bf16.gmra.mxu0 %vm674_vm6, %v2017_v53  ;;  %4649 = vmatmul.msk.bf16.gmra.mxu1 %vm674_vm6, %v2017_v53  ;;  %v2336_v45 = vmax.f32 %v6862_v37, %v6864_v38 }
 0x490   : > { %v2103_v6 = vpop.f32.mrf.mxu0  ;;  %v2192_v15 = vpop.f32.mrf.mxu1 }
 0x491   : > { %v6911_v59 = vmul.f32 0.35355338, %v2103_v6 }
 0x498   : > { %v2106_v7 = vpop.f32.mrf.mxu0  ;;  %v2195_v8 = vpop.f32.mrf.mxu1 }
 0x499   : > { %v6856_v27 = vmul.f32 0.35355338, %v2106_v7  ;;  %v6858_v30 = vmul.f32 0.35355338, %v2195_v8  ;;  %v2027_v7 = vpop.trf.xlu2 }
 0x49b   : > { %4634 = vmatmul.msk.bf16.gmra.mxu0 %vm674_vm6, %v2019_v56  ;;  %4650 = vmatmul.msk.bf16.gmra.mxu1 %vm674_vm6, %v2019_v56  ;;  %v2342_v18 = vmax.f32 %v6856_v27, %v6858_v30  ;;  %v6897_v56 = vmul.f32 0.35355338, %v6830_v60  ;;  %v6913_v60 = vmul.f32 0.35355338, %v2192_v15  ;;  %v6928_v15 = vmul.f32 0.35355338, %v6834_v0 }
 0x49d   : > { %v2324_v28 = vmax.f32 %v6894_v42, %v6897_v56  ;;  %v2339_v4 = vmax.f32 %v6911_v59, %v6913_v60  ;;  %8376 = vst [vmem:[#allocation12_spill] sm:$0xff] %v6928_v15 }
 0x4a0   : > { %v2108_v13 = vpop.f32.mrf.mxu0  ;;  %v2197_v14 = vpop.f32.mrf.mxu1 }
 0x4a1   : > { %v6899_v33 = vmul.f32 0.35355338, %v2108_v13 }
 0x4a8   : > { %v2111_v16 = vpop.f32.mrf.mxu0  ;;  %v2200_v19 = vpop.f32.mrf.mxu1 }
 0x4a9   : > { %v6848_v20 = vmul.f32 0.35355338, %v2111_v16  ;;  %v6850_v17 = vmul.f32 0.35355338, %v2200_v19 }
 0x4ab   : > { %4635 = vmatmul.msk.bf16.gmra.mxu0 %vm674_vm6, %v2021_v57  ;;  %4651 = vmatmul.msk.bf16.gmra.mxu1 %vm674_vm6, %v2021_v57  ;;  %v2348_v26 = vmax.f32 %v6848_v20, %v6850_v17  ;;  %v6901_v57 = vmul.f32 0.35355338, %v2197_v14 }
 0x4ad   : > { %2349 = vmax.xlane.f32.xlu1 %v2348_v26  ;;  %v2345_v29 = vmax.f32 %v6899_v33, %v6901_v57 }
 0x4b0   : > { %v2113_v31 = vpop.f32.mrf.mxu0  ;;  %v2202_v36 = vpop.f32.mrf.mxu1 }
 0x4b1   : > { %v6880_v46 = vmul.f32 0.35355338, %v2113_v31  ;;  %v6882_v21 = vmul.f32 0.35355338, %v2202_v36 }
 0x4b3   : > { %v2351_v51 = vmax.f32 %v6880_v46, %v6882_v21 }
 0x4b5   : > { %2343 = vmax.xlane.f32.xlu1 %v2342_v18 }
 0x4b8   : > { %v2116_v40 = vpop.f32.mrf.mxu0  ;;  %v2205_v41 = vpop.f32.mrf.mxu1 }
 0x4b9   : > { %v6866_v43 = vmul.f32 0.35355338, %v2116_v40  ;;  %v6868_v44 = vmul.f32 0.35355338, %v2205_v41 }
 0x4bb   : > { %4636 = vmatmul.msk.bf16.gmra.mxu0 %vm674_vm6, %v2023_v39  ;;  %4652 = vmatmul.msk.bf16.gmra.mxu1 %vm674_vm6, %v2023_v39  ;;  %v2354_v48 = vmax.f32 %v6866_v43, %v6868_v44 }
 0x4bd   : > { %2337 = vmax.xlane.f32.xlu1 %v2336_v45  ;;  %2355 = vmax.xlane.f32.xlu0 %v2354_v48 }
 0x4c0   : > { %v2118_v22 = vpop.f32.mrf.mxu0  ;;  %v2207_v23 = vpop.f32.mrf.mxu1 }
 0x4c1   : > { %v6884_v62 = vmul.f32 0.35355338, %v2118_v22  ;;  %v6886_v63 = vmul.f32 0.35355338, %v2207_v23 }
 0x4c3   : > { %v2357_v53 = vmax.f32 %v6884_v62, %v6886_v63 }
 0x4c5   : > { %2331 = vmax.xlane.f32.xlu1 %v2330_v50  ;;  %2352 = vmax.xlane.f32.xlu0 %v2351_v51 }
 0x4c6   : > { %2358 = vmax.xlane.f32.xlu2 %v2357_v53 }
 0x4c8   : > { %v2121_v35 = vpop.f32.mrf.mxu0  ;;  %v2210_v39 = vpop.f32.mrf.mxu1 }
 0x4c9   : > { %v6941_v36 = vmul.f32 0.35355338, %v2121_v35  ;;  %v6943_v0 = vmul.f32 0.35355338, %v2210_v39 }
 0x4cb   : > { %4637 = vmatmul.msk.bf16.gmra.mxu0 %vm674_vm6, %v6826_v58  ;;  %4653 = vmatmul.msk.bf16.gmra.mxu1 %vm674_vm6, %v6826_v58  ;;  %v6918_v58 = vmul.f32 0.35355338, %v6840_v55  ;;  %v6931_v55 = vmul.f32 0.35355338, %v6836_v61  ;;  %v2360_v45 = vmax.f32 %v6941_v36, %v6943_v0 }
 0x4cd   : > { %2325 = vmax.xlane.f32.xlu1 %v2324_v28  ;;  %2346 = vmax.xlane.f32.xlu0 %v2345_v29  ;;  %v2333_v6 = vmax.f32 %v6918_v58, %v6921_v5  ;;  %8377 = vst [vmem:[#allocation13_spill] sm:$0xff] %v6931_v55  ;;  %v2327_v26 = vmax.f32 %v6928_v15, %v6931_v55 }
 0x4d0   : > { %v2123_v1 = vpop.f32.mrf.mxu0  ;;  %v2212_v2 = vpop.f32.mrf.mxu1 }
 0x4d1   : > { %v6953_v22 = vmul.f32 0.35355338, %v2123_v1  ;;  %v6955_v23 = vmul.f32 0.35355338, %v2212_v2 }
 0x4d3   : > { %v2363_v53 = vmax.f32 %v6953_v22, %v6955_v23 }
 0x4d5   : > { %2340 = vmax.xlane.f32.xlu0 %v2339_v4 }
 0x4d8   : > { %v2126_v8 = vpop.f32.mrf.mxu0  ;;  %v2215_v13 = vpop.f32.mrf.mxu1 }
 0x4d9   : > { %v6959_v35 = vmul.f32 0.35355338, %v2126_v8  ;;  %v6961_v39 = vmul.f32 0.35355338, %v2215_v13 }
 0x4db   : > { %4638 = vmatmul.msk.bf16.gmra.mxu0 %vm674_vm6, %v2027_v7  ;;  %4654 = vmatmul.msk.bf16.gmra.mxu1 %vm674_vm6, %v2027_v7  ;;  %v2366_v1 = vmax.f32 %v6959_v35, %v6961_v39 }
 0x4dd   : > { %2334 = vmax.xlane.f32.xlu0 %v2333_v6 }
 0x4e0   : > { %v2128_v14 = vpop.f32.mrf.mxu0  ;;  %v2217_v3 = vpop.f32.mrf.mxu1 }
 0x4e1   : > { %v6933_v16 = vmul.f32 0.35355338, %v2128_v14  ;;  %v6935_v19 = vmul.f32 0.35355338, %v2217_v3 }
 0x4e3   : > { %v2369_v31 = vmax.f32 %v6933_v16, %v6935_v19 }
 0x4e5   : > { %2328 = vmax.xlane.f32.xlu0 %v2327_v26  ;;  %2370 = vmax.xlane.f32.xlu1 %v2369_v31 }
 0x4e8   : > { %v2131_v61 = vpop.f32.mrf.mxu0  ;;  %v2220_v18 = vpop.f32.mrf.mxu1 }
 0x4e9   : > { %v6945_v40 = vmul.f32 0.35355338, %v2131_v61  ;;  %v6947_v41 = vmul.f32 0.35355338, %v2220_v18 }
 0x4eb   : > { %8378 = vst [vmem:[#allocation14_spill] sm:$0xff] %v6945_v40  ;;  %v2372_v48 = vmax.f32 %v6945_v40, %v6947_v41 }
 0x4ec   : > { %8379 = vst [vmem:[#allocation15_spill] sm:$0xff] %v6947_v41 }
 0x4ed   : > { %2361 = vmax.xlane.f32.xlu0 %v2360_v45  ;;  %2373 = vmax.xlane.f32.xlu1 %v2372_v48 }
 0x4f0   : > { %v2133_v50 = vpop.f32.mrf.mxu0  ;;  %v2222_v51 = vpop.f32.mrf.mxu1 }
 0x4f1   : > { %v6971_v6 = vmul.f32 0.35355338, %v2133_v50  ;;  %v6973_v8 = vmul.f32 0.35355338, %v2222_v51 }
 0x4f3   : > { %8382 = vst [vmem:[#allocation18_spill] sm:$0xff] %v6971_v6  ;;  %v2375_v3 = vmax.f32 %v6971_v6, %v6973_v8 }
 0x4f4   : > { %8383 = vst [vmem:[#allocation19_spill] sm:$0xff] %v6973_v8 }
 0x4f5   : > { %2364 = vmax.xlane.f32.xlu0 %v2363_v53 }
 0x4f8   : > { %v2136_v28 = vpop.f32.mrf.mxu0  ;;  %v2225_v29 = vpop.f32.mrf.mxu1 }
 0x4f9   : > { %v6963_v4 = vmul.f32 0.35355338, %v2136_v28  ;;  %v6965_v7 = vmul.f32 0.35355338, %v2225_v29 }
 0x4fb   : > { %8380 = vst [vmem:[#allocation16_spill] sm:$0xff] %v6963_v4  ;;  %v2378_v2 = vmax.f32 %v6963_v4, %v6965_v7 }
 0x4fc   : > { %8381 = vst [vmem:[#allocation17_spill] sm:$0xff] %v6965_v7 }
 0x4fd   : > { %2367 = vmax.xlane.f32.xlu0 %v2366_v1  ;;  %2379 = vmax.xlane.f32.xlu1 %v2378_v2 }
 0x500   : > { %v2138_v13 = vpop.f32.mrf.mxu0  ;;  %v2227_v14 = vpop.f32.mrf.mxu1 }
 0x501   : > { %v6977_v26 = vmul.f32 0.35355338, %v2138_v13  ;;  %v6979_v31 = vmul.f32 0.35355338, %v2227_v14 }
 0x503   : > { %v2381_v50 = vmax.f32 %v6977_v26, %v6979_v31 }
 0x505   : > { %2376 = vmax.xlane.f32.xlu0 %v2375_v3 }
 0x508   : > { %v2141_v61 = vpop.f32.mrf.mxu0  ;;  %v2230_v18 = vpop.f32.mrf.mxu1 }
 0x509   : > { %v6981_v45 = vmul.f32 0.35355338, %v2141_v61  ;;  %v6983_v48 = vmul.f32 0.35355338, %v2230_v18 }
 0x50b   : > { %8384 = vst [vmem:[#allocation20_spill] sm:$0xff] %v6981_v45  ;;  %v2384_v51 = vmax.f32 %v6981_v45, %v6983_v48 }
 0x50c   : > { %8385 = vst [vmem:[#allocation21_spill] sm:$0xff] %v6983_v48 }
 0x50d   : > { %2382 = vmax.xlane.f32.xlu0 %v2381_v50  ;;  %2385 = vmax.xlane.f32.xlu1 %v2384_v51 }
 0x510   : > { %v2143_v53 = vpop.f32.mrf.mxu0  ;;  %v2232_v28 = vpop.f32.mrf.mxu1 }
 0x511   : > { %v6989_v29 = vmul.f32 0.35355338, %v2143_v53  ;;  %v6991_v1 = vmul.f32 0.35355338, %v2232_v28 }
 0x513   : > { %8386 = vst [vmem:[#allocation22_spill] sm:$0xff] %v6989_v29  ;;  %v2387_v2 = vmax.f32 %v6989_v29, %v6991_v1 }
 0x514   : > { %8387 = vst [vmem:[#allocation23_spill] sm:$0xff] %v6991_v1 }
 0x515   : > { %2388 = vmax.xlane.f32.xlu0 %v2387_v2 }
 0x518   : > { %v2146_v13 = vpop.f32.mrf.mxu0  ;;  %v2235_v14 = vpop.f32.mrf.mxu1 }
 0x519   : > { %v6995_v3 = vmul.f32 0.35355338, %v2146_v13  ;;  %v6997_v61 = vmul.f32 0.35355338, %v2235_v14 }
 0x51b   : > { %v2390_v18 = vmax.f32 %v6995_v3, %v6997_v61 }
 0x51d   : > { %2391 = vmax.xlane.f32.xlu1 %v2390_v18 }
 0x520   : > { %v2350_v50 = vpop.xlane.xlu1 %2349  ;;  %v2148_v51 = vpop.f32.mrf.mxu0 }
 0x521   : > { %v7001_v53 = vmul.f32 0.35355338, %v2148_v51  ;;  %v2237_v28 = vpop.f32.mrf.mxu1  ;;  %v2436_v34 = vsub.f32 %v6848_v20, %v2350_v50  ;;  %v2437_v2 = vsub.f32 %v6850_v17, %v2350_v50 }
 0x522   : > { %v7004_v32 = vmul.f32 0.35355338, %v2237_v28 }
 0x523   : > { %v2516_v14 = vmul.f32 1.442695, %v2436_v34  ;;  %v2518_v25 = vmul.f32 1.442695, %v2437_v2 }
 0x524   : > { %8388 = vst [vmem:[#allocation24_spill] sm:$0xff] %v7004_v32  ;;  %v2393_v13 = vmax.f32 %v7001_v53, %v7004_v32 }
 0x525   : > { %5478 = vpow2.f32 %v2516_v14 }
 0x526   : > { %2394 = vmax.xlane.f32.xlu0 %v2393_v13  ;;  %5480 = vpow2.f32 %v2518_v25 }
 0x528   : > { %v2151_v24 = vpop.f32.mrf.mxu0 }
 0x529   : > { %v7009_v12 = vmul.f32 0.35355338, %v2151_v24  ;;  %v2240_v18 = vpop.f32.mrf.mxu1 }
 0x52a   : > { %v7011_v51 = vmul.f32 0.35355338, %v2240_v18 }
 0x52b   : > { %v7015_v28 = vpop.eup %5478 }
 0x52c   : > { %v2396_v20 = vmax.f32 %v7009_v12, %v7011_v51  ;;  %8389 = vst [vmem:[#allocation25_spill] sm:$0xff] %v7015_v28  ;;  %v7017_v50 = vpop.eup %5480 }
 0x52d   : > { %8390 = vst [vmem:[#allocation26_spill] sm:$0xff] %v7017_v50  ;;  %v2636_v25 = vadd.f32 %v7017_v50, %v7015_v28 }
 0x52e   : > { %2397 = vmax.xlane.f32.xlu1 %v2396_v20 }
 0x530   : > { %v2356_v17 = vpop.xlane.xlu0 %2355  ;;  %v2153_v34 = vpop.f32.mrf.mxu0 }
 0x531   : > { %v2242_v13 = vpop.f32.mrf.mxu1  ;;  %v2440_v2 = vsub.f32 %v6866_v43, %v2356_v17  ;;  %v7020_v24 = vmul.f32 0.35355338, %v2153_v34  ;;  %v2441_v14 = vsub.f32 %v6868_v44, %v2356_v17 }
 0x532   : > { %v7022_v11 = vmul.f32 0.35355338, %v2242_v13 }
 0x533   : > { %v2524_v20 = vmul.f32 1.442695, %v2440_v2  ;;  %v2526_v10 = vmul.f32 1.442695, %v2441_v14 }
 0x534   : > { %v2399_v18 = vmax.f32 %v7020_v24, %v7022_v11 }
 0x535   : > { %5482 = vpow2.f32 %v2524_v20 }
 0x536   : > { %2637 = vadd.xlane.f32.xlu1 %v2636_v25  ;;  %2400 = vmax.xlane.f32.xlu0 %v2399_v18  ;;  %5484 = vpow2.f32 %v2526_v10 }
 0x538   : > { %v7029_v9 = vpop.xlane.xlu0 %2352  ;;  %v2156_v47 = vpop.f32.mrf.mxu0 }
 0x539   : > { %v2245_v43 = vpop.f32.mrf.mxu1  ;;  %v7031_v34 = vmul.f32 0.35355338, %v2156_v47  ;;  %v2359_v44 = vpop.xlane.xlu2 %2358 }
 0x53a   : > { %v7033_v13 = vmul.f32 0.35355338, %v2245_v43  ;;  %v2442_v17 = vsub.f32 %v6884_v62, %v2359_v44  ;;  %v2443_v52 = vsub.f32 %v6886_v63, %v2359_v44 }
 0x53b   : > { %v7039_v18 = vpop.eup %5482 }
 0x53c   : > { %v2402_v2 = vmax.f32 %v7031_v34, %v7033_v13  ;;  %v2528_v25 = vmul.f32 1.442695, %v2442_v17  ;;  %v2530_v14 = vmul.f32 1.442695, %v2443_v52  ;;  %v7043_v47 = vpop.eup %5484 }
 0x53d   : > { %v2642_v63 = vadd.f32 %v7043_v47, %v7039_v18 }
 0x53e   : > { %2403 = vmax.xlane.f32.xlu1 %v2402_v2  ;;  %5486 = vpow2.f32 %v2528_v25 }
 0x53f   : > { %5488 = vpow2.f32 %v2530_v14 }
 0x540   : > { %v7041_v50 = vpop.xlane.xlu0 %2346  ;;  %v2158_v20 = vpop.f32.mrf.mxu0 }
 0x541   : > { %v2247_v43 = vpop.f32.mrf.mxu1  ;;  %v7045_v10 = vmul.f32 0.35355338, %v2158_v20 }
 0x542   : > { %v7047_v62 = vmul.f32 0.35355338, %v2247_v43 }
 0x544   : > { %v2405_v52 = vmax.f32 %v7045_v10, %v7047_v62  ;;  %v7053_v44 = vpop.eup %5486 }
 0x545   : > { %v7057_v2 = vpop.eup %5488 }
 0x546   : > { %2643 = vadd.xlane.f32.xlu1 %v2642_v63  ;;  %2406 = vmax.xlane.f32.xlu0 %v2405_v52  ;;  %v2645_v8 = vadd.f32 %v7057_v2, %v7053_v44  ;;  %v2344_v63 = vpop.xlane.xlu1 %2343 }
 0x548   : > { %v7055_v17 = vpop.xlane.xlu0 %2340  ;;  %v2161_v25 = vpop.f32.mrf.mxu0 }
 0x549   : > { %v2250_v20 = vpop.f32.mrf.mxu1  ;;  %v7059_v28 = vmul.f32 0.35355338, %v2161_v25 }
 0x54a   : > { %v7061_v43 = vmul.f32 0.35355338, %v2250_v20 }
 0x54c   : > { %v2408_v14 = vmax.f32 %v7059_v28, %v7061_v43 }
 0x54e   : > { %2409 = vmax.xlane.f32.xlu1 %v2408_v14  ;;  %2646 = vadd.xlane.f32.xlu0 %v2645_v8  ;;  %v2338_v29 = vpop.xlane.xlu1 %2337 }
 0x550   : > { %v7067_v52 = vpop.xlane.xlu0 %2334  ;;  %v2163_v6 = vpop.f32.mrf.mxu0 }
 0x551   : > { %v2252_v41 = vpop.f32.mrf.mxu1  ;;  %v7069_v40 = vmul.f32 0.35355338, %v2163_v6 }
 0x552   : > { %v7071_v1 = vmul.f32 0.35355338, %v2252_v41 }
 0x554   : > { %v2411_v25 = vmax.f32 %v7069_v40, %v7071_v1 }
 0x556   : > { %2412 = vmax.xlane.f32.xlu0 %v2411_v25  ;;  %v7079_v45 = vpop.xlane.xlu1 %2331 }
 0x558   : > { %v7075_v20 = vpop.xlane.xlu0 %2328 }
 0x559   : > { %8391 = vst [vmem:[#allocation27_spill] sm:$0xff] %v7075_v20 }
 0x560   : > { %v2362_v7 = vpop.xlane.xlu0 %2361 }
 0x561   : > { %v2444_v14 = vsub.f32 %v6941_v36, %v2362_v7  ;;  %v2445_v8 = vsub.f32 %v6943_v0, %v2362_v7  ;;  %v7089_v0 = vpop.xlane.xlu1 %2325 }
 0x563   : > { %v2532_v4 = vmul.f32 1.442695, %v2444_v14  ;;  %v2534_v48 = vmul.f32 1.442695, %v2445_v8 }
 0x565   : > { %5490 = vpow2.f32 %v2532_v4 }
 0x566   : > { %5492 = vpow2.f32 %v2534_v48  ;;  %v2432_v48 = vsub.f32 %v6856_v27, %v2344_v63 }
 0x568   : > { %v2365_v41 = vpop.xlane.xlu0 %2364 }
 0x569   : > { %v2446_v6 = vsub.f32 %v6953_v22, %v2365_v41  ;;  %v2447_v55 = vsub.f32 %v6955_v23, %v2365_v41  ;;  %v2166_v41 = vpop.f32.mrf.mxu0 }
 0x56b   : > { %v7083_v25 = vpop.eup %5490  ;;  %v2536_v15 = vmul.f32 1.442695, %v2446_v6  ;;  %v2538_v20 = vmul.f32 1.442695, %v2447_v55 }
 0x56c   : > { %8392 = vst [vmem:[#allocation28_spill] sm:$0xff] %v7083_v25  ;;  %v7085_v32 = vpop.eup %5492 }
 0x56d   : > { %8393 = vst [vmem:[#allocation29_spill] sm:$0xff] %v7085_v32  ;;  %5494 = vpow2.f32 %v2536_v15  ;;  %v2648_v36 = vadd.f32 %v7085_v32, %v7083_v25  ;;  %v2433_v15 = vsub.f32 %v6858_v30, %v2344_v63  ;;  %v2429_v30 = vsub.f32 %v6864_v38, %v2338_v29 }
 0x56e   : > { %5496 = vpow2.f32 %v2538_v20  ;;  %v2255_v20 = vpop.f32.mrf.mxu1 }
 0x56f   : > { %2649 = vadd.xlane.f32.xlu1 %v2648_v36  ;;  %v7101_v36 = vpop.xlane.xlu1 %2370  ;;  %v2510_v27 = vmul.f32 1.442695, %v2433_v15  ;;  %v2502_v38 = vmul.f32 1.442695, %v2429_v30 }
 0x570   : > { %v2368_v4 = vpop.xlane.xlu0 %2367 }
 0x571   : > { %v2448_v7 = vsub.f32 %v6959_v35, %v2368_v4  ;;  %v2449_v22 = vsub.f32 %v6961_v39, %v2368_v4  ;;  %v2508_v35 = vmul.f32 1.442695, %v2432_v48  ;;  %v7103_v39 = vmul.f32 0.35355338, %v2166_v41 }
 0x572   : > { %v7105_v4 = vmul.f32 0.35355338, %v2255_v20  ;;  %v2438_v48 = vsub.f32 %v6880_v46, %v7029_v9 }
 0x573   : > { %v7093_v23 = vpop.eup %5494  ;;  %v2540_v55 = vmul.f32 1.442695, %v2448_v7  ;;  %v2542_v14 = vmul.f32 1.442695, %v2449_v22  ;;  %v2428_v7 = vsub.f32 %v6862_v37, %v2338_v29  ;;  %v2439_v37 = vsub.f32 %v6882_v21, %v7029_v9  ;;  %v2168_v29 = vpop.f32.mrf.mxu0 }
 0x574   : > { %v7096_v8 = vpop.eup %5496 }
 0x575   : > { %5498 = vpow2.f32 %v2540_v55  ;;  %v2651_v6 = vadd.f32 %v7096_v8, %v7093_v23  ;;  %v2414_v55 = vmax.f32 %v7103_v39, %v7105_v4  ;;  %v2500_v41 = vmul.f32 1.442695, %v2428_v7 }
 0x576   : > { %5500 = vpow2.f32 %v2542_v14  ;;  %v2257_v20 = vpop.f32.mrf.mxu1  ;;  %v2522_v46 = vmul.f32 1.442695, %v2439_v37  ;;  %v2435_v37 = vsub.f32 %v6901_v57, %v7041_v50 }
 0x577   : > { %2652 = vadd.xlane.f32.xlu0 %v2651_v6  ;;  %5502 = vpow2.f32 %v2508_v35  ;;  %v2520_v6 = vmul.f32 1.442695, %v2438_v48  ;;  %v7125_v25 = vpop.xlane.xlu1 %2373  ;;  %v7129_v7 = vmul.f32 0.35355338, %v2257_v20 }
 0x578   : > { %v7108_v22 = vpop.xlane.xlu0 %2376  ;;  %5504 = vpow2.f32 %v2510_v27  ;;  %v7127_v27 = vmul.f32 0.35355338, %v2168_v29 }
 0x579   : > { %5506 = vpow2.f32 %v2500_v41  ;;  %v2434_v41 = vsub.f32 %v6899_v33, %v7041_v50  ;;  %v2514_v33 = vmul.f32 1.442695, %v2435_v37 }
 0x57a   : > { %5508 = vpow2.f32 %v2502_v38 }
 0x57b   : > { %v7111_v63 = vpop.eup %5498  ;;  %5510 = vpow2.f32 %v2520_v6  ;;  %v2512_v29 = vmul.f32 1.442695, %v2434_v41 }
 0x57c   : > { %v7117_v14 = vpop.eup %5500  ;;  %5512 = vpow2.f32 %v2522_v46 }
 0x57d   : > { %v2654_v15 = vadd.f32 %v7117_v14, %v7111_v63  ;;  %v7123_v32 = vpop.eup %5502 }
 0x57e   : > { %8394 = vst [vmem:[#allocation30_spill] sm:$0xff] %v7123_v32  ;;  %v7133_v30 = vpop.eup %5504 }
 0x57f   : > { %2655 = vadd.xlane.f32.xlu1 %v2654_v15  ;;  %2415 = vmax.xlane.f32.xlu0 %v2414_v55  ;;  %8395 = vst [vmem:[#allocation31_spill] sm:$0xff] %v7133_v30  ;;  %v2630_v15 = vadd.f32 %v7133_v30, %v7123_v32  ;;  %v7149_v6 = vpop.xlane.xlu1 %2379 }
 0x580   : > { %v2383_v35 = vpop.xlane.xlu0 %2382 }
 0x581   : > { %v2458_v9 = vsub.f32 %v6977_v26, %v2383_v35  ;;  %v2459_v21 = vsub.f32 %v6979_v31, %v2383_v35  ;;  %v2417_v26 = vmax.f32 %v7127_v27, %v7129_v7  ;;  %v7143_v31 = vpop.eup %5506  ;;  %v2430_v35 = vsub.f32 %v6911_v59, %v7055_v17 }
 0x582   : > { %8396 = vst [vmem:[#allocation32_spill] sm:$0xff] %v7143_v31  ;;  %v7145_v38 = vpop.eup %5508 }
 0x583   : > { %v2560_v48 = vmul.f32 1.442695, %v2458_v9  ;;  %v2562_v55 = vmul.f32 1.442695, %v2459_v21  ;;  %8397 = vst [vmem:[#allocation33_spill] sm:$0xff] %v7145_v38  ;;  %v7147_v20 = vpop.eup %5510  ;;  %v2431_v9 = vsub.f32 %v6913_v60, %v7055_v17  ;;  %v2450_v60 = vsub.f32 %v6933_v16, %v7101_v36 }
 0x584   : > { %v7151_v57 = vpop.eup %5512  ;;  %v2504_v41 = vmul.f32 1.442695, %v2430_v35  ;;  %v2451_v17 = vsub.f32 %v6935_v19, %v7101_v36 }
 0x585   : > { %5514 = vpow2.f32 %v2560_v48  ;;  %v2624_v48 = vadd.f32 %v7145_v38, %v7143_v31  ;;  %v2506_v37 = vmul.f32 1.442695, %v2431_v9 }
 0x586   : > { %5516 = vpow2.f32 %v2562_v55  ;;  %v2639_v55 = vadd.f32 %v7151_v57, %v7147_v20  ;;  %v2546_v35 = vmul.f32 1.442695, %v2451_v17 }
 0x587   : > { %2631 = vadd.xlane.f32.xlu1 %v2630_v15  ;;  %2418 = vmax.xlane.f32.xlu0 %v2417_v26  ;;  %5518 = vpow2.f32 %v2512_v29  ;;  %v7167_v15 = vpop.xlane.xlu1 %2385 }
 0x588   : > { %5520 = vpow2.f32 %v2514_v33  ;;  %v2544_v33 = vmul.f32 1.442695, %v2450_v60 }
 0x589   : > { %5522 = vpow2.f32 %v2504_v41 }
 0x58a   : > { %5524 = vpow2.f32 %v2506_v37 }
 0x58b   : > { %v7153_v50 = vpop.eup %5514  ;;  %5526 = vpow2.f32 %v2544_v33 }
 0x58c   : > { %8398 = vst [vmem:[#allocation34_spill] sm:$0xff] %v7153_v50  ;;  %v7155_v46 = vpop.eup %5516  ;;  %5528 = vpow2.f32 %v2546_v35 }
 0x58d   : > { %8399 = vst [vmem:[#allocation35_spill] sm:$0xff] %v7155_v46  ;;  %v2669_v21 = vadd.f32 %v7155_v46, %v7153_v50  ;;  %v7169_v59 = vpop.eup %5518 }
 0x58e   : > { %v7171_v26 = vpop.eup %5520 }
 0x58f   : > { %2670 = vadd.xlane.f32.xlu2 %v2669_v21  ;;  %2625 = vadd.xlane.f32.xlu1 %v2624_v48  ;;  %8400 = vst [vmem:[#allocation36_spill] sm:$0xff] %v7171_v26  ;;  %v2633_v29 = vadd.f32 %v7171_v26, %v7169_v59  ;;  %v7181_v21 = vpop.eup %5522 }
 0x590   : > { %2640 = vadd.xlane.f32.xlu0 %v2639_v55  ;;  %v7179_v9 = vpop.xlane.xlu1 %2391  ;;  %8401 = vst [vmem:[#allocation37_spill] sm:$0xff] %v7181_v21  ;;  %v7183_v48 = vpop.eup %5524 }
 0x591   : > { %8402 = vst [vmem:[#allocation38_spill] sm:$0xff] %v7183_v48  ;;  %v2627_v16 = vadd.f32 %v7183_v48, %v7181_v21  ;;  %v7187_v55 = vpop.xlane.xlu0 %2388  ;;  %v7191_v36 = vpop.eup %5526 }
 0x592   : > { %v7193_v41 = vpop.eup %5528 }
 0x593   : > { %v2657_v37 = vadd.f32 %v7193_v41, %v7191_v36 }
 0x598   : > { %2634 = vadd.xlane.f32.xlu0 %v2633_v29 }
 0x599   : > { %v7197_v60 = vpop.xlane.xlu0 %2394 }
 0x5a0   : > { %2628 = vadd.xlane.f32.xlu0 %v2627_v16 }
 0x5a1   : > { %v7189_v19 = vpop.xlane.xlu1 %2397 }
 0x5a8   : > { %2658 = vadd.xlane.f32.xlu0 %v2657_v37 }
 0x5a9   : > { %v7199_v17 = vpop.xlane.xlu1 %2637  ;;  %v7201_v29 = vpop.xlane.xlu0 %2400 }
 0x5b1   : > { %v2404_v33 = vpop.xlane.xlu1 %2403 }
 0x5b2   : > { %v2472_v35 = vsub.f32 %v7031_v34, %v2404_v33  ;;  %v2473_v16 = vsub.f32 %v7033_v13, %v2404_v33 }
 0x5b4   : > { %v2588_v46 = vmul.f32 1.442695, %v2472_v35  ;;  %v2590_v50 = vmul.f32 1.442695, %v2473_v16 }
 0x5b6   : > { %5530 = vpow2.f32 %v2588_v46 }
 0x5b7   : > { %5532 = vpow2.f32 %v2590_v50 }
 0x5b9   : > { %v2644_v38 = vpop.xlane.xlu1 %2643  ;;  %v2407_v31 = vpop.xlane.xlu0 %2406 }
 0x5ba   : > { %v2474_v48 = vsub.f32 %v7045_v10, %v2407_v31  ;;  %v2475_v37 = vsub.f32 %v7047_v62, %v2407_v31 }
 0x5bc   : > { %v7207_v21 = vpop.eup %5530  ;;  %v2592_v30 = vmul.f32 1.442695, %v2474_v48  ;;  %v2594_v32 = vmul.f32 1.442695, %v2475_v37 }
 0x5bd   : > { %v7209_v26 = vpop.eup %5532 }
 0x5be   : > { %5534 = vpow2.f32 %v2592_v30  ;;  %v2690_v34 = vadd.f32 %v7209_v26, %v7207_v21 }
 0x5bf   : > { %5536 = vpow2.f32 %v2594_v32 }
 0x5c0   : > { %5538 = vrcp.f32 %v2644_v38  ;;  %2691 = vadd.xlane.f32.xlu1 %v2690_v34 }
 0x5c1   : > { %v2410_v13 = vpop.xlane.xlu1 %2409  ;;  %v2647_v50 = vpop.xlane.xlu0 %2646 }
 0x5c2   : > { %v2476_v46 = vsub.f32 %v7059_v28, %v2410_v13  ;;  %v2477_v10 = vsub.f32 %v7061_v43, %v2410_v13  ;;  %5540 = vrcp.f32 %v2647_v50 }
 0x5c4   : > { %v7215_v62 = vpop.eup %5534  ;;  %v2596_v31 = vmul.f32 1.442695, %v2476_v46  ;;  %v2598_v48 = vmul.f32 1.442695, %v2477_v10 }
 0x5c5   : > { %v7217_v33 = vpop.eup %5536 }
 0x5c6   : > { %v5539_v30 = vpop.eup %5538  ;;  %5542 = vpow2.f32 %v2596_v31  ;;  %v2693_v32 = vadd.f32 %v7217_v33, %v7215_v62 }
 0x5c7   : > { %5544 = vpow2.f32 %v2598_v48  ;;  %v7222_v28 = vmul.f32 %v5539_v30, %v7039_v18  ;;  %v7228_v16 = vmul.f32 %v5539_v30, %v7043_v47  ;;  %v2424_v18 = vsub.f32 %v6876_v49, %v7079_v45 }
 0x5c8   : > { %v5541_v38 = vpop.eup %5540  ;;  %2694 = vadd.xlane.f32.xlu0 %v2693_v32  ;;  %v2471_v49 = vsub.f32 %v7022_v11, %v7201_v29  ;;  %v2427_v11 = vsub.f32 %v6921_v5, %v7067_v52 }
 0x5c9   : > { %v2413_v35 = vpop.xlane.xlu0 %2412  ;;  %v7225_v43 = vmul.f32 %v5541_v38, %v7053_v44  ;;  %v7231_v37 = vmul.f32 %v5541_v38, %v7057_v2 }
 0x5ca   : > { %v2478_v34 = vsub.f32 %v7069_v40, %v2413_v35  ;;  %v2479_v13 = vsub.f32 %v7071_v1, %v2413_v35  ;;  %v2468_v35 = vsub.f32 %v7009_v12, %v7189_v19  ;;  %v2425_v12 = vsub.f32 %v6878_v54, %v7079_v45 }
 0x5cb   : > { %v2498_v5 = vmul.f32 1.442695, %v2427_v11 }
 0x5cc   : > { %v7239_v46 = vpop.eup %5542  ;;  %v2600_v44 = vmul.f32 1.442695, %v2478_v34  ;;  %v2602_v10 = vmul.f32 1.442695, %v2479_v13  ;;  %v2494_v54 = vmul.f32 1.442695, %v2425_v12 }
 0x5cd   : > { %v7241_v31 = vpop.eup %5544 }
 0x5ce   : > { %5546 = vpow2.f32 %v2600_v44  ;;  %v2696_v47 = vadd.f32 %v7241_v31, %v7239_v46  ;;  %v2469_v44 = vsub.f32 %v7011_v51, %v7189_v19  ;;  %v2470_v51 = vsub.f32 %v7020_v24, %v7201_v29 }
 0x5cf   : > { %5548 = vpow2.f32 %v2602_v10  ;;  %v2580_v10 = vmul.f32 1.442695, %v2468_v35  ;;  %v2586_v35 = vmul.f32 1.442695, %v2471_v49  ;;  %v2426_v24 = vsub.f32 %v6918_v58, %v7067_v52 }
 0x5d0   : > { %2697 = vadd.xlane.f32.xlu1 %v2696_v47  ;;  %v2582_v47 = vmul.f32 1.442695, %v2469_v44  ;;  %v2584_v45 = vmul.f32 1.442695, %v2470_v51  ;;  %v2466_v49 = vsub.f32 %v7001_v53, %v7197_v60 }
 0x5d1   : > { %v2496_v58 = vmul.f32 1.442695, %v2426_v24 }
 0x5d4   : > { %v7245_v40 = vpop.eup %5546 }
 0x5d5   : > { %v7247_v1 = vpop.eup %5548 }
 0x5d6   : > { %v2699_v2 = vadd.f32 %v7247_v1, %v7245_v40 }
 0x5d8   : > { %2700 = vadd.xlane.f32.xlu0 %v2699_v2 }
 0x5ea   : > { %v7251_v48 = vpop.xlane.xlu0 %2652 }
 0x5f2   : > { %v2416_v30 = vpop.xlane.xlu0 %2415 }
 0x5f3   : > { %v2480_v32 = vsub.f32 %v7103_v39, %v2416_v30  ;;  %v2481_v38 = vsub.f32 %v7105_v4, %v2416_v30 }
 0x5f5   : > { %v2604_v34 = vmul.f32 1.442695, %v2480_v32  ;;  %v2606_v13 = vmul.f32 1.442695, %v2481_v38 }
 0x5f7   : > { %5550 = vpow2.f32 %v2604_v34 }
 0x5f8   : > { %5552 = vpow2.f32 %v2606_v13 }
 0x5f9   : > { %5554 = vpow2.f32 %v2580_v10 }
 0x5fa   : > { %v2419_v2 = vpop.xlane.xlu0 %2418  ;;  %5556 = vpow2.f32 %v2582_v47  ;;  %v2465_v47 = vsub.f32 %v6997_v61, %v7179_v9  ;;  %v2420_v61 = vsub.f32 %v6894_v42, %v7089_v0 }
 0x5fb   : > { %v2482_v39 = vsub.f32 %v7127_v27, %v2419_v2  ;;  %v2483_v4 = vsub.f32 %v7129_v7, %v2419_v2  ;;  %v2492_v27 = vmul.f32 1.442695, %v2424_v18  ;;  %v2464_v18 = vsub.f32 %v6995_v3, %v7179_v9 }
 0x5fc   : > { %v2574_v12 = vmul.f32 1.442695, %v2465_v47  ;;  %v2576_v47 = vmul.f32 1.442695, %v2466_v49  ;;  %v8410_v49 = vld [vmem:[#allocation21_spill] sm:$0xff] }
 0x5fd   : > { %v7265_v30 = vpop.eup %5550  ;;  %v2608_v19 = vmul.f32 1.442695, %v2482_v39  ;;  %v2610_v32 = vmul.f32 1.442695, %v2483_v4  ;;  %v2572_v4 = vmul.f32 1.442695, %v2464_v18 }
 0x5fe   : > { %v7269_v38 = vpop.eup %5552 }
 0x5ff   : > { %5558 = vpow2.f32 %v2608_v19  ;;  %v2702_v7 = vadd.f32 %v7269_v38, %v7265_v30  ;;  %v7275_v34 = vpop.eup %5554 }
 0x600   : > { %5560 = vpow2.f32 %v2610_v32  ;;  %v7281_v44 = vpop.eup %5556  ;;  %v2421_v32 = vsub.f32 %v6897_v56, %v7089_v0  ;;  %v8404_v56 = vld [vmem:[#allocation27_spill] sm:$0xff]  ;;  %v8405_v0 = vld [vmem:[#allocation12_spill] sm:$0xff] }
 0x601   : > { %2703 = vadd.xlane.f32.xlu1 %v2702_v7  ;;  %5562 = vpow2.f32 %v2492_v27  ;;  %v2684_v2 = vadd.f32 %v7281_v44, %v7275_v34  ;;  %v8403_v27 = vld [vmem:[#allocation24_spill] sm:$0xff]  ;;  %v2422_v18 = vsub.f32 %v8405_v0, %v8404_v56 }
 0x602   : > { %5564 = vpow2.f32 %v2494_v54  ;;  %v2467_v7 = vsub.f32 %v8403_v27, %v7197_v60  ;;  %v2484_v54 = vmul.f32 1.442695, %v2420_v61  ;;  %v2486_v24 = vmul.f32 1.442695, %v2421_v32  ;;  %v8409_v61 = vld [vmem:[#allocation20_spill] sm:$0xff] }
 0x603   : > { %v7279_v13 = vpop.xlane.xlu0 %2640  ;;  %5566 = vpow2.f32 %v2584_v45  ;;  %v2650_v45 = vpop.xlane.xlu1 %2649  ;;  %v2460_v32 = vsub.f32 %v8409_v61, %v7167_v15  ;;  %v2461_v27 = vsub.f32 %v8410_v49, %v7167_v15  ;;  %v8412_v61 = vld [vmem:[#allocation17_spill] sm:$0xff] }
 0x604   : > { %5568 = vpow2.f32 %v2586_v35  ;;  %v2578_v60 = vmul.f32 1.442695, %v2467_v7  ;;  %v2457_v49 = vsub.f32 %v8412_v61, %v7149_v6 }
 0x605   : > { %v7285_v29 = vpop.eup %5558  ;;  %5570 = vpow2.f32 %v2496_v58  ;;  %v2566_v15 = vmul.f32 1.442695, %v2461_v27 }
 0x606   : > { %v7289_v10 = vpop.eup %5560  ;;  %5572 = vpow2.f32 %v2498_v5 }
 0x607   : > { %v2705_v39 = vadd.f32 %v7289_v10, %v7285_v29  ;;  %v7297_v52 = vpop.eup %5562  ;;  %5574 = vpow2.f32 %v2572_v4 }
 0x608   : > { %v7299_v3 = vpop.eup %5564  ;;  %5576 = vpow2.f32 %v2574_v12  ;;  %v2488_v12 = vmul.f32 1.442695, %v2422_v18  ;;  %v2564_v18 = vmul.f32 1.442695, %v2460_v32  ;;  %v8413_v32 = vld [vmem:[#allocation22_spill] sm:$0xff] }
 0x609   : > { %2685 = vadd.xlane.f32.xlu1 %v2684_v2  ;;  %2706 = vadd.xlane.f32.xlu0 %v2705_v39  ;;  %v7301_v51 = vpop.eup %5566  ;;  %v2618_v42 = vadd.f32 %v7299_v3, %v7297_v52  ;;  %5578 = vpow2.f32 %v2484_v54  ;;  %v8407_v2 = vld [vmem:[#allocation13_spill] sm:$0xff] }
 0x60a   : > { %v7307_v19 = vpop.eup %5568  ;;  %v2423_v39 = vsub.f32 %v8407_v2, %v8404_v56  ;;  %5580 = vpow2.f32 %v2486_v24  ;;  %v8411_v24 = vld [vmem:[#allocation16_spill] sm:$0xff] }
 0x60b   : > { %v7305_v9 = vpop.xlane.xlu0 %2634  ;;  %v2687_v35 = vadd.f32 %v7307_v19, %v7301_v51  ;;  %v7319_v11 = vpop.eup %5570  ;;  %5582 = vpow2.f32 %v2576_v47  ;;  %v2456_v0 = vsub.f32 %v8411_v24, %v7149_v6  ;;  %v2558_v6 = vmul.f32 1.442695, %v2457_v49 }
 0x60c   : > { %v7323_v53 = vpop.eup %5572  ;;  %5584 = vpow2.f32 %v2578_v60  ;;  %v2490_v7 = vmul.f32 1.442695, %v2423_v39 }
 0x60d   : > { %v7325_v58 = vpop.eup %5574  ;;  %5586 = vpow2.f32 %v2488_v12  ;;  %v2556_v12 = vmul.f32 1.442695, %v2456_v0 }
 0x60e   : > { %8406 = vst [vmem:[#allocation24_spill] sm:$0xff] %v7325_v58  ;;  %v7331_v4 = vpop.eup %5576 }
 0x60f   : > { %8408 = vst [vmem:[#allocation27_spill] sm:$0xff] %v7331_v4  ;;  %v2678_v54 = vadd.f32 %v7331_v4, %v7325_v58  ;;  %v7341_v56 = vpop.eup %5578 }
 0x610   : > { %v7345_v47 = vpop.eup %5580 }
 0x611   : > { %2619 = vadd.xlane.f32.xlu1 %v2618_v42  ;;  %2688 = vadd.xlane.f32.xlu0 %v2687_v35  ;;  %v2656_v42 = vpop.xlane.xlu1 %2655  ;;  %v2621_v35 = vadd.f32 %v7323_v53, %v7319_v11  ;;  %v7347_v60 = vpop.eup %5582 }
 0x612   : > { %5588 = vrcp.f32 %v2656_v42  ;;  %v7349_v39 = vpop.eup %5584 }
 0x613   : > { %v7329_v5 = vpop.xlane.xlu0 %2628  ;;  %5590 = vpow2.f32 %v2490_v7  ;;  %v7357_v42 = vpop.eup %5586  ;;  %v2612_v7 = vadd.f32 %v7345_v47, %v7341_v56  ;;  %v2681_v24 = vadd.f32 %v7349_v39, %v7347_v60 }
 0x618   : > { %v5589_v50 = vpop.eup %5588 }
 0x619   : > { %2679 = vadd.xlane.f32.xlu1 %v2678_v54  ;;  %2622 = vadd.xlane.f32.xlu0 %v2621_v35  ;;  %v2462_v54 = vsub.f32 %v8413_v32, %v7187_v55  ;;  %v8414_v35 = vld [vmem:[#allocation23_spill] sm:$0xff]  ;;  %v7364_v0 = vpop.eup %5590  ;;  %v2769_v49 = vmul.f32 %v5589_v50, %v7117_v14 }
 0x61a   : > { %v2463_v27 = vsub.f32 %v8414_v35, %v7187_v55  ;;  %v8415_v55 = vld [vmem:[#allocation14_spill] sm:$0xff]  ;;  %v2768_v35 = vmul.f32 %v5589_v50, %v7111_v63  ;;  %v8418_v14 = vld [vmem:[#allocation19_spill] sm:$0xff] }
 0x61b   : > { %v2659_v2 = vpop.xlane.xlu0 %2658  ;;  %v2455_v50 = vsub.f32 %v8418_v14, %v7108_v22 }
 0x61c   : > { %5592 = vrcp.f32 %v2659_v2  ;;  %v2452_v2 = vsub.f32 %v8415_v55, %v7125_v25  ;;  %v2570_v61 = vmul.f32 1.442695, %v2463_v27 }
 0x61d   : > { %5594 = vpow2.f32 %v2564_v18  ;;  %v2568_v18 = vmul.f32 1.442695, %v2462_v54  ;;  %v8416_v54 = vld [vmem:[#allocation15_spill] sm:$0xff] }
 0x61e   : > { %5596 = vpow2.f32 %v2566_v15 }
 0x61f   : > { %5598 = vrcp.f32 %v7251_v48 }
 0x620   : > { %5600 = vpow2.f32 %v2556_v12 }
 0x621   : > { %2613 = vadd.xlane.f32.xlu1 %v2612_v7  ;;  %2682 = vadd.xlane.f32.xlu0 %v2681_v24  ;;  %5602 = vrcp.f32 %v2650_v45  ;;  %v2453_v7 = vsub.f32 %v8416_v54, %v7125_v25  ;;  %v8417_v24 = vld [vmem:[#allocation18_spill] sm:$0xff]  ;;  %v2632_v45 = vpop.xlane.xlu1 %2631  ;;  %v8420_v54 = vld [vmem:[#allocation29_spill] sm:$0xff] }
 0x622   : > { %v5593_v15 = vpop.eup %5592  ;;  %5604 = vpow2.f32 %v2558_v6  ;;  %v2454_v27 = vsub.f32 %v8417_v24, %v7108_v22  ;;  %v2615_v6 = vadd.f32 %v7364_v0, %v7357_v42 }
 0x623   : > { %v7368_v32 = vpop.eup %5594  ;;  %v2770_v48 = vmul.f32 %v5593_v15, %v7191_v36  ;;  %v2771_v4 = vmul.f32 %v5593_v15, %v7193_v41  ;;  %5606 = vpow2.f32 %v2568_v18  ;;  %v2548_v41 = vmul.f32 1.442695, %v2452_v2 }
 0x624   : > { %v7374_v12 = vpop.eup %5596  ;;  %5608 = vpow2.f32 %v2570_v61  ;;  %v2550_v15 = vmul.f32 1.442695, %v2453_v7  ;;  %v2554_v2 = vmul.f32 1.442695, %v2455_v50 }
 0x625   : > { %v2818_v55 = vpack.c.bf16 %v2770_v48, %v2768_v35  ;;  %v2819_v58 = vpack.c.bf16 %v2771_v4, %v2769_v49  ;;  %v5599_v63 = vpop.eup %5598  ;;  %v2672_v25 = vadd.f32 %v7374_v12, %v7368_v32  ;;  %v2552_v35 = vmul.f32 1.442695, %v2454_v27 }
 0x626   : > { %v7382_v36 = vpop.eup %5600  ;;  %v2766_v4 = vmul.f32 %v5599_v63, %v7093_v23  ;;  %v2767_v22 = vmul.f32 %v5599_v63, %v7096_v8  ;;  %5610 = vpow2.f32 %v2548_v41 }
 0x627   : > { %2836 = vmatpush.bf16.xpose.msra.mxu2 %v2818_v55  ;;  %2849 = vmatpush.bf16.xpose.msra.mxu3 %v2819_v58  ;;  %v5603_v18 = vpop.eup %5602  ;;  %v8419_v58 = vld [vmem:[#allocation28_spill] sm:$0xff]  ;;  %5612 = vpow2.f32 %v2550_v15  ;;  %v8421_v15 = vpack.c.bf16 %v7225_v43, %v7222_v28 }
 0x628   : > { %v7390_v61 = vpop.eup %5604  ;;  %v2764_v48 = vmul.f32 %v5603_v18, %v8419_v58  ;;  %v2765_v24 = vmul.f32 %v5603_v18, %v8420_v54  ;;  %5614 = vpow2.f32 %v2552_v35 }
 0x629   : > { %2673 = vadd.xlane.f32.xlu1 %v2672_v25  ;;  %2616 = vadd.xlane.f32.xlu0 %v2615_v6  ;;  %v7392_v49 = vpop.eup %5606  ;;  %5616 = vpow2.f32 %v2554_v2  ;;  %v2626_v23 = vpop.xlane.xlu1 %2625  ;;  %v2666_v8 = vadd.f32 %v7390_v61, %v7382_v36  ;;  %v8424_v2 = vld [vmem:[#allocation26_spill] sm:$0xff] }
 0x62a   : > { %v7396_v55 = vpop.eup %5608  ;;  %v2816_v7 = vpack.c.bf16 %v2766_v4, %v2764_v48  ;;  %v2817_v27 = vpack.c.bf16 %v2767_v22, %v2765_v24  ;;  %5618 = vrcp.f32 %v7279_v13  ;;  %v8422_v13 = vpack.c.bf16 %v7231_v37, %v7228_v16  ;;  %v8423_v16 = vld [vmem:[#allocation25_spill] sm:$0xff] }
 0x62b   : > { %v2675_v63 = vadd.f32 %v7396_v55, %v7392_v49  ;;  %5620 = vrcp.f32 %v7199_v17 }
 0x62c   : > { %v7403_v14 = vpop.eup %5610  ;;  %5622 = vrcp.f32 %v7305_v9 }
 0x62d   : > { %v7405_v50 = vpop.eup %5612  ;;  %5624 = vrcp.f32 %v2632_v45  ;;  %v8425_v45 = vld [vmem:[#allocation36_spill] sm:$0xff] }
 0x62e   : > { %v7408_v41 = vpop.eup %5614  ;;  %v2660_v17 = vadd.f32 %v7405_v50, %v7403_v14 }
 0x62f   : > { %2837 = vmatpush.bf16.xpose.msra.mxu2 %v2816_v7  ;;  %2850 = vmatpush.bf16.xpose.msra.mxu3 %v2817_v27  ;;  %v7410_v25 = vpop.eup %5616 }
 0x630   : > { %v5619_v6 = vpop.eup %5618  ;;  %v2663_v35 = vadd.f32 %v7410_v25, %v7408_v41 }
 0x631   : > { %2667 = vadd.xlane.f32.xlu1 %v2666_v8  ;;  %2676 = vadd.xlane.f32.xlu0 %v2675_v63  ;;  %v5621_v4 = vpop.eup %5620  ;;  %v2758_v22 = vmul.f32 %v5619_v6, %v7147_v20  ;;  %v2759_v28 = vmul.f32 %v5619_v6, %v7151_v57  ;;  %v8426_v8 = vld [vmem:[#allocation30_spill] sm:$0xff]  ;;  %v8427_v6 = vld [vmem:[#allocation31_spill] sm:$0xff] }
 0x632   : > { %v2756_v37 = vmul.f32 %v5621_v4, %v8423_v16  ;;  %v2757_v58 = vmul.f32 %v5621_v4, %v8424_v2  ;;  %v5623_v24 = vpop.eup %5622  ;;  %v8430_v16 = vld [vmem:[#allocation32_spill] sm:$0xff] }
 0x633   : > { %v2692_v18 = vpop.xlane.xlu1 %2691  ;;  %v5625_v7 = vpop.eup %5624  ;;  %v2754_v20 = vmul.f32 %v5623_v24, %v7169_v59  ;;  %v2755_v57 = vmul.f32 %v5623_v24, %v8425_v45 }
 0x634   : > { %5626 = vrcp.f32 %v2692_v18  ;;  %v2812_v48 = vpack.c.bf16 %v2758_v22, %v2756_v37  ;;  %v2813_v54 = vpack.c.bf16 %v2759_v28, %v2757_v58  ;;  %v2752_v63 = vmul.f32 %v5625_v7, %v8426_v8 }
 0x635   : > { %v2753_v18 = vmul.f32 %v5625_v7, %v8427_v6 }
 0x636   : > { %v2810_v59 = vpack.c.bf16 %v2754_v20, %v2752_v63 }
 0x637   : > { %2838 = vmatpush.bf16.xpose.msra.mxu2 %v8421_v15  ;;  %2851 = vmatpush.bf16.xpose.msra.mxu3 %v8422_v13 }
 0x639   : > { %2664 = vadd.xlane.f32.xlu1 %v2663_v35  ;;  %2661 = vadd.xlane.f32.xlu0 %v2660_v17  ;;  %v2811_v17 = vpack.c.bf16 %v2755_v57, %v2753_v18 }
 0x63a   : > { %v5627_v9 = vpop.eup %5626 }
 0x63b   : > { %v2695_v43 = vpop.xlane.xlu0 %2694  ;;  %v7433_v15 = vmul.f32 %v5627_v9, %v7207_v21  ;;  %v7439_v35 = vmul.f32 %v5627_v9, %v7209_v26 }
 0x63c   : > { %5628 = vrcp.f32 %v2695_v43  ;;  %v8429_v43 = vld [vmem:[#allocation38_spill] sm:$0xff] }
 0x63d   : > { %5630 = vrcp.f32 %v7329_v5 }
 0x63e   : > { %5632 = vrcp.f32 %v2626_v23 }
 0x63f   : > { %2839 = vmatpush.bf16.xpose.msra.mxu2 %v2812_v48  ;;  %2852 = vmatpush.bf16.xpose.msra.mxu3 %v2813_v54 }
 0x642   : > { %v5629_v27 = vpop.eup %5628 }
 0x643   : > { %v7436_v13 = vmul.f32 %v5629_v27, %v7215_v62  ;;  %v7442_v5 = vmul.f32 %v5629_v27, %v7217_v33  ;;  %v5631_v22 = vpop.eup %5630  ;;  %v8428_v62 = vld [vmem:[#allocation37_spill] sm:$0xff]  ;;  %v2698_v54 = vpop.xlane.xlu1 %2697 }
 0x644   : > { %v5633_v21 = vpop.eup %5632  ;;  %v2750_v28 = vmul.f32 %v5631_v22, %v8428_v62  ;;  %v2751_v26 = vmul.f32 %v5631_v22, %v8429_v43  ;;  %v8431_v33 = vld [vmem:[#allocation33_spill] sm:$0xff] }
 0x645   : > { %v2830_v23 = vpack.c.bf16 %v7436_v13, %v7433_v15  ;;  %v2831_v4 = vpack.c.bf16 %v7442_v5, %v7439_v35  ;;  %v2748_v37 = vmul.f32 %v5633_v21, %v8430_v16  ;;  %v2749_v2 = vmul.f32 %v5633_v21, %v8431_v33  ;;  %v5449_v35 = vld [vmem:[%s8326_s5 + $0x3ec] sm:$0xf0] }
 0x647   : > { %2840 = vmatpush.bf16.xpose.msra.mxu2 %v2810_v59  ;;  %2853 = vmatpush.bf16.xpose.msra.mxu3 %v2811_v17  ;;  %v2808_v58 = vpack.c.bf16 %v2750_v28, %v2748_v37  ;;  %v2809_v48 = vpack.c.bf16 %v2751_v26, %v2749_v2 }
 0x64b   : > { %v2701_v24 = vpop.xlane.xlu0 %2700 }
 0x64f   : > { %2841 = vmatpush.bf16.xpose.msra.mxu2 %v2808_v58  ;;  %2854 = vmatpush.bf16.xpose.msra.mxu3 %v2809_v48 }
 0x674   : > { %v2704_v7 = vpop.xlane.xlu1 %2703 }
 0x67c   : > { %v2686_v9 = vpop.xlane.xlu1 %2685  ;;  %v2707_v20 = vpop.xlane.xlu0 %2706 }
 0x684   : > { %v2689_v45 = vpop.xlane.xlu0 %2688  ;;  %v2620_v57 = vpop.xlane.xlu1 %2619 }
 0x685   : > { %5634 = vrcp.f32 %v2620_v57 }
 0x68b   : > { %v5635_v63 = vpop.eup %5634 }
 0x68c   : > { %v2623_v27 = vpop.xlane.xlu0 %2622  ;;  %v7452_v8 = vpop.xlane.xlu1 %2679  ;;  %v2744_v59 = vmul.f32 %v5635_v63, %v7297_v52  ;;  %v2745_v22 = vmul.f32 %v5635_v63, %v7299_v3 }
 0x68d   : > { %5636 = vrcp.f32 %v2623_v27 }
 0x68e   : > { %5638 = vrcp.f32 %v2707_v20 }
 0x693   : > { %v5637_v6 = vpop.eup %5636 }
 0x694   : > { %v2683_v18 = vpop.xlane.xlu0 %2682  ;;  %v2746_v17 = vmul.f32 %v5637_v6, %v7319_v11  ;;  %v2747_v21 = vmul.f32 %v5637_v6, %v7323_v53  ;;  %v2614_v43 = vpop.xlane.xlu1 %2613 }
 0x695   : > { %5640 = vrcp.f32 %v2614_v43  ;;  %v5639_v16 = vpop.eup %5638 }
 0x696   : > { %v2806_v62 = vpack.c.bf16 %v2746_v17, %v2744_v59  ;;  %v2807_v28 = vpack.c.bf16 %v2747_v21, %v2745_v22  ;;  %5642 = vrcp.f32 %v2704_v7  ;;  %v2802_v3 = vmul.f32 %v5639_v16, %v7285_v29 }
 0x697   : > { %v2803_v11 = vmul.f32 %v5639_v16, %v7289_v10 }
 0x698   : > { %2842 = vmatpush.bf16.xpose.msra.mxu2 %v2806_v62  ;;  %2855 = vmatpush.bf16.xpose.msra.mxu3 %v2807_v28 }
 0x69b   : > { %v5641_v37 = vpop.eup %5640 }
 0x69c   : > { %v2617_v26 = vpop.xlane.xlu0 %2616  ;;  %v5643_v33 = vpop.eup %5642  ;;  %v2740_v53 = vmul.f32 %v5641_v37, %v7341_v56  ;;  %v2741_v58 = vmul.f32 %v5641_v37, %v7345_v47  ;;  %v8432_v47 = vld [vmem:[#allocation10_spill] sm:$0xff] }
 0x69d   : > { %5644 = vrcp.f32 %v2617_v26  ;;  %v2800_v7 = vmul.f32 %v5643_v33, %v7265_v30  ;;  %v2801_v20 = vmul.f32 %v5643_v33, %v7269_v38  ;;  %v8433_v30 = vld [vmem:[#allocation11_spill] sm:$0xff]  ;;  %v2674_v15 = vpop.xlane.xlu1 %2673  ;;  %v8434_v26 = vld [vmem:[#allocation24_spill] sm:$0xff] }
 0x69e   : > { %5646 = vrcp.f32 %v2701_v24  ;;  %v7474_v38 = vpack.c.bf16 %v8433_v30, %v8433_v30 }
 0x69f   : > { %5648 = vrcp.f32 %v2698_v54  ;;  %v2834_v27 = vpack.c.bf16 %v2802_v3, %v2800_v7  ;;  %v2835_v54 = vpack.c.bf16 %v2803_v11, %v2801_v20  ;;  %v4865_v3 = vld [vmem:[%s8326_s5 + $0x190] sm:$0xf] }
 0x6a0   : > { %5650 = vrcp.f32 %v2689_v45  ;;  %v5377_v11 = vld [vmem:[%s8326_s5 + $0x1ac] sm:$0xf0] }
 0x6a1   : > { %5652 = vrcp.f32 %v2686_v9  ;;  %v5153_v9 = vld [vmem:[%s8326_s5 + $0x3d0] sm:$0xf] }
 0x6a2   : > { %5654 = vrcp.f32 %v2683_v18 }
 0x6a3   : > { %v5645_v52 = vpop.eup %5644  ;;  %5656 = vrcp.f32 %v7452_v8 }
 0x6a4   : > { %v2742_v2 = vmul.f32 %v5645_v52, %v7357_v42  ;;  %v2743_v48 = vmul.f32 %v5645_v52, %v7364_v0  ;;  %v5647_v63 = vpop.eup %5646  ;;  %v7470_v42 = vpack.c.bf16 %v8432_v47, %v8432_v47  ;;  %v2677_v18 = vpop.xlane.xlu0 %2676  ;;  %v8436_v47 = vld [vmem:[#allocation34_spill] sm:$0xff] }
 0x6a5   : > { %v5649_v29 = vpop.eup %5648  ;;  %v2798_v10 = vmul.f32 %v5647_v63, %v7245_v40  ;;  %v2799_v56 = vmul.f32 %v5647_v63, %v7247_v1  ;;  %5658 = vrcp.f32 %v2677_v18  ;;  %v2668_v8 = vpop.xlane.xlu1 %2667  ;;  %v5089_v18 = vld [vmem:[%s8326_s5 + $0x350] sm:$0xf] }
 0x6a6   : > { %v2804_v57 = vpack.c.bf16 %v2742_v2, %v2740_v53  ;;  %v2805_v24 = vpack.c.bf16 %v2743_v48, %v2741_v58  ;;  %v2796_v0 = vmul.f32 %v5649_v29, %v7239_v46  ;;  %v2797_v6 = vmul.f32 %v5649_v29, %v7241_v31  ;;  %v5651_v1 = vpop.eup %5650  ;;  %v4897_v46 = vld [vmem:[%s8326_s5 + $0x1d0] sm:$0xf] }
 0x6a7   : > { %v5385_v31 = vld [vmem:[%s8326_s5 + $0x1ec] sm:$0xf0]  ;;  %v5653_v45 = vpop.eup %5652  ;;  %v2790_v5 = vmul.f32 %v5651_v1, %v7301_v51  ;;  %5660 = vrcp.f32 %v2674_v15  ;;  %v4866_v53 = vor.u32 %v5377_v11, %v4865_v3 }
 0x6a8   : > { %2843 = vmatpush.bf16.xpose.msra.mxu2 %v2804_v57  ;;  %2856 = vmatpush.bf16.xpose.msra.mxu3 %v2805_v24  ;;  %v2832_v59 = vpack.c.bf16 %v2798_v10, %v2796_v0  ;;  %v2833_v40 = vpack.c.bf16 %v2799_v56, %v2797_v6  ;;  %v4898_v13 = vor.u32 %v5385_v31, %v4897_v46  ;;  %v5655_v28 = vpop.eup %5654  ;;  %v5441_v2 = vld [vmem:[%s8326_s5 + $0x3ac] sm:$0xf0]  ;;  %5662 = vrcp.f32 %v2668_v8  ;;  %v8437_v0 = vld [vmem:[#allocation35_spill] sm:$0xff] }
 0x6a9   : > { %v2788_v17 = vmul.f32 %v5653_v45, %v7275_v34  ;;  %v2789_v22 = vmul.f32 %v5653_v45, %v7281_v44  ;;  %v5657_v43 = vpop.eup %5656  ;;  %v2786_v51 = vmul.f32 %v5655_v28, %v7347_v60  ;;  %v8435_v34 = vld [vmem:[#allocation27_spill] sm:$0xff]  ;;  %v5121_v60 = vld [vmem:[%s8326_s5 + $0x390] sm:$0xf] }
 0x6aa   : > { %3762 = vmatpush.bf16.msrb.mxu0 %v4898_v13  ;;  %v2784_v16 = vmul.f32 %v5657_v43, %v8434_v26  ;;  %v2785_v37 = vmul.f32 %v5657_v43, %v8435_v34  ;;  %v5122_v48 = vor.u32 %v5441_v2, %v5121_v60  ;;  %v5369_v6 = vld [vmem:[%s8326_s5 + $0x16c] sm:$0xf0]  ;;  %v4753_v60 = vld [vmem:[%s8326_s5 + $0xc0] sm:$0xf] }
 0x6ab   : > { %v2828_v21 = vpack.c.bf16 %v2790_v5, %v2788_v17  ;;  %v5659_v52 = vpop.eup %5658  ;;  %v4769_v17 = vld [vmem:[%s8326_s5 + $0xd0] sm:$0xf] }
 0x6ac   : > { %v2826_v44 = vpack.c.bf16 %v2786_v51, %v2784_v16  ;;  %v2782_v7 = vmul.f32 %v5659_v52, %v7392_v49  ;;  %v2783_v20 = vmul.f32 %v5659_v52, %v7396_v55  ;;  %v4817_v51 = vld [vmem:[%s8326_s5 + $0x140] sm:$0xf]  ;;  %v4737_v8 = vld [vmem:[%s8326_s5 + $0x90] sm:$0xf] }
 0x6ad   : > { %v5661_v58 = vpop.eup %5660  ;;  %v5345_v26 = vld [vmem:[%s8326_s5 + $0xac] sm:$0xf0] }
 0x6ae   : > { %3763 = vmatpush.bf16.msrb.mxu0 %v4866_v53  ;;  %v2780_v57 = vmul.f32 %v5661_v58, %v7368_v32  ;;  %v2781_v24 = vmul.f32 %v5661_v58, %v7374_v12  ;;  %v5663_v10 = vpop.eup %5662  ;;  %v4833_v12 = vld [vmem:[%s8326_s5 + $0x150] sm:$0xf]  ;;  %v4738_v16 = vor.u32 %v5345_v26, %v4737_v8  ;;  %v5386_v58 = vld [vmem:[%s8326_s5 + $0x1f4] sm:$0xf0] }
 0x6af   : > { %2844 = vmatmul.bf16.vlgmr.msra.gmra.mxu2 %v7470_v42  ;;  %2857 = vmatmul.bf16.vlgmr.msra.gmra.mxu3 %v7474_v38  ;;  %v2776_v49 = vmul.f32 %v5663_v10, %v7382_v36  ;;  %v2777_v55 = vmul.f32 %v5663_v10, %v7390_v61  ;;  %v4834_v46 = vor.u32 %v5369_v6, %v4833_v12  ;;  %v4801_v61 = vld [vmem:[%s8326_s5 + $0x110] sm:$0xf]  ;;  %v5335_v10 = vld [vmem:[%s8326_s5 + $0x5c] sm:$0xf0]  ;;  %v4883_v12 = vld [vmem:[%s8326_s5 + $0x1e0] sm:$0xf0] }
 0x6b0   : > { %2862 = vmatpush.bf16.xpose.msrb.mxu2 %v2834_v27  ;;  %2875 = vmatpush.bf16.xpose.msrb.mxu3 %v2835_v54  ;;  %v2665_v27 = vpop.xlane.xlu1 %2664  ;;  %v2662_v54 = vpop.xlane.xlu0 %2661  ;;  %v2824_v63 = vpack.c.bf16 %v2782_v7, %v2780_v57  ;;  %v2825_v29 = vpack.c.bf16 %v2783_v20, %v2781_v24  ;;  %v5337_v52 = vld [vmem:[%s8326_s5 + $0x6c] sm:$0xf0]  ;;  %v4721_v20 = vld [vmem:[%s8326_s5 + $0x80] sm:$0xf]  ;;  %v4873_v24 = vld [vmem:[%s8326_s5 + $0x198] sm:$0xf] }
 0x6b1   : > { %v4673_v53 = vld [vmem:[%s8326_s5 + $0x10] sm:$0xf]  ;;  %v5343_v57 = vld [vmem:[%s8326_s5 + $0x9c] sm:$0xf0]  ;;  %v4777_v8 = vld [vmem:[%s8326_s5 + $0xd8] sm:$0xf] }
 0x6b2   : > { %3764 = vmatpush.bf16.msrb.mxu0 %v4834_v46  ;;  %v5354_v26 = vld [vmem:[%s8326_s5 + $0xf4] sm:$0xf0] }
 0x6b8   : > { %2863 = vmatpush.bf16.xpose.msrb.mxu2 %v2832_v59  ;;  %2876 = vmatpush.bf16.xpose.msrb.mxu3 %v2833_v40 }
 0x6c0   : > { %2864 = vmatpush.bf16.xpose.msrb.mxu2 %v2830_v23  ;;  %2877 = vmatpush.bf16.xpose.msrb.mxu3 %v2831_v4  ;;  %v2791_v23 = vmul.f32 %v5651_v1, %v7307_v19  ;;  %v5154_v4 = vor.u32 %v5449_v35, %v5153_v9  ;;  %v2787_v19 = vmul.f32 %v5655_v28, %v7349_v39  ;;  %v2671_v39 = vpop.xlane.xlu2 %2670  ;;  %v5361_v9 = vld [vmem:[%s8326_s5 + $0x12c] sm:$0xf0]  ;;  %v4881_v35 = vld [vmem:[%s8326_s5 + $0x1c0] sm:$0xf] }
 0x6c1   : > { %5664 = vrcp.f32 %v2671_v39  ;;  %v4802_v5 = vor.u32 %v5361_v9, %v4801_v61  ;;  %v5351_v39 = vld [vmem:[%s8326_s5 + $0xdc] sm:$0xf0]  ;;  %v5355_v9 = vld [vmem:[%s8326_s5 + $0x104] sm:$0xf] }
 0x6c2   : > { %3775 = vmatpush.bf16.msrb.mxu1 %v5154_v4  ;;  %v2829_v62 = vpack.c.bf16 %v2791_v23, %v2789_v22  ;;  %v2827_v33 = vpack.c.bf16 %v2787_v19, %v2785_v37  ;;  %5666 = vrcp.f32 %v2665_v27  ;;  %v4849_v4 = vld [vmem:[%s8326_s5 + $0x180] sm:$0xf]  ;;  %v5353_v22 = vld [vmem:[%s8326_s5 + $0xec] sm:$0xf0]  ;;  %v4754_v7 = vor.u32 %v5351_v39, %v4753_v60  ;;  %v5378_v27 = vld [vmem:[%s8326_s5 + $0x1b4] sm:$0xf0] }
 0x6c3   : > { %5668 = vrcp.f32 %v2662_v54  ;;  %3765 = vmatpush.bf16.msrb.mxu0 %v4802_v5  ;;  %v5367_v19 = vld [vmem:[%s8326_s5 + $0x15c] sm:$0xf0]  ;;  %v4874_v54 = vor.u32 %v5378_v27, %v4873_v24  ;;  %v5339_v5 = vld [vmem:[%s8326_s5 + $0x84] sm:$0xf]  ;;  %v4681_v24 = vld [vmem:[%s8326_s5 + $0x18] sm:$0xf] }
 0x6c4   : > { %v4818_v34 = vor.u32 %v5367_v19, %v4817_v51  ;;  %v4785_v37 = vld [vmem:[%s8326_s5 + $0x100] sm:$0xf]  ;;  %v4659_v51 = vld [vmem:[%s8326_s5 + $0x20] sm:$0xf0]  ;;  %v5330_v27 = vld [vmem:[%s8326_s5 + $0x34] sm:$0xf0] }
 0x6c5   : > { %v5073_v39 = vld [vmem:[%s8326_s5 + $0x340] sm:$0xf] }
 0x6c6   : > { %3776 = vmatpush.bf16.msrb.mxu1 %v5122_v48 }
 0x6c7   : > { %v5665_v56 = vpop.eup %5664 }
 0x6c8   : > { %2865 = vmatpush.bf16.xpose.msrb.mxu2 %v2828_v21  ;;  %2878 = vmatpush.bf16.xpose.msrb.mxu3 %v2829_v62  ;;  %v2778_v30 = vmul.f32 %v5665_v56, %v8436_v47  ;;  %v2779_v32 = vmul.f32 %v5665_v56, %v8437_v0  ;;  %v5667_v59 = vpop.eup %5666  ;;  %v4770_v21 = vor.u32 %v5353_v22, %v4769_v17  ;;  %v5433_v62 = vld [vmem:[%s8326_s5 + $0x36c] sm:$0xf0]  ;;  %v4841_v56 = vld [vmem:[%s8326_s5 + $0x158] sm:$0xf]  ;;  %v5327_v0 = vld [vmem:[%s8326_s5 + $0x1c] sm:$0xf0] }
 0x6c9   : > { %v5669_v31 = vpop.eup %5668  ;;  %v2774_v36 = vmul.f32 %v5667_v59, %v7408_v41  ;;  %v2775_v13 = vmul.f32 %v5667_v59, %v7410_v25  ;;  %v5383_v41 = vld [vmem:[%s8326_s5 + $0x1dc] sm:$0xf0]  ;;  %v5090_v28 = vor.u32 %v5433_v62, %v5089_v18  ;;  %v4809_v17 = vld [vmem:[%s8326_s5 + $0x118] sm:$0xf] }
 0x6ca   : > { %v2822_v40 = vpack.c.bf16 %v2778_v30, %v2776_v49  ;;  %v2823_v1 = vpack.c.bf16 %v2779_v32, %v2777_v55  ;;  %v2772_v45 = vmul.f32 %v5669_v31, %v7403_v14  ;;  %v2773_v15 = vmul.f32 %v5669_v31, %v7405_v50  ;;  %v5375_v14 = vld [vmem:[%s8326_s5 + $0x19c] sm:$0xf0]  ;;  %3766 = vmatpush.bf16.msrb.mxu0 %v4770_v21  ;;  %v5370_v49 = vld [vmem:[%s8326_s5 + $0x174] sm:$0xf0]  ;;  %v5379_v32 = vld [vmem:[%s8326_s5 + $0x1c4] sm:$0xf] }
 0x6cb   : > { %v4882_v23 = vor.u32 %v5383_v41, %v4881_v35  ;;  %v4850_v43 = vor.u32 %v5375_v14, %v4849_v4  ;;  %3777 = vmatpush.bf16.msrb.mxu1 %v5090_v28  ;;  %v4842_v55 = vor.u32 %v5370_v49, %v4841_v56  ;;  %v4657_v30 = vld [vmem:[%s8326_s5] sm:$0xf]  ;;  %v4886_v59 = vor.u32 %v5379_v32, %v4883_v12  ;;  %v5363_v31 = vld [vmem:[%s8326_s5 + $0x144] sm:$0xf]  ;;  %v5362_v22 = vld [vmem:[%s8326_s5 + $0x134] sm:$0xf0] }
 0x6cc   : > { %v2820_v50 = vpack.c.bf16 %v2774_v36, %v2772_v45  ;;  %v2821_v25 = vpack.c.bf16 %v2775_v13, %v2773_v15  ;;  %v4658_v6 = vor.u32 %v5327_v0, %v4657_v30  ;;  %v4819_v36 = vld [vmem:[%s8326_s5 + $0x160] sm:$0xf0]  ;;  %v4810_v18 = vor.u32 %v5362_v22, %v4809_v17  ;;  %v5137_v21 = vld [vmem:[%s8326_s5 + $0x3c0] sm:$0xf]  ;;  %v4825_v22 = vld [vmem:[%s8326_s5 + $0x148] sm:$0xf] }
 0x6cd   : > { %v4822_v61 = vor.u32 %v5363_v31, %v4819_v36  ;;  %v4787_v45 = vld [vmem:[%s8326_s5 + $0x120] sm:$0xf0]  ;;  %v5447_v62 = vld [vmem:[%s8326_s5 + $0x3dc] sm:$0xf0] }
 0x6ce   : > { %3767 = vmatpush.bf16.msrb.mxu0 %v4738_v16  ;;  %v4790_v15 = vor.u32 %v5355_v9, %v4787_v45  ;;  %v5347_v13 = vld [vmem:[%s8326_s5 + $0xc4] sm:$0xf]  ;;  %v4778_v16 = vor.u32 %v5354_v26, %v4777_v8  ;;  %v4977_v56 = vld [vmem:[%s8326_s5 + $0x280] sm:$0xf]  ;;  %v5025_v45 = vld [vmem:[%s8326_s5 + $0x2d0] sm:$0xf] }
 0x6cf   : > { %v4755_v35 = vld [vmem:[%s8326_s5 + $0xe0] sm:$0xf0]  ;;  %v5407_v49 = vld [vmem:[%s8326_s5 + $0x29c] sm:$0xf0]  ;;  %v4961_v26 = vld [vmem:[%s8326_s5 + $0x250] sm:$0xf] }
 0x6d0   : > { %2866 = vmatpush.bf16.xpose.msrb.mxu2 %v2826_v44  ;;  %2879 = vmatpush.bf16.xpose.msrb.mxu3 %v2827_v33  ;;  %v5359_v44 = vld [vmem:[%s8326_s5 + $0x11c] sm:$0xf0]  ;;  %v4705_v33 = vld [vmem:[%s8326_s5 + $0x50] sm:$0xf]  ;;  %v4758_v41 = vor.u32 %v5347_v13, %v4755_v35  ;;  %v5331_v14 = vld [vmem:[%s8326_s5 + $0x44] sm:$0xf] }
 0x6d1   : > { %v4706_v3 = vor.u32 %v5337_v52, %v4705_v33  ;;  %v4786_v11 = vor.u32 %v5359_v44, %v4785_v37  ;;  %v5323_v28 = vld [vmem:[%s8326_s5 + $0x4] sm:$0xf]  ;;  %v5439_v37 = vld [vmem:[%s8326_s5 + $0x39c] sm:$0xf0]  ;;  %v4745_v33 = vld [vmem:[%s8326_s5 + $0x98] sm:$0xf] }
 0x6d2   : > { %v4662_v19 = vor.u32 %v5323_v28, %v4659_v51  ;;  %v5346_v52 = vld [vmem:[%s8326_s5 + $0xb4] sm:$0xf0]  ;;  %v5399_v30 = vld [vmem:[%s8326_s5 + $0x25c] sm:$0xf0]  ;;  %v4857_v13 = vld [vmem:[%s8326_s5 + $0x188] sm:$0xf] }
 0x6d3   : > { %3768 = vmatpush.bf16.msrb.mxu0 %v4706_v3  ;;  %v5057_v3 = vld [vmem:[%s8326_s5 + $0x310] sm:$0xf]  ;;  %v4746_v60 = vor.u32 %v5346_v52, %v4745_v33  ;;  %v4913_v32 = vld [vmem:[%s8326_s5 + $0x200] sm:$0xf]  ;;  %v5427_v28 = vld [vmem:[%s8326_s5 + $0x344] sm:$0xf] }
 0x6d4   : > { %v5391_v12 = vld [vmem:[%s8326_s5 + $0x21c] sm:$0xf0]  ;;  %v5417_v35 = vld [vmem:[%s8326_s5 + $0x2ec] sm:$0xf0]  ;;  %v5360_v33 = vld [vmem:[%s8326_s5 + $0x124] sm:$0xf0] }
 0x6d5   : > { %v5419_v52 = vld [vmem:[%s8326_s5 + $0x304] sm:$0xf] }
 0x6d8   : > { %2867 = vmatpush.bf16.xpose.msrb.mxu2 %v2824_v63  ;;  %2880 = vmatpush.bf16.xpose.msrb.mxu3 %v2825_v29  ;;  %v4722_v63 = vor.u32 %v5343_v57, %v4721_v20  ;;  %v4689_v29 = vld [vmem:[%s8326_s5 + $0x40] sm:$0xf] }
 0x6d9   : > { %v4690_v47 = vor.u32 %v5335_v10, %v4689_v29  ;;  %v5423_v20 = vld [vmem:[%s8326_s5 + $0x31c] sm:$0xf0] }
 0x6da   : > { %v5415_v29 = vld [vmem:[%s8326_s5 + $0x2dc] sm:$0xf0] }
 0x6e0   : > { %2868 = vmatpush.bf16.xpose.msrb.mxu2 %v2822_v40  ;;  %2881 = vmatpush.bf16.xpose.msrb.mxu3 %v2823_v1  ;;  %v5371_v40 = vld [vmem:[%s8326_s5 + $0x184] sm:$0xf] }
 0x6e1   : > { %v4851_v1 = vld [vmem:[%s8326_s5 + $0x1a0] sm:$0xf0] }
 0x6e2   : > { %v4854_v46 = vor.u32 %v5371_v40, %v4851_v1  ;;  %v5384_v40 = vld [vmem:[%s8326_s5 + $0x1e4] sm:$0xf0]  ;;  %v4914_v1 = vor.u32 %v5391_v12, %v4913_v32  ;;  %v5434_v32 = vld [vmem:[%s8326_s5 + $0x374] sm:$0xf0] }
 0x6e3   : > { %v4697_v12 = vld [vmem:[%s8326_s5 + $0x48] sm:$0xf] }
 0x6e8   : > { %2869 = vmatpush.bf16.xpose.msrb.mxu2 %v2820_v50  ;;  %2882 = vmatpush.bf16.xpose.msrb.mxu3 %v2821_v25  ;;  %v4691_v50 = vld [vmem:[%s8326_s5 + $0x60] sm:$0xf0] }
 0x6e9   : > { %v4694_v25 = vor.u32 %v5331_v14, %v4691_v50  ;;  %v5107_v14 = vld [vmem:[%s8326_s5 + $0x3a0] sm:$0xf0] }
 0x6ef   : > { %2870 = vmatmul.bf16.vlgmr.msrb.gmra.mxu2 %v7470_v42  ;;  %2883 = vmatmul.bf16.vlgmr.msrb.gmra.mxu3 %v7474_v38  ;;  %v5329_v42 = vld [vmem:[%s8326_s5 + $0x2c] sm:$0xf0]  ;;  %v4905_v38 = vld [vmem:[%s8326_s5 + $0x1d8] sm:$0xf] }
 0x6f0   : > { %3658 = vmatpush.bf16.msra.mxu2 %v4882_v23  ;;  %v4674_v2 = vor.u32 %v5329_v42, %v4673_v53  ;;  %v4906_v48 = vor.u32 %v5386_v58, %v4905_v38  ;;  %v4723_v23 = vld [vmem:[%s8326_s5 + $0xa0] sm:$0xf0]  ;;  %v5431_v42 = vld [vmem:[%s8326_s5 + $0x35c] sm:$0xf0]  ;;  %v5338_v58 = vld [vmem:[%s8326_s5 + $0x74] sm:$0xf0] }
 0x6f1   : > { %v4726_v4 = vor.u32 %v5339_v5, %v4723_v23  ;;  %v5074_v38 = vor.u32 %v5431_v42, %v5073_v39  ;;  %v5376_v5 = vld [vmem:[%s8326_s5 + $0x1a4] sm:$0xf0]  ;;  %v5026_v23 = vor.u32 %v5417_v35, %v5025_v45  ;;  %v5393_v39 = vld [vmem:[%s8326_s5 + $0x22c] sm:$0xf0]  ;;  %v4891_v35 = vld [vmem:[%s8326_s5 + $0x1e8] sm:$0xf0] }
 0x6f2   : > { %3769 = vmatpush.bf16.msrb.mxu0 %v4674_v2  ;;  %v4713_v2 = vld [vmem:[%s8326_s5 + $0x58] sm:$0xf]  ;;  %v4858_v17 = vor.u32 %v5376_v5, %v4857_v13  ;;  %v4761_v42 = vld [vmem:[%s8326_s5 + $0xc8] sm:$0xf]  ;;  %v5387_v5 = vld [vmem:[%s8326_s5 + $0x204] sm:$0xf] }
 0x6f3   : > { %v5328_v45 = vld [vmem:[%s8326_s5 + $0x24] sm:$0xf0] }
 0x6f4   : > { %3659 = vmatpush.bf16.msra.mxu2 %v4850_v43  ;;  %v5138_v43 = vor.u32 %v5447_v62, %v5137_v21  ;;  %v5368_v21 = vld [vmem:[%s8326_s5 + $0x164] sm:$0xf0] }
 0x6f6   : > { %3814 = vmatpush.bf16.msra.mxu0 %v4906_v48  ;;  %3671 = vmatpush.bf16.msra.mxu3 %v5138_v43  ;;  %v4714_v48 = vor.u32 %v5338_v58, %v4713_v2  ;;  %v5075_v43 = vld [vmem:[%s8326_s5 + $0x360] sm:$0xf0]  ;;  %v5161_v2 = vld [vmem:[%s8326_s5 + $0x3d8] sm:$0xf] }
 0x6f7   : > { %v5078_v8 = vor.u32 %v5427_v28, %v5075_v43  ;;  %v5450_v58 = vld [vmem:[%s8326_s5 + $0x3f4] sm:$0xf0] }
 0x6f8   : > { %3660 = vmatpush.bf16.msra.mxu2 %v4818_v34  ;;  %v5105_v34 = vld [vmem:[%s8326_s5 + $0x380] sm:$0xf]  ;;  %v5410_v43 = vld [vmem:[%s8326_s5 + $0x2b4] sm:$0xf0] }
 0x6f9   : > { %v5106_v44 = vor.u32 %v5439_v37, %v5105_v34  ;;  %v4826_v34 = vor.u32 %v5368_v21, %v4825_v22  ;;  %v4793_v37 = vld [vmem:[%s8326_s5 + $0x108] sm:$0xf]  ;;  %v5372_v22 = vld [vmem:[%s8326_s5 + $0x18c] sm:$0xf] }
 0x6fa   : > { %3815 = vmatpush.bf16.msra.mxu0 %v4874_v54  ;;  %v4682_v54 = vor.u32 %v5330_v27, %v4681_v24 }
 0x6fb   : > { %3672 = vmatpush.bf16.msra.mxu3 %v5106_v44 }
 0x6fc   : > { %3661 = vmatpush.bf16.msra.mxu2 %v4786_v11  ;;  %v5425_v11 = vld [vmem:[%s8326_s5 + $0x32c] sm:$0xf0] }
 0x6fd   : > { %v5058_v53 = vor.u32 %v5425_v11, %v5057_v3  ;;  %v5043_v3 = vld [vmem:[%s8326_s5 + $0x320] sm:$0xf0] }
 0x6fe   : > { %3816 = vmatpush.bf16.msra.mxu0 %v4842_v55  ;;  %v4978_v55 = vor.u32 %v5407_v49, %v4977_v56  ;;  %v5046_v11 = vor.u32 %v5419_v52, %v5043_v3  ;;  %v5403_v49 = vld [vmem:[%s8326_s5 + $0x284] sm:$0xf]  ;;  %v4937_v52 = vld [vmem:[%s8326_s5 + $0x218] sm:$0xf] }
 0x6ff   : > { %3778 = vmatpush.bf16.msrb.mxu1 %v5058_v53  ;;  %3673 = vmatpush.bf16.msra.mxu3 %v5074_v38  ;;  %v4794_v53 = vor.u32 %v5360_v33, %v4793_v37  ;;  %v5356_v37 = vld [vmem:[%s8326_s5 + $0x10c] sm:$0xf] }
 0x700   : > { %3662 = vmatpush.bf16.msra.mxu2 %v4754_v7  ;;  %v5041_v7 = vld [vmem:[%s8326_s5 + $0x300] sm:$0xf] }
 0x701   : > { %v5042_v57 = vor.u32 %v5423_v20, %v5041_v7  ;;  %v5162_v7 = vor.u32 %v5450_v58, %v5161_v2  ;;  %v5411_v20 = vld [vmem:[%s8326_s5 + $0x2c4] sm:$0xf]  ;;  %v4731_v2 = vld [vmem:[%s8326_s5 + $0xa8] sm:$0xf0] }
 0x702   : > { %3817 = vmatpush.bf16.msra.mxu0 %v4810_v18  ;;  %v5409_v18 = vld [vmem:[%s8326_s5 + $0x2ac] sm:$0xf0] }
 0x703   : > { %3674 = vmatpush.bf16.msra.mxu3 %v5042_v57  ;;  %3779 = vmatpush.bf16.msrb.mxu1 %v5026_v23  ;;  %v5011_v57 = vld [vmem:[%s8326_s5 + $0x2e0] sm:$0xf0] }
 0x704   : > { %3663 = vmatpush.bf16.msra.mxu2 %v4722_v63  ;;  %v5009_v63 = vld [vmem:[%s8326_s5 + $0x2c0] sm:$0xf]  ;;  %v5014_v24 = vor.u32 %v5411_v20, %v5011_v57  ;;  %v4915_v23 = vld [vmem:[%s8326_s5 + $0x220] sm:$0xf0]  ;;  %v5145_v57 = vld [vmem:[%s8326_s5 + $0x3c8] sm:$0xf] }
 0x705   : > { %v5010_v10 = vor.u32 %v5415_v29, %v5009_v63  ;;  %v5129_v63 = vld [vmem:[%s8326_s5 + $0x398] sm:$0xf] }
 0x706   : > { %3818 = vmatpush.bf16.msra.mxu0 %v4778_v16  ;;  %v5401_v16 = vld [vmem:[%s8326_s5 + $0x26c] sm:$0xf0]  ;;  %v5442_v29 = vld [vmem:[%s8326_s5 + $0x3b4] sm:$0xf0] }
 0x707   : > { %3675 = vmatpush.bf16.msra.mxu3 %v5010_v10  ;;  %v4962_v44 = vor.u32 %v5401_v16, %v4961_v26  ;;  %v5344_v10 = vld [vmem:[%s8326_s5 + $0xa4] sm:$0xf0]  ;;  %v5130_v56 = vor.u32 %v5442_v29, %v5129_v63  ;;  %v4969_v26 = vld [vmem:[%s8326_s5 + $0x258] sm:$0xf] }
 0x708   : > { %3664 = vmatpush.bf16.msra.mxu2 %v4690_v47  ;;  %v4945_v47 = vld [vmem:[%s8326_s5 + $0x240] sm:$0xf] }
 0x709   : > { %v4946_v0 = vor.u32 %v5399_v30, %v4945_v47 }
 0x70a   : > { %3819 = vmatpush.bf16.msra.mxu0 %v4746_v60  ;;  %v4929_v60 = vld [vmem:[%s8326_s5 + $0x210] sm:$0xf] }
 0x70b   : > { %3676 = vmatpush.bf16.msra.mxu3 %v4978_v55  ;;  %v4930_v38 = vor.u32 %v5393_v39, %v4929_v60  ;;  %v4979_v55 = vld [vmem:[%s8326_s5 + $0x2a0] sm:$0xf0]  ;;  %v5348_v60 = vld [vmem:[%s8326_s5 + $0xcc] sm:$0xf] }
 0x70c   : > { %3665 = vmatpush.bf16.msra.mxu2 %v4658_v6  ;;  %v5443_v6 = vld [vmem:[%s8326_s5 + $0x3c4] sm:$0xf]  ;;  %v4982_v47 = vor.u32 %v5403_v49, %v4979_v55  ;;  %v4763_v39 = vld [vmem:[%s8326_s5 + $0xe8] sm:$0xf0] }
 0x70e   : > { %3820 = vmatpush.bf16.msra.mxu0 %v4714_v48  ;;  %v5352_v48 = vld [vmem:[%s8326_s5 + $0xe4] sm:$0xf0] }
 0x70f   : > { %3677 = vmatpush.bf16.msra.mxu3 %v4946_v0  ;;  %v4762_v27 = vor.u32 %v5352_v48, %v4761_v42  ;;  %v5097_v0 = vld [vmem:[%s8326_s5 + $0x358] sm:$0xf]  ;;  %v4766_v42 = vor.u32 %v5348_v60, %v4763_v39  ;;  %v5332_v48 = vld [vmem:[%s8326_s5 + $0x4c] sm:$0xf] }
 0x710   : > { %3684 = vmatpush.bf16.msrb.mxu2 %v4886_v59  ;;  %v4889_v59 = vld [vmem:[%s8326_s5 + $0x1c8] sm:$0xf]  ;;  %v5444_v60 = vld [vmem:[%s8326_s5 + $0x3cc] sm:$0xf] }
 0x711   : > { %v5147_v39 = vld [vmem:[%s8326_s5 + $0x3e8] sm:$0xf0] }
 0x712   : > { %3821 = vmatpush.bf16.msra.mxu0 %v4682_v54  ;;  %v4729_v54 = vld [vmem:[%s8326_s5 + $0x88] sm:$0xf] }
 0x713   : > { %3678 = vmatpush.bf16.msra.mxu3 %v4914_v1  ;;  %v4730_v30 = vor.u32 %v5344_v10, %v4729_v54  ;;  %v4947_v1 = vld [vmem:[%s8326_s5 + $0x260] sm:$0xf0]  ;;  %v4667_v54 = vld [vmem:[%s8326_s5 + $0x28] sm:$0xf0]  ;;  %v5381_v10 = vld [vmem:[%s8326_s5 + $0x1d4] sm:$0xf] }
 0x714   : > { %3685 = vmatpush.bf16.msrb.mxu2 %v4854_v46  ;;  %v5139_v46 = vld [vmem:[%s8326_s5 + $0x3e0] sm:$0xf0] }
 0x718   : > { %3686 = vmatpush.bf16.msrb.mxu2 %v4822_v61  ;;  %v5142_v61 = vor.u32 %v5443_v6, %v5139_v46  ;;  %v5336_v6 = vld [vmem:[%s8326_s5 + $0x64] sm:$0xf0] }
 0x71a   : > { %3697 = vmatpush.bf16.msrb.mxu3 %v5142_v61  ;;  %v5426_v61 = vld [vmem:[%s8326_s5 + $0x334] sm:$0xf0] }
 0x71c   : > { %3687 = vmatpush.bf16.msrb.mxu2 %v4790_v15  ;;  %v4890_v15 = vor.u32 %v5384_v40, %v4889_v59  ;;  %v5098_v59 = vor.u32 %v5434_v32, %v5097_v0  ;;  %v5395_v40 = vld [vmem:[%s8326_s5 + $0x244] sm:$0xf]  ;;  %v5113_v32 = vld [vmem:[%s8326_s5 + $0x388] sm:$0xf] }
 0x71d   : > { %v4950_v46 = vor.u32 %v5395_v40, %v4947_v1 }
 0x720   : > { %3688 = vmatpush.bf16.msrb.mxu2 %v4758_v41 }
 0x724   : > { %3689 = vmatpush.bf16.msrb.mxu2 %v4726_v4  ;;  %v5435_v4 = vld [vmem:[%s8326_s5 + $0x384] sm:$0xf] }
 0x725   : > { %v5110_v50 = vor.u32 %v5435_v4, %v5107_v14  ;;  %v4918_v4 = vor.u32 %v5387_v5, %v4915_v23  ;;  %v5424_v5 = vld [vmem:[%s8326_s5 + $0x324] sm:$0xf0]  ;;  %v5357_v23 = vld [vmem:[%s8326_s5 + $0x114] sm:$0xf] }
 0x727   : > { %3698 = vmatpush.bf16.msrb.mxu3 %v5110_v50 }
 0x728   : > { %3690 = vmatpush.bf16.msrb.mxu2 %v4694_v25  ;;  %v4993_v25 = vld [vmem:[%s8326_s5 + $0x290] sm:$0xf] }
 0x729   : > { %v4994_v62 = vor.u32 %v5409_v18, %v4993_v25  ;;  %v5033_v25 = vld [vmem:[%s8326_s5 + $0x2d8] sm:$0xf]  ;;  %v4859_v18 = vld [vmem:[%s8326_s5 + $0x1a8] sm:$0xf0] }
 0x72a   : > { %v4862_v28 = vor.u32 %v5372_v22, %v4859_v18  ;;  %v5349_v22 = vld [vmem:[%s8326_s5 + $0xd4] sm:$0xf] }
 0x72b   : > { %3780 = vmatpush.bf16.msrb.mxu1 %v4994_v62  ;;  %3699 = vmatpush.bf16.msrb.mxu3 %v5078_v8  ;;  %v5001_v62 = vld [vmem:[%s8326_s5 + $0x298] sm:$0xf]  ;;  %v4771_v18 = vld [vmem:[%s8326_s5 + $0xf0] sm:$0xf0] }
 0x72c   : > { %3691 = vmatpush.bf16.msrb.mxu2 %v4662_v19  ;;  %v5002_v8 = vor.u32 %v5410_v43, %v5001_v62  ;;  %v4774_v62 = vor.u32 %v5349_v22, %v4771_v18  ;;  %v5408_v43 = vld [vmem:[%s8326_s5 + $0x2a4] sm:$0xf0] }
 0x72f   : > { %3781 = vmatpush.bf16.msrb.mxu1 %v4962_v44  ;;  %3700 = vmatpush.bf16.msrb.mxu3 %v5046_v11  ;;  %v4795_v44 = vld [vmem:[%s8326_s5 + $0x128] sm:$0xf0]  ;;  %v5394_v11 = vld [vmem:[%s8326_s5 + $0x234] sm:$0xf0] }
 0x730   : > { %v4798_v3 = vor.u32 %v5356_v37, %v4795_v44  ;;  %v5333_v37 = vld [vmem:[%s8326_s5 + $0x54] sm:$0xf] }
 0x731   : > { %v4707_v44 = vld [vmem:[%s8326_s5 + $0x70] sm:$0xf0] }
 0x732   : > { %v2845_v31 = vpop.f32.mrf.mxu2  ;;  %v2858_v36 = vpop.f32.mrf.mxu3 }
 0x733   : > { %v2859_v9 = vadd.f32 %v2858_v36, %v2845_v31  ;;  %3782 = vmatpush.bf16.msrb.mxu1 %v4930_v38  ;;  %3701 = vmatpush.bf16.msrb.mxu3 %v5014_v24  ;;  %v4698_v31 = vor.u32 %v5336_v6, %v4697_v12  ;;  %v5065_v36 = vld [vmem:[%s8326_s5 + $0x318] sm:$0xf]  ;;  %v5340_v38 = vld [vmem:[%s8326_s5 + $0x8c] sm:$0xf]  ;;  %v5448_v24 = vld [vmem:[%s8326_s5 + $0x3e4] sm:$0xf0] }
 0x734   : > { %v5066_v13 = vor.u32 %v5426_v61, %v5065_v36  ;;  %v4734_v58 = vor.u32 %v5340_v38, %v4731_v2  ;;  %v5146_v55 = vor.u32 %v5448_v24, %v5145_v57  ;;  %v5440_v12 = vld [vmem:[%s8326_s5 + $0x3a4] sm:$0xf0]  ;;  %v5373_v6 = vld [vmem:[%s8326_s5 + $0x194] sm:$0xf]  ;;  %v5382_v38 = vld [vmem:[%s8326_s5 + $0x1dc] sm:$0xf] }
 0x735   : > { %v7794_v41 = vpack.c.bf16 %v2859_v9, %v2859_v9  ;;  %v4665_v9 = vld [vmem:[%s8326_s5 + $0x8] sm:$0xf]  ;;  %v5114_v40 = vor.u32 %v5440_v12, %v5113_v32  ;;  %v4907_v2 = vld [vmem:[%s8326_s5 + $0x1f8] sm:$0xf0]  ;;  %v5436_v57 = vld [vmem:[%s8326_s5 + $0x38c] sm:$0xf] }
 0x736   : > { %v4666_v14 = vor.u32 %v5328_v45, %v4665_v9  ;;  %v5365_v9 = vld [vmem:[%s8326_s5 + $0x154] sm:$0xf]  ;;  %v5115_v24 = vld [vmem:[%s8326_s5 + $0x3a8] sm:$0xf0] }
 0x737   : > { %3666 = vmatmul.bf16.vlgmr.msra.gmra.mxu2 %v7794_v41  ;;  %3770 = vmatmul.bf16.vlgmr.msrb.gmra.mxu0 %v7794_v41  ;;  %v4835_v45 = vld [vmem:[%s8326_s5 + $0x170] sm:$0xf0]  ;;  %v5420_v32 = vld [vmem:[%s8326_s5 + $0x30c] sm:$0xf] }
 0x738   : > { %3710 = vmatpush.bf16.msra.mxu2 %v4890_v15  ;;  %3827 = vmatpush.bf16.msra.mxu1 %v5162_v7  ;;  %v5380_v15 = vld [vmem:[%s8326_s5 + $0x1cc] sm:$0xf] }
 0x739   : > { %3702 = vmatpush.bf16.msrb.mxu3 %v4982_v47  ;;  %v4894_v50 = vor.u32 %v5380_v15, %v4891_v35  ;;  %v4699_v7 = vld [vmem:[%s8326_s5 + $0x68] sm:$0xf0]  ;;  %v5049_v35 = vld [vmem:[%s8326_s5 + $0x308] sm:$0xf] }
 0x73a   : > { %v2847_v51 = vpop.f32.mrf.mxu2  ;;  %v2860_v19 = vpop.f32.mrf.mxu3  ;;  %v4702_v20 = vor.u32 %v5332_v48, %v4699_v7  ;;  %v5150_v48 = vor.u32 %v5444_v60, %v5147_v39  ;;  %v5051_v12 = vld [vmem:[%s8326_s5 + $0x328] sm:$0xf0]  ;;  %v5059_v60 = vld [vmem:[%s8326_s5 + $0x330] sm:$0xf0] }
 0x73b   : > { %v5364_v51 = vld [vmem:[%s8326_s5 + $0x14c] sm:$0xf] }
 0x73c   : > { %3711 = vmatpush.bf16.msra.mxu2 %v4858_v17  ;;  %3828 = vmatpush.bf16.msra.mxu1 %v5130_v56  ;;  %v5418_v17 = vld [vmem:[%s8326_s5 + $0x2f4] sm:$0xf0]  ;;  %v4827_v19 = vld [vmem:[%s8326_s5 + $0x168] sm:$0xf0]  ;;  %v4899_v56 = vld [vmem:[%s8326_s5 + $0x1f0] sm:$0xf0] }
 0x73d   : > { %3703 = vmatpush.bf16.msrb.mxu3 %v4950_v46  ;;  %v5034_v21 = vor.u32 %v5418_v17, %v5033_v25  ;;  %v4830_v16 = vor.u32 %v5364_v51, %v4827_v19  ;;  %v4902_v0 = vor.u32 %v5381_v10, %v4899_v56  ;;  %v5081_v46 = vld [vmem:[%s8326_s5 + $0x348] sm:$0xf]  ;;  %v5341_v51 = vld [vmem:[%s8326_s5 + $0x94] sm:$0xf]  ;;  %v5428_v10 = vld [vmem:[%s8326_s5 + $0x34c] sm:$0xf] }
 0x73e   : > { %v5017_v25 = vld [vmem:[%s8326_s5 + $0x2c8] sm:$0xf]  ;;  %v4739_v19 = vld [vmem:[%s8326_s5 + $0xb0] sm:$0xf0]  ;;  %v5083_v56 = vld [vmem:[%s8326_s5 + $0x368] sm:$0xf0] }
 0x73f   : > { %v5416_v17 = vld [vmem:[%s8326_s5 + $0x2e4] sm:$0xf0] }
 0x740   : > { %3712 = vmatpush.bf16.msra.mxu2 %v4826_v34  ;;  %3829 = vmatpush.bf16.msra.mxu1 %v5098_v59  ;;  %v5402_v34 = vld [vmem:[%s8326_s5 + $0x274] sm:$0xf0]  ;;  %v4867_v59 = vld [vmem:[%s8326_s5 + $0x1b0] sm:$0xf0] }
 0x741   : > { %3704 = vmatpush.bf16.msrb.mxu3 %v4918_v4  ;;  %v4970_v33 = vor.u32 %v5402_v34, %v4969_v26  ;;  %v4870_v1 = vor.u32 %v5373_v6, %v4867_v59  ;;  %v4803_v4 = vld [vmem:[%s8326_s5 + $0x130] sm:$0xf0]  ;;  %v4742_v26 = vor.u32 %v5341_v51, %v4739_v19  ;;  %v5400_v34 = vld [vmem:[%s8326_s5 + $0x264] sm:$0xf0]  ;;  %v5358_v6 = vld [vmem:[%s8326_s5 + $0x11c] sm:$0xf] }
 0x742   : > { %v4811_v59 = vld [vmem:[%s8326_s5 + $0x138] sm:$0xf0] }
 0x743   : > { %v5326_v51 = vld [vmem:[%s8326_s5 + $0x1c] sm:$0xf] }
 0x744   : > { %3713 = vmatpush.bf16.msra.mxu2 %v4794_v53  ;;  %3830 = vmatpush.bf16.msra.mxu1 %v5066_v13  ;;  %v4938_v53 = vor.u32 %v5394_v11, %v4937_v52  ;;  %v4838_v13 = vor.u32 %v5365_v9, %v4835_v45  ;;  %v4710_v52 = vor.u32 %v5333_v37, %v4707_v44  ;;  %v5392_v11 = vld [vmem:[%s8326_s5 + $0x224] sm:$0xf0]  ;;  %v4683_v19 = vld [vmem:[%s8326_s5 + $0x38] sm:$0xf0]  ;;  %v5123_v37 = vld [vmem:[%s8326_s5 + $0x3b0] sm:$0xf0] }
 0x747   : > { %3692 = vmatmul.bf16.vlgmr.msrb.gmra.mxu2 %v7794_v41  ;;  %3822 = vmatmul.bf16.vlgmr.msra.gmra.mxu0 %v7794_v41 }
 0x748   : > { %3714 = vmatpush.bf16.msra.mxu2 %v4762_v27  ;;  %3831 = vmatpush.bf16.msra.mxu1 %v5034_v21  ;;  %v5324_v27 = vld [vmem:[%s8326_s5 + $0xc] sm:$0xf]  ;;  %v5018_v21 = vor.u32 %v5416_v17, %v5017_v25  ;;  %v5334_v25 = vld [vmem:[%s8326_s5 + $0x5c] sm:$0xf] }
 0x749   : > { %v4670_v47 = vor.u32 %v5324_v27, %v4667_v54  ;;  %v5374_v27 = vld [vmem:[%s8326_s5 + $0x19c] sm:$0xf] }
 0x74a   : > { %v4875_v54 = vld [vmem:[%s8326_s5 + $0x1b8] sm:$0xf0] }
 0x74b   : > { %v4715_v17 = vld [vmem:[%s8326_s5 + $0x78] sm:$0xf0] }
 0x74c   : > { %3715 = vmatpush.bf16.msra.mxu2 %v4730_v30  ;;  %3832 = vmatpush.bf16.msra.mxu1 %v5002_v8  ;;  %v4718_v18 = vor.u32 %v5334_v25, %v4715_v17  ;;  %v5390_v17 = vld [vmem:[%s8326_s5 + $0x21c] sm:$0xf] }
 0x750   : > { %3716 = vmatpush.bf16.msra.mxu2 %v4698_v31  ;;  %3833 = vmatpush.bf16.msra.mxu1 %v4970_v33  ;;  %v5432_v31 = vld [vmem:[%s8326_s5 + $0x364] sm:$0xf0] }
 0x751   : > { %v5082_v15 = vor.u32 %v5432_v31, %v5081_v46  ;;  %v5412_v46 = vld [vmem:[%s8326_s5 + $0x2cc] sm:$0xf] }
 0x752   : > { %v5019_v31 = vld [vmem:[%s8326_s5 + $0x2e8] sm:$0xf0] }
 0x753   : > { %v5022_v9 = vor.u32 %v5412_v46, %v5019_v31  ;;  %v5422_v31 = vld [vmem:[%s8326_s5 + $0x31c] sm:$0xf] }
 0x754   : > { %3717 = vmatpush.bf16.msra.mxu2 %v4666_v14  ;;  %3834 = vmatpush.bf16.msra.mxu1 %v4938_v53  ;;  %v5050_v14 = vor.u32 %v5424_v5, %v5049_v35  ;;  %v5325_v53 = vld [vmem:[%s8326_s5 + $0x14] sm:$0xf]  ;;  %v5342_v35 = vld [vmem:[%s8326_s5 + $0x9c] sm:$0xf] }
 0x755   : > { %v4747_v5 = vld [vmem:[%s8326_s5 + $0xb8] sm:$0xf0] }
 0x757   : > { %3718 = vmatmul.bf16.vlgmr.msra.gmra.mxu2 %v7794_v41 }
 0x758   : > { %3736 = vmatpush.bf16.msrb.mxu2 %v4894_v50  ;;  %v4806_v50 = vor.u32 %v5357_v23, %v4803_v4  ;;  %v4750_v4 = vor.u32 %v5342_v35, %v4747_v5  ;;  %v5406_v35 = vld [vmem:[%s8326_s5 + $0x29c] sm:$0xf] }
 0x759   : > { %v5003_v5 = vld [vmem:[%s8326_s5 + $0x2b8] sm:$0xf0] }
 0x75c   : > { %3737 = vmatpush.bf16.msrb.mxu2 %v4862_v28  ;;  %v4985_v28 = vld [vmem:[%s8326_s5 + $0x288] sm:$0xf] }
 0x75d   : > { %v4986_v8 = vor.u32 %v5408_v43, %v4985_v28  ;;  %v5445_v28 = vld [vmem:[%s8326_s5 + $0x3d4] sm:$0xf] }
 0x75e   : > { %v5155_v43 = vld [vmem:[%s8326_s5 + $0x3f0] sm:$0xf0] }
 0x760   : > { %3738 = vmatpush.bf16.msrb.mxu2 %v4830_v16  ;;  %v4953_v16 = vld [vmem:[%s8326_s5 + $0x248] sm:$0xf] }
 0x761   : > { %v4954_v33 = vor.u32 %v5400_v34, %v4953_v16  ;;  %v4686_v16 = vor.u32 %v5326_v51, %v4683_v19  ;;  %v5437_v34 = vld [vmem:[%s8326_s5 + $0x394] sm:$0xf] }
 0x762   : > { %v5126_v44 = vor.u32 %v5437_v34, %v5123_v37 }
 0x764   : > { %3739 = vmatpush.bf16.msrb.mxu2 %v4798_v3  ;;  %v4921_v3 = vld [vmem:[%s8326_s5 + $0x208] sm:$0xf] }
 0x768   : > { %3740 = vmatpush.bf16.msrb.mxu2 %v4766_v42  ;;  %v4675_v42 = vld [vmem:[%s8326_s5 + $0x30] sm:$0xf0] }
 0x769   : > { %v4678_v7 = vor.u32 %v5325_v53, %v4675_v42  ;;  %v5413_v42 = vld [vmem:[%s8326_s5 + $0x2d4] sm:$0xf] }
 0x76c   : > { %3741 = vmatpush.bf16.msrb.mxu2 %v4734_v58  ;;  %v4922_v58 = vor.u32 %v5392_v11, %v4921_v3  ;;  %v5421_v11 = vld [vmem:[%s8326_s5 + $0x314] sm:$0xf] }
 0x76d   : > { %v5062_v39 = vor.u32 %v5421_v11, %v5059_v60  ;;  %v8438_v60 = vld [vmem:[#allocation2_spill] sm:$0xff] }
 0x770   : > { %3742 = vmatpush.bf16.msrb.mxu2 %v4702_v20  ;;  %v4910_v20 = vor.u32 %v5382_v38, %v4907_v2  ;;  %v5405_v2 = vld [vmem:[%s8326_s5 + $0x294] sm:$0xf] }
 0x772   : > { %v2871_v63 = vpop.f32.mrf.mxu2  ;;  %v2884_v29 = vpop.f32.mrf.mxu3 }
 0x773   : > { %v2885_v49 = vadd.f32 %v2884_v29, %v2871_v63  ;;  %v5118_v63 = vor.u32 %v5436_v57, %v5115_v24  ;;  %v4878_v29 = vor.u32 %v5374_v27, %v4875_v54  ;;  %v5397_v57 = vld [vmem:[%s8326_s5 + $0x254] sm:$0xf] }
 0x774   : > { %3743 = vmatpush.bf16.msrb.mxu2 %v4670_v47  ;;  %v5086_v47 = vor.u32 %v5428_v10, %v5083_v56  ;;  %v4963_v24 = vld [vmem:[%s8326_s5 + $0x270] sm:$0xf0]  ;;  %v5163_v10 = vld [vmem:[%s8326_s5 + $0x3f8] sm:$0xf0] }
 0x775   : > { %v8008_v30 = vpack.c.bf16 %v2885_v49, %v2885_v49  ;;  %v5366_v49 = vld [vmem:[%s8326_s5 + $0x15c] sm:$0xf]  ;;  %v4966_v27 = vor.u32 %v5397_v57, %v4963_v24  ;;  %v5389_v54 = vld [vmem:[%s8326_s5 + $0x214] sm:$0xf] }
 0x777   : > { %3679 = vmatmul.bf16.vlgmr.msra.gmra.mxu3 %v8008_v30  ;;  %3783 = vmatmul.bf16.vlgmr.msrb.gmra.mxu1 %v8008_v30 }
 0x778   : > { %3723 = vmatpush.bf16.msra.mxu3 %v5146_v55  ;;  %3788 = vmatpush.bf16.msra.mxu2 %v4902_v0  ;;  %v4843_v55 = vld [vmem:[%s8326_s5 + $0x178] sm:$0xf0] }
 0x779   : > { %3744 = vmatmul.bf16.vlgmr.msrb.gmra.mxu2 %v7794_v41  ;;  %v4846_v0 = vor.u32 %v5366_v49, %v4843_v55 }
 0x77a   : > { %v2873_v36 = vpop.f32.mrf.mxu2  ;;  %v2886_v61 = vpop.f32.mrf.mxu3 }
 0x77b   : > { %v5350_v36 = vld [vmem:[%s8326_s5 + $0xdc] sm:$0xf] }
 0x77c   : > { %3724 = vmatpush.bf16.msra.mxu3 %v5114_v40  ;;  %3789 = vmatpush.bf16.msra.mxu2 %v4870_v1  ;;  %v5054_v40 = vor.u32 %v5420_v32, %v5051_v12  ;;  %v4814_v1 = vor.u32 %v5358_v6, %v4811_v59  ;;  %v4779_v61 = vld [vmem:[%s8326_s5 + $0xf8] sm:$0xf0] }
 0x77d   : > { %v4782_v45 = vor.u32 %v5350_v36, %v4779_v61  ;;  %v5131_v32 = vld [vmem:[%s8326_s5 + $0x3b8] sm:$0xf0] }
 0x77e   : > { %v5430_v6 = vld [vmem:[%s8326_s5 + $0x35c] sm:$0xf] }
 0x77f   : > { %v5099_v59 = vld [vmem:[%s8326_s5 + $0x378] sm:$0xf0] }
 0x780   : > { %3725 = vmatpush.bf16.msra.mxu3 %v5082_v15  ;;  %3790 = vmatpush.bf16.msra.mxu2 %v4838_v13  ;;  %v5404_v15 = vld [vmem:[%s8326_s5 + $0x28c] sm:$0xf]  ;;  %v5102_v46 = vor.u32 %v5430_v6, %v5099_v59  ;;  %v5067_v36 = vld [vmem:[%s8326_s5 + $0x338] sm:$0xf0]  ;;  %v8442_v59 = vld [vmem:[#allocation6_spill] sm:$0xff] }
 0x781   : > { %v4987_v13 = vld [vmem:[%s8326_s5 + $0x2a8] sm:$0xf0]  ;;  %v5070_v61 = vor.u32 %v5422_v31, %v5067_v36 }
 0x782   : > { %v4990_v23 = vor.u32 %v5404_v15, %v4987_v13 }
 0x784   : > { %3726 = vmatpush.bf16.msra.mxu3 %v5050_v14  ;;  %3791 = vmatpush.bf16.msra.mxu2 %v4806_v50  ;;  %v5396_v14 = vld [vmem:[%s8326_s5 + $0x24c] sm:$0xf] }
 0x785   : > { %v4955_v50 = vld [vmem:[%s8326_s5 + $0x268] sm:$0xf0] }
 0x786   : > { %v4958_v22 = vor.u32 %v5396_v14, %v4955_v50  ;;  %v4971_v14 = vld [vmem:[%s8326_s5 + $0x278] sm:$0xf0] }
 0x787   : > { %3705 = vmatmul.bf16.vlgmr.msrb.gmra.mxu3 %v8008_v30  ;;  %3835 = vmatmul.bf16.vlgmr.msra.gmra.mxu1 %v8008_v30 }
 0x788   : > { %3727 = vmatpush.bf16.msra.mxu3 %v5018_v21  ;;  %3792 = vmatpush.bf16.msra.mxu2 %v4774_v62  ;;  %v5388_v21 = vld [vmem:[%s8326_s5 + $0x20c] sm:$0xf] }
 0x789   : > { %v4923_v62 = vld [vmem:[%s8326_s5 + $0x228] sm:$0xf0] }
 0x78c   : > { %3728 = vmatpush.bf16.msra.mxu3 %v4986_v8  ;;  %3793 = vmatpush.bf16.msra.mxu2 %v4742_v26  ;;  %v4926_v8 = vor.u32 %v5388_v21, %v4923_v62  ;;  %v5158_v26 = vor.u32 %v5445_v28, %v5155_v43 }
 0x790   : > { %3729 = vmatpush.bf16.msra.mxu3 %v4954_v33  ;;  %3794 = vmatpush.bf16.msra.mxu2 %v4710_v52  ;;  %v5429_v33 = vld [vmem:[%s8326_s5 + $0x354] sm:$0xf] }
 0x791   : > { %v5091_v52 = vld [vmem:[%s8326_s5 + $0x370] sm:$0xf0] }
 0x792   : > { %v5094_v3 = vor.u32 %v5429_v33, %v5091_v52 }
 0x794   : > { %3730 = vmatpush.bf16.msra.mxu3 %v4922_v58  ;;  %3795 = vmatpush.bf16.msra.mxu2 %v4678_v7  ;;  %v4995_v58 = vld [vmem:[%s8326_s5 + $0x2b0] sm:$0xf0] }
 0x795   : > { %v4998_v7 = vor.u32 %v5405_v2, %v4995_v58 }
 0x797   : > { %3731 = vmatmul.bf16.vlgmr.msra.gmra.mxu3 %v8008_v30  ;;  %3796 = vmatmul.bf16.vlgmr.msra.gmra.mxu2 %v7794_v41 }
 0x798   : > { %3749 = vmatpush.bf16.msrb.mxu3 %v5150_v48  ;;  %3840 = vmatpush.bf16.msrb.mxu2 %v4910_v20 }
 0x79c   : > { %3750 = vmatpush.bf16.msrb.mxu3 %v5118_v63  ;;  %3841 = vmatpush.bf16.msrb.mxu2 %v4878_v29  ;;  %v4931_v63 = vld [vmem:[%s8326_s5 + $0x230] sm:$0xf0]  ;;  %v5446_v29 = vld [vmem:[%s8326_s5 + $0x3dc] sm:$0xf] }
 0x79d   : > { %v4934_v49 = vor.u32 %v5389_v54, %v4931_v63  ;;  %v8440_v63 = vld [vmem:[#allocation4_spill] sm:$0xff] }
 0x7a0   : > { %3751 = vmatpush.bf16.msrb.mxu3 %v5086_v47  ;;  %3842 = vmatpush.bf16.msrb.mxu2 %v4846_v0  ;;  %v5166_v47 = vor.u32 %v5446_v29, %v5163_v10  ;;  %v5438_v0 = vld [vmem:[%s8326_s5 + $0x39c] sm:$0xf] }
 0x7a1   : > { %v5134_v12 = vor.u32 %v5438_v0, %v5131_v32  ;;  %v8441_v10 = vld [vmem:[#allocation5_spill] sm:$0xff] }
 0x7a4   : > { %3752 = vmatpush.bf16.msrb.mxu3 %v5054_v40  ;;  %3843 = vmatpush.bf16.msrb.mxu2 %v4814_v1 }
 0x7a8   : > { %3753 = vmatpush.bf16.msrb.mxu3 %v5022_v9  ;;  %3844 = vmatpush.bf16.msrb.mxu2 %v4782_v45  ;;  %v5414_v9 = vld [vmem:[%s8326_s5 + $0x2dc] sm:$0xf] }
 0x7a9   : > { %v5035_v45 = vld [vmem:[%s8326_s5 + $0x2f8] sm:$0xf0] }
 0x7aa   : > { %v5038_v13 = vor.u32 %v5414_v9, %v5035_v45 }
 0x7ac   : > { %3754 = vmatpush.bf16.msrb.mxu3 %v4990_v23  ;;  %3845 = vmatpush.bf16.msrb.mxu2 %v4750_v4  ;;  %v5006_v23 = vor.u32 %v5406_v35, %v5003_v5  ;;  %v5398_v4 = vld [vmem:[%s8326_s5 + $0x25c] sm:$0xf] }
 0x7ad   : > { %v4974_v25 = vor.u32 %v5398_v4, %v4971_v14  ;;  %v8445_v5 = vld [vmem:[#allocation9_spill] sm:$0xff] }
 0x7b0   : > { %3755 = vmatpush.bf16.msrb.mxu3 %v4958_v22  ;;  %3846 = vmatpush.bf16.msrb.mxu2 %v4718_v18  ;;  %v4939_v22 = vld [vmem:[%s8326_s5 + $0x238] sm:$0xf0] }
 0x7b1   : > { %v4942_v18 = vor.u32 %v5390_v17, %v4939_v22 }
 0x7b4   : > { %3756 = vmatpush.bf16.msrb.mxu3 %v4926_v8  ;;  %3847 = vmatpush.bf16.msrb.mxu2 %v4686_v16  ;;  %v3771_v53 = vpop.f32.mrf.mxu0 }
 0x7b7   : > { %3757 = vmatmul.bf16.vlgmr.msrb.gmra.mxu3 %v8008_v30  ;;  %3848 = vmatmul.bf16.vlgmr.msrb.gmra.mxu2 %v7794_v41  ;;  %v5027_v41 = vld [vmem:[%s8326_s5 + $0x2f0] sm:$0xf0] }
 0x7b8   : > { %3801 = vmatpush.bf16.msra.mxu3 %v5158_v26  ;;  %v5030_v38 = vor.u32 %v5413_v42, %v5027_v41 }
 0x7ba   : > { %v8235_v48 = vpop.f32.mrf.mxu2 }
 0x7bc   : > { %3802 = vmatpush.bf16.msra.mxu3 %v5126_v44  ;;  %v3773_v20 = vpop.f32.mrf.mxu0 }
 0x7c0   : > { %3803 = vmatpush.bf16.msra.mxu3 %v5094_v3 }
 0x7c2   : > { %v3669_v56 = vpop.f32.mrf.mxu2 }
 0x7c4   : > { %3804 = vmatpush.bf16.msra.mxu3 %v5062_v39  ;;  %v3823_v55 = vpop.f32.mrf.mxu0 }
 0x7c8   : > { %3805 = vmatpush.bf16.msra.mxu3 %v5030_v38 }
 0x7ca   : > { %v3693_v40 = vpop.f32.mrf.mxu2 }
 0x7cc   : > { %3806 = vmatpush.bf16.msra.mxu3 %v4998_v7  ;;  %v3825_v1 = vpop.f32.mrf.mxu0 }
 0x7cd   : > { %v8443_v1 = vld [vmem:[#allocation7_spill] sm:$0xff] }
 0x7d0   : > { %3807 = vmatpush.bf16.msra.mxu3 %v4966_v27 }
 0x7d2   : > { %v3695_v15 = vpop.f32.mrf.mxu2 }
 0x7d4   : > { %3808 = vmatpush.bf16.msra.mxu3 %v4934_v49 }
 0x7d7   : > { %3809 = vmatmul.bf16.vlgmr.msra.gmra.mxu3 %v8008_v30 }
 0x7d8   : > { %3853 = vmatpush.bf16.msrb.mxu3 %v5166_v47 }
 0x7da   : > { %v3719_v50 = vpop.f32.mrf.mxu2 }
 0x7dc   : > { %3854 = vmatpush.bf16.msrb.mxu3 %v5134_v12 }
 0x7e0   : > { %3855 = vmatpush.bf16.msrb.mxu3 %v5102_v46 }
 0x7e2   : > { %v3721_v21 = vpop.f32.mrf.mxu2 }
 0x7e4   : > { %3856 = vmatpush.bf16.msrb.mxu3 %v5070_v61 }
 0x7e8   : > { %3857 = vmatpush.bf16.msrb.mxu3 %v5038_v13  ;;  %v8444_v13 = vld [vmem:[#allocation8_spill] sm:$0xff] }
 0x7ec   : > { %3858 = vmatpush.bf16.msrb.mxu3 %v5006_v23 }
 0x7f0   : > { %3859 = vmatpush.bf16.msrb.mxu3 %v4974_v25 }
 0x7f4   : > { %3860 = vmatpush.bf16.msrb.mxu3 %v4942_v18  ;;  %v3784_v62 = vpop.f32.mrf.mxu1 }
 0x7f5   : > { %v3785_v28 = vadd.f32 %v3784_v62, %v3771_v53 }
 0x7f7   : > { %3861 = vmatmul.bf16.vlgmr.msrb.gmra.mxu3 %v8008_v30  ;;  %v8439_v30 = vld [vmem:[#allocation3_spill] sm:$0xff]  ;;  %v3870_v32 = vmul.f32 0.25, %v3785_v28 }
 0x7fa   : > { %v3680_v43 = vpop.f32.mrf.mxu3 }
 0x7fb   : > { %v3681_v37 = vadd.f32 %v3680_v43, %v8235_v48 }
 0x7fc   : > { %v3786_v51 = vpop.f32.mrf.mxu1  ;;  %v3745_v19 = vpop.f32.mrf.mxu2 }
 0x7fd   : > { %v3866_v33 = vmul.f32 0.25, %v3681_v37 }
 0x7ff   : > { %v3874_v39 = vadd.f32 %v3866_v33, %v8438_v60 }
 0x802   : > { %v3682_v8 = vpop.f32.mrf.mxu3 }
 0x804   : > { %v3836_v26 = vpop.f32.mrf.mxu1  ;;  %v3747_v34 = vpop.f32.mrf.mxu2 }
 0x805   : > { %v3837_v16 = vadd.f32 %v3836_v26, %v3823_v55 }
 0x807   : > { %v3872_v9 = vmul.f32 0.25, %v3837_v16 }
 0x809   : > { %v3880_v35 = vadd.f32 %v3872_v9, %v8444_v13 }
 0x80a   : > { %v3706_v44 = vpop.f32.mrf.mxu3 }
 0x80b   : > { %v3707_v52 = vadd.f32 %v3706_v44, %v3693_v40  ;;  %v3878_v40 = vadd.f32 %v3870_v32, %v8442_v59 }
 0x80c   : > { %v3838_v3 = vpop.f32.mrf.mxu1 }
 0x80d   : > { %v3867_v11 = vmul.f32 0.25, %v3707_v52 }
 0x80f   : > { %v3875_v42 = vadd.f32 %v3867_v11, %v8439_v30 }
 0x811   : > { %v3882_v53 = vpack.c.bf16 %v3875_v42, %v3874_v39 }
 0x812   : > { %v3708_v41 = vpop.f32.mrf.mxu3 }
 0x813   : > { %3886 = vst [vmem:[%s8306_s21] sm:$0xff] %v3882_v53 }
 0x81a   : > { %v3732_v38 = vpop.f32.mrf.mxu3  ;;  %v3797_v2 = vpop.f32.mrf.mxu2 }
 0x81b   : > { %v3733_v7 = vadd.f32 %v3732_v38, %v3719_v50 }
 0x81d   : > { %v3868_v57 = vmul.f32 0.25, %v3733_v7 }
 0x81f   : > { %v3876_v29 = vadd.f32 %v3868_v57, %v8440_v63 }
 0x822   : > { %v3734_v58 = vpop.f32.mrf.mxu3  ;;  %v3799_v48 = vpop.f32.mrf.mxu2 }
 0x83a   : > { %v3758_v20 = vpop.f32.mrf.mxu3  ;;  %v3849_v27 = vpop.f32.mrf.mxu2 }
 0x83b   : > { %v3759_v24 = vadd.f32 %v3758_v20, %v3745_v19 }
 0x83d   : > { %v3869_v54 = vmul.f32 0.25, %v3759_v24 }
 0x83f   : > { %v3877_v56 = vadd.f32 %v3869_v54, %v8441_v10 }
 0x841   : > { %v3883_v49 = vpack.c.bf16 %v3877_v56, %v3876_v29 }
 0x842   : > { %v3760_v55 = vpop.f32.mrf.mxu3  ;;  %v3851_v47 = vpop.f32.mrf.mxu2 }
 0x843   : > { %3887 = vst [vmem:[%s8306_s21 + $0x8] sm:$0xff] %v3883_v49 }
 0x85a   : > { %v3810_v0 = vpop.f32.mrf.mxu3 }
 0x85b   : > { %v3811_v12 = vadd.f32 %v3810_v0, %v3797_v2 }
 0x85d   : > { %v3871_v6 = vmul.f32 0.25, %v3811_v12 }
 0x85f   : > { %v3879_v46 = vadd.f32 %v3871_v6, %v8443_v1 }
 0x861   : > { %v3884_v31 = vpack.c.bf16 %v3879_v46, %v3878_v40 }
 0x862   : > { %v3812_v36 = vpop.f32.mrf.mxu3 }
 0x863   : > { %3888 = vst [vmem:[%s8306_s21 + $0x10] sm:$0xff] %v3884_v31 }
 0x87a   : > { %v3862_v61 = vpop.f32.mrf.mxu3 }
 0x87b   : > { %v3863_v45 = vadd.f32 %v3862_v61, %v3849_v27 }
 0x87d   : > { %v3873_v15 = vmul.f32 0.25, %v3863_v45 }
 0x87f   : > { %v3881_v23 = vadd.f32 %v3873_v15, %v8445_v5 }
 0x881   : > { %v3885_v4 = vpack.c.bf16 %v3881_v23, %v3880_v35 }
 0x882   : > { %v3864_v14 = vpop.f32.mrf.mxu3 }
 0x883   : > { %3889 = vst [vmem:[%s8306_s21 + $0x18] sm:$0xff] %v3885_v4 }
 0x884 PF: > { %s18_s24 = sadd.s32 1, %s5676_s24  }
 0x885   : > { %p15_p4 = scmp.ge.s32.totalorder %s18_s24, 4  }
 0x887   :  { %17 = sbr.rel (!%p15_p4) target bundleno = 1 (0x1), region = 86 }

// kernel: attn_conv2d_forward.3
= control target key start
LH: loop header
LB: loop body
LE: loop exit
PB: predicated region body
PF: predicated region fallthrough
CT: control target
= control target key end

     0   :  { %s4132_s15 = smov 0   ;;  %s6550_s0 = inlined_call_operand.vmem [shape: bf16[2,1536,16], index: 0, kind: input, shape index: {}]   ;;  %s6551_s1 = inlined_call_operand.vmem [shape: bf16[2,512,16], index: 1, kind: input, shape index: {}]   ;;  %s6552_s2 = inlined_call_operand.vmem [shape: f32[512,1], index: 2, kind: input, shape index: {}]   ;;  %s6553_s3 = inlined_call_operand.vmem [shape: f32[512,1], index: 3, kind: input, shape index: {}]   ;;  %s6554_s4 = inlined_call_operand.vmem [shape: f32[2,512,16], index: 4, kind: output, shape index: {}]  }
   0x1 LB: > { %s3343_s16 = sadd.s32 4294967295, %s4103_s15   ;;  %p3347_p0 = scmp.ge.s32.totalorder %s4103_s15, 1  ;;  %s4103_s15 = sphi %s4132_s15, %s14_s15  }
   0x2   : > { %p172_p1 = scmp.lt.s32.totalorder %s4103_s15, 3 }
   0x4   : > { %p173_p2 = pnand %p3347_p0, %p172_p1 }
   0x6   : > { %176 = sbr.rel (%p173_p2) target bundleno = 1348 (0x544), region = 36 }
   0xb   : > { %p203_p3 = scmp.lt.s32.totalorder %s3343_s16, 1  ;;  %vm917_vm0 = vcmask 130048  }
   0xd   : > { %s6959_s16 = smov (!%p203_p3, %s3343_s16), 1 }
   0xe   : > { %s4043_s17 = smul.u32 768, %s6959_s16  ;;  %s3771_s13 = sshll.u32 %s6959_s16, 8 }
   0xf   : > { %s4716_s18 = scalar_lea.vmem %s6551_s1, %s3771_s13  ;;  %s3772_s8 = sshll.u32 %s6959_s16, 9 }
  0x10   : > { %s4146_s20 = scalar_lea.vmem %s6550_s0, %s4043_s17  ;;  %s6203_s10 = scalar_lea.vmem %s6554_s4, %s3772_s8 }
  0x11   : > { %v3789_v0 = vld [vmem:[%s4146_s20 + $0x80] sm:$0xff]  ;;  %v3790_v4 = vld [vmem:[%s4146_s20 + $0x88] sm:$0xff]  ;;  %v3791_v8 = vld [vmem:[%s4146_s20 + $0x90] sm:$0xff] }
  0x12   : > { %v3797_v1 = vld [vmem:[%s4146_s20 + $0xc0] sm:$0xff]  ;;  %v3798_v5 = vld [vmem:[%s4146_s20 + $0xc8] sm:$0xff]  ;;  %v3799_v9 = vld [vmem:[%s4146_s20 + $0xd0] sm:$0xff] }
  0x13   : > { %v3773_v2 = vld [vmem:[%s4146_s20] sm:$0xff]  ;;  %4072 = vxpose.binary.xlu1.c.b16.start [1/16] (narrow) %v3797_v1, %v3789_v0, 16  ;;  %v3774_v6 = vld [vmem:[%s4146_s20 + $0x8] sm:$0xff]  ;;  %v3775_v10 = vld [vmem:[%s4146_s20 + $0x10] sm:$0xff] }
  0x14   : > { %v3781_v3 = vld [vmem:[%s4146_s20 + $0x40] sm:$0xff]  ;;  %v3782_v7 = vld [vmem:[%s4146_s20 + $0x48] sm:$0xff]  ;;  %v3783_v11 = vld [vmem:[%s4146_s20 + $0x50] sm:$0xff] }
  0x15   : > { %4062 = vxpose.binary.xlu0.c.b16.start [1/16] (narrow) %v3781_v3, %v3773_v2, 16  ;;  %v3792_v12 = vld [vmem:[%s4146_s20 + $0x98] sm:$0xff]  ;;  %v3793_v16 = vld [vmem:[%s4146_s20 + $0xa0] sm:$0xff]  ;;  %v3794_v20 = vld [vmem:[%s4146_s20 + $0xa8] sm:$0xff] }
  0x16   : > { %v3800_v13 = vld [vmem:[%s4146_s20 + $0xd8] sm:$0xff]  ;;  %v3801_v17 = vld [vmem:[%s4146_s20 + $0xe0] sm:$0xff]  ;;  %v3802_v21 = vld [vmem:[%s4146_s20 + $0xe8] sm:$0xff] }
  0x17   : > { %v3776_v14 = vld [vmem:[%s4146_s20 + $0x18] sm:$0xff]  ;;  %v3777_v18 = vld [vmem:[%s4146_s20 + $0x20] sm:$0xff]  ;;  %v3778_v22 = vld [vmem:[%s4146_s20 + $0x28] sm:$0xff] }
  0x18   : > { %v3784_v15 = vld [vmem:[%s4146_s20 + $0x58] sm:$0xff]  ;;  %v3785_v19 = vld [vmem:[%s4146_s20 + $0x60] sm:$0xff]  ;;  %v3786_v23 = vld [vmem:[%s4146_s20 + $0x68] sm:$0xff] }
  0x19   : > { %v3812_v24 = vld [vmem:[%s4146_s20 + $0x138] sm:$0xff]  ;;  %v3811_v27 = vld [vmem:[%s4146_s20 + $0x130] sm:$0xff]  ;;  %v3810_v32 = vld [vmem:[%s4146_s20 + $0x128] sm:$0xff] }
  0x1a   : > { %v3828_v25 = vld [vmem:[%s4146_s20 + $0x1b8] sm:$0xff]  ;;  %859 = vmatpush.bf16.msra.mxu0 %v3812_v24  ;;  %v3827_v28 = vld [vmem:[%s4146_s20 + $0x1b0] sm:$0xff]  ;;  %v3826_v33 = vld [vmem:[%s4146_s20 + $0x1a8] sm:$0xff] }
  0x1b   : > { %v3820_v26 = vld [vmem:[%s4146_s20 + $0x178] sm:$0xff]  ;;  %887 = vmatpush.bf16.msra.mxu2 %v3828_v25  ;;  %v3819_v30 = vld [vmem:[%s4146_s20 + $0x170] sm:$0xff]  ;;  %v3818_v34 = vld [vmem:[%s4146_s20 + $0x168] sm:$0xff] }
  0x1c   : > { %v3836_v29 = vld [vmem:[%s4146_s20 + $0x1f8] sm:$0xff]  ;;  %873 = vmatpush.bf16.msra.mxu1 %v3820_v26  ;;  %v3835_v31 = vld [vmem:[%s4146_s20 + $0x1f0] sm:$0xff]  ;;  %v3834_v35 = vld [vmem:[%s4146_s20 + $0x1e8] sm:$0xff] }
  0x1d   : > { %901 = vmatpush.bf16.msra.mxu3 %v3836_v29  ;;  %v3809_v36 = vld [vmem:[%s4146_s20 + $0x120] sm:$0xff]  ;;  %v3795_v38 = vld [vmem:[%s4146_s20 + $0xb0] sm:$0xff]  ;;  %v3808_v44 = vld [vmem:[%s4146_s20 + $0x118] sm:$0xff] }
  0x1e   : > { %860 = vmatpush.bf16.msra.mxu0 %v3811_v27  ;;  %v3825_v37 = vld [vmem:[%s4146_s20 + $0x1a0] sm:$0xff]  ;;  %v3803_v39 = vld [vmem:[%s4146_s20 + $0xf0] sm:$0xff]  ;;  %v3824_v45 = vld [vmem:[%s4146_s20 + $0x198] sm:$0xff] }
  0x1f   : > { %888 = vmatpush.bf16.msra.mxu2 %v3827_v28  ;;  %v3779_v40 = vld [vmem:[%s4146_s20 + $0x30] sm:$0xff]  ;;  %v3817_v42 = vld [vmem:[%s4146_s20 + $0x160] sm:$0xff]  ;;  %v3816_v46 = vld [vmem:[%s4146_s20 + $0x158] sm:$0xff] }
  0x20   : > { %874 = vmatpush.bf16.msra.mxu1 %v3819_v30  ;;  %v3787_v41 = vld [vmem:[%s4146_s20 + $0x70] sm:$0xff]  ;;  %v3833_v43 = vld [vmem:[%s4146_s20 + $0x1e0] sm:$0xff]  ;;  %v3832_v47 = vld [vmem:[%s4146_s20 + $0x1d8] sm:$0xff] }
  0x21   : > { %902 = vmatpush.bf16.msra.mxu3 %v3835_v31  ;;  %v3807_v48 = vld [vmem:[%s4146_s20 + $0x110] sm:$0xff]  ;;  %v3806_v52 = vld [vmem:[%s4146_s20 + $0x108] sm:$0xff]  ;;  %v3805_v54 = vld [vmem:[%s4146_s20 + $0x100] sm:$0xff] }
  0x22   : > { %861 = vmatpush.bf16.msra.mxu0 %v3810_v32  ;;  %v3823_v49 = vld [vmem:[%s4146_s20 + $0x190] sm:$0xff]  ;;  %v3822_v53 = vld [vmem:[%s4146_s20 + $0x188] sm:$0xff]  ;;  %v3821_v55 = vld [vmem:[%s4146_s20 + $0x180] sm:$0xff] }
  0x23   : > { %4073 = vxpose.binary.xlu1.c.b16.cont [2/16] (narrow) %v3798_v5, %v3790_v4, 16  ;;  %v3815_v50 = vld [vmem:[%s4146_s20 + $0x150] sm:$0xff]  ;;  %v3796_v56 = vld [vmem:[%s4146_s20 + $0xb8] sm:$0xff]  ;;  %v3814_v60 = vld [vmem:[%s4146_s20 + $0x148] sm:$0xff] }
  0x24   : > { %889 = vmatpush.bf16.msra.mxu2 %v3826_v33  ;;  %875 = vmatpush.bf16.msra.mxu1 %v3818_v34  ;;  %v3831_v51 = vld [vmem:[%s4146_s20 + $0x1d0] sm:$0xff]  ;;  %v3804_v57 = vld [vmem:[%s4146_s20 + $0xf8] sm:$0xff]  ;;  %v3830_v61 = vld [vmem:[%s4146_s20 + $0x1c8] sm:$0xff] }
  0x25   : > { %4063 = vxpose.binary.xlu0.c.b16.cont [2/16] (narrow) %v3782_v7, %v3774_v6, 16  ;;  %v3780_v58 = vld [vmem:[%s4146_s20 + $0x38] sm:$0xff]  ;;  %v3813_v62 = vld [vmem:[%s4146_s20 + $0x140] sm:$0xff]  ;;  %v2145_v34 = vld [vmem:[%s6552_s2 + $0xa8] sm:$0xff] }
  0x26   : > { %903 = vmatpush.bf16.msra.mxu3 %v3834_v35  ;;  %862 = vmatpush.bf16.msra.mxu0 %v3809_v36  ;;  %v3788_v59 = vld [vmem:[%s4146_s20 + $0x78] sm:$0xff]  ;;  %v3829_v63 = vld [vmem:[%s4146_s20 + $0x1c0] sm:$0xff] }
  0x27   : > { %v2132_v33 = vld [vmem:[%s6552_s2 + $0x40] sm:$0xff]  ;;  %v2147_v36 = vld [vmem:[%s6552_s2 + $0xb8] sm:$0xff] }
  0x28   : > { %890 = vmatpush.bf16.msra.mxu2 %v3825_v37  ;;  %876 = vmatpush.bf16.msra.mxu1 %v3817_v42  ;;  %v2124_v35 = vld [vmem:[%s6552_s2] sm:$0xff]  ;;  %v2125_v37 = vld [vmem:[%s6552_s2 + $0x8] sm:$0xff]  ;;  %v2155_v42 = vld [vmem:[%s6552_s2 + $0xf8] sm:$0xff] }
  0x2a   : > { %904 = vmatpush.bf16.msra.mxu3 %v3833_v43  ;;  %863 = vmatpush.bf16.msra.mxu0 %v3808_v44  ;;  %v2128_v43 = vld [vmem:[%s6552_s2 + $0x20] sm:$0xff]  ;;  %v2158_v44 = vld [vmem:[%s6552_s2 + $0x110] sm:$0xff] }
  0x2c   : > { %891 = vmatpush.bf16.msra.mxu2 %v3824_v45  ;;  %877 = vmatpush.bf16.msra.mxu1 %v3816_v46  ;;  %v2131_v45 = vld [vmem:[%s6552_s2 + $0x38] sm:$0xff]  ;;  %v2129_v46 = vld [vmem:[%s6552_s2 + $0x28] sm:$0xff] }
  0x2e   : > { %905 = vmatpush.bf16.msra.mxu3 %v3832_v47  ;;  %864 = vmatpush.bf16.msra.mxu0 %v3807_v48  ;;  %v2161_v47 = vld [vmem:[%s6552_s2 + $0x128] sm:$0xff]  ;;  %v2150_v48 = vld [vmem:[%s6552_s2 + $0xd0] sm:$0xff] }
  0x30   : > { %892 = vmatpush.bf16.msra.mxu2 %v3823_v49  ;;  %878 = vmatpush.bf16.msra.mxu1 %v3815_v50  ;;  %v2130_v49 = vld [vmem:[%s6552_s2 + $0x30] sm:$0xff]  ;;  %v2164_v50 = vld [vmem:[%s6552_s2 + $0x140] sm:$0xff] }
  0x32   : > { %906 = vmatpush.bf16.msra.mxu3 %v3831_v51  ;;  %865 = vmatpush.bf16.msra.mxu0 %v3806_v52  ;;  %v2153_v51 = vld [vmem:[%s6552_s2 + $0xe8] sm:$0xff] }
  0x33   : > { %4074 = vxpose.binary.xlu1.c.b16.cont [3/16] (narrow) %v3799_v9, %v3791_v8, 16  ;;  %v2133_v52 = vld [vmem:[%s6552_s2 + $0x48] sm:$0xff] }
  0x34   : > { %893 = vmatpush.bf16.msra.mxu2 %v3822_v53  ;;  %879 = vmatpush.bf16.msra.mxu1 %v3814_v60  ;;  %v2167_v53 = vld [vmem:[%s6552_s2 + $0x158] sm:$0xff]  ;;  %v2162_v60 = vld [vmem:[%s6552_s2 + $0x130] sm:$0xff] }
  0x35   : > { %4064 = vxpose.binary.xlu0.c.b16.cont [3/16] (narrow) %v3783_v11, %v3775_v10, 16 }
  0x36   : > { %866 = vmatpush.bf16.msra.mxu0 %v3805_v54  ;;  %907 = vmatpush.bf16.msra.mxu3 %v3830_v61  ;;  %v2156_v54 = vld [vmem:[%s6552_s2 + $0x100] sm:$0xff] }
  0x37   : > { %v2136_v61 = vld [vmem:[%s6552_s2 + $0x60] sm:$0xff] }
  0x38   : > { %894 = vmatpush.bf16.msra.mxu2 %v3821_v55  ;;  %880 = vmatpush.bf16.msra.mxu1 %v3813_v62  ;;  %v2134_v55 = vld [vmem:[%s6552_s2 + $0x50] sm:$0xff] }
  0x3a   : > { %908 = vmatpush.bf16.msra.mxu3 %v3829_v63  ;;  %v2176_v63 = vld [vmem:[%s6552_s2 + $0x1a0] sm:$0xff] }
  0x43   : > { %4075 = vxpose.binary.xlu1.c.b16.cont [4/16] (narrow) %v3800_v13, %v3792_v12, 16 }
  0x45   : > { %4065 = vxpose.binary.xlu0.c.b16.cont [4/16] (narrow) %v3784_v15, %v3776_v14, 16 }
  0x53   : > { %4076 = vxpose.binary.xlu1.c.b16.cont [5/16] (narrow) %v3801_v17, %v3793_v16, 16 }
  0x55   : > { %4066 = vxpose.binary.xlu0.c.b16.cont [5/16] (narrow) %v3785_v19, %v3777_v18, 16 }
  0x63   : > { %4077 = vxpose.binary.xlu1.c.b16.cont [6/16] (narrow) %v3802_v21, %v3794_v20, 16 }
  0x65   : > { %4067 = vxpose.binary.xlu0.c.b16.cont [6/16] (narrow) %v3786_v23, %v3778_v22, 16  ;;  %v4105_v22 = vmov 0  }
  0x66   : > { %4082 = vset.pattern.permute.xlu2 %v4105_v22 }
  0x73   : > { %4078 = vxpose.binary.xlu1.c.b16.cont [7/16] (narrow) %v3803_v39, %v3795_v38, 16  ;;  %v2149_v38 = vld [vmem:[%s6552_s2 + $0xc8] sm:$0xff]  ;;  %v2126_v39 = vld [vmem:[%s6552_s2 + $0x10] sm:$0xff] }
  0x75   : > { %4068 = vxpose.binary.xlu0.c.b16.cont [7/16] (narrow) %v3787_v41, %v3779_v40, 16  ;;  %v2152_v40 = vld [vmem:[%s6552_s2 + $0xe0] sm:$0xff]  ;;  %v2127_v41 = vld [vmem:[%s6552_s2 + $0x18] sm:$0xff] }
  0x83   : > { %4079 = vxpose.binary.xlu1.c.b16.end [8/16] (narrow) %v3804_v57, %v3796_v56, 16  ;;  %v2170_v56 = vld [vmem:[%s6552_s2 + $0x170] sm:$0xff]  ;;  %v2159_v57 = vld [vmem:[%s6552_s2 + $0x118] sm:$0xff] }
  0x85   : > { %4069 = vxpose.binary.xlu0.c.b16.end [8/16] (narrow) %v3788_v59, %v3780_v58, 16  ;;  %v2135_v58 = vld [vmem:[%s6552_s2 + $0x58] sm:$0xff]  ;;  %v2173_v59 = vld [vmem:[%s6552_s2 + $0x188] sm:$0xff] }
  0xbf   : > { %v4080_v0 = vpop.trf.xlu1 }
  0xc0   : > { %895 = vmatmul.bf16.vlgmr.msra.gmra.mxu2 %v4080_v0  ;;  %v2165_v0 = vld [vmem:[%s6552_s2 + $0x148] sm:$0xff] }
  0xc1   : > { %v4070_v1 = vpop.trf.xlu0 }
  0xc2   : > { %867 = vmatmul.bf16.vlgmr.msra.gmra.mxu0 %v4070_v1  ;;  %v2137_v1 = vld [vmem:[%s6552_s2 + $0x68] sm:$0xff] }
  0xc7   : > { %v4081_v2 = vpop.trf.xlu1 }
  0xc8   : > { %909 = vmatmul.bf16.vlgmr.msra.gmra.mxu3 %v4081_v2 }
  0xc9   : > { %v4071_v3 = vpop.trf.xlu0 }
  0xca   : > { %881 = vmatmul.bf16.vlgmr.msra.gmra.mxu1 %v4071_v3  ;;  %v2179_v3 = vld [vmem:[%s6552_s2 + $0x1b8] sm:$0xff] }
  0xd6   : > { %4084 = vset.pattern.permute.xlu1 %v4105_v22 }
  0xdd   : > { %2230 = vperm.xlu1 %4084, %v2132_v33   ;;  %v3847_v33 = vld [vmem:[%s4146_s20 + $0x250] sm:$0xff] }
  0xe5   : > { %2295 = vperm.xlu1 %4084, %v2145_v34   ;;  %v2581_v34 = vld [vmem:[%s6553_s3 + $0x48] sm:$0xff] }
  0xec   : > { %4083 = vset.pattern.permute.xlu0 %v4105_v22  ;;  %v2141_v22 = vld [vmem:[%s6552_s2 + $0x88] sm:$0xff] }
  0xed   : > { %2305 = vperm.xlu1 %4084, %v2147_v36   ;;  %v2144_v36 = vld [vmem:[%s6552_s2 + $0xa0] sm:$0xff] }
  0xf3   : > { %2225 = vperm.xlu0 %4083, %v2131_v45   ;;  %v2148_v45 = vld [vmem:[%s6552_s2 + $0xc0] sm:$0xff] }
  0xf5   : > { %2315 = vperm.xlu1 %4084, %v2149_v38   ;;  %v2584_v38 = vld [vmem:[%s6553_s3 + $0x60] sm:$0xff] }
  0xfb   : > { %2320 = vperm.xlu0 %4083, %v2150_v48   ;;  %v2590_v48 = vld [vmem:[%s6553_s3 + $0x90] sm:$0xff] }
  0xfd   : > { %2330 = vperm.xlu1 %4084, %v2152_v40   ;;  %v2146_v40 = vld [vmem:[%s6552_s2 + $0xb0] sm:$0xff] }
 0x103   : > { %2335 = vperm.xlu0 %4083, %v2153_v51  }
 0x105   : > { %2345 = vperm.xlu1 %4084, %v2155_v42   ;;  %v3848_v42 = vld [vmem:[%s4146_s20 + $0x258] sm:$0xff] }
 0x10b   : > { %2350 = vperm.xlu0 %4083, %v2156_v54   ;;  %v2593_v54 = vld [vmem:[%s6553_s3 + $0xa8] sm:$0xff] }
 0x10d   : > { %2360 = vperm.xlu1 %4084, %v2158_v44   ;;  %v2576_v44 = vld [vmem:[%s6553_s3 + $0x20] sm:$0xff] }
 0x113   : > { %2365 = vperm.xlu0 %4083, %v2159_v57  }
 0x115   : > { %2375 = vperm.xlu1 %4084, %v2161_v47   ;;  %v3861_v47 = vld [vmem:[%s4146_s20 + $0x2c0] sm:$0xff] }
 0x11b   : > { %2380 = vperm.xlu0 %4083, %v2162_v60   ;;  %v2596_v60 = vld [vmem:[%s6553_s3 + $0xc0] sm:$0xff] }
 0x11d   : > { %2390 = vperm.xlu1 %4084, %v2164_v50   ;;  %v2151_v50 = vld [vmem:[%s6552_s2 + $0xd8] sm:$0xff] }
 0x123   : > { %2395 = vperm.xlu0 %4083, %v2165_v0   ;;  %v3842_v0 = vld [vmem:[%s4146_s20 + $0x228] sm:$0xff] }
 0x125   : > { %2405 = vperm.xlu1 %4084, %v2167_v53   ;;  %v3849_v53 = vld [vmem:[%s4146_s20 + $0x260] sm:$0xff] }
 0x12d   : > { %2420 = vperm.xlu1 %4084, %v2170_v56   ;;  %v2154_v56 = vld [vmem:[%s6552_s2 + $0xf0] sm:$0xff] }
 0x135   : > { %2435 = vperm.xlu1 %4084, %v2173_v59   ;;  %v3862_v59 = vld [vmem:[%s4146_s20 + $0x2c8] sm:$0xff] }
 0x13d   : > { %2450 = vperm.xlu1 %4084, %v2176_v63  }
 0x13f   : > { %v868_v4 = vpop.f32.mrf.mxu0 }
 0x143   : > { %v896_v6 = vpop.f32.mrf.mxu2 }
 0x145   : > { %2465 = vperm.xlu1 %4084, %v2179_v3   ;;  %v2588_v3 = vld [vmem:[%s6553_s3 + $0x80] sm:$0xff] }
 0x147   : > { %v882_v5 = vpop.f32.mrf.mxu1  ;;  %v870_v11 = vpop.f32.mrf.mxu0 }
 0x148   : > { %v883_v7 = vadd.f32 %v882_v5, %v868_v4  ;;  %v2168_v4 = vld [vmem:[%s6552_s2 + $0x160] sm:$0xff]  ;;  %v2138_v5 = vld [vmem:[%s6552_s2 + $0x70] sm:$0xff] }
 0x149   : > { %2410 = vperm.xlu0 %4083, %v2168_v4   ;;  %v2160_v4 = vld [vmem:[%s6552_s2 + $0x120] sm:$0xff] }
 0x14a   : > { %v897_v8 = vadd.f32 %v896_v6, %v883_v7 }
 0x14b   : > { %v910_v9 = vpop.f32.mrf.mxu3  ;;  %v898_v16 = vpop.f32.mrf.mxu2 }
 0x14c   : > { %v911_v10 = vadd.f32 %v910_v9, %v897_v8 }
 0x14e   : > { %v915_v12 = vmul.f32 0.044194173, %v911_v10  ;;  %v2182_v10 = vld [vmem:[%s6552_s2 + $0x1d0] sm:$0xff] }
 0x14f   : > { %v884_v13 = vpop.f32.mrf.mxu1  ;;  %2480 = vperm.xlu1 %4084, %v2182_v10   ;;  %v2163_v10 = vld [vmem:[%s6552_s2 + $0x138] sm:$0xff] }
 0x150   : > { %v885_v14 = vadd.f32 %v884_v13, %v870_v11  ;;  %v918_v15 = vsel %vm917_vm0, %v915_v12, -inf  ;;  %v2171_v11 = vld [vmem:[%s6552_s2 + $0x178] sm:$0xff] }
 0x151   : > { %919 = vmax.xlane.f32.xlu2 %v918_v15  ;;  %2425 = vperm.xlu0 %4083, %v2171_v11   ;;  %v3837_v15 = vld [vmem:[%s4146_s20 + $0x200] sm:$0xff]  ;;  %v3843_v11 = vld [vmem:[%s4146_s20 + $0x230] sm:$0xff] }
 0x152   : > { %v899_v17 = vadd.f32 %v898_v16, %v885_v14  ;;  %v3845_v16 = vld [vmem:[%s4146_s20 + $0x240] sm:$0xff] }
 0x153   : > { %v912_v18 = vpop.f32.mrf.mxu3 }
 0x154   : > { %v913_v19 = vadd.f32 %v912_v18, %v899_v17  ;;  %v2185_v17 = vld [vmem:[%s6552_s2 + $0x1e8] sm:$0xff]  ;;  %v2174_v18 = vld [vmem:[%s6552_s2 + $0x190] sm:$0xff] }
 0x156   : > { %v916_v20 = vmul.f32 0.044194173, %v913_v19  ;;  %v2140_v19 = vld [vmem:[%s6552_s2 + $0x80] sm:$0xff] }
 0x157   : > { %2495 = vperm.xlu1 %4084, %v2185_v17   ;;  %v3858_v17 = vld [vmem:[%s4146_s20 + $0x2a8] sm:$0xff] }
 0x158   : > { %v921_v21 = vsel %vm917_vm0, %v916_v20, -inf }
 0x159   : > { %922 = vmax.xlane.f32.xlu2 %v921_v21  ;;  %2440 = vperm.xlu0 %4083, %v2174_v18   ;;  %v2177_v21 = vld [vmem:[%s6552_s2 + $0x1a8] sm:$0xff]  ;;  %v3864_v18 = vld [vmem:[%s4146_s20 + $0x2d8] sm:$0xff] }
 0x161   : > { %2455 = vperm.xlu0 %4083, %v2177_v21   ;;  %v2169_v21 = vld [vmem:[%s6552_s2 + $0x168] sm:$0xff] }
 0x1c4   : > { %v920_v23 = vpop.xlane.xlu2 %919 }
 0x1c5   : > { %v924_v24 = vsub.f32 %v915_v12, %v920_v23  ;;  %v2139_v12 = vld [vmem:[%s6552_s2 + $0x78] sm:$0xff]  ;;  %v3838_v23 = vld [vmem:[%s4146_s20 + $0x208] sm:$0xff] }
 0x1c7   : > { %v926_v25 = vmul.f32 1.442695, %v924_v24  ;;  %v3846_v24 = vld [vmem:[%s4146_s20 + $0x248] sm:$0xff] }
 0x1c9   : > { %4085 = vpow2.f32 %v926_v25  ;;  %v2575_v25 = vld [vmem:[%s6553_s3 + $0x18] sm:$0xff] }
 0x1cc   : > { %v923_v26 = vpop.xlane.xlu2 %922 }
 0x1cd   : > { %v925_v27 = vsub.f32 %v916_v20, %v923_v26  ;;  %v2572_v20 = vld [vmem:[%s6553_s3] sm:$0xff] }
 0x1ce   : > { %2638 = vperm.xlu1 %4084, %v2572_v20   ;;  %v2180_v26 = vld [vmem:[%s6552_s2 + $0x1c0] sm:$0xff]  ;;  %v2597_v20 = vld [vmem:[%s6553_s3 + $0xc8] sm:$0xff] }
 0x1cf   : > { %v4214_v28 = vpop.eup %4085  ;;  %v928_v29 = vmul.f32 1.442695, %v925_v27  ;;  %v2142_v27 = vld [vmem:[%s6552_s2 + $0x90] sm:$0xff]  ;;  %2470 = vperm.xlu0 %4083, %v2180_v26   ;;  %v2600_v26 = vld [vmem:[%s6553_s3 + $0xe0] sm:$0xff] }
 0x1d0   : > { %v930_v30 = vsel %vm917_vm0, %v4214_v28, 0.0 }
 0x1d1   : > { %4087 = vpow2.f32 %v928_v29  ;;  %931 = vadd.xlane.f32.xlu2 %v930_v30  ;;  %v2578_v29 = vld [vmem:[%s6553_s3 + $0x30] sm:$0xff]  ;;  %v2183_v30 = vld [vmem:[%s6552_s2 + $0x1d8] sm:$0xff] }
 0x1d6   : > { %2653 = vperm.xlu1 %4084, %v2575_v25   ;;  %v2611_v25 = vld [vmem:[%s6553_s3 + $0x138] sm:$0xff] }
 0x1d7   : > { %v4218_v31 = vpop.eup %4087  ;;  %2485 = vperm.xlu0 %4083, %v2183_v30  }
 0x1d8   : > { %v933_v32 = vsel %vm917_vm0, %v4218_v31, 0.0 }
 0x1d9   : > { %934 = vadd.xlane.f32.xlu2 %v933_v32  ;;  %v3839_v32 = vld [vmem:[%s4146_s20 + $0x210] sm:$0xff] }
 0x1de   : > { %2668 = vperm.xlu1 %4084, %v2578_v29   ;;  %v3865_v29 = vld [vmem:[%s4146_s20 + $0x2e0] sm:$0xff] }
 0x1e6   : > { %2683 = vperm.xlu1 %4084, %v2581_v34  }
 0x1ee   : > { %2698 = vperm.xlu1 %4084, %v2584_v38   ;;  %v2178_v38 = vld [vmem:[%s6552_s2 + $0x1b0] sm:$0xff] }
 0x1f1   : > { %2190 = vperm.xlu2 %4082, %v2124_v35   ;;  %v2186_v35 = vld [vmem:[%s6552_s2 + $0x1f0] sm:$0xff] }
 0x1f2   : > { %2500 = vperm.xlu0 %4083, %v2186_v35   ;;  %v2617_v35 = vld [vmem:[%s6553_s3 + $0x168] sm:$0xff] }
 0x1f9   : > { %2195 = vperm.xlu2 %4082, %v2125_v37   ;;  %v3854_v37 = vld [vmem:[%s4146_s20 + $0x288] sm:$0xff] }
 0x201   : > { %2200 = vperm.xlu2 %4082, %v2126_v39   ;;  %v2573_v39 = vld [vmem:[%s6553_s3 + $0x8] sm:$0xff] }
 0x202   : > { %2643 = vperm.xlu0 %4083, %v2573_v39  }
 0x209   : > { %2205 = vperm.xlu2 %4082, %v2127_v41   ;;  %v3840_v41 = vld [vmem:[%s4146_s20 + $0x218] sm:$0xff] }
 0x20a   : > { %2658 = vperm.xlu0 %4083, %v2576_v44   ;;  %v2609_v44 = vld [vmem:[%s6553_s3 + $0x128] sm:$0xff] }
 0x211   : > { %2210 = vperm.xlu2 %4082, %v2128_v43   ;;  %v2587_v43 = vld [vmem:[%s6553_s3 + $0x78] sm:$0xff] }
 0x212   : > { %2713 = vperm.xlu1 %4084, %v2587_v43   ;;  %v2620_v43 = vld [vmem:[%s6553_s3 + $0x180] sm:$0xff] }
 0x219   : > { %2215 = vperm.xlu2 %4082, %v2129_v46   ;;  %v3855_v46 = vld [vmem:[%s4146_s20 + $0x290] sm:$0xff] }
 0x21a   : > { %2728 = vperm.xlu1 %4084, %v2590_v48  }
 0x221   : > { %2220 = vperm.xlu2 %4082, %v2130_v49   ;;  %v2579_v49 = vld [vmem:[%s6553_s3 + $0x38] sm:$0xff] }
 0x222   : > { %2673 = vperm.xlu0 %4083, %v2579_v49   ;;  %2743 = vperm.xlu1 %4084, %v2593_v54   ;;  %v2623_v49 = vld [vmem:[%s6553_s3 + $0x198] sm:$0xff] }
 0x229   : > { %2235 = vperm.xlu2 %4082, %v2133_v52   ;;  %v3841_v52 = vld [vmem:[%s4146_s20 + $0x220] sm:$0xff] }
 0x22a   : > { %2758 = vperm.xlu1 %4084, %v2596_v60   ;;  %v2187_v60 = vld [vmem:[%s6552_s2 + $0x1f8] sm:$0xff] }
 0x231   : > { %2240 = vperm.xlu2 %4082, %v2134_v55   ;;  %v2582_v55 = vld [vmem:[%s6553_s3 + $0x50] sm:$0xff] }
 0x232   : > { %2688 = vperm.xlu0 %4083, %v2582_v55   ;;  %v3867_v55 = vld [vmem:[%s4146_s20 + $0x2f0] sm:$0xff] }
 0x239   : > { %2245 = vperm.xlu2 %4082, %v2135_v58   ;;  %v3856_v58 = vld [vmem:[%s4146_s20 + $0x298] sm:$0xff] }
 0x241   : > { %2250 = vperm.xlu2 %4082, %v2136_v61   ;;  %v2585_v61 = vld [vmem:[%s6553_s3 + $0x68] sm:$0xff] }
 0x242   : > { %2703 = vperm.xlu0 %4083, %v2585_v61  }
 0x244   : > { %v932_v62 = vpop.xlane.xlu2 %931 }
 0x245   : > { %4089 = vrcp.f32 %v932_v62  ;;  %v2157_v62 = vld [vmem:[%s6552_s2 + $0x108] sm:$0xff] }
 0x249   : > { %2255 = vperm.xlu2 %4082, %v2137_v1   ;;  %v3850_v1 = vld [vmem:[%s4146_s20 + $0x268] sm:$0xff] }
 0x24a   : > { %2718 = vperm.xlu0 %4083, %v2588_v3   ;;  %v2618_v3 = vld [vmem:[%s6553_s3 + $0x170] sm:$0xff] }
 0x24b   : > { %v4090_v6 = vpop.eup %4089 }
 0x24c   : > { %v935_v2 = vpop.xlane.xlu2 %934  ;;  %v938_v8 = vmul.f32 %v4090_v6, %v4214_v28  ;;  %v3853_v28 = vld [vmem:[%s4146_s20 + $0x280] sm:$0xff]  ;;  %v3863_v6 = vld [vmem:[%s4146_s20 + $0x2d0] sm:$0xff] }
 0x24d   : > { %4091 = vrcp.f32 %v935_v2  ;;  %v2599_v2 = vld [vmem:[%s6553_s3 + $0xd8] sm:$0xff] }
 0x24e   : > { %2773 = vperm.xlu1 %4084, %v2599_v2   ;;  %v2629_v2 = vld [vmem:[%s6553_s3 + $0x1c8] sm:$0xff] }
 0x251   : > { %2260 = vperm.xlu2 %4082, %v2138_v5   ;;  %v3857_v5 = vld [vmem:[%s4146_s20 + $0x2a0] sm:$0xff] }
 0x253   : > { %v4092_v7 = vpop.eup %4091 }
 0x254   : > { %v939_v9 = vmul.f32 %v4092_v7, %v4218_v31  ;;  %v2143_v31 = vld [vmem:[%s6552_s2 + $0x98] sm:$0xff]  ;;  %v4435_v51 = vpop.permute.xlu2 %2190  ;;  %v2602_v7 = vld [vmem:[%s6553_s3 + $0xf0] sm:$0xff] }
 0x255   : > { %6610 = vst [vmem:[#allocation2_spill] sm:$0xff] %v4435_v51 }
 0x256   : > { %v940_v13 = vpack.c.bf16 %v939_v9, %v938_v8  ;;  %v2591_v8 = vld [vmem:[%s6553_s3 + $0x98] sm:$0xff]  ;;  %2788 = vperm.xlu1 %4084, %v2602_v7  }
 0x257   : > { %2733 = vperm.xlu0 %4083, %v2591_v8   ;;  %v3868_v7 = vld [vmem:[%s4146_s20 + $0x2f8] sm:$0xff] }
 0x258   : > { %v1198_v14 = vsel %vm917_vm0, %v940_v13, 0  ;;  %v2605_v13 = vld [vmem:[%s6553_s3 + $0x108] sm:$0xff] }
 0x259   : > { %2265 = vperm.xlu2 %4082, %v2139_v12   ;;  %1207 = vmatpush.bf16.xpose.msrb.mxu0 %v1198_v14  ;;  %v3851_v12 = vld [vmem:[%s4146_s20 + $0x270] sm:$0xff] }
 0x25a   : > { %4028 = vmatpush.bf16.xpose.msrb.mxu1 %v1198_v14  ;;  %4029 = vmatpush.bf16.xpose.msrb.mxu2 %v1198_v14 }
 0x25b   : > { %4030 = vmatpush.bf16.xpose.msrb.mxu3 %v1198_v14  ;;  %v2594_v14 = vld [vmem:[%s6553_s3 + $0xb0] sm:$0xff] }
 0x25c   : > { %v4450_v57 = vpop.permute.xlu2 %2195 }
 0x25d   : > { %6611 = vst [vmem:[#allocation3_spill] sm:$0xff] %v4450_v57 }
 0x25e   : > { %2803 = vperm.xlu1 %4084, %v2605_v13   ;;  %v2577_v13 = vld [vmem:[%s6553_s3 + $0x28] sm:$0xff] }
 0x25f   : > { %2748 = vperm.xlu0 %4083, %v2594_v14  }
 0x260   : > { %3737 = vmatmul.msk.bf16.vlgmr.msrb.gmra.mxu0 %vm917_vm0, %v3837_v15  ;;  %v2166_v15 = vld [vmem:[%s6552_s2 + $0x150] sm:$0xff] }
 0x261   : > { %2270 = vperm.xlu2 %4082, %v2140_v19   ;;  %3745 = vmatmul.msk.bf16.vlgmr.msrb.gmra.mxu1 %vm917_vm0, %v3845_v16  ;;  %v2608_v19 = vld [vmem:[%s6553_s3 + $0x120] sm:$0xff] }
 0x262   : > { %3753 = vmatmul.msk.bf16.vlgmr.msrb.gmra.mxu2 %vm917_vm0, %v3853_v28  ;;  %3761 = vmatmul.msk.bf16.vlgmr.msrb.gmra.mxu3 %vm917_vm0, %v3861_v47  ;;  %v3859_v28 = vld [vmem:[%s4146_s20 + $0x2b0] sm:$0xff] }
 0x264   : > { %v4465_v63 = vpop.permute.xlu2 %2200 }
 0x265   : > { %6612 = vst [vmem:[#allocation4_spill] sm:$0xff] %v4465_v63 }
 0x266   : > { %2818 = vperm.xlu1 %4084, %v2608_v19   ;;  %v2624_v19 = vld [vmem:[%s6553_s3 + $0x1a0] sm:$0xff] }
 0x267   : > { %2763 = vperm.xlu0 %4083, %v2597_v20   ;;  %v2580_v20 = vld [vmem:[%s6553_s3 + $0x40] sm:$0xff] }
 0x269   : > { %2275 = vperm.xlu2 %4082, %v2141_v22  }
 0x26c   : > { %v4490_v9 = vpop.permute.xlu2 %2205 }
 0x26d   : > { %6613 = vst [vmem:[#allocation5_spill] sm:$0xff] %v4490_v9 }
 0x26e   : > { %2833 = vperm.xlu1 %4084, %v2611_v25  }
 0x26f   : > { %2778 = vperm.xlu0 %4083, %v2600_v26   ;;  %v2627_v26 = vld [vmem:[%s6553_s3 + $0x1b8] sm:$0xff] }
 0x270   : > { %3738 = vmatmul.msk.bf16.gmra.mxu0 %vm917_vm0, %v3838_v23  ;;  %v3844_v23 = vld [vmem:[%s4146_s20 + $0x238] sm:$0xff] }
 0x271   : > { %2280 = vperm.xlu2 %4082, %v2142_v27   ;;  %3746 = vmatmul.msk.bf16.gmra.mxu1 %vm917_vm0, %v3846_v24  ;;  %v3852_v24 = vld [vmem:[%s4146_s20 + $0x278] sm:$0xff]  ;;  %v2172_v27 = vld [vmem:[%s6552_s2 + $0x180] sm:$0xff] }
 0x272   : > { %3754 = vmatmul.msk.bf16.gmra.mxu2 %vm917_vm0, %v3854_v37  ;;  %3762 = vmatmul.msk.bf16.gmra.mxu3 %vm917_vm0, %v3862_v59  ;;  %v2615_v59 = vld [vmem:[%s6553_s3 + $0x158] sm:$0xff] }
 0x274   : > { %v4506_v16 = vpop.permute.xlu2 %2210 }
 0x275   : > { %6614 = vst [vmem:[#allocation6_spill] sm:$0xff] %v4506_v16 }
 0x279   : > { %2285 = vperm.xlu2 %4082, %v2143_v31   ;;  %v2614_v31 = vld [vmem:[%s6553_s3 + $0x150] sm:$0xff] }
 0x27a   : > { %2848 = vperm.xlu1 %4084, %v2614_v31  }
 0x27c   : > { %v4523_v22 = vpop.permute.xlu2 %2215 }
 0x27d   : > { %6615 = vst [vmem:[#allocation7_spill] sm:$0xff] %v4523_v22 }
 0x280   : > { %3739 = vmatmul.msk.bf16.gmra.mxu0 %vm917_vm0, %v3839_v32  ;;  %v2603_v32 = vld [vmem:[%s6553_s3 + $0xf8] sm:$0xff] }
 0x281   : > { %2290 = vperm.xlu2 %4082, %v2144_v36   ;;  %3747 = vmatmul.msk.bf16.gmra.mxu1 %vm917_vm0, %v3847_v33  ;;  %v2175_v33 = vld [vmem:[%s6552_s2 + $0x198] sm:$0xff]  ;;  %v2606_v36 = vld [vmem:[%s6553_s3 + $0x110] sm:$0xff] }
 0x282   : > { %3755 = vmatmul.msk.bf16.gmra.mxu2 %vm917_vm0, %v3855_v46  ;;  %3763 = vmatmul.msk.bf16.gmra.mxu3 %vm917_vm0, %v3863_v6 }
 0x283   : > { %2793 = vperm.xlu0 %4083, %v2603_v32   ;;  %2863 = vperm.xlu1 %4084, %v2617_v35   ;;  %v2586_v35 = vld [vmem:[%s6553_s3 + $0x70] sm:$0xff] }
 0x284   : > { %v4540_v30 = vpop.permute.xlu2 %2220 }
 0x285   : > { %6616 = vst [vmem:[#allocation8_spill] sm:$0xff] %v4540_v30 }
 0x289   : > { %2300 = vperm.xlu2 %4082, %v2146_v40   ;;  %v3860_v40 = vld [vmem:[%s4146_s20 + $0x2b8] sm:$0xff] }
 0x28b   : > { %2808 = vperm.xlu0 %4083, %v2606_v36   ;;  %2878 = vperm.xlu1 %4084, %v2620_v43   ;;  %v2633_v43 = vld [vmem:[%s6553_s3 + $0x1e8] sm:$0xff] }
 0x28c   : > { %v4561_v37 = vpop.permute.xlu2 %2235 }
 0x28d   : > { %6617 = vst [vmem:[#allocation9_spill] sm:$0xff] %v4561_v37 }
 0x290   : > { %3740 = vmatmul.msk.bf16.gmra.mxu0 %vm917_vm0, %v3840_v41  ;;  %v3866_v41 = vld [vmem:[%s4146_s20 + $0x2e8] sm:$0xff] }
 0x291   : > { %2310 = vperm.xlu2 %4082, %v2148_v45   ;;  %3748 = vmatmul.msk.bf16.gmra.mxu1 %vm917_vm0, %v3848_v42  ;;  %v2181_v45 = vld [vmem:[%s6552_s2 + $0x1c8] sm:$0xff] }
 0x292   : > { %3756 = vmatmul.msk.bf16.gmra.mxu2 %vm917_vm0, %v3856_v58  ;;  %3764 = vmatmul.msk.bf16.gmra.mxu3 %vm917_vm0, %v3864_v18  ;;  %v2626_v58 = vld [vmem:[%s6553_s3 + $0x1b0] sm:$0xff]  ;;  %v2635_v18 = vld [vmem:[%s6553_s3 + $0x1f8] sm:$0xff] }
 0x293   : > { %2823 = vperm.xlu0 %4083, %v2609_v44   ;;  %2893 = vperm.xlu1 %4084, %v2623_v49   ;;  %v2589_v44 = vld [vmem:[%s6553_s3 + $0x88] sm:$0xff] }
 0x294   : > { %v4585_v47 = vpop.permute.xlu2 %2240 }
 0x295   : > { %6618 = vst [vmem:[#allocation10_spill] sm:$0xff] %v4585_v47 }
 0x299   : > { %2325 = vperm.xlu2 %4082, %v2151_v50   ;;  %v2612_v50 = vld [vmem:[%s6553_s3 + $0x140] sm:$0xff] }
 0x29b   : > { %2838 = vperm.xlu0 %4083, %v2612_v50   ;;  %2908 = vperm.xlu1 %4084, %v2626_v58   ;;  %v2592_v58 = vld [vmem:[%s6553_s3 + $0xa0] sm:$0xff] }
 0x29c   : > { %v4600_v54 = vpop.permute.xlu2 %2245 }
 0x29d   : > { %6619 = vst [vmem:[#allocation11_spill] sm:$0xff] %v4600_v54 }
 0x2a0   : > { %3741 = vmatmul.msk.bf16.gmra.mxu0 %vm917_vm0, %v3841_v52  ;;  %v2184_v52 = vld [vmem:[%s6552_s2 + $0x1e0] sm:$0xff] }
 0x2a1   : > { %2340 = vperm.xlu2 %4082, %v2154_v56   ;;  %3749 = vmatmul.msk.bf16.gmra.mxu1 %vm917_vm0, %v3849_v53 }
 0x2a2   : > { %3757 = vmatmul.msk.bf16.gmra.mxu2 %vm917_vm0, %v3857_v5  ;;  %3765 = vmatmul.msk.bf16.gmra.mxu3 %vm917_vm0, %v3865_v29 }
 0x2a3   : > { %2853 = vperm.xlu0 %4083, %v2615_v59   ;;  %2923 = vperm.xlu1 %4084, %v2629_v2   ;;  %v3870_v59 = vld [vmem:[%s4716_s18] sm:$0xff]  }
 0x2a9   : > { %2355 = vperm.xlu2 %4082, %v2157_v62  }
 0x2ab   : > { %2868 = vperm.xlu0 %4083, %v2618_v3   ;;  %v3997_v3 = vld [vmem:[%s4716_s18 + $0x8] sm:$0xff]  }
 0x2b0   : > { %3742 = vmatmul.msk.bf16.gmra.mxu0 %vm917_vm0, %v3842_v0  ;;  %v4619_v0 = vpop.permute.xlu2 %2250 }
 0x2b1   : > { %2370 = vperm.xlu2 %4082, %v2160_v4   ;;  %3750 = vmatmul.msk.bf16.gmra.mxu1 %vm917_vm0, %v3850_v1  ;;  %6620 = vst [vmem:[#allocation12_spill] sm:$0xff] %v4619_v0  ;;  %v2574_v4 = vld [vmem:[%s6553_s3 + $0x10] sm:$0xff] }
 0x2b2   : > { %3758 = vmatmul.msk.bf16.gmra.mxu2 %vm917_vm0, %v3858_v17  ;;  %3766 = vmatmul.msk.bf16.gmra.mxu3 %vm917_vm0, %v3866_v41 }
 0x2b9   : > { %2385 = vperm.xlu2 %4082, %v2163_v10   ;;  %v2632_v10 = vld [vmem:[%s6553_s3 + $0x1e0] sm:$0xff] }
 0x2ba   : > { %2938 = vperm.xlu1 %4084, %v2632_v10  }
 0x2c0   : > { %3743 = vmatmul.msk.bf16.gmra.mxu0 %vm917_vm0, %v3843_v11  ;;  %v2621_v11 = vld [vmem:[%s6553_s3 + $0x188] sm:$0xff] }
 0x2c1   : > { %2400 = vperm.xlu2 %4082, %v2166_v15   ;;  %3751 = vmatmul.msk.bf16.gmra.mxu1 %vm917_vm0, %v3851_v12  ;;  %v4646_v12 = vpop.permute.xlu2 %2255 }
 0x2c2   : > { %3759 = vmatmul.msk.bf16.gmra.mxu2 %vm917_vm0, %v3859_v28  ;;  %3767 = vmatmul.msk.bf16.gmra.mxu3 %vm917_vm0, %v3867_v55  ;;  %6621 = vst [vmem:[#allocation13_spill] sm:$0xff] %v4646_v12 }
 0x2c3   : > { %2883 = vperm.xlu0 %4083, %v2621_v11   ;;  %2953 = vperm.xlu1 %4084, %v2635_v18  }
 0x2c9   : > { %2415 = vperm.xlu2 %4082, %v2169_v21   ;;  %v4666_v21 = vpop.permute.xlu2 %2260 }
 0x2ca   : > { %6622 = vst [vmem:[#allocation14_spill] sm:$0xff] %v4666_v21 }
 0x2cb   : > { %2898 = vperm.xlu0 %4083, %v2624_v19  }
 0x2d0   : > { %3744 = vmatmul.msk.bf16.gmra.mxu0 %vm917_vm0, %v3844_v23 }
 0x2d1   : > { %2430 = vperm.xlu2 %4082, %v2172_v27   ;;  %3752 = vmatmul.msk.bf16.gmra.mxu1 %vm917_vm0, %v3852_v24  ;;  %v2583_v27 = vld [vmem:[%s6553_s3 + $0x58] sm:$0xff]  ;;  %v4682_v29 = vpop.permute.xlu2 %2265 }
 0x2d2   : > { %3760 = vmatmul.msk.bf16.gmra.mxu2 %vm917_vm0, %v3860_v40  ;;  %3768 = vmatmul.msk.bf16.gmra.mxu3 %vm917_vm0, %v3868_v7  ;;  %6623 = vst [vmem:[#allocation15_spill] sm:$0xff] %v4682_v29  ;;  %v3871_v7 = vunpack.c.l.bf16 %v3870_v59 }
 0x2d3   : > { %2913 = vperm.xlu0 %4083, %v2627_v26  }
 0x2d9   : > { %2445 = vperm.xlu2 %4082, %v2175_v33   ;;  %v2630_v33 = vld [vmem:[%s6553_s3 + $0x1d0] sm:$0xff]  ;;  %v4698_v40 = vpop.permute.xlu2 %2270 }
 0x2da   : > { %6624 = vst [vmem:[#allocation16_spill] sm:$0xff] %v4698_v40 }
 0x2db   : > { %2928 = vperm.xlu0 %4083, %v2630_v33  }
 0x2dd   : > { %v4553_v34 = vpop.f32.mrf.mxu0 }
 0x2de   : > { %v4566_v39 = vpop.f32.mrf.mxu1  ;;  %v1497_v10 = vmul.f32 0.75, %v4553_v34 }
 0x2e1   : > { %2460 = vperm.xlu2 %4082, %v2178_v38   ;;  %v4722_v55 = vpop.permute.xlu2 %2275 }
 0x2e2   : > { %6625 = vst [vmem:[#allocation17_spill] sm:$0xff] %v4722_v55  ;;  %v4000_v55 = vld [vmem:[%s4716_s18 + $0x20] sm:$0xff]  }
 0x2e3   : > { %2943 = vperm.xlu0 %4083, %v2633_v43  }
 0x2e5   : > { %v4572_v42 = vpop.f32.mrf.mxu0  ;;  %v4617_v62 = vpop.f32.mrf.mxu2 }
 0x2e6   : > { %v4583_v46 = vpop.f32.mrf.mxu1  ;;  %v4680_v28 = vpop.f32.mrf.mxu3  ;;  %v1498_v2 = vmul.f32 0.75, %v4572_v42  ;;  %v3876_v42 = vunpack.c.h.bf16 %v3997_v3 }
 0x2e9   : > { %2475 = vperm.xlu2 %4082, %v2181_v45   ;;  %v4746_v43 = vpop.permute.xlu2 %2280 }
 0x2ea   : > { %6626 = vst [vmem:[#allocation18_spill] sm:$0xff] %v4746_v43 }
 0x2ed   : > { %v4587_v48 = vpop.f32.mrf.mxu0  ;;  %v4634_v6 = vpop.f32.mrf.mxu2 }
 0x2ee   : > { %v4598_v53 = vpop.f32.mrf.mxu1  ;;  %v4696_v38 = vpop.f32.mrf.mxu3  ;;  %v1499_v18 = vmul.f32 0.75, %v4587_v48 }
 0x2f1   : > { %2490 = vperm.xlu2 %4082, %v2184_v52  }
 0x2f5   : > { %v4604_v56 = vpop.f32.mrf.mxu0  ;;  %v4653_v15 = vpop.f32.mrf.mxu2 }
 0x2f6   : > { %v4615_v61 = vpop.f32.mrf.mxu1  ;;  %v4720_v52 = vpop.f32.mrf.mxu3  ;;  %v1500_v33 = vmul.f32 0.75, %v4604_v56 }
 0x2f9   : > { %2505 = vperm.xlu2 %4082, %v2187_v60   ;;  %v3872_v60 = vunpack.c.h.bf16 %v3870_v59 }
 0x2fb   : > { %v4736_v19 = vadd.f32 %v3872_v60, %v1498_v2  ;;  %v4756_v2 = vadd.f32 %v3876_v42, %v1500_v33 }
 0x2fd   : > { %v4621_v1 = vpop.f32.mrf.mxu0  ;;  %v4672_v25 = vpop.f32.mrf.mxu2  ;;  %v1771_v59 = vmul.f32 %v4736_v19, %v4736_v19 }
 0x2fe   : > { %v4632_v5 = vpop.f32.mrf.mxu1  ;;  %v1501_v48 = vmul.f32 0.75, %v4621_v1  ;;  %v1626_v1 = vsel %vm917_vm0, %v4736_v19, 0.0 }
 0x301   : > { %2648 = vperm.xlu2 %4082, %v2574_v4  }
 0x305   : > { %v4638_v8 = vpop.f32.mrf.mxu0  ;;  %v4694_v36 = vpop.f32.mrf.mxu2 }
 0x306   : > { %v4651_v14 = vpop.f32.mrf.mxu1 }
 0x309   : > { %2663 = vperm.xlu2 %4082, %v2577_v13   ;;  %v3875_v13 = vunpack.c.l.bf16 %v3997_v3  ;;  %v1502_v3 = vmul.f32 0.75, %v4638_v8 }
 0x30b   : > { %v4748_v34 = vadd.f32 %v3875_v13, %v1499_v18 }
 0x30d   : > { %v4655_v17 = vpop.f32.mrf.mxu0  ;;  %v4711_v49 = vpop.f32.mrf.mxu2  ;;  %v1772_v18 = vmul.f32 %v4748_v34, %v4748_v34  ;;  %v1628_v21 = vsel %vm917_vm0, %v4748_v34, 0.0 }
 0x30e   : > { %v4668_v23 = vpop.f32.mrf.mxu1 }
 0x30f   : > { %v1837_v54 = vsel %vm917_vm0, %v1772_v18, 0.0 }
 0x311   : > { %2678 = vperm.xlu2 %4082, %v2580_v20   ;;  %v3998_v20 = vld [vmem:[%s4716_s18 + $0x10] sm:$0xff]  }
 0x312   : > { %v3880_v56 = vunpack.c.h.bf16 %v3998_v20 }
 0x315   : > { %v4670_v24 = vpop.f32.mrf.mxu0  ;;  %v4733_v11 = vpop.f32.mrf.mxu2 }
 0x316   : > { %v4686_v32 = vpop.f32.mrf.mxu1  ;;  %v1504_v33 = vmul.f32 0.75, %v4670_v24 }
 0x319   : > { %2693 = vperm.xlu2 %4082, %v2583_v27   ;;  %v4741_v27 = vadd.f32 %v3871_v7, %v1497_v10  ;;  %v1503_v10 = vmul.f32 0.75, %v4655_v17 }
 0x31b   : > { %v1770_v60 = vmul.f32 %v4741_v27, %v4741_v27  ;;  %v1625_v42 = vsel %vm917_vm0, %v4741_v27, 0.0 }
 0x31c   : > { %v1627_v12 = vadd.f32 %v1626_v1, %v1625_v42  ;;  %v4796_v1 = vpop.permute.xlu2 %2285 }
 0x31d   : > { %v4684_v31 = vpop.f32.mrf.mxu0  ;;  %v4773_v40 = vpop.f32.mrf.mxu2  ;;  %v1834_v29 = vsel %vm917_vm0, %v1770_v60, 0.0  ;;  %v1630_v60 = vsel %vm917_vm0, %v4756_v2, 0.0 }
 0x31e   : > { %v4708_v45 = vpop.f32.mrf.mxu1  ;;  %v1505_v24 = vmul.f32 0.75, %v4684_v31  ;;  %v1629_v37 = vadd.f32 %v1628_v21, %v1627_v12 }
 0x320   : > { %v1631_v21 = vadd.f32 %v1630_v60, %v1629_v37 }
 0x321   : > { %2708 = vperm.xlu2 %4082, %v2586_v35   ;;  %v4744_v35 = vpop.f32.mrf.mxu3 }
 0x325   : > { %v4700_v41 = vpop.f32.mrf.mxu0 }
 0x326   : > { %v4730_v4 = vpop.f32.mrf.mxu1 }
 0x329   : > { %2723 = vperm.xlu2 %4082, %v2589_v44   ;;  %v3879_v44 = vunpack.c.l.bf16 %v3998_v20  ;;  %v1835_v20 = vsel %vm917_vm0, %v1771_v59, 0.0 }
 0x32a   : > { %v1836_v59 = vadd.f32 %v1835_v20, %v1834_v29 }
 0x32b   : > { %v4766_v43 = vadd.f32 %v3879_v44, %v1501_v48  ;;  %v1773_v44 = vmul.f32 %v4756_v2, %v4756_v2  ;;  %v4780_v48 = vadd.f32 %v3880_v56, %v1502_v3  ;;  %v3888_v56 = vunpack.c.h.bf16 %v4000_v55 }
 0x32c   : > { %v1506_v3 = vmul.f32 0.75, %v4700_v41  ;;  %v1838_v12 = vadd.f32 %v1837_v54, %v1836_v59  ;;  %v4002_v59 = vld [vmem:[%s4716_s18 + $0x30] sm:$0xff]  }
 0x32d   : > { %v4718_v50 = vpop.f32.mrf.mxu0  ;;  %6627 = vst [vmem:[#allocation19_spill] sm:$0xff] %v4780_v48  ;;  %v1774_v47 = vmul.f32 %v4766_v43, %v4766_v43  ;;  %v1839_v29 = vsel %vm917_vm0, %v1773_v44, 0.0  ;;  %v1632_v31 = vsel %vm917_vm0, %v4766_v43, 0.0  ;;  %v1775_v18 = vmul.f32 %v4780_v48, %v4780_v48 }
 0x32e   : > { %v4760_v13 = vpop.f32.mrf.mxu1  ;;  %v1634_v20 = vsel %vm917_vm0, %v4780_v48, 0.0  ;;  %v1840_v44 = vadd.f32 %v1839_v29, %v1838_v12  ;;  %v1633_v22 = vadd.f32 %v1632_v31, %v1631_v21  ;;  %v4813_v37 = vadd.f32 %v3888_v56, %v1506_v3  ;;  %v4825_v3 = vpop.f32.mrf.mxu2  ;;  %v4004_v21 = vld [vmem:[%s4716_s18 + $0x40] sm:$0xff]   ;;  %v4013_v48 = vld [vmem:[%s4716_s18 + $0x88] sm:$0xff]  }
 0x32f   : > { %v1841_v42 = vsel %vm917_vm0, %v1774_v47, 0.0  ;;  %v1843_v47 = vsel %vm917_vm0, %v1775_v18, 0.0  ;;  %v3895_v63 = vunpack.c.l.bf16 %v4002_v59 }
 0x330   : > { %6631 = vst [vmem:[#allocation23_spill] sm:$0xff] %v4813_v37  ;;  %v1842_v29 = vadd.f32 %v1841_v42, %v1840_v44  ;;  %v1635_v31 = vadd.f32 %v1634_v20, %v1633_v22  ;;  %v1779_v22 = vmul.f32 %v4813_v37, %v4813_v37  ;;  %v3896_v44 = vunpack.c.h.bf16 %v4002_v59 }
 0x331   : > { %2738 = vperm.xlu2 %4082, %v2592_v58   ;;  %v3999_v58 = vld [vmem:[%s4716_s18 + $0x18] sm:$0xff]  }
 0x332   : > { %v3883_v7 = vunpack.c.l.bf16 %v3999_v58  ;;  %v3884_v8 = vunpack.c.h.bf16 %v3999_v58  ;;  %v3887_v58 = vunpack.c.l.bf16 %v4000_v55  ;;  %v1844_v57 = vadd.f32 %v1843_v47, %v1842_v29 }
 0x333   : > { %v1642_v29 = vsel %vm917_vm0, %v4813_v37, 0.0 }
 0x334   : > { %v4782_v0 = vadd.f32 %v3883_v7, %v1503_v10  ;;  %v4790_v30 = vadd.f32 %v3884_v8, %v1504_v33  ;;  %v4001_v7 = vld [vmem:[%s4716_s18 + $0x28] sm:$0xff]   ;;  %v4794_v10 = vpop.f32.mrf.mxu3  ;;  %v4805_v41 = vadd.f32 %v3887_v58, %v1505_v24  ;;  %v1507_v33 = vmul.f32 0.75, %v4718_v50 }
 0x335   : > { %v4739_v26 = vpop.f32.mrf.mxu0  ;;  %v3891_v8 = vunpack.c.l.bf16 %v4001_v7  ;;  %v3892_v16 = vunpack.c.h.bf16 %v4001_v7 }
 0x336   : > { %6628 = vst [vmem:[#allocation20_spill] sm:$0xff] %v4782_v0  ;;  %v1776_v55 = vmul.f32 %v4782_v0, %v4782_v0  ;;  %v1777_v54 = vmul.f32 %v4790_v30, %v4790_v30  ;;  %v4816_v58 = vpop.f32.mrf.mxu1  ;;  %v1636_v24 = vsel %vm917_vm0, %v4782_v0, 0.0  ;;  %v1508_v50 = vmul.f32 0.75, %v4739_v26 }
 0x337   : > { %6629 = vst [vmem:[#allocation21_spill] sm:$0xff] %v4790_v30  ;;  %v1778_v56 = vmul.f32 %v4805_v41, %v4805_v41  ;;  %v1638_v18 = vsel %vm917_vm0, %v4790_v30, 0.0  ;;  %v4830_v9 = vadd.f32 %v3891_v8, %v1507_v33  ;;  %v1637_v51 = vadd.f32 %v1636_v24, %v1635_v31 }
 0x338   : > { %6630 = vst [vmem:[#allocation22_spill] sm:$0xff] %v4805_v41  ;;  %v1845_v12 = vsel %vm917_vm0, %v1776_v55, 0.0  ;;  %v1847_v26 = vsel %vm917_vm0, %v1777_v54, 0.0  ;;  %v4836_v55 = vld [vmem:[%s4716_s18 + $0x38] sm:$0xff]   ;;  %v1640_v42 = vsel %vm917_vm0, %v4805_v41, 0.0  ;;  %v4840_v20 = vadd.f32 %v3892_v16, %v1508_v50  ;;  %v4845_v54 = vpop.permute.xlu2 %2290 }
 0x339   : > { %6632 = vst [vmem:[#allocation24_spill] sm:$0xff] %v4830_v9  ;;  %v3903_v8 = vunpack.c.l.bf16 %v4004_v21  ;;  %v1846_v33 = vadd.f32 %v1845_v12, %v1844_v57  ;;  %v1849_v47 = vsel %vm917_vm0, %v1778_v56, 0.0  ;;  %v1780_v31 = vmul.f32 %v4830_v9, %v4830_v9  ;;  %v4005_v56 = vld [vmem:[%s4716_s18 + $0x48] sm:$0xff]  }
 0x33a   : > { %6633 = vst [vmem:[#allocation25_spill] sm:$0xff] %v4840_v20  ;;  %v3899_v59 = vunpack.c.l.bf16 %v4836_v55  ;;  %v1851_v50 = vsel %vm917_vm0, %v1779_v22, 0.0  ;;  %v1514_v41 = vmul.f32 0.75, %v4583_v46  ;;  %v4874_v46 = vpop.f32.mrf.mxu2 }
 0x33b   : > { %6634 = vst [vmem:[#allocation26_spill] sm:$0xff] %v4845_v54  ;;  %v1848_v57 = vadd.f32 %v1847_v26, %v1846_v33  ;;  %v1781_v54 = vmul.f32 %v4840_v20, %v4840_v20  ;;  %v1853_v22 = vsel %vm917_vm0, %v1780_v31, 0.0 }
 0x33c   : > { %v4843_v24 = vpop.f32.mrf.mxu3 }
 0x33d   : > { %v1239_v17 = vpop.f32.mrf.mxu0  ;;  %v1850_v0 = vadd.f32 %v1849_v47, %v1848_v57 }
 0x33e   : > { %v1509_v7 = vmul.f32 0.75, %v1239_v17  ;;  %v1639_v17 = vadd.f32 %v1638_v18, %v1637_v51  ;;  %v1644_v18 = vsel %vm917_vm0, %v4830_v9, 0.0  ;;  %v4864_v26 = vpop.f32.mrf.mxu1 }
 0x340   : > { %v4851_v16 = vadd.f32 %v3895_v63, %v1509_v7  ;;  %v1641_v51 = vadd.f32 %v1640_v42, %v1639_v17  ;;  %v3904_v7 = vunpack.c.h.bf16 %v4004_v21  ;;  %v1646_v42 = vsel %vm917_vm0, %v4840_v20, 0.0 }
 0x341   : > { %v1852_v21 = vadd.f32 %v1851_v50, %v1850_v0 }
 0x342   : > { %6635 = vst [vmem:[#allocation27_spill] sm:$0xff] %v4851_v16  ;;  %v1782_v33 = vmul.f32 %v4851_v16, %v4851_v16  ;;  %v1648_v31 = vsel %vm917_vm0, %v4851_v16, 0.0  ;;  %v4942_v16 = vld [vmem:[%s4716_s18 + $0x80] sm:$0xff]  }
 0x345   : > { %v1241_v60 = vpop.f32.mrf.mxu0 }
 0x346   : > { %v1510_v30 = vmul.f32 0.75, %v1241_v60  ;;  %v1513_v60 = vmul.f32 0.75, %v4566_v39  ;;  %v1643_v39 = vadd.f32 %v1642_v29, %v1641_v51  ;;  %v1855_v29 = vsel %vm917_vm0, %v1781_v54, 0.0 }
 0x347   : > { %v3908_v51 = vunpack.c.h.bf16 %v4005_v56  ;;  %v3900_v54 = vunpack.c.h.bf16 %v4836_v55 }
 0x348   : > { %v4861_v37 = vadd.f32 %v3896_v44, %v1510_v30  ;;  %v3907_v30 = vunpack.c.l.bf16 %v4005_v56  ;;  %v1515_v44 = vmul.f32 0.75, %v4598_v53  ;;  %v4876_v47 = vadd.f32 %v3903_v8, %v1513_v60 }
 0x349   : > { %v1857_v53 = vsel %vm917_vm0, %v1782_v33, 0.0  ;;  %v4890_v60 = vadd.f32 %v3904_v7, %v1514_v41  ;;  %v4006_v41 = vld [vmem:[%s4716_s18 + $0x50] sm:$0xff]  }
 0x34a   : > { %6636 = vst [vmem:[#allocation28_spill] sm:$0xff] %v4861_v37  ;;  %v1783_v57 = vmul.f32 %v4861_v37, %v4861_v37  ;;  %v1650_v0 = vsel %vm917_vm0, %v4861_v37, 0.0  ;;  %v4892_v50 = vadd.f32 %v3907_v30, %v1515_v44  ;;  %v1786_v30 = vmul.f32 %v4876_v47, %v4876_v47 }
 0x34b   : > { %6638 = vst [vmem:[#allocation30_spill] sm:$0xff] %v4876_v47 }
 0x34c   : > { %6639 = vst [vmem:[#allocation31_spill] sm:$0xff] %v4890_v60 }
 0x34d   : > { %v1244_v12 = vpop.f32.mrf.mxu0  ;;  %6640 = vst [vmem:[#allocation32_spill] sm:$0xff] %v4892_v50 }
 0x34e   : > { %v1511_v63 = vmul.f32 0.75, %v1244_v12  ;;  %v1645_v12 = vadd.f32 %v1644_v18, %v1643_v39  ;;  %v4894_v39 = vpop.f32.mrf.mxu3 }
 0x350   : > { %v4871_v17 = vadd.f32 %v3899_v59, %v1511_v63  ;;  %v1516_v59 = vmul.f32 0.75, %v4615_v61  ;;  %v1854_v63 = vadd.f32 %v1853_v22, %v1852_v21  ;;  %v1647_v20 = vadd.f32 %v1646_v42, %v1645_v12  ;;  %v4896_v22 = vpop.permute.xlu2 %2300 }
 0x351   : > { %v1859_v42 = vsel %vm917_vm0, %v1783_v57, 0.0  ;;  %v1788_v57 = vmul.f32 %v4892_v50, %v4892_v50 }
 0x352   : > { %6637 = vst [vmem:[#allocation29_spill] sm:$0xff] %v4871_v17  ;;  %v1784_v8 = vmul.f32 %v4871_v17, %v4871_v17  ;;  %v1856_v56 = vadd.f32 %v1855_v29, %v1854_v63  ;;  %v1649_v18 = vadd.f32 %v1648_v31, %v1647_v20  ;;  %v1652_v33 = vsel %vm917_vm0, %v4871_v17, 0.0 }
 0x353   : > { %v4901_v12 = vadd.f32 %v3908_v51, %v1516_v59  ;;  %v1656_v20 = vsel %vm917_vm0, %v4876_v47, 0.0  ;;  %v1787_v31 = vmul.f32 %v4890_v60, %v4890_v60  ;;  %v4007_v51 = vld [vmem:[%s4716_s18 + $0x58] sm:$0xff]   ;;  %v1865_v17 = vsel %vm917_vm0, %v1786_v30, 0.0 }
 0x354   : > { %v1858_v55 = vadd.f32 %v1857_v53, %v1856_v56  ;;  %v1651_v7 = vadd.f32 %v1650_v0, %v1649_v18  ;;  %v1861_v44 = vsel %vm917_vm0, %v1784_v8, 0.0  ;;  %v4916_v53 = vpop.f32.mrf.mxu1  ;;  %v3911_v0 = vunpack.c.l.bf16 %v4006_v41 }
 0x355   : > { %v1246_v61 = vpop.f32.mrf.mxu0  ;;  %v1517_v56 = vmul.f32 0.75, %v4632_v5  ;;  %v1519_v5 = vmul.f32 0.75, %v4668_v23  ;;  %v1660_v23 = vsel %vm917_vm0, %v4892_v50, 0.0 }
 0x356   : > { %v1512_v21 = vmul.f32 0.75, %v1246_v61  ;;  %v1860_v59 = vadd.f32 %v1859_v42, %v1858_v55  ;;  %v1653_v63 = vadd.f32 %v1652_v33, %v1651_v7  ;;  %v3912_v61 = vunpack.c.h.bf16 %v4006_v41  ;;  %v4925_v42 = vpop.f32.mrf.mxu2 }
 0x357   : > { %v1518_v33 = vmul.f32 0.75, %v4651_v14  ;;  %v3915_v55 = vunpack.c.l.bf16 %v4007_v51  ;;  %v4008_v14 = vld [vmem:[%s4716_s18 + $0x60] sm:$0xff]  }
 0x358   : > { %v4909_v29 = vadd.f32 %v3900_v54, %v1512_v21  ;;  %v1789_v54 = vmul.f32 %v4901_v12, %v4901_v12  ;;  %v1862_v21 = vadd.f32 %v1861_v44, %v1860_v59  ;;  %v1867_v44 = vsel %vm917_vm0, %v1787_v31, 0.0 }
 0x359   : > { %v4934_v59 = vadd.f32 %v3911_v0, %v1517_v56  ;;  %v4951_v31 = vadd.f32 %v3912_v61, %v1518_v33  ;;  %v3919_v0 = vunpack.c.l.bf16 %v4008_v14  ;;  %v1522_v61 = vmul.f32 0.75, %v4730_v4  ;;  %v4009_v33 = vld [vmem:[%s4716_s18 + $0x68] sm:$0xff]  }
 0x35a   : > { %6641 = vst [vmem:[#allocation33_spill] sm:$0xff] %v4909_v29  ;;  %v1654_v18 = vsel %vm917_vm0, %v4909_v29, 0.0  ;;  %v1785_v8 = vmul.f32 %v4909_v29, %v4909_v29  ;;  %v1658_v29 = vsel %vm917_vm0, %v4890_v60, 0.0  ;;  %v4944_v60 = vpop.f32.mrf.mxu3 }
 0x35b   : > { %v1655_v47 = vadd.f32 %v1654_v18, %v1653_v63  ;;  %6642 = vst [vmem:[#allocation34_spill] sm:$0xff] %v4934_v59  ;;  %v3916_v63 = vunpack.c.h.bf16 %v4007_v51  ;;  %v1520_v18 = vmul.f32 0.75, %v4686_v32  ;;  %v1871_v32 = vsel %vm917_vm0, %v1789_v54, 0.0 }
 0x35c   : > { %v1863_v7 = vsel %vm917_vm0, %v1785_v8, 0.0  ;;  %v1869_v8 = vsel %vm917_vm0, %v1788_v57, 0.0  ;;  %v4953_v51 = vadd.f32 %v3915_v55, %v1519_v5  ;;  %v1521_v57 = vmul.f32 0.75, %v4708_v45 }
 0x35d   : > { %v1657_v37 = vadd.f32 %v1656_v20, %v1655_v47  ;;  %v1864_v41 = vadd.f32 %v1863_v7, %v1862_v21  ;;  %v4946_v47 = vpop.permute.xlu2 %2310  ;;  %v1662_v20 = vsel %vm917_vm0, %v4901_v12, 0.0  ;;  %v4960_v21 = vmul.f32 0.75, %v4617_v62 }
 0x35e   : > { %v4962_v7 = vadd.f32 %v3916_v63, %v1520_v18  ;;  %v3920_v54 = vunpack.c.h.bf16 %v4008_v14  ;;  %v1791_v45 = vmul.f32 %v4951_v31, %v4951_v31  ;;  %v4972_v62 = vmul.f32 0.75, %v4634_v6 }
 0x35f   : > { %v1659_v30 = vadd.f32 %v1658_v29, %v1657_v37  ;;  %v1866_v9 = vadd.f32 %v1865_v17, %v1864_v41  ;;  %v1790_v17 = vmul.f32 %v4934_v59, %v4934_v59  ;;  %v1284_v41 = vpop.f32.mrf.mxu1  ;;  %v1792_v63 = vmul.f32 %v4953_v51, %v4953_v51 }
 0x360   : > { %v4976_v4 = vadd.f32 %v3919_v0, %v1521_v57  ;;  %v1793_v6 = vmul.f32 %v4962_v7, %v4962_v7  ;;  %v4010_v57 = vld [vmem:[%s4716_s18 + $0x70] sm:$0xff]  }
 0x361   : > { %v1661_v56 = vadd.f32 %v1660_v23, %v1659_v30  ;;  %v1868_v37 = vadd.f32 %v1867_v44, %v1866_v9  ;;  %v1664_v9 = vsel %vm917_vm0, %v4934_v59, 0.0  ;;  %v4978_v23 = vpop.f32.mrf.mxu2  ;;  %v1666_v30 = vsel %vm917_vm0, %v4951_v31, 0.0 }
 0x363   : > { %v1663_v55 = vadd.f32 %v1662_v20, %v1661_v56  ;;  %v1870_v5 = vadd.f32 %v1869_v8, %v1868_v37  ;;  %v1873_v8 = vsel %vm917_vm0, %v1790_v17, 0.0  ;;  %v3923_v20 = vunpack.c.l.bf16 %v4009_v33 }
 0x364   : > { %v1523_v56 = vmul.f32 0.75, %v4760_v13  ;;  %v4986_v37 = vadd.f32 %v3920_v54, %v1522_v61  ;;  %v3924_v17 = vunpack.c.h.bf16 %v4009_v33  ;;  %v1794_v13 = vmul.f32 %v4976_v4, %v4976_v4  ;;  %v4996_v61 = vpop.f32.mrf.mxu3 }
 0x365   : > { %v1665_v18 = vadd.f32 %v1664_v9, %v1663_v55  ;;  %v1872_v14 = vadd.f32 %v1871_v32, %v1870_v5  ;;  %v1875_v32 = vsel %vm917_vm0, %v1791_v45, 0.0  ;;  %v1668_v55 = vsel %vm917_vm0, %v4953_v51, 0.0 }
 0x366   : > { %6643 = vst [vmem:[#allocation35_spill] sm:$0xff] %v4986_v37  ;;  %v1524_v5 = vmul.f32 0.75, %v4816_v58  ;;  %v1877_v9 = vsel %vm917_vm0, %v1792_v63, 0.0  ;;  %v1670_v45 = vsel %vm917_vm0, %v4962_v7, 0.0  ;;  %v3927_v33 = vunpack.c.l.bf16 %v4010_v57 }
 0x367   : > { %v1667_v44 = vadd.f32 %v1666_v30, %v1665_v18  ;;  %v1874_v0 = vadd.f32 %v1873_v8, %v1872_v14  ;;  %v4998_v18 = vpop.permute.xlu2 %2325  ;;  %v5002_v14 = vadd.f32 %v3923_v20, %v1523_v56  ;;  %v1525_v58 = vmul.f32 0.75, %v4864_v26  ;;  %v1286_v50 = vpop.f32.mrf.mxu1 }
 0x368   : > { %6644 = vst [vmem:[#allocation36_spill] sm:$0xff] %v4998_v18  ;;  %v1879_v63 = vsel %vm917_vm0, %v1793_v6, 0.0  ;;  %v1795_v8 = vmul.f32 %v4986_v37, %v4986_v37  ;;  %v3928_v18 = vunpack.c.h.bf16 %v4010_v57  ;;  %v1526_v20 = vmul.f32 0.75, %v4916_v53 }
 0x369   : > { %v1876_v29 = vadd.f32 %v1875_v32, %v1874_v0  ;;  %v1669_v54 = vadd.f32 %v1668_v55, %v1667_v44  ;;  %v4011_v0 = vld [vmem:[%s4716_s18 + $0x78] sm:$0xff]   ;;  %v1672_v32 = vsel %vm917_vm0, %v4976_v4, 0.0  ;;  %v5011_v55 = vadd.f32 %v3924_v17, %v1524_v5 }
 0x36a   : > { %v1881_v56 = vsel %vm917_vm0, %v1794_v13, 0.0  ;;  %v1674_v26 = vsel %vm917_vm0, %v4986_v37, 0.0  ;;  %v1527_v17 = vmul.f32 0.75, %v1284_v41  ;;  %v1883_v57 = vsel %vm917_vm0, %v1795_v8, 0.0 }
 0x36b   : > { %v1671_v30 = vadd.f32 %v1670_v45, %v1669_v54  ;;  %v1878_v44 = vadd.f32 %v1877_v9, %v1876_v29  ;;  %v1796_v29 = vmul.f32 %v5002_v14, %v5002_v14  ;;  %v5020_v9 = vadd.f32 %v3927_v33, %v1525_v58  ;;  %v5025_v45 = vpop.f32.mrf.mxu2 }
 0x36c   : > { %v3931_v54 = vunpack.c.l.bf16 %v4011_v0  ;;  %v1676_v53 = vsel %vm917_vm0, %v5002_v14, 0.0  ;;  %v1528_v33 = vmul.f32 0.75, %v1286_v50  ;;  %v3939_v58 = vunpack.c.l.bf16 %v4013_v48 }
 0x36d   : > { %v1673_v6 = vadd.f32 %v1672_v32, %v1671_v30  ;;  %v1880_v59 = vadd.f32 %v1879_v63, %v1878_v44  ;;  %v1797_v63 = vmul.f32 %v5011_v55, %v5011_v55  ;;  %v5029_v30 = vadd.f32 %v3928_v18, %v1526_v20 }
 0x36e   : > { %v3932_v44 = vunpack.c.h.bf16 %v4011_v0  ;;  %v1531_v41 = vmul.f32 0.75, %v4653_v15  ;;  %v1885_v37 = vsel %vm917_vm0, %v1796_v29, 0.0  ;;  %v6646_v18 = vunpack.c.l.bf16 %v4942_v16  ;;  %v5049_v29 = vpop.f32.mrf.mxu3 }
 0x36f   : > { %v1675_v5 = vadd.f32 %v1674_v26, %v1673_v6  ;;  %v1882_v13 = vadd.f32 %v1881_v56, %v1880_v59  ;;  %v1678_v59 = vsel %vm917_vm0, %v5011_v55, 0.0  ;;  %v1798_v56 = vmul.f32 %v5020_v9, %v5020_v9 }
 0x370   : > { %v5037_v26 = vadd.f32 %v3931_v54, %v1527_v17  ;;  %v5042_v0 = vadd.f32 %v6646_v18, %v4960_v21  ;;  %v6648_v15 = vunpack.c.h.bf16 %v4942_v16  ;;  %v1887_v54 = vsel %vm917_vm0, %v1797_v63, 0.0 }
 0x371   : > { %v1677_v32 = vadd.f32 %v1676_v53, %v1675_v5  ;;  %v1884_v8 = vadd.f32 %v1883_v57, %v1882_v13  ;;  %v5051_v57 = vpop.permute.xlu2 %2340  ;;  %v4014_v53 = vld [vmem:[%s4716_s18 + $0x90] sm:$0xff]   ;;  %v1680_v17 = vsel %vm917_vm0, %v5020_v9, 0.0  ;;  %v1799_v21 = vmul.f32 %v5029_v30, %v5029_v30 }
 0x372   : > { %6645 = vst [vmem:[#allocation37_spill] sm:$0xff] %v5037_v26  ;;  %v5047_v50 = vadd.f32 %v6648_v15, %v4972_v62  ;;  %v5059_v5 = vadd.f32 %v3932_v44, %v1528_v33  ;;  %v3940_v16 = vunpack.c.h.bf16 %v4013_v48  ;;  %v1532_v62 = vmul.f32 0.75, %v4672_v25 }
 0x373   : > { %6647 = vst [vmem:[#allocation38_spill] sm:$0xff] %v5042_v0  ;;  %v1679_v20 = vadd.f32 %v1678_v59, %v1677_v32  ;;  %v1886_v6 = vadd.f32 %v1885_v37, %v1884_v8  ;;  %v5062_v32 = vadd.f32 %v3939_v58, %v1531_v41  ;;  %v1889_v8 = vsel %vm917_vm0, %v1798_v56, 0.0 }
 0x374   : > { %6649 = vst [vmem:[#allocation39_spill] sm:$0xff] %v5047_v50  ;;  %v1682_v63 = vsel %vm917_vm0, %v5029_v30, 0.0  ;;  %v1800_v59 = vmul.f32 %v5037_v26, %v5037_v26  ;;  %v3943_v18 = vunpack.c.l.bf16 %v4014_v53  ;;  %v1533_v44 = vmul.f32 0.75, %v4694_v36  ;;  %v4015_v36 = vld [vmem:[%s4716_s18 + $0x98] sm:$0xff]  }
 0x375   : > { %6650 = vst [vmem:[#allocation40_spill] sm:$0xff] %v5051_v57  ;;  %v1888_v13 = vadd.f32 %v1887_v54, %v1886_v6  ;;  %v1681_v37 = vadd.f32 %v1680_v17, %v1679_v20  ;;  %v1688_v25 = vsel %vm917_vm0, %v5042_v0, 0.0  ;;  %v1891_v15 = vsel %vm917_vm0, %v1799_v21, 0.0  ;;  %v5082_v17 = vpop.f32.mrf.mxu2 }
 0x376   : > { %6651 = vst [vmem:[#allocation41_spill] sm:$0xff] %v5059_v5  ;;  %v1684_v58 = vsel %vm917_vm0, %v5037_v26, 0.0  ;;  %v1801_v41 = vmul.f32 %v5059_v5, %v5059_v5  ;;  %v1802_v56 = vmul.f32 %v5042_v0, %v5042_v0  ;;  %v1803_v20 = vmul.f32 %v5047_v50, %v5047_v50 }
 0x377   : > { %6652 = vst [vmem:[#allocation42_spill] sm:$0xff] %v5062_v32  ;;  %v1890_v33 = vadd.f32 %v1889_v8, %v1888_v13  ;;  %v1683_v48 = vadd.f32 %v1682_v63, %v1681_v37  ;;  %v1804_v21 = vmul.f32 %v5062_v32, %v5062_v32  ;;  %v5086_v13 = vadd.f32 %v3940_v16, %v1532_v62 }
 0x378   : > { %v1893_v37 = vsel %vm917_vm0, %v1800_v59, 0.0  ;;  %v1686_v8 = vsel %vm917_vm0, %v5059_v5, 0.0  ;;  %v5091_v63 = vadd.f32 %v3943_v18, %v1533_v44  ;;  %v3944_v57 = vunpack.c.h.bf16 %v4014_v53  ;;  %v5099_v44 = vpop.f32.mrf.mxu3 }
 0x379   : > { %v1892_v6 = vadd.f32 %v1891_v15, %v1890_v33  ;;  %v1685_v54 = vadd.f32 %v1684_v58, %v1683_v48  ;;  %6653 = vst [vmem:[#allocation43_spill] sm:$0xff] %v5086_v13  ;;  %v1534_v33 = vmul.f32 0.75, %v4711_v49  ;;  %v3947_v48 = vunpack.c.l.bf16 %v4015_v36  ;;  %v5101_v53 = vpop.permute.xlu2 %2355 }
 0x37a   : > { %v1535_v15 = vmul.f32 0.75, %v4733_v11  ;;  %v1895_v16 = vsel %vm917_vm0, %v1801_v41, 0.0  ;;  %v1897_v62 = vsel %vm917_vm0, %v1802_v56, 0.0  ;;  %v1690_v59 = vsel %vm917_vm0, %v5047_v50, 0.0  ;;  %6654 = vst [vmem:[#allocation44_spill] sm:$0xff] %v5101_v53  ;;  %v4016_v41 = vld [vmem:[%s4716_s18 + $0xa0] sm:$0xff]  }
 0x37b   : > { %v1894_v0 = vadd.f32 %v1893_v37, %v1892_v6  ;;  %v1687_v26 = vadd.f32 %v1686_v8, %v1685_v54  ;;  %v1899_v6 = vsel %vm917_vm0, %v1803_v20, 0.0  ;;  %v1805_v49 = vmul.f32 %v5086_v13, %v5086_v13 }
 0x37c   : > { %v3948_v54 = vunpack.c.h.bf16 %v4015_v36  ;;  %v1536_v11 = vmul.f32 0.75, %v4773_v40  ;;  %v1692_v56 = vsel %vm917_vm0, %v5062_v32, 0.0  ;;  %v1901_v20 = vsel %vm917_vm0, %v1804_v21, 0.0 }
 0x37d   : > { %v1689_v58 = vadd.f32 %v1688_v25, %v1687_v26  ;;  %v1896_v18 = vadd.f32 %v1895_v16, %v1894_v0  ;;  %v1694_v26 = vsel %vm917_vm0, %v5086_v13, 0.0  ;;  %v5113_v0 = vld [vmem:[%s4716_s18 + $0xc0] sm:$0xff]   ;;  %v1806_v8 = vmul.f32 %v5091_v63, %v5091_v63 }
 0x37e   : > { %v5118_v36 = vadd.f32 %v3944_v57, %v1534_v33  ;;  %v5120_v40 = vadd.f32 %v3947_v48, %v1535_v15  ;;  %v3951_v16 = vunpack.c.l.bf16 %v4016_v41  ;;  %v1537_v53 = vmul.f32 0.75, %v4825_v3  ;;  %v4017_v33 = vld [vmem:[%s4716_s18 + $0xa8] sm:$0xff]  }
 0x37f   : > { %v1691_v25 = vadd.f32 %v1690_v59, %v1689_v58  ;;  %v1898_v37 = vadd.f32 %v1897_v62, %v1896_v18  ;;  %v1903_v13 = vsel %vm917_vm0, %v1805_v49, 0.0  ;;  %v5126_v62 = vmul.f32 0.75, %v4680_v28  ;;  %v1324_v18 = vpop.f32.mrf.mxu2  ;;  %v4018_v59 = vld [vmem:[%s4716_s18 + $0xb0] sm:$0xff]  }
 0x380   : > { %6655 = vst [vmem:[#allocation45_spill] sm:$0xff] %v5118_v36  ;;  %v5128_v21 = vadd.f32 %v3948_v54, %v1536_v11  ;;  %v3952_v58 = vunpack.c.h.bf16 %v4016_v41  ;;  %v1538_v57 = vmul.f32 0.75, %v4874_v46  ;;  %v1696_v3 = vsel %vm917_vm0, %v5091_v63, 0.0 }
 0x381   : > { %v1693_v32 = vadd.f32 %v1692_v56, %v1691_v25  ;;  %v1900_v50 = vadd.f32 %v1899_v6, %v1898_v37  ;;  %v1905_v6 = vsel %vm917_vm0, %v1806_v8, 0.0  ;;  %v1807_v49 = vmul.f32 %v5118_v36, %v5118_v36 }
 0x382   : > { %6656 = vst [vmem:[#allocation46_spill] sm:$0xff] %v5128_v21  ;;  %v3968_v28 = vunpack.c.h.bf16 %v5113_v0  ;;  %v1808_v54 = vmul.f32 %v5120_v40, %v5120_v40  ;;  %v5140_v11 = vadd.f32 %v3951_v16, %v1537_v53  ;;  %v1546_v41 = vmul.f32 0.75, %v4696_v38  ;;  %v5151_v53 = vpop.f32.mrf.mxu3  ;;  %v5153_v16 = vpop.permute.xlu2 %2370 }
 0x383   : > { %v1695_v48 = vadd.f32 %v1694_v26, %v1693_v32  ;;  %v1902_v15 = vadd.f32 %v1901_v20, %v1900_v50  ;;  %v1698_v50 = vsel %vm917_vm0, %v5118_v36, 0.0  ;;  %v3955_v56 = vunpack.c.l.bf16 %v4017_v33  ;;  %6658 = vst [vmem:[#allocation48_spill] sm:$0xff] %v5153_v16  ;;  %v4019_v16 = vld [vmem:[%s4716_s18 + $0xb8] sm:$0xff]  }
 0x384   : > { %v1539_v26 = vmul.f32 0.75, %v4925_v42  ;;  %v1809_v25 = vmul.f32 %v5128_v21, %v5128_v21  ;;  %v5148_v37 = vadd.f32 %v3952_v58, %v1538_v57  ;;  %v1700_v38 = vsel %vm917_vm0, %v5120_v40, 0.0 }
 0x385   : > { %v1697_v46 = vadd.f32 %v1696_v3, %v1695_v48  ;;  %v1904_v32 = vadd.f32 %v1903_v13, %v1902_v15  ;;  %v1907_v13 = vsel %vm917_vm0, %v1807_v49, 0.0  ;;  %v3956_v48 = vunpack.c.h.bf16 %v4017_v33 }
 0x386   : > { %6657 = vst [vmem:[#allocation47_spill] sm:$0xff] %v5148_v37  ;;  %v1540_v42 = vmul.f32 0.75, %v4978_v23  ;;  %v1909_v15 = vsel %vm917_vm0, %v1808_v54, 0.0  ;;  %v1810_v58 = vmul.f32 %v5140_v11, %v5140_v11  ;;  %v3959_v49 = vunpack.c.l.bf16 %v4018_v59 }
 0x387   : > { %v1699_v20 = vadd.f32 %v1698_v50, %v1697_v46  ;;  %v1906_v8 = vadd.f32 %v1905_v6, %v1904_v32  ;;  %v1702_v6 = vsel %vm917_vm0, %v5128_v21, 0.0  ;;  %v5164_v46 = vadd.f32 %v3955_v56, %v1539_v26  ;;  %v1326_v21 = vpop.f32.mrf.mxu2 }
 0x388   : > { %v1541_v32 = vmul.f32 0.75, %v5025_v45  ;;  %v1911_v50 = vsel %vm917_vm0, %v1809_v25, 0.0  ;;  %v1811_v23 = vmul.f32 %v5148_v37, %v5148_v37  ;;  %v1542_v56 = vmul.f32 0.75, %v5082_v17 }
 0x389   : > { %v1908_v57 = vadd.f32 %v1907_v13, %v1906_v8  ;;  %v1701_v3 = vadd.f32 %v1700_v38, %v1699_v20  ;;  %6659 = vst [vmem:[#allocation49_spill] sm:$0xff] %v5164_v46  ;;  %v1704_v8 = vsel %vm917_vm0, %v5140_v11, 0.0  ;;  %v5173_v20 = vadd.f32 %v3956_v48, %v1540_v42 }
 0x38a   : > { %v3960_v13 = vunpack.c.h.bf16 %v4018_v59  ;;  %v1913_v26 = vsel %vm917_vm0, %v1810_v58, 0.0  ;;  %v1706_v45 = vsel %vm917_vm0, %v5148_v37, 0.0  ;;  %v1543_v48 = vmul.f32 0.75, %v1324_v18 }
 0x38b   : > { %v1703_v33 = vadd.f32 %v1702_v6, %v1701_v3  ;;  %v1910_v54 = vadd.f32 %v1909_v15, %v1908_v57  ;;  %v1812_v15 = vmul.f32 %v5164_v46, %v5164_v46  ;;  %v5181_v57 = vadd.f32 %v3959_v49, %v1541_v32  ;;  %v4021_v6 = vld [vmem:[%s4716_s18 + $0xc8] sm:$0xff]  }
 0x38c   : > { %v3963_v3 = vunpack.c.l.bf16 %v4019_v16  ;;  %v1915_v42 = vsel %vm917_vm0, %v1811_v23, 0.0  ;;  %v1708_v17 = vsel %vm917_vm0, %v5164_v46, 0.0  ;;  %v6660_v49 = vunpack.c.l.bf16 %v5113_v0  ;;  %v5198_v46 = vpop.f32.mrf.mxu3 }
 0x38d   : > { %v1705_v25 = vadd.f32 %v1704_v8, %v1703_v33  ;;  %v1912_v38 = vadd.f32 %v1911_v50, %v1910_v54  ;;  %v1813_v33 = vmul.f32 %v5173_v20, %v5173_v20  ;;  %v5189_v50 = vadd.f32 %v3960_v13, %v1542_v56 }
 0x38e   : > { %v3964_v54 = vunpack.c.h.bf16 %v4019_v16  ;;  %v1544_v8 = vmul.f32 0.75, %v1326_v21  ;;  %v5194_v32 = vadd.f32 %v6660_v49, %v5126_v62  ;;  %v5196_v18 = vadd.f32 %v3968_v28, %v1546_v41 }
 0x38f   : > { %v1707_v59 = vadd.f32 %v1706_v45, %v1705_v25  ;;  %v1914_v58 = vadd.f32 %v1913_v26, %v1912_v38  ;;  %v5200_v26 = vpop.permute.xlu2 %2385  ;;  %v1917_v45 = vsel %vm917_vm0, %v1812_v15, 0.0  ;;  %v1710_v16 = vsel %vm917_vm0, %v5173_v20, 0.0 }
 0x390   : > { %6661 = vst [vmem:[#allocation50_spill] sm:$0xff] %v5200_v26  ;;  %v1814_v21 = vmul.f32 %v5181_v57, %v5181_v57  ;;  %v5207_v0 = vadd.f32 %v3963_v3, %v1543_v48  ;;  %v3971_v62 = vunpack.c.l.bf16 %v4021_v6  ;;  %v1547_v28 = vmul.f32 0.75, %v4720_v52 }
 0x391   : > { %v1709_v23 = vadd.f32 %v1708_v17, %v1707_v59  ;;  %v1916_v37 = vadd.f32 %v1915_v42, %v1914_v58  ;;  %v1919_v56 = vsel %vm917_vm0, %v1813_v33, 0.0  ;;  %v1712_v25 = vsel %vm917_vm0, %v5181_v57, 0.0  ;;  %v4022_v17 = vld [vmem:[%s4716_s18 + $0xd0] sm:$0xff]  }
 0x392   : > { %v1815_v38 = vmul.f32 %v5189_v50, %v5189_v50  ;;  %v5215_v15 = vadd.f32 %v3964_v54, %v1544_v8  ;;  %v1818_v42 = vmul.f32 %v5194_v32, %v5194_v32  ;;  %v1819_v52 = vmul.f32 %v5196_v18, %v5196_v18 }
 0x393   : > { %v1711_v41 = vadd.f32 %v1710_v16, %v1709_v23  ;;  %v1918_v13 = vadd.f32 %v1917_v45, %v1916_v37  ;;  %v1921_v37 = vsel %vm917_vm0, %v1814_v21, 0.0  ;;  %v1714_v59 = vsel %vm917_vm0, %v5189_v50, 0.0 }
 0x394   : > { %v1816_v58 = vmul.f32 %v5207_v0, %v5207_v0  ;;  %v3972_v33 = vunpack.c.h.bf16 %v4021_v6  ;;  %v1548_v54 = vmul.f32 0.75, %v4744_v35  ;;  %v5228_v23 = vadd.f32 %v3971_v62, %v1547_v28 }
 0x395   : > { %v1920_v3 = vadd.f32 %v1919_v56, %v1918_v13  ;;  %v1713_v48 = vadd.f32 %v1712_v25, %v1711_v41  ;;  %v1923_v45 = vsel %vm917_vm0, %v1815_v38, 0.0  ;;  %v1716_v16 = vsel %vm917_vm0, %v5207_v0, 0.0 }
 0x396   : > { %v1817_v21 = vmul.f32 %v5215_v15, %v5215_v15  ;;  %v3975_v41 = vunpack.c.l.bf16 %v4022_v17  ;;  %v1549_v13 = vmul.f32 0.75, %v4794_v10  ;;  %v3976_v25 = vunpack.c.h.bf16 %v4022_v17 }
 0x397   : > { %v1922_v8 = vadd.f32 %v1921_v37, %v1920_v3  ;;  %v1715_v49 = vadd.f32 %v1714_v59, %v1713_v48  ;;  %v1550_v35 = vmul.f32 0.75, %v4843_v24  ;;  %v1925_v62 = vsel %vm917_vm0, %v1816_v58, 0.0  ;;  %v4023_v3 = vld [vmem:[%s4716_s18 + $0xd8] sm:$0xff]   ;;  %v5243_v59 = vpop.f32.mrf.mxu3  ;;  %v5245_v26 = vpop.permute.xlu2 %2400 }
 0x398   : > { %v1718_v28 = vsel %vm917_vm0, %v5215_v15, 0.0  ;;  %v5240_v38 = vadd.f32 %v3972_v33, %v1548_v54  ;;  %6663 = vst [vmem:[#allocation52_spill] sm:$0xff] %v5245_v26  ;;  %v1720_v10 = vsel %vm917_vm0, %v5194_v32, 0.0  ;;  %v1929_v17 = vsel %vm917_vm0, %v1818_v42, 0.0 }
 0x399   : > { %v1924_v56 = vadd.f32 %v1923_v45, %v1922_v8  ;;  %v1717_v6 = vadd.f32 %v1716_v16, %v1715_v49  ;;  %v1722_v24 = vsel %vm917_vm0, %v5196_v18, 0.0  ;;  %v1927_v58 = vsel %vm917_vm0, %v1817_v21, 0.0  ;;  %v4024_v8 = vld [vmem:[%s4716_s18 + $0xe0] sm:$0xff]  }
 0x39a   : > { %6662 = vst [vmem:[#allocation51_spill] sm:$0xff] %v5240_v38  ;;  %v1931_v33 = vsel %vm917_vm0, %v1819_v52, 0.0  ;;  %v1820_v54 = vmul.f32 %v5228_v23, %v5228_v23  ;;  %v5257_v16 = vadd.f32 %v3975_v41, %v1549_v13  ;;  %v1551_v42 = vmul.f32 0.75, %v4894_v39 }
 0x39b   : > { %v1926_v48 = vadd.f32 %v1925_v62, %v1924_v56  ;;  %v1719_v37 = vadd.f32 %v1718_v28, %v1717_v6  ;;  %v5259_v56 = vadd.f32 %v3976_v25, %v1550_v35  ;;  %v3979_v6 = vunpack.c.l.bf16 %v4023_v3 }
 0x39c   : > { %v1724_v62 = vsel %vm917_vm0, %v5228_v23, 0.0  ;;  %v1821_v52 = vmul.f32 %v5240_v38, %v5240_v38  ;;  %v3980_v26 = vunpack.c.h.bf16 %v4023_v3  ;;  %v1553_v41 = vmul.f32 0.75, %v4996_v61  ;;  %v4025_v3 = vld [vmem:[%s4716_s18 + $0xe8] sm:$0xff]  }
 0x39d   : > { %v1721_v49 = vadd.f32 %v1720_v10, %v1719_v37  ;;  %v1928_v45 = vadd.f32 %v1927_v58, %v1926_v48  ;;  %v1552_v37 = vmul.f32 0.75, %v4944_v60  ;;  %v3983_v48 = vunpack.c.l.bf16 %v4024_v8 }
 0x39e   : > { %v1933_v13 = vsel %vm917_vm0, %v1820_v54, 0.0  ;;  %v1726_v39 = vsel %vm917_vm0, %v5240_v38, 0.0  ;;  %v1822_v10 = vmul.f32 %v5257_v16, %v5257_v16  ;;  %v3984_v60 = vunpack.c.h.bf16 %v4024_v8 }
 0x39f   : > { %v1723_v21 = vadd.f32 %v1722_v24, %v1721_v49  ;;  %v1930_v28 = vadd.f32 %v1929_v17, %v1928_v45  ;;  %v1823_v24 = vmul.f32 %v5259_v56, %v5259_v56  ;;  %v5275_v17 = vadd.f32 %v3979_v6, %v1551_v42  ;;  %v1364_v8 = vpop.f32.mrf.mxu3  ;;  %v5287_v38 = vpop.permute.xlu2 %2415 }
 0x3a0   : > { %v1554_v58 = vmul.f32 0.75, %v5049_v29  ;;  %v1935_v54 = vsel %vm917_vm0, %v1821_v52, 0.0  ;;  %v5282_v45 = vadd.f32 %v3980_v26, %v1552_v37  ;;  %v1555_v6 = vmul.f32 0.75, %v5099_v44  ;;  %6664 = vst [vmem:[#allocation53_spill] sm:$0xff] %v5287_v38  ;;  %v4026_v44 = vld [vmem:[%s4716_s18 + $0xf0] sm:$0xff]  }
 0x3a1   : > { %v1725_v25 = vadd.f32 %v1724_v62, %v1723_v21  ;;  %v1932_v35 = vadd.f32 %v1931_v33, %v1930_v28  ;;  %v1728_v33 = vsel %vm917_vm0, %v5257_v16, 0.0  ;;  %v5284_v62 = vadd.f32 %v3983_v48, %v1553_v41 }
 0x3a2   : > { %v3987_v21 = vunpack.c.l.bf16 %v4025_v3  ;;  %v1937_v29 = vsel %vm917_vm0, %v1822_v10, 0.0  ;;  %v1730_v52 = vsel %vm917_vm0, %v5259_v56, 0.0  ;;  %v1939_v26 = vsel %vm917_vm0, %v1823_v24, 0.0 }
 0x3a3   : > { %v1727_v61 = vadd.f32 %v1726_v39, %v1725_v25  ;;  %v1934_v49 = vadd.f32 %v1933_v13, %v1932_v35  ;;  %v1824_v13 = vmul.f32 %v5275_v17, %v5275_v17  ;;  %v5295_v37 = vadd.f32 %v3984_v60, %v1554_v58 }
 0x3a4   : > { %v1732_v25 = vsel %vm917_vm0, %v5275_v17, 0.0  ;;  %v1825_v35 = vmul.f32 %v5282_v45, %v5282_v45  ;;  %v3988_v39 = vunpack.c.h.bf16 %v4025_v3  ;;  %v1556_v10 = vmul.f32 0.75, %v5151_v53 }
 0x3a5   : > { %v1729_v42 = vadd.f32 %v1728_v33, %v1727_v61  ;;  %v1936_v28 = vadd.f32 %v1935_v54, %v1934_v49  ;;  %v1826_v61 = vmul.f32 %v5284_v62, %v5284_v62  ;;  %v5305_v49 = vadd.f32 %v3987_v21, %v1555_v6 }
 0x3a6   : > { %v1941_v58 = vsel %vm917_vm0, %v1824_v13, 0.0  ;;  %v1734_v54 = vsel %vm917_vm0, %v5282_v45, 0.0  ;;  %v3991_v33 = vunpack.c.l.bf16 %v4026_v44  ;;  %v1827_v3 = vmul.f32 %v5295_v37, %v5295_v37 }
 0x3a7   : > { %v1731_v48 = vadd.f32 %v1730_v52, %v1729_v42  ;;  %v1938_v41 = vadd.f32 %v1937_v29, %v1936_v28  ;;  %v1557_v42 = vmul.f32 0.75, %v5198_v46  ;;  %v1943_v29 = vsel %vm917_vm0, %v1825_v35, 0.0 }
 0x3a8   : > { %v1736_v21 = vsel %vm917_vm0, %v5284_v62, 0.0  ;;  %v5316_v6 = vadd.f32 %v3988_v39, %v1556_v10  ;;  %v1945_v52 = vsel %vm917_vm0, %v1826_v61, 0.0  ;;  %v1828_v13 = vmul.f32 %v5305_v49, %v5305_v49  ;;  %v1366_v10 = vpop.f32.mrf.mxu3  ;;  %v5328_v61 = vpop.permute.xlu2 %2430 }
 0x3a9   : > { %v1940_v24 = vadd.f32 %v1939_v26, %v1938_v41  ;;  %v1733_v60 = vadd.f32 %v1732_v25, %v1731_v48  ;;  %v4027_v48 = vld [vmem:[%s4716_s18 + $0xf8] sm:$0xff]   ;;  %v1738_v41 = vsel %vm917_vm0, %v5295_v37, 0.0  ;;  %v5324_v25 = vadd.f32 %v3991_v33, %v1557_v42  ;;  %6665 = vst [vmem:[#allocation54_spill] sm:$0xff] %v5328_v61 }
 0x3aa   : > { %v1558_v35 = vmul.f32 0.75, %v5243_v59  ;;  %v1949_v33 = vsel %vm917_vm0, %v1828_v13, 0.0  ;;  %v1742_v59 = vsel %vm917_vm0, %v5316_v6, 0.0 }
 0x3ab   : > { %v1735_v53 = vadd.f32 %v1734_v54, %v1733_v60  ;;  %v1942_v28 = vadd.f32 %v1941_v58, %v1940_v24  ;;  %v3992_v24 = vunpack.c.h.bf16 %v4026_v44  ;;  %v1947_v60 = vsel %vm917_vm0, %v1827_v3, 0.0 }
 0x3ac   : > { %v1740_v54 = vsel %vm917_vm0, %v5305_v49, 0.0  ;;  %v1830_v3 = vmul.f32 %v5324_v25, %v5324_v25 }
 0x3ad   : > { %v1737_v26 = vadd.f32 %v1736_v21, %v1735_v53  ;;  %v1944_v46 = vadd.f32 %v1943_v29, %v1942_v28  ;;  %v1829_v53 = vmul.f32 %v5316_v6, %v5316_v6  ;;  %v3995_v28 = vunpack.c.l.bf16 %v4027_v48 }
 0x3ae   : > { %v1559_v29 = vmul.f32 0.75, %v1364_v8  ;;  %v5339_v21 = vadd.f32 %v3992_v24, %v1558_v35  ;;  %v1744_v8 = vsel %vm917_vm0, %v5324_v25, 0.0  ;;  %v1953_v24 = vsel %vm917_vm0, %v1830_v3, 0.0 }
 0x3af   : > { %v1739_v39 = vadd.f32 %v1738_v41, %v1737_v26  ;;  %v1946_v58 = vadd.f32 %v1945_v52, %v1944_v46  ;;  %v3996_v52 = vunpack.c.h.bf16 %v4027_v48  ;;  %v1560_v26 = vmul.f32 0.75, %v1366_v10 }
 0x3b0   : > { %v1951_v61 = vsel %vm917_vm0, %v1829_v53, 0.0  ;;  %v5344_v13 = vadd.f32 %v3995_v28, %v1559_v29  ;;  %v1746_v48 = vsel %vm917_vm0, %v5339_v21, 0.0  ;;  %v5355_v28 = vpop.permute.xlu2 %2445 }
 0x3b1   : > { %v1741_v44 = vadd.f32 %v1740_v54, %v1739_v39  ;;  %v1948_v42 = vadd.f32 %v1947_v60, %v1946_v58  ;;  %v1831_v60 = vmul.f32 %v5339_v21, %v5339_v21  ;;  %v5348_v58 = vadd.f32 %v3996_v52, %v1560_v26  ;;  %6666 = vst [vmem:[#allocation55_spill] sm:$0xff] %v5355_v28 }
 0x3b2   : > { %v1748_v53 = vsel %vm917_vm0, %v5344_v13, 0.0  ;;  %v1832_v29 = vmul.f32 %v5344_v13, %v5344_v13 }
 0x3b3   : > { %v1743_v46 = vadd.f32 %v1742_v59, %v1741_v44  ;;  %v1950_v41 = vadd.f32 %v1949_v33, %v1948_v42  ;;  %v1955_v44 = vsel %vm917_vm0, %v1831_v60, 0.0  ;;  %v1833_v3 = vmul.f32 %v5348_v58, %v5348_v58  ;;  %v5372_v60 = vpop.permute.xlu1 %2230 }
 0x3b4   : > { %v1957_v52 = vsel %vm917_vm0, %v1832_v29, 0.0  ;;  %6670 = vst [vmem:[#allocation59_spill] sm:$0xff] %v5372_v60  ;;  %v2604_v29 = vld [vmem:[%s6553_s3 + $0x100] sm:$0xff] }
 0x3b5   : > { %v1745_v39 = vadd.f32 %v1744_v8, %v1743_v46  ;;  %v1952_v54 = vadd.f32 %v1951_v61, %v1950_v41  ;;  %v1750_v61 = vsel %vm917_vm0, %v5348_v58, 0.0  ;;  %v1959_v46 = vsel %vm917_vm0, %v1833_v3, 0.0  ;;  %v2607_v3 = vld [vmem:[%s6553_s3 + $0x118] sm:$0xff] }
 0x3b7   : > { %v1747_v35 = vadd.f32 %v1746_v48, %v1745_v39  ;;  %v1954_v10 = vadd.f32 %v1953_v24, %v1952_v54  ;;  %v2595_v48 = vld [vmem:[%s6553_s3 + $0xb8] sm:$0xff] }
 0x3b8   : > { %v5366_v8 = vpop.permute.xlu2 %2460 }
 0x3b9   : > { %v1749_v33 = vadd.f32 %v1748_v53, %v1747_v35  ;;  %v1956_v42 = vadd.f32 %v1955_v44, %v1954_v10  ;;  %6667 = vst [vmem:[#allocation56_spill] sm:$0xff] %v5366_v8  ;;  %v2598_v35 = vld [vmem:[%s6553_s3 + $0xd0] sm:$0xff]  ;;  %v2601_v53 = vld [vmem:[%s6553_s3 + $0xe8] sm:$0xff]  ;;  %v5394_v44 = vpop.permute.xlu0 %2225  ;;  %v4106_v8 = vmov 8192.0  }
 0x3ba   : > { %6673 = vst [vmem:[#allocation62_spill] sm:$0xff] %v5394_v44  ;;  %4093 = vrcp.f32 %v4106_v8  ;;  %v2628_v8 = vld [vmem:[%s6553_s3 + $0x1c0] sm:$0xff]  ;;  %v6741_v44 = vld [vmem:[#allocation29_spill] sm:$0xff] }
 0x3bb   : > { %v1751_v59 = vadd.f32 %v1750_v61, %v1749_v33  ;;  %v1958_v26 = vadd.f32 %v1957_v52, %v1956_v42  ;;  %v5382_v10 = vpop.permute.xlu1 %2295 }
 0x3bd   : > { %1752 = vadd.xlane.f32.xlu2 %v1751_v59  ;;  %v1960_v41 = vadd.f32 %v1959_v46, %v1958_v26 }
 0x3c0   : > { %v5368_v39 = vpop.permute.xlu2 %2475 }
 0x3c1   : > { %6668 = vst [vmem:[#allocation57_spill] sm:$0xff] %v5368_v39  ;;  %v5403_v52 = vpop.permute.xlu0 %2320 }
 0x3c2   : > { %6676 = vst [vmem:[#allocation65_spill] sm:$0xff] %v5403_v52 }
 0x3c3   : > { %v5389_v61 = vpop.permute.xlu1 %2305 }
 0x3c5   : > { %1961 = vadd.xlane.f32.xlu2 %v1960_v41  ;;  %v2610_v41 = vld [vmem:[%s6553_s3 + $0x130] sm:$0xff] }
 0x3c8   : > { %v5370_v54 = vpop.permute.xlu2 %2490 }
 0x3c9   : > { %6669 = vst [vmem:[#allocation58_spill] sm:$0xff] %v5370_v54 }
 0x3cb   : > { %v5398_v42 = vpop.permute.xlu1 %2315 }
 0x3cc   : > { %6675 = vst [vmem:[#allocation64_spill] sm:$0xff] %v5398_v42 }
 0x3d0   : > { %v5377_v24 = vpop.permute.xlu2 %2505 }
 0x3d1   : > { %6671 = vst [vmem:[#allocation60_spill] sm:$0xff] %v5377_v24 }
 0x3d3   : > { %v5407_v46 = vpop.permute.xlu1 %2330 }
 0x3d4   : > { %6678 = vst [vmem:[#allocation67_spill] sm:$0xff] %v5407_v46 }
 0x3d8   : > { %v5387_v33 = vpop.permute.xlu2 %2648 }
 0x3d9   : > { %6672 = vst [vmem:[#allocation61_spill] sm:$0xff] %v5387_v33 }
 0x3dd   : > { %2753 = vperm.xlu2 %4082, %v2595_v48   ;;  %v5412_v48 = vpop.permute.xlu0 %2335 }
 0x3de   : > { %6679 = vst [vmem:[#allocation68_spill] sm:$0xff] %v5412_v48 }
 0x3e0   : > { %v5396_v59 = vpop.permute.xlu2 %2663 }
 0x3e1   : > { %6674 = vst [vmem:[#allocation63_spill] sm:$0xff] %v5396_v59  ;;  %v2622_v59 = vld [vmem:[%s6553_s3 + $0x190] sm:$0xff] }
 0x3e5   : > { %2768 = vperm.xlu2 %4082, %v2598_v35   ;;  %v5424_v24 = vpop.permute.xlu0 %2350 }
 0x3e6   : > { %6682 = vst [vmem:[#allocation71_spill] sm:$0xff] %v5424_v24 }
 0x3e8   : > { %v5405_v26 = vpop.permute.xlu2 %2678 }
 0x3e9   : > { %6677 = vst [vmem:[#allocation66_spill] sm:$0xff] %v5405_v26 }
 0x3ed   : > { %2783 = vperm.xlu2 %4082, %v2601_v53   ;;  %v2613_v53 = vld [vmem:[%s6553_s3 + $0x148] sm:$0xff]  ;;  %v5433_v26 = vpop.permute.xlu0 %2365 }
 0x3ee   : > { %6685 = vst [vmem:[#allocation74_spill] sm:$0xff] %v5433_v26 }
 0x3f0   : > { %v5414_v35 = vpop.permute.xlu2 %2693 }
 0x3f1   : > { %6680 = vst [vmem:[#allocation69_spill] sm:$0xff] %v5414_v35  ;;  %v2619_v35 = vld [vmem:[%s6553_s3 + $0x178] sm:$0xff] }
 0x3f5   : > { %2798 = vperm.xlu2 %4082, %v2604_v29   ;;  %v5419_v29 = vpop.permute.xlu1 %2345 }
 0x3f6   : > { %6681 = vst [vmem:[#allocation70_spill] sm:$0xff] %v5419_v29 }
 0x3f8   : > { %v5426_v54 = vpop.permute.xlu2 %2708 }
 0x3f9   : > { %6683 = vst [vmem:[#allocation72_spill] sm:$0xff] %v5426_v54  ;;  %v5442_v54 = vpop.permute.xlu0 %2380 }
 0x3fa   : > { %6688 = vst [vmem:[#allocation77_spill] sm:$0xff] %v5442_v54 }
 0x3fd   : > { %2813 = vperm.xlu2 %4082, %v2607_v3   ;;  %v2616_v3 = vld [vmem:[%s6553_s3 + $0x160] sm:$0xff] }
 0x400   : > { %v5435_v39 = vpop.permute.xlu2 %2723 }
 0x401   : > { %6686 = vst [vmem:[#allocation75_spill] sm:$0xff] %v5435_v39  ;;  %v5451_v26 = vpop.permute.xlu0 %2395 }
 0x402   : > { %6691 = vst [vmem:[#allocation80_spill] sm:$0xff] %v5451_v26  ;;  %v2631_v26 = vld [vmem:[%s6553_s3 + $0x1d8] sm:$0xff] }
 0x405   : > { %2828 = vperm.xlu2 %4082, %v2610_v41   ;;  %v5428_v41 = vpop.permute.xlu1 %2360 }
 0x406   : > { %6684 = vst [vmem:[#allocation73_spill] sm:$0xff] %v5428_v41 }
 0x408   : > { %v5444_v28 = vpop.permute.xlu2 %2738 }
 0x409   : > { %6689 = vst [vmem:[#allocation78_spill] sm:$0xff] %v5444_v28  ;;  %v5461_v46 = vpop.permute.xlu0 %2410 }
 0x40a   : > { %6693 = vst [vmem:[#allocation82_spill] sm:$0xff] %v5461_v46  ;;  %v6740_v46 = vld [vmem:[#allocation28_spill] sm:$0xff] }
 0x40d   : > { %2843 = vperm.xlu2 %4082, %v2613_v53   ;;  %v5437_v53 = vpop.permute.xlu1 %2375 }
 0x40e   : > { %6687 = vst [vmem:[#allocation76_spill] sm:$0xff] %v5437_v53 }
 0x415   : > { %2858 = vperm.xlu2 %4082, %v2616_v3   ;;  %v4094_v3 = vpop.eup %4093  ;;  %v5446_v33 = vpop.permute.xlu1 %2390 }
 0x416   : > { %6690 = vst [vmem:[#allocation79_spill] sm:$0xff] %v5446_v33  ;;  %v1762_v39 = vmul.f32 8192.0, %v4094_v3  ;;  %vm1766_vm1 = vweird.f32 %v4094_v3 }
 0x418   : > { %v1763_v38 = vsub.f32 1.0, %v1762_v39 }
 0x41a   : > { %v1764_v54 = vmul.f32 %v4094_v3, %v1763_v38 }
 0x41c   : > { %v1765_v29 = vadd.f32 %v4094_v3, %v1764_v54 }
 0x41d   : > { %2873 = vperm.xlu2 %4082, %v2619_v35   ;;  %v2625_v35 = vld [vmem:[%s6553_s3 + $0x1a8] sm:$0xff] }
 0x41e   : > { %v1767_v60 = vsel %vm1766_vm1, %v4094_v3, %v1765_v29 }
 0x425   : > { %2888 = vperm.xlu2 %4082, %v2622_v59   ;;  %v5456_v59 = vpop.permute.xlu1 %2405 }
 0x426   : > { %6692 = vst [vmem:[#allocation81_spill] sm:$0xff] %v5456_v59 }
 0x42d   : > { %2903 = vperm.xlu2 %4082, %v2625_v35   ;;  %v5463_v59 = vpop.permute.xlu1 %2420 }
 0x42e   : > { %6694 = vst [vmem:[#allocation83_spill] sm:$0xff] %v5463_v59 }
 0x430   : > { %v1753_v53 = vpop.xlane.xlu2 %1752 }
 0x431   : > { %v1754_v41 = vrot.slane %v1753_v53, 4 }
 0x433   : > { %v1755_v28 = vadd.f32 %v1754_v41, %v1753_v53  ;;  %v5468_v53 = vpop.permute.xlu0 %2425 }
 0x434   : > { %6695 = vst [vmem:[#allocation84_spill] sm:$0xff] %v5468_v53 }
 0x435   : > { %v1756_v33 = vrot.slane %v1755_v28, 2  ;;  %2918 = vperm.xlu2 %4082, %v2628_v8  }
 0x437   : > { %v1757_v24 = vadd.f32 %v1756_v33, %v1755_v28  ;;  %v2634_v33 = vld [vmem:[%s6553_s3 + $0x1f0] sm:$0xff] }
 0x438   : > { %v1962_v48 = vpop.xlane.xlu2 %1961 }
 0x439   : > { %v1963_v35 = vrot.slane %v1962_v48, 4  ;;  %v1758_v39 = vrot.slane %v1757_v24, 1 }
 0x43b   : > { %v1964_v52 = vadd.f32 %v1963_v35, %v1962_v48  ;;  %v1759_v42 = vadd.f32 %v1758_v39, %v1757_v24  ;;  %v5470_v48 = vpop.permute.xlu1 %2435  ;;  %v5472_v24 = vpop.permute.xlu0 %2440 }
 0x43c   : > { %6696 = vst [vmem:[#allocation85_spill] sm:$0xff] %v5470_v48 }
 0x43d   : > { %v1965_v38 = vrot.slane %v1964_v52, 2  ;;  %2933 = vperm.xlu2 %4082, %v2631_v26   ;;  %4044 = vpush %v1759_v42 }
 0x43e   : > { %4046 = vpush %v1767_v60 }
 0x43f   : > { %v1966_v28 = vadd.f32 %v1965_v38, %v1964_v52  ;;  %6697 = vst [vmem:[#allocation86_spill] sm:$0xff] %v5472_v24 }
 0x441   : > { %v1967_v54 = vrot.slane %v1966_v28, 1 }
 0x443   : > { %v1968_v41 = vadd.f32 %v1967_v54, %v1966_v28  ;;  %v5474_v29 = vpop.permute.xlu1 %2450  ;;  %v5476_v26 = vpop.permute.xlu0 %2455 }
 0x444   : > { %6698 = vst [vmem:[#allocation87_spill] sm:$0xff] %v5474_v29 }
 0x445   : > { %2948 = vperm.xlu2 %4082, %v2634_v33   ;;  %4048 = vpush %v1968_v41 }
 0x446   : > { %6699 = vst [vmem:[#allocation88_spill] sm:$0xff] %v5476_v26 }
 0x44b   : > { %v5478_v60 = vpop.permute.xlu1 %2465  ;;  %v5480_v42 = vpop.permute.xlu0 %2470 }
 0x44c   : > { %6700 = vst [vmem:[#allocation89_spill] sm:$0xff] %v5478_v60 }
 0x44d   : > { %6701 = vst [vmem:[#allocation90_spill] sm:$0xff] %v5480_v42 }
 0x453   : > { %v5482_v52 = vpop.permute.xlu1 %2480  ;;  %v5484_v3 = vpop.permute.xlu0 %2485 }
 0x454   : > { %6702 = vst [vmem:[#allocation91_spill] sm:$0xff] %v5482_v52 }
 0x455   : > { %6703 = vst [vmem:[#allocation92_spill] sm:$0xff] %v5484_v3 }
 0x45b   : > { %v5486_v8 = vpop.permute.xlu1 %2495  ;;  %v5492_v35 = vpop.permute.xlu0 %2500 }
 0x45c   : > { %6704 = vst [vmem:[#allocation93_spill] sm:$0xff] %v5486_v8 }
 0x45d   : > { %6705 = vst [vmem:[#allocation94_spill] sm:$0xff] %v5492_v35 }
 0x463   : > { %v5494_v39 = vpop.permute.xlu1 %2638  ;;  %v5496_v28 = vpop.permute.xlu0 %2643 }
 0x464   : > { %6706 = vst [vmem:[#allocation95_spill] sm:$0xff] %v5494_v39 }
 0x465   : > { %6707 = vst [vmem:[#allocation96_spill] sm:$0xff] %v5496_v28 }
 0x46b   : > { %v5498_v54 = vpop.permute.xlu1 %2653  ;;  %v5500_v52 = vpop.permute.xlu0 %2658 }
 0x46c   : > { %6708 = vst [vmem:[#allocation97_spill] sm:$0xff] %v5498_v54 }
 0x46d   : > { %6709 = vst [vmem:[#allocation98_spill] sm:$0xff] %v5500_v52 }
 0x46e   : > { %s4045_s25 = spop %4044 }
 0x46f   : > { %s4047_s26 = spop %4046 }
 0x470   : > { %s5488_s27 = smul.f32 %s4047_s26, %s4045_s25 }
 0x472   : > { %s1979_s28 = smul.f32 %s5488_s27, %s5488_s27 }
 0x473   : > { %v5502_v35 = vpop.permute.xlu1 %2668  ;;  %v5504_v29 = vpop.permute.xlu0 %2673 }
 0x474   : > { %6710 = vst [vmem:[#allocation99_spill] sm:$0xff] %v5502_v35 }
 0x475   : > { %6711 = vst [vmem:[#allocation100_spill] sm:$0xff] %v5504_v29 }
 0x476   : > { %s4049_s29 = spop %4048 }
 0x477   : > { %s1978_s30 = smul.f32 %s4049_s29, %s4047_s26 }
 0x479   : > { %s1980_s5 = ssub.f32 %s1978_s30, %s1979_s28 }
 0x47b   : > { %s1981_s6 = sadd.f32 1e-05, %s1980_s5  ;;  %v5506_v24 = vpop.permute.xlu1 %2683  ;;  %v5508_v54 = vpop.permute.xlu0 %2688 }
 0x47c   : > { %6712 = vst [vmem:[#allocation101_spill] sm:$0xff] %v5506_v24 }
 0x47d   : > { %v1982_v38 = vstv %s1981_s6  ;;  %6713 = vst [vmem:[#allocation102_spill] sm:$0xff] %v5508_v54 }
 0x47e   : > { %4095 = vrsqrt.f32 %v1982_v38  ;;  %vm1989_vm3 = vweird.f32 %v1982_v38 }
 0x484   : > { %v4096_v33 = vpop.eup %4095 }
 0x485   : > { %v1984_v41 = vmul.f32 %v4096_v33, %v1982_v38  ;;  %vm1990_vm2 = vweird.f32 %v4096_v33 }
 0x486   : > { %vm1991_vm4 = vmor %vm1989_vm3, %vm1990_vm2 }
 0x487   : > { %v1985_v8 = vmul.f32 %v4096_v33, %v1984_v41  ;;  %v5510_v41 = vpop.permute.xlu1 %2698 }
 0x488   : > { %6714 = vst [vmem:[#allocation103_spill] sm:$0xff] %v5510_v41  ;;  %v5527_v41 = vstv %s5488_s27 }
 0x489   : > { %v1986_v3 = vmul.f32 0.5, %v1985_v8  ;;  %v5512_v8 = vpop.permute.xlu0 %2703  ;;  %v2014_v48 = vsub.f32 %v4901_v12, %v5527_v41 }
 0x48a   : > { %6715 = vst [vmem:[#allocation104_spill] sm:$0xff] %v5512_v8 }
 0x48b   : > { %v1987_v42 = vsub.f32 1.5, %v1986_v3 }
 0x48d   : > { %v1988_v60 = vmul.f32 %v4096_v33, %v1987_v42 }
 0x48f   : > { %v1992_v26 = vsel %vm1991_vm4, %v4096_v33, %v1988_v60  ;;  %v5514_v3 = vpop.permute.xlu1 %2713  ;;  %v2754_v33 = vpop.permute.xlu2 %2753 }
 0x490   : > { %4050 = vpush %v1992_v26 }
 0x491   : > { %6716 = vst [vmem:[#allocation105_spill] sm:$0xff] %v5514_v3  ;;  %v5516_v52 = vpop.permute.xlu0 %2718 }
 0x492   : > { %6717 = vst [vmem:[#allocation106_spill] sm:$0xff] %v5516_v52 }
 0x497   : > { %v5518_v42 = vpop.permute.xlu1 %2728  ;;  %v5522_v24 = vpop.permute.xlu2 %2768 }
 0x498   : > { %6718 = vst [vmem:[#allocation107_spill] sm:$0xff] %v5518_v42 }
 0x499   : > { %v2734_v38 = vpop.permute.xlu0 %2733  ;;  %6720 = vst [vmem:[#allocation109_spill] sm:$0xff] %v5522_v24  ;;  %v2018_v24 = vsub.f32 %v4962_v7, %v5527_v41 }
 0x49f   : > { %v2744_v60 = vpop.permute.xlu1 %2743  ;;  %v5531_v3 = vpop.permute.xlu2 %2783 }
 0x4a0   : > { %6723 = vst [vmem:[#allocation112_spill] sm:$0xff] %v5531_v3 }
 0x4a1   : > { %v2749_v26 = vpop.permute.xlu0 %2748 }
 0x4a7   : > { %v2759_v29 = vpop.permute.xlu1 %2758 }
 0x4a9   : > { %v5520_v35 = vpop.permute.xlu0 %2763 }
 0x4aa   : > { %6719 = vst [vmem:[#allocation108_spill] sm:$0xff] %v5520_v35  ;;  %v2016_v35 = vsub.f32 %v4951_v31, %v5527_v41 }
 0x4af   : > { %v5524_v54 = vpop.permute.xlu1 %2773 }
 0x4b0   : > { %6721 = vst [vmem:[#allocation110_spill] sm:$0xff] %v5524_v54  ;;  %v2017_v54 = vsub.f32 %v4953_v51, %v5527_v41  ;;  %v6733_v51 = vld [vmem:[#allocation24_spill] sm:$0xff] }
 0x4b1   : > { %v5529_v8 = vpop.permute.xlu0 %2778 }
 0x4b2   : > { %6722 = vst [vmem:[#allocation111_spill] sm:$0xff] %v5529_v8  ;;  %v2019_v8 = vsub.f32 %v4976_v4, %v5527_v41 }
 0x4b7   : > { %v5535_v42 = vpop.permute.xlu1 %2788 }
 0x4b8   : > { %6724 = vst [vmem:[#allocation113_spill] sm:$0xff] %v5535_v42 }
 0x4c1   : > { %s4051_s7 = spop %4050 }
 0x4c2   : > { %v5533_v52 = vstv %s4051_s7 }
 0x4c3   : > { %v2079_v3 = vmul.f32 %v5533_v52, %v2014_v48  ;;  %v2081_v28 = vmul.f32 %v5533_v52, %v2016_v35  ;;  %v2082_v42 = vmul.f32 %v5533_v52, %v2017_v54  ;;  %v2083_v12 = vmul.f32 %v5533_v52, %v2018_v24  ;;  %v5558_v48 = vpop.permute.xlu0 %2793  ;;  %v5577_v24 = vpop.permute.xlu1 %2803  ;;  %v6747_v35 = vld [vmem:[#allocation34_spill] sm:$0xff] }
 0x4c4   : > { %v2084_v53 = vmul.f32 %v5533_v52, %v2019_v8  ;;  %6725 = vst [vmem:[#allocation114_spill] sm:$0xff] %v5558_v48  ;;  %v5567_v8 = vpop.permute.xlu2 %2798 }
 0x4c5   : > { %v2527_v31 = vmul.f32 %v4796_v1, %v2079_v3  ;;  %v2529_v7 = vmul.f32 %v5382_v10, %v2081_v28  ;;  %v2530_v59 = vmul.f32 %v4896_v22, %v2082_v42  ;;  %v2531_v4 = vmul.f32 %v5389_v61, %v2083_v12  ;;  %6726 = vst [vmem:[#allocation115_spill] sm:$0xff] %v5567_v8  ;;  %v6727_v10 = vld [vmem:[#allocation19_spill] sm:$0xff]  ;;  %v6728_v28 = vld [vmem:[#allocation20_spill] sm:$0xff]  ;;  %v6729_v42 = vld [vmem:[#allocation21_spill] sm:$0xff] }
 0x4c6   : > { %v2532_v54 = vmul.f32 %v4946_v47, %v2084_v53  ;;  %6730 = vst [vmem:[#allocation19_spill] sm:$0xff] %v5577_v24  ;;  %v6731_v1 = vld [vmem:[#allocation22_spill] sm:$0xff]  ;;  %v6732_v47 = vld [vmem:[#allocation23_spill] sm:$0xff]  ;;  %v6735_v61 = vld [vmem:[#allocation25_spill] sm:$0xff]  ;;  %v2045_v53 = vsub.f32 %v5228_v23, %v5527_v41  ;;  %v2052_v23 = vsub.f32 %v5295_v37, %v5527_v41  ;;  %v6761_v37 = vsub.f32 %v4741_v27, %v5527_v41 }
 0x4c7   : > { %v5585_v8 = vadd.f32 %v2734_v38, %v2527_v31  ;;  %v5589_v3 = vadd.f32 %v2744_v60, %v2529_v7  ;;  %v5591_v39 = vadd.f32 %v2749_v26, %v2530_v59  ;;  %v5593_v12 = vadd.f32 %v2754_v33, %v2531_v4  ;;  %v6739_v24 = vld [vmem:[#allocation27_spill] sm:$0xff]  ;;  %v6743_v31 = vld [vmem:[#allocation33_spill] sm:$0xff]  ;;  %v6744_v60 = vld [vmem:[#allocation30_spill] sm:$0xff] }
 0x4c8   : > { %v5601_v38 = vadd.f32 %v2759_v29, %v2532_v54  ;;  %v2010_v48 = vsub.f32 %v6743_v31, %v5527_v41  ;;  %v6745_v26 = vld [vmem:[#allocation31_spill] sm:$0xff]  ;;  %v6746_v7 = vld [vmem:[#allocation32_spill] sm:$0xff]  ;;  %v6749_v4 = vld [vmem:[#allocation37_spill] sm:$0xff]  ;;  %v2043_v33 = vsub.f32 %v5194_v32, %v5527_v41  ;;  %v2044_v59 = vsub.f32 %v5196_v18, %v5527_v41 }
 0x4c9   : > { %6734 = vst [vmem:[#allocation20_spill] sm:$0xff] %v5585_v8  ;;  %v6751_v29 = vld [vmem:[#allocation39_spill] sm:$0xff]  ;;  %v6752_v54 = vld [vmem:[#allocation42_spill] sm:$0xff]  ;;  %v6757_v31 = vld [vmem:[#allocation49_spill] sm:$0xff]  ;;  %v2048_v8 = vsub.f32 %v5259_v56, %v5527_v41  ;;  %v2050_v32 = vsub.f32 %v5282_v45, %v5527_v41  ;;  %v2051_v18 = vsub.f32 %v5284_v62, %v5527_v41  ;;  %v2055_v56 = vsub.f32 %v5324_v25, %v5527_v41 }
 0x4ca   : > { %6736 = vst [vmem:[#allocation21_spill] sm:$0xff] %v5589_v3  ;;  %v2047_v3 = vsub.f32 %v5257_v16, %v5527_v41  ;;  %v2054_v16 = vsub.f32 %v5316_v6, %v5527_v41  ;;  %v6762_v6 = vsub.f32 %v4736_v19, %v5527_v41  ;;  %v6764_v62 = vsub.f32 %v4756_v2, %v5527_v41 }
 0x4cb   : > { %6737 = vst [vmem:[#allocation22_spill] sm:$0xff] %v5591_v39  ;;  %v5643_v5 = vpop.permute.xlu0 %2808  ;;  %v6756_v39 = vld [vmem:[#allocation47_spill] sm:$0xff] }
 0x4cc   : > { %6738 = vst [vmem:[#allocation23_spill] sm:$0xff] %v5593_v12  ;;  %v6748_v12 = vld [vmem:[#allocation35_spill] sm:$0xff]  ;;  %v5653_v36 = vpop.permute.xlu2 %2813  ;;  %v5707_v25 = vmul.f32 %v5533_v52, %v6762_v6  ;;  %v5719_v27 = vmul.f32 %v5533_v52, %v6764_v62  ;;  %v6766_v6 = vsub.f32 %v6727_v10, %v5527_v41  ;;  %v6768_v62 = vsub.f32 %v6729_v42, %v5527_v41 }
 0x4cd   : > { %6742 = vst [vmem:[#allocation24_spill] sm:$0xff] %v5601_v38  ;;  %v6754_v38 = vld [vmem:[#allocation46_spill] sm:$0xff] }
 0x4ce   : > { %6755 = vst [vmem:[#allocation25_spill] sm:$0xff] %v5643_v5  ;;  %v5663_v5 = vpop.permute.xlu1 %2818 }
 0x4cf   : > { %6758 = vst [vmem:[#allocation27_spill] sm:$0xff] %v5653_v36  ;;  %v6760_v36 = vld [vmem:[#allocation51_spill] sm:$0xff] }
 0x4d0   : > { %6759 = vst [vmem:[#allocation28_spill] sm:$0xff] %v5663_v5  ;;  %v2046_v22 = vsub.f32 %v6760_v36, %v5527_v41  ;;  %v2049_v5 = vsub.f32 %v5275_v17, %v5527_v41  ;;  %v2053_v36 = vsub.f32 %v5305_v49, %v5527_v41  ;;  %v5701_v49 = vmul.f32 %v5533_v52, %v6761_v37 }
 0x4d1   : > { %v6763_v17 = vsub.f32 %v4748_v34, %v5527_v41  ;;  %v6765_v37 = vsub.f32 %v4766_v43, %v5527_v41  ;;  %v5731_v34 = vmul.f32 %v5533_v52, %v6766_v6  ;;  %v5743_v43 = vmul.f32 %v5533_v52, %v6768_v62 }
 0x4d2   : > { %v6770_v6 = vsub.f32 %v6732_v47, %v5527_v41  ;;  %v6772_v62 = vsub.f32 %v6735_v61, %v5527_v41 }
 0x4d3   : > { %v5713_v45 = vmul.f32 %v5533_v52, %v6763_v17  ;;  %v5725_v19 = vmul.f32 %v5533_v52, %v6765_v37  ;;  %v6767_v17 = vsub.f32 %v6728_v28, %v5527_v41  ;;  %v6769_v37 = vsub.f32 %v6731_v1, %v5527_v41 }
 0x4d4   : > { %v5755_v28 = vmul.f32 %v5533_v52, %v6770_v6  ;;  %v5767_v1 = vmul.f32 %v5533_v52, %v6772_v62  ;;  %v6775_v6 = vsub.f32 %v6740_v46, %v5527_v41  ;;  %v5788_v62 = vmul.f32 %v5533_v52, %v2010_v48 }
 0x4d5   : > { %v5737_v2 = vmul.f32 %v5533_v52, %v6767_v17  ;;  %v5749_v10 = vmul.f32 %v5533_v52, %v6769_v37  ;;  %v6771_v17 = vsub.f32 %v6733_v51, %v5527_v41  ;;  %v6774_v37 = vsub.f32 %v6739_v24, %v5527_v41 }
 0x4d6   : > { %6773 = vst [vmem:[#allocation29_spill] sm:$0xff] %v5767_v1  ;;  %v5779_v51 = vmul.f32 %v5533_v52, %v6775_v6  ;;  %v5790_v1 = vpop.permute.xlu0 %2823  ;;  %v6778_v24 = vsub.f32 %v6744_v60, %v5527_v41  ;;  %v6779_v46 = vsub.f32 %v6745_v26, %v5527_v41  ;;  %v6783_v26 = vsub.f32 %v6748_v12, %v5527_v41 }
 0x4d7   : > { %v5761_v42 = vmul.f32 %v5533_v52, %v6771_v17  ;;  %v5773_v47 = vmul.f32 %v5533_v52, %v6774_v37  ;;  %v6776_v17 = vsub.f32 %v6741_v44, %v5527_v41  ;;  %6777 = vst [vmem:[#allocation33_spill] sm:$0xff] %v5790_v1  ;;  %v6780_v44 = vsub.f32 %v6746_v7, %v5527_v41 }
 0x4d8   : > { %v5796_v37 = vmul.f32 %v5533_v52, %v6778_v24  ;;  %v5802_v6 = vmul.f32 %v5533_v52, %v6779_v46  ;;  %v5816_v24 = vpop.permute.xlu2 %2828  ;;  %v5822_v46 = vmul.f32 %v5533_v52, %v6783_v26  ;;  %v6785_v7 = vsub.f32 %v5002_v14, %v5527_v41  ;;  %v5842_v26 = vpop.permute.xlu1 %2833 }
 0x4d9   : > { %v5785_v61 = vmul.f32 %v5533_v52, %v6776_v17  ;;  %v5808_v48 = vmul.f32 %v5533_v52, %v6780_v44  ;;  %v6781_v17 = vsub.f32 %v6747_v35, %v5527_v41  ;;  %6782 = vst [vmem:[#allocation30_spill] sm:$0xff] %v5816_v24  ;;  %v6787_v35 = vsub.f32 %v5011_v55, %v5527_v41 }
 0x4da   : > { %6784 = vst [vmem:[#allocation31_spill] sm:$0xff] %v5822_v46  ;;  %v5828_v44 = vmul.f32 %v5533_v52, %v6785_v7  ;;  %v6789_v24 = vsub.f32 %v5020_v9, %v5527_v41  ;;  %v6792_v14 = vsub.f32 %v5029_v30, %v5527_v41  ;;  %v6793_v1 = vsub.f32 %v6749_v4, %v5527_v41  ;;  %v6803_v46 = vld [vmem:[#allocation45_spill] sm:$0xff] }
 0x4db   : > { %v5814_v60 = vmul.f32 %v5533_v52, %v6781_v17  ;;  %v5834_v17 = vmul.f32 %v5533_v52, %v6787_v35  ;;  %6791 = vst [vmem:[#allocation37_spill] sm:$0xff] %v5842_v26  ;;  %v6794_v35 = vld [vmem:[#allocation41_spill] sm:$0xff]  ;;  %v6798_v30 = vsub.f32 %v6751_v29, %v5527_v41  ;;  %v6799_v4 = vsub.f32 %v6752_v54, %v5527_v41 }
 0x4dc   : > { %6786 = vst [vmem:[#allocation32_spill] sm:$0xff] %v5828_v44  ;;  %v5840_v12 = vmul.f32 %v5533_v52, %v6789_v24  ;;  %v2089_v7 = vmul.f32 %v5533_v52, %v6792_v14  ;;  %v2090_v55 = vmul.f32 %v5533_v52, %v6793_v1  ;;  %v6796_v44 = vld [vmem:[#allocation38_spill] sm:$0xff]  ;;  %v6804_v29 = vsub.f32 %v6803_v46, %v5527_v41 }
 0x4dd   : > { %6788 = vst [vmem:[#allocation34_spill] sm:$0xff] %v5834_v17  ;;  %v6795_v17 = vsub.f32 %v6794_v35, %v5527_v41  ;;  %v6797_v24 = vsub.f32 %v6796_v44, %v5527_v41  ;;  %v2093_v14 = vmul.f32 %v5533_v52, %v6798_v30  ;;  %v2094_v1 = vmul.f32 %v5533_v52, %v6799_v4 }
 0x4de   : > { %6790 = vst [vmem:[#allocation35_spill] sm:$0xff] %v5840_v12  ;;  %v6800_v12 = vld [vmem:[#allocation43_spill] sm:$0xff]  ;;  %v6802_v44 = vsub.f32 %v5091_v63, %v5527_v41  ;;  %v2097_v30 = vmul.f32 %v5533_v52, %v6804_v29  ;;  %v6805_v54 = vsub.f32 %v5120_v40, %v5527_v41  ;;  %v6807_v63 = vsub.f32 %v5140_v11, %v5527_v41 }
 0x4df   : > { %v2091_v9 = vmul.f32 %v5533_v52, %v6795_v17  ;;  %v2092_v26 = vmul.f32 %v5533_v52, %v6797_v24  ;;  %v6801_v35 = vsub.f32 %v6800_v12, %v5527_v41  ;;  %v6806_v12 = vsub.f32 %v6754_v38, %v5527_v41 }
 0x4e0   : > { %v2096_v24 = vmul.f32 %v5533_v52, %v6802_v44  ;;  %v2098_v4 = vmul.f32 %v5533_v52, %v6805_v54  ;;  %v2100_v44 = vmul.f32 %v5533_v52, %v6807_v63  ;;  %v6808_v46 = vsub.f32 %v6756_v39, %v5527_v41 }
 0x4e1   : > { %v2095_v17 = vmul.f32 %v5533_v52, %v6801_v35  ;;  %v2099_v35 = vmul.f32 %v5533_v52, %v6806_v12  ;;  %v6809_v40 = vsub.f32 %v6757_v31, %v5527_v41  ;;  %v6810_v38 = vsub.f32 %v5173_v20, %v5527_v41 }
 0x4e2   : > { %v2101_v29 = vmul.f32 %v5533_v52, %v6808_v46  ;;  %v6811_v11 = vsub.f32 %v5181_v57, %v5527_v41  ;;  %v6812_v39 = vsub.f32 %v5189_v50, %v5527_v41  ;;  %v6813_v46 = vsub.f32 %v5207_v0, %v5527_v41 }
 0x4e3   : > { %v5900_v54 = vmul.f32 %v5533_v52, %v6809_v40  ;;  %v5906_v12 = vmul.f32 %v5533_v52, %v6810_v38  ;;  %v6814_v40 = vsub.f32 %v5215_v15, %v5527_v41  ;;  %v5933_v38 = vmul.f32 %v5533_v52, %v2043_v33 }
 0x4e4   : > { %v5912_v63 = vmul.f32 %v5533_v52, %v6811_v11  ;;  %v5918_v31 = vmul.f32 %v5533_v52, %v6812_v39  ;;  %v5924_v20 = vmul.f32 %v5533_v52, %v6813_v46  ;;  %v5936_v50 = vmul.f32 %v5533_v52, %v2044_v59 }
 0x4e5   : > { %v5930_v57 = vmul.f32 %v5533_v52, %v6814_v40  ;;  %v5939_v11 = vmul.f32 %v5533_v52, %v2045_v53  ;;  %v5942_v0 = vmul.f32 %v5533_v52, %v2046_v22  ;;  %v5945_v39 = vmul.f32 %v5533_v52, %v2047_v3  ;;  %v6824_v40 = vld [vmem:[#allocation2_spill] sm:$0xff] }
 0x4e6   : > { %v5948_v15 = vmul.f32 %v5533_v52, %v2048_v8  ;;  %v5951_v46 = vmul.f32 %v5533_v52, %v2049_v5  ;;  %v5954_v33 = vmul.f32 %v5533_v52, %v2050_v32  ;;  %v5957_v59 = vmul.f32 %v5533_v52, %v2051_v18  ;;  %v5971_v5 = vpop.permute.xlu0 %2838 }
 0x4e7   : > { %v5960_v53 = vmul.f32 %v5533_v52, %v2052_v23  ;;  %v5963_v22 = vmul.f32 %v5533_v52, %v2053_v36  ;;  %v5966_v3 = vmul.f32 %v5533_v52, %v2054_v16  ;;  %v5969_v8 = vmul.f32 %v5533_v52, %v2055_v56  ;;  %6817 = vst [vmem:[#allocation46_spill] sm:$0xff] %v5971_v5 }
 0x4e8   : > { %v6818_v32 = vsub.f32 %v5339_v21, %v5527_v41  ;;  %v6820_v23 = vsub.f32 %v5344_v13, %v5527_v41  ;;  %v6822_v16 = vsub.f32 %v5348_v58, %v5527_v41  ;;  %v2508_v5 = vmul.f32 %v6824_v40, %v5701_v49  ;;  %v6826_v21 = vld [vmem:[#allocation3_spill] sm:$0xff]  ;;  %v6003_v41 = vpop.permute.xlu1 %2848  ;;  %v6832_v49 = vld [vmem:[#allocation8_spill] sm:$0xff] }
 0x4e9   : > { %6815 = vst [vmem:[#allocation39_spill] sm:$0xff] %v5966_v3  ;;  %v6829_v3 = vld [vmem:[#allocation6_spill] sm:$0xff]  ;;  %v2514_v40 = vmul.f32 %v6832_v49, %v5737_v2  ;;  %v6839_v2 = vld [vmem:[#allocation12_spill] sm:$0xff] }
 0x4ea   : > { %6816 = vst [vmem:[#allocation42_spill] sm:$0xff] %v5969_v8  ;;  %v5977_v18 = vmul.f32 %v5533_v52, %v6818_v32  ;;  %v5983_v36 = vmul.f32 %v5533_v52, %v6820_v23  ;;  %v5989_v56 = vmul.f32 %v5533_v52, %v6822_v16  ;;  %v5993_v8 = vpop.permute.xlu2 %2843  ;;  %v2509_v32 = vmul.f32 %v6826_v21, %v5707_v25  ;;  %v6828_v23 = vld [vmem:[#allocation5_spill] sm:$0xff]  ;;  %v6831_v52 = vld [vmem:[#allocation7_spill] sm:$0xff]  ;;  %v6841_v49 = vld [vmem:[#allocation14_spill] sm:$0xff] }
 0x4eb   : > { %6825 = vst [vmem:[#allocation41_spill] sm:$0xff] %v5993_v8  ;;  %v2512_v58 = vmul.f32 %v6829_v3, %v5725_v19  ;;  %v2513_v16 = vmul.f32 %v6831_v52, %v5731_v34  ;;  %v6833_v8 = vld [vmem:[#allocation62_spill] sm:$0xff]  ;;  %v6837_v34 = vld [vmem:[#allocation29_spill] sm:$0xff] }
 0x4ec   : > { %6819 = vst [vmem:[#allocation47_spill] sm:$0xff] %v5977_v18  ;;  %v6827_v18 = vld [vmem:[#allocation4_spill] sm:$0xff]  ;;  %v6011_v25 = vmul.f32 %v6833_v8, %v5743_v43  ;;  %v6836_v19 = vld [vmem:[#allocation10_spill] sm:$0xff]  ;;  %v6031_v43 = vmul.f32 %v6839_v2, %v5773_v47  ;;  %v6840_v8 = vld [vmem:[#allocation13_spill] sm:$0xff] }
 0x4ed   : > { %6821 = vst [vmem:[#allocation49_spill] sm:$0xff] %v5983_v36  ;;  %v2510_v13 = vmul.f32 %v6827_v18, %v5713_v45  ;;  %v2511_v36 = vmul.f32 %v6828_v23, %v5719_v27  ;;  %v6834_v45 = vld [vmem:[#allocation59_spill] sm:$0xff]  ;;  %v6835_v27 = vld [vmem:[#allocation9_spill] sm:$0xff]  ;;  %v6023_v3 = vmul.f32 %v6836_v19, %v5761_v42  ;;  %v6848_v2 = vld [vmem:[#allocation26_spill] sm:$0xff] }
 0x4ee   : > { %6823 = vst [vmem:[#allocation51_spill] sm:$0xff] %v5989_v56  ;;  %v6015_v18 = vmul.f32 %v6834_v45, %v5749_v10  ;;  %v6019_v21 = vmul.f32 %v6835_v27, %v5755_v28  ;;  %v6838_v23 = vld [vmem:[#allocation11_spill] sm:$0xff]  ;;  %v6035_v10 = vmul.f32 %v6840_v8, %v5779_v51  ;;  %v6039_v28 = vmul.f32 %v6841_v49, %v5785_v61  ;;  %v6843_v27 = vld [vmem:[#allocation16_spill] sm:$0xff] }
 0x4ef   : > { %6830 = vst [vmem:[#allocation38_spill] sm:$0xff] %v6003_v41  ;;  %v6027_v52 = vmul.f32 %v6838_v23, %v6837_v34  ;;  %v6842_v45 = vld [vmem:[#allocation15_spill] sm:$0xff]  ;;  %v6047_v19 = vmul.f32 %v6843_v27, %v5796_v37  ;;  %v6844_v34 = vld [vmem:[#allocation17_spill] sm:$0xff]  ;;  %v6846_v23 = vld [vmem:[#allocation18_spill] sm:$0xff]  ;;  %v6059_v61 = vmul.f32 %v6848_v2, %v5814_v60 }
 0x4f0   : > { %v6043_v42 = vmul.f32 %v6842_v45, %v5788_v62  ;;  %v6051_v47 = vmul.f32 %v6844_v34, %v5802_v6  ;;  %v6055_v51 = vmul.f32 %v6846_v23, %v5808_v48  ;;  %v6849_v8 = vld [vmem:[#allocation31_spill] sm:$0xff]  ;;  %v6850_v49 = vld [vmem:[#allocation64_spill] sm:$0xff]  ;;  %v6853_v41 = vld [vmem:[#allocation65_spill] sm:$0xff] }
 0x4f1   : > { %v6063_v62 = vmul.f32 %v6850_v49, %v6849_v8  ;;  %v6852_v45 = vld [vmem:[#allocation32_spill] sm:$0xff]  ;;  %v6855_v27 = vld [vmem:[#allocation34_spill] sm:$0xff]  ;;  %v6857_v34 = vld [vmem:[#allocation35_spill] sm:$0xff] }
 0x4f2   : > { %6845 = vst [vmem:[#allocation43_spill] sm:$0xff] %v6051_v47  ;;  %v6067_v37 = vmul.f32 %v6853_v41, %v6852_v45  ;;  %v6856_v56 = vld [vmem:[#allocation36_spill] sm:$0xff]  ;;  %v6858_v47 = vld [vmem:[#allocation67_spill] sm:$0xff]  ;;  %v6861_v8 = vld [vmem:[#allocation70_spill] sm:$0xff] }
 0x4f3   : > { %6847 = vst [vmem:[#allocation45_spill] sm:$0xff] %v6055_v51  ;;  %v6071_v6 = vmul.f32 %v6856_v56, %v6855_v27  ;;  %v6075_v48 = vmul.f32 %v6858_v47, %v6857_v34  ;;  %v6859_v23 = vld [vmem:[#allocation68_spill] sm:$0xff]  ;;  %v6084_v49 = vmul.f32 %v6861_v8, %v2091_v9  ;;  %v6864_v56 = vld [vmem:[#allocation73_spill] sm:$0xff]  ;;  %v6865_v47 = vld [vmem:[#allocation74_spill] sm:$0xff] }
 0x4f4   : > { %6851 = vst [vmem:[#allocation2_spill] sm:$0xff] %v6063_v62  ;;  %v6078_v51 = vmul.f32 %v6859_v23, %v2089_v7  ;;  %v6860_v60 = vld [vmem:[#allocation40_spill] sm:$0xff]  ;;  %v6862_v62 = vld [vmem:[#allocation71_spill] sm:$0xff]  ;;  %v6093_v27 = vmul.f32 %v6864_v56, %v2094_v1  ;;  %v6096_v34 = vmul.f32 %v6865_v47, %v2095_v17  ;;  %v6868_v9 = vld [vmem:[#allocation77_spill] sm:$0xff]  ;;  %v6116_v17 = vpop.permute.xlu0 %2853 }
 0x4f5   : > { %6854 = vst [vmem:[#allocation3_spill] sm:$0xff] %v6067_v37  ;;  %v6081_v2 = vmul.f32 %v6860_v60, %v2090_v55  ;;  %v6087_v41 = vmul.f32 %v6862_v62, %v2092_v26  ;;  %v6863_v45 = vld [vmem:[#allocation44_spill] sm:$0xff]  ;;  %v6105_v8 = vmul.f32 %v6868_v9, %v2098_v4  ;;  %v6869_v26 = vld [vmem:[#allocation50_spill] sm:$0xff]  ;;  %v6131_v9 = vpop.permute.xlu2 %2858 }
 0x4f6   : > { %v6090_v37 = vmul.f32 %v6863_v45, %v2093_v14  ;;  %v6866_v7 = vld [vmem:[#allocation48_spill] sm:$0xff]  ;;  %v6108_v62 = vmul.f32 %v6869_v26, %v2099_v35  ;;  %v6870_v14 = vld [vmem:[#allocation79_spill] sm:$0xff]  ;;  %v6874_v4 = vld [vmem:[#allocation82_spill] sm:$0xff] }
 0x4f7   : > { %v6099_v23 = vmul.f32 %v6866_v7, %v2096_v24  ;;  %v6867_v55 = vld [vmem:[#allocation76_spill] sm:$0xff]  ;;  %v6111_v45 = vmul.f32 %v6870_v14, %v2100_v44  ;;  %v6128_v35 = vmul.f32 %v6874_v4, %v5912_v63  ;;  %v6877_v14 = vld [vmem:[#allocation83_spill] sm:$0xff] }
 0x4f8   : > { %v6102_v60 = vmul.f32 %v6867_v55, %v2097_v30  ;;  %v6871_v1 = vld [vmem:[#allocation80_spill] sm:$0xff]  ;;  %v6873_v30 = vld [vmem:[#allocation81_spill] sm:$0xff]  ;;  %v6875_v55 = vld [vmem:[#allocation95_spill] sm:$0xff] }
 0x4f9   : > { %v6114_v56 = vmul.f32 %v6871_v1, %v2101_v29  ;;  %v6872_v24 = vld [vmem:[#allocation52_spill] sm:$0xff]  ;;  %v6124_v7 = vmul.f32 %v6873_v30, %v5906_v12  ;;  %v2956_v44 = vadd.f32 %v6875_v55, %v2508_v5  ;;  %v6876_v29 = vld [vmem:[#allocation53_spill] sm:$0xff]  ;;  %v6146_v30 = vpop.permute.xlu1 %2863  ;;  %v6881_v5 = vld [vmem:[#allocation54_spill] sm:$0xff] }
 0x4fa   : > { %v6120_v47 = vmul.f32 %v6872_v24, %v5900_v54  ;;  %v6135_v26 = vmul.f32 %v6876_v29, %v5918_v31  ;;  %v6139_v54 = vmul.f32 %v6877_v14, %v5924_v20  ;;  %v6879_v1 = vld [vmem:[#allocation84_spill] sm:$0xff]  ;;  %v6150_v4 = vmul.f32 %v6881_v5, %v5933_v38  ;;  %v6882_v31 = vld [vmem:[#allocation85_spill] sm:$0xff]  ;;  %v6884_v20 = vld [vmem:[#allocation86_spill] sm:$0xff] }
 0x4fb   : > { %v6143_v12 = vmul.f32 %v6879_v1, %v5930_v57  ;;  %v6880_v24 = vld [vmem:[#allocation96_spill] sm:$0xff]  ;;  %v6154_v55 = vmul.f32 %v6882_v31, %v5936_v50  ;;  %v6158_v29 = vmul.f32 %v6884_v20, %v5939_v11  ;;  %v6885_v14 = vld [vmem:[#allocation61_spill] sm:$0xff]  ;;  %v6886_v57 = vld [vmem:[#allocation55_spill] sm:$0xff]  ;;  %vm3020_vm5 = vcmp.ge.f32.partialorder %v2956_v44, 0.0 }
 0x4fc   : > { %6878 = vst [vmem:[#allocation4_spill] sm:$0xff] %v6139_v54  ;;  %v2957_v63 = vadd.f32 %v6880_v24, %v2509_v32  ;;  %v2958_v54 = vadd.f32 %v6885_v14, %v2510_v13  ;;  %v6163_v1 = vmul.f32 %v6886_v57, %v5942_v0  ;;  %v6887_v32 = vld [vmem:[#allocation87_spill] sm:$0xff]  ;;  %v6888_v38 = vld [vmem:[#allocation88_spill] sm:$0xff]  ;;  %v6889_v50 = vld [vmem:[#allocation97_spill] sm:$0xff]  ;;  %v3084_v57 = vmul.f32 0.01, %v2956_v44 }
 0x4fd   : > { %6883 = vst [vmem:[#allocation5_spill] sm:$0xff] %v6154_v55  ;;  %v6167_v24 = vmul.f32 %v6887_v32, %v5945_v39  ;;  %v6171_v5 = vmul.f32 %v6888_v38, %v5948_v15  ;;  %v2959_v31 = vadd.f32 %v6889_v50, %v2511_v36  ;;  %v6890_v55 = vld [vmem:[#allocation56_spill] sm:$0xff]  ;;  %v6892_v13 = vld [vmem:[#allocation89_spill] sm:$0xff]  ;;  %v6893_v0 = vld [vmem:[#allocation98_spill] sm:$0xff] }
 0x4fe   : > { %v6176_v11 = vmul.f32 %v6890_v55, %v5951_v46  ;;  %v6180_v20 = vmul.f32 %v6892_v13, %v5954_v33  ;;  %v2960_v14 = vadd.f32 %v6893_v0, %v2512_v58  ;;  %v6894_v39 = vld [vmem:[#allocation90_spill] sm:$0xff]  ;;  %v6896_v15 = vld [vmem:[#allocation63_spill] sm:$0xff]  ;;  %v3085_v36 = vmul.f32 0.01, %v2957_v63  ;;  %v6897_v50 = vld [vmem:[#allocation57_spill] sm:$0xff] }
 0x4ff   : > { %v6186_v32 = vmul.f32 %v6894_v39, %v5957_v59  ;;  %v2961_v38 = vadd.f32 %v6896_v15, %v2513_v16  ;;  %v6191_v46 = vmul.f32 %v6897_v50, %v5960_v53  ;;  %v6899_v55 = vld [vmem:[#allocation99_spill] sm:$0xff]  ;;  %vm3021_vm6 = vcmp.ge.f32.partialorder %v2957_v63, 0.0  ;;  %v6902_v0 = vld [vmem:[#allocation100_spill] sm:$0xff]  ;;  %v6903_v53 = vld [vmem:[#allocation66_spill] sm:$0xff] }
 0x500   : > { %6891 = vst [vmem:[#allocation6_spill] sm:$0xff] %v6176_v11  ;;  %v2962_v11 = vadd.f32 %v6899_v55, %v2514_v40  ;;  %v3086_v33 = vmul.f32 0.01, %v2958_v54  ;;  %v6900_v58 = vld [vmem:[#allocation91_spill] sm:$0xff]  ;;  %v2963_v59 = vadd.f32 %v6902_v0, %v6011_v25  ;;  %vm3022_vm7 = vcmp.ge.f32.partialorder %v2958_v54, 0.0  ;;  %v6905_v0 = vld [vmem:[#allocation102_spill] sm:$0xff] }
 0x501   : > { %6895 = vst [vmem:[#allocation7_spill] sm:$0xff] %v6186_v32  ;;  %v6196_v13 = vmul.f32 %v6900_v58, %v5963_v22  ;;  %v3087_v39 = vmul.f32 0.01, %v2959_v31  ;;  %v2964_v16 = vadd.f32 %v6903_v53, %v6015_v18  ;;  %vm3023_vm8 = vcmp.ge.f32.partialorder %v2959_v31, 0.0  ;;  %v6904_v22 = vld [vmem:[#allocation101_spill] sm:$0xff]  ;;  %v6209_v58 = vpop.permute.xlu0 %2868  ;;  %v6213_v18 = vpop.permute.xlu2 %2873 }
 0x502   : > { %6898 = vst [vmem:[#allocation8_spill] sm:$0xff] %v6191_v46  ;;  %v3088_v40 = vmul.f32 0.01, %v2960_v14  ;;  %v3148_v15 = vsel %vm3020_vm5, %v2956_v44, %v3084_v57  ;;  %v2965_v50 = vadd.f32 %v6904_v22, %v6019_v21  ;;  %vm3024_vm9 = vcmp.ge.f32.partialorder %v2960_v14, 0.0  ;;  %v6906_v53 = vld [vmem:[#allocation69_spill] sm:$0xff] }
 0x503   : > { %6901 = vst [vmem:[#allocation62_spill] sm:$0xff] %v6196_v13  ;;  %v3089_v55 = vmul.f32 0.01, %v2961_v38  ;;  %v3149_v25 = vsel %vm3021_vm6, %v2957_v63, %v3085_v36  ;;  %v2966_v13 = vadd.f32 %v6905_v0, %v6023_v3  ;;  %vm3025_vm10 = vcmp.ge.f32.partialorder %v2961_v38, 0.0  ;;  %v6220_v63 = vpop.permute.xlu1 %2878  ;;  %v6907_v3 = vld [vmem:[#allocation103_spill] sm:$0xff] }
 0x504   : > { %v3090_v46 = vmul.f32 0.01, %v2962_v11  ;;  %v3150_v32 = vsel %vm3022_vm7, %v2958_v54, %v3086_v33  ;;  %v2967_v44 = vadd.f32 %v6906_v53, %v6027_v52  ;;  %vm3026_vm11 = vcmp.ge.f32.partialorder %v2962_v11, 0.0  ;;  %3212 = vst.msk [vmem:[%s6203_s10] sm:$0xff] %vm917_vm0, %v3148_v15  ;;  %v6908_v52 = vld [vmem:[#allocation104_spill] sm:$0xff]  ;;  %v6913_v53 = vld [vmem:[#allocation75_spill] sm:$0xff] }
 0x505   : > { %v3091_v21 = vmul.f32 0.01, %v2963_v59  ;;  %v3151_v57 = vsel %vm3023_vm8, %v2959_v31, %v3087_v39  ;;  %v2968_v36 = vadd.f32 %v6907_v3, %v6031_v43  ;;  %vm3027_vm12 = vcmp.ge.f32.partialorder %v2963_v59, 0.0  ;;  %3213 = vst.msk [vmem:[%s6203_s10 + $0x8] sm:$0xff] %vm917_vm0, %v3149_v25  ;;  %v6909_v15 = vld [vmem:[#allocation72_spill] sm:$0xff]  ;;  %v6915_v3 = vld [vmem:[#allocation107_spill] sm:$0xff] }
 0x506   : > { %v3092_v54 = vmul.f32 0.01, %v2964_v16  ;;  %v3152_v33 = vsel %vm3024_vm9, %v2960_v14, %v3088_v40  ;;  %v2969_v22 = vadd.f32 %v6908_v52, %v6035_v10  ;;  %vm3028_vm13 = vcmp.ge.f32.partialorder %v2964_v16, 0.0  ;;  %3214 = vst.msk [vmem:[%s6203_s10 + $0x10] sm:$0xff] %vm917_vm0, %v3150_v32  ;;  %v6910_v40 = vld [vmem:[#allocation105_spill] sm:$0xff]  ;;  %v6911_v32 = vld [vmem:[#allocation106_spill] sm:$0xff] }
 0x507   : > { %v3093_v31 = vmul.f32 0.01, %v2965_v50  ;;  %v3153_v39 = vsel %vm3025_vm10, %v2961_v38, %v3089_v55  ;;  %v2970_v43 = vadd.f32 %v6909_v15, %v6039_v28  ;;  %vm3029_vm14 = vcmp.ge.f32.partialorder %v2965_v50, 0.0  ;;  %3215 = vst.msk [vmem:[%s6203_s10 + $0x18] sm:$0xff] %vm917_vm0, %v3151_v57  ;;  %v6917_v52 = vld [vmem:[#allocation92_spill] sm:$0xff] }
 0x508   : > { %v3094_v0 = vmul.f32 0.01, %v2966_v13  ;;  %v3154_v14 = vsel %vm3026_vm11, %v2962_v11, %v3090_v46  ;;  %v2971_v10 = vadd.f32 %v6910_v40, %v6043_v42  ;;  %vm3030_vm15 = vcmp.ge.f32.partialorder %v2966_v13, 0.0  ;;  %3216 = vst.msk [vmem:[%s6203_s10 + $0x20] sm:$0xff] %vm917_vm0, %v3152_v33  ;;  %v6912_v46 = vld [vmem:[#allocation43_spill] sm:$0xff] }
 0x509   : > { %v3095_v25 = vmul.f32 0.01, %v2967_v44  ;;  %v3155_v38 = vsel %vm3027_vm12, %v2963_v59, %v3091_v21  ;;  %v2972_v28 = vadd.f32 %v6911_v32, %v6047_v19  ;;  %vm3031_vm1 = vcmp.ge.f32.partialorder %v2967_v44, 0.0  ;;  %3217 = vst.msk [vmem:[%s6203_s10 + $0x28] sm:$0xff] %vm917_vm0, %v3153_v39  ;;  %v6914_v21 = vld [vmem:[#allocation45_spill] sm:$0xff]  ;;  %v6919_v32 = vld [vmem:[#allocation42_spill] sm:$0xff] }
 0x50a   : > { %v3096_v55 = vmul.f32 0.01, %v2968_v36  ;;  %v3156_v11 = vsel %vm3028_vm13, %v2964_v16, %v3092_v54  ;;  %v2973_v42 = vadd.f32 %v6913_v53, %v6912_v46  ;;  %vm3032_vm2 = vcmp.ge.f32.partialorder %v2968_v36, 0.0  ;;  %3218 = vst.msk [vmem:[%s6203_s10 + $0x30] sm:$0xff] %vm917_vm0, %v3154_v14  ;;  %v6916_v54 = vld [vmem:[#allocation39_spill] sm:$0xff]  ;;  %v6918_v14 = vld [vmem:[#allocation78_spill] sm:$0xff] }
 0x50b   : > { %v3097_v57 = vmul.f32 0.01, %v2969_v22  ;;  %v3157_v59 = vsel %vm3029_vm14, %v2965_v50, %v3093_v31  ;;  %v2974_v19 = vadd.f32 %v6915_v3, %v6914_v21  ;;  %vm3033_vm3 = vcmp.ge.f32.partialorder %v2969_v22, 0.0  ;;  %3219 = vst.msk [vmem:[%s6203_s10 + $0x38] sm:$0xff] %vm917_vm0, %v3155_v38  ;;  %v6264_v31 = vpop.permute.xlu0 %2883  ;;  %v6271_v38 = vpop.permute.xlu2 %2888  ;;  %v6920_v46 = vld [vmem:[#allocation58_spill] sm:$0xff]  ;;  %v6921_v53 = vld [vmem:[#allocation47_spill] sm:$0xff] }
 0x50c   : > { %v3098_v33 = vmul.f32 0.01, %v2970_v43  ;;  %v3158_v16 = vsel %vm3030_vm15, %v2966_v13, %v3094_v0  ;;  %v6259_v39 = vmul.f32 %v6917_v52, %v6916_v54  ;;  %vm3034_vm4 = vcmp.ge.f32.partialorder %v2970_v43, 0.0  ;;  %3220 = vst.msk [vmem:[%s6203_s10 + $0x40] sm:$0xff] %vm917_vm0, %v3156_v11  ;;  %v6923_v3 = vld [vmem:[#allocation49_spill] sm:$0xff]  ;;  %v6924_v54 = vld [vmem:[#allocation94_spill] sm:$0xff] }
 0x50d   : > { %v3099_v15 = vmul.f32 0.01, %v2971_v10  ;;  %v3159_v50 = vsel %vm3031_vm1, %v2967_v44, %v3095_v25  ;;  %v2976_v40 = vadd.f32 %v6918_v14, %v6059_v61  ;;  %vm3035_vm5 = vcmp.ge.f32.partialorder %v2971_v10, 0.0  ;;  %3221 = vst.msk [vmem:[%s6203_s10 + $0x48] sm:$0xff] %vm917_vm0, %v3157_v59  ;;  %v6280_v61 = vpop.permute.xlu1 %2893  ;;  %v6926_v14 = vld [vmem:[#allocation51_spill] sm:$0xff] }
 0x50e   : > { %v3100_v13 = vmul.f32 0.01, %v2972_v28  ;;  %v3160_v0 = vsel %vm3032_vm2, %v2968_v36, %v3096_v55  ;;  %v6275_v44 = vmul.f32 %v6920_v46, %v6919_v32  ;;  %vm3036_vm6 = vcmp.ge.f32.partialorder %v2972_v28, 0.0  ;;  %3222 = vst.msk [vmem:[%s6203_s10 + $0x50] sm:$0xff] %vm917_vm0, %v3158_v16  ;;  %v6922_v36 = vld [vmem:[#allocation93_spill] sm:$0xff]  ;;  %v6927_v32 = vld [vmem:[#allocation60_spill] sm:$0xff] }
 0x50f   : > { %v3101_v25 = vmul.f32 0.01, %v2973_v42  ;;  %v3161_v11 = vsel %vm3033_vm3, %v2969_v22, %v3097_v57  ;;  %v6284_v55 = vmul.f32 %v6922_v36, %v6921_v53  ;;  %vm3037_vm7 = vcmp.ge.f32.partialorder %v2973_v42, 0.0  ;;  %3223 = vst.msk [vmem:[%s6203_s10 + $0x58] sm:$0xff] %vm917_vm0, %v3159_v50  ;;  %v6925_v22 = vld [vmem:[#allocation20_spill] sm:$0xff]  ;;  %v6928_v50 = vld [vmem:[#allocation2_spill] sm:$0xff] }
 0x510   : > { %v3102_v59 = vmul.f32 0.01, %v2974_v19  ;;  %v3162_v21 = vsel %vm3034_vm4, %v2970_v43, %v3098_v33  ;;  %v6291_v52 = vmul.f32 %v6924_v54, %v6923_v3  ;;  %vm3038_vm8 = vcmp.ge.f32.partialorder %v2974_v19, 0.0  ;;  %3224 = vst.msk [vmem:[%s6203_s10 + $0x60] sm:$0xff] %vm917_vm0, %v3160_v0  ;;  %v6929_v53 = vld [vmem:[#allocation108_spill] sm:$0xff]  ;;  %v6931_v3 = vld [vmem:[#allocation3_spill] sm:$0xff] }
 0x511   : > { %v3103_v57 = vmul.f32 0.01, %v6925_v22  ;;  %v3163_v16 = vsel %vm3035_vm5, %v2971_v10, %v3099_v15  ;;  %v6299_v46 = vmul.f32 %v6927_v32, %v6926_v14  ;;  %vm3039_vm9 = vcmp.ge.f32.partialorder %v6925_v22, 0.0  ;;  %3225 = vst.msk [vmem:[%s6203_s10 + $0x68] sm:$0xff] %vm917_vm0, %v3161_v11  ;;  %v6930_v10 = vld [vmem:[#allocation21_spill] sm:$0xff]  ;;  %v6934_v32 = vld [vmem:[#allocation110_spill] sm:$0xff] }
 0x512   : > { %v3104_v43 = vmul.f32 0.01, %v2976_v40  ;;  %v3164_v33 = vsel %vm3036_vm6, %v2972_v28, %v3100_v13  ;;  %v2981_v36 = vadd.f32 %v6929_v53, %v6928_v50  ;;  %vm3040_vm10 = vcmp.ge.f32.partialorder %v2976_v40, 0.0  ;;  %3226 = vst.msk [vmem:[%s6203_s10 + $0x70] sm:$0xff] %vm917_vm0, %v3162_v21  ;;  %v6932_v54 = vld [vmem:[#allocation109_spill] sm:$0xff]  ;;  %v6933_v28 = vld [vmem:[#allocation22_spill] sm:$0xff] }
 0x513   : > { %v3105_v15 = vmul.f32 0.01, %v6930_v10  ;;  %v3165_v0 = vsel %vm3037_vm7, %v2973_v42, %v3101_v25  ;;  %v2982_v14 = vadd.f32 %v6932_v54, %v6931_v3  ;;  %vm3041_vm11 = vcmp.ge.f32.partialorder %v6930_v10, 0.0  ;;  %3227 = vst.msk [vmem:[%s6203_s10 + $0x78] sm:$0xff] %vm917_vm0, %v3163_v16  ;;  %v6935_v42 = vld [vmem:[#allocation23_spill] sm:$0xff]  ;;  %v6938_v3 = vld [vmem:[#allocation112_spill] sm:$0xff] }
 0x514   : > { %v3106_v13 = vmul.f32 0.01, %v6933_v28  ;;  %v3166_v11 = vsel %vm3038_vm8, %v2974_v19, %v3102_v59  ;;  %v2983_v50 = vadd.f32 %v6934_v32, %v6071_v6  ;;  %vm3042_vm12 = vcmp.ge.f32.partialorder %v6933_v28, 0.0  ;;  %3228 = vst.msk [vmem:[%s6203_s10 + $0x80] sm:$0xff] %vm917_vm0, %v3164_v33  ;;  %v6936_v53 = vld [vmem:[#allocation111_spill] sm:$0xff]  ;;  %v6937_v59 = vld [vmem:[#allocation24_spill] sm:$0xff] }
 0x515   : > { %v3107_v25 = vmul.f32 0.01, %v6935_v42  ;;  %v3167_v21 = vsel %vm3039_vm9, %v6925_v22, %v3103_v57  ;;  %v2984_v19 = vadd.f32 %v6936_v53, %v6075_v48  ;;  %vm3043_vm13 = vcmp.ge.f32.partialorder %v6935_v42, 0.0  ;;  %3229 = vst.msk [vmem:[%s6203_s10 + $0x88] sm:$0xff] %vm917_vm0, %v3165_v0  ;;  %v6342_v48 = vpop.permute.xlu0 %2898  ;;  %v6939_v33 = vld [vmem:[#allocation113_spill] sm:$0xff]  ;;  %v6351_v0 = vpop.permute.xlu2 %2903  ;;  %v6942_v53 = vld [vmem:[#allocation19_spill] sm:$0xff] }
 0x516   : > { %v3108_v16 = vmul.f32 0.01, %v6937_v59  ;;  %v3168_v6 = vsel %vm3040_vm10, %v2976_v40, %v3104_v43  ;;  %v2985_v54 = vadd.f32 %v6938_v3, %v6078_v51  ;;  %vm3044_vm14 = vcmp.ge.f32.partialorder %v6937_v59, 0.0  ;;  %3230 = vst.msk [vmem:[%s6203_s10 + $0x90] sm:$0xff] %vm917_vm0, %v3166_v11  ;;  %v6360_v32 = vpop.permute.xlu1 %2908 }
 0x517   : > { %v3109_v22 = vmul.f32 0.01, %v2981_v36  ;;  %v3169_v57 = vsel %vm3041_vm11, %v6930_v10, %v3105_v15  ;;  %v2986_v40 = vadd.f32 %v6939_v33, %v6081_v2  ;;  %vm3045_vm15 = vcmp.ge.f32.partialorder %v2981_v36, 0.0  ;;  %3231 = vst.msk [vmem:[%s6203_s10 + $0x98] sm:$0xff] %vm917_vm0, %v3167_v21  ;;  %v6940_v10 = vld [vmem:[#allocation114_spill] sm:$0xff] }
 0x518   : > { %v3110_v43 = vmul.f32 0.01, %v2982_v14  ;;  %v3170_v51 = vsel %vm3042_vm12, %v6933_v28, %v3106_v13  ;;  %v2987_v15 = vadd.f32 %v6940_v10, %v6084_v49  ;;  %vm3046_vm1 = vcmp.ge.f32.partialorder %v2982_v14, 0.0  ;;  %3232 = vst.msk [vmem:[%s6203_s10 + $0xa0] sm:$0xff] %vm917_vm0, %v3168_v6  ;;  %v6941_v28 = vld [vmem:[#allocation115_spill] sm:$0xff] }
 0x519   : > { %v3111_v11 = vmul.f32 0.01, %v2983_v50  ;;  %v3171_v2 = vsel %vm3043_vm13, %v6935_v42, %v3107_v25  ;;  %v2988_v13 = vadd.f32 %v6941_v28, %v6087_v41  ;;  %vm3047_vm2 = vcmp.ge.f32.partialorder %v2983_v50, 0.0  ;;  %3233 = vst.msk [vmem:[%s6203_s10 + $0xa8] sm:$0xff] %vm917_vm0, %v3169_v57  ;;  %v6943_v41 = vld [vmem:[#allocation25_spill] sm:$0xff] }
 0x51a   : > { %v3112_v21 = vmul.f32 0.01, %v2984_v19  ;;  %v3172_v49 = vsel %vm3044_vm14, %v6937_v59, %v3108_v16  ;;  %v2989_v42 = vadd.f32 %v6942_v53, %v6090_v37  ;;  %vm3048_vm3 = vcmp.ge.f32.partialorder %v2984_v19, 0.0  ;;  %3234 = vst.msk [vmem:[%s6203_s10 + $0xb0] sm:$0xff] %vm917_vm0, %v3170_v51  ;;  %v6944_v16 = vld [vmem:[#allocation27_spill] sm:$0xff]  ;;  %v6948_v28 = vld [vmem:[#allocation37_spill] sm:$0xff] }
 0x51b   : > { %v3113_v25 = vmul.f32 0.01, %v2985_v54  ;;  %v3173_v6 = vsel %vm3045_vm15, %v2981_v36, %v3109_v22  ;;  %v2990_v3 = vadd.f32 %v6943_v41, %v6093_v27  ;;  %vm3049_vm4 = vcmp.ge.f32.partialorder %v2985_v54, 0.0  ;;  %3235 = vst.msk [vmem:[%s6203_s10 + $0xb8] sm:$0xff] %vm917_vm0, %v3171_v2  ;;  %v6945_v22 = vld [vmem:[#allocation28_spill] sm:$0xff] }
 0x51c   : > { %v3114_v33 = vmul.f32 0.01, %v2986_v40  ;;  %v3174_v59 = vsel %vm3046_vm1, %v2982_v14, %v3110_v43  ;;  %v2991_v37 = vadd.f32 %v6944_v16, %v6096_v34  ;;  %vm3050_vm5 = vcmp.ge.f32.partialorder %v2986_v40, 0.0  ;;  %3236 = vst.msk [vmem:[%s6203_s10 + $0xc0] sm:$0xff] %vm917_vm0, %v3172_v49  ;;  %v6946_v43 = vld [vmem:[#allocation33_spill] sm:$0xff] }
 0x51d   : > { %v3115_v57 = vmul.f32 0.01, %v2987_v15  ;;  %v3175_v36 = vsel %vm3047_vm2, %v2983_v50, %v3111_v11  ;;  %v2992_v27 = vadd.f32 %v6945_v22, %v6099_v23  ;;  %vm3051_vm6 = vcmp.ge.f32.partialorder %v2987_v15, 0.0  ;;  %3237 = vst.msk [vmem:[%s6203_s10 + $0xc8] sm:$0xff] %vm917_vm0, %v3173_v6  ;;  %v6947_v11 = vld [vmem:[#allocation30_spill] sm:$0xff]  ;;  %v6404_v49 = vpop.permute.xlu0 %2913  ;;  %v6950_v6 = vld [vmem:[#allocation41_spill] sm:$0xff] }
 0x51e   : > { %v3116_v51 = vmul.f32 0.01, %v2988_v13  ;;  %v3176_v14 = vsel %vm3048_vm3, %v2984_v19, %v3112_v21  ;;  %v2993_v34 = vadd.f32 %v6946_v43, %v6102_v60  ;;  %vm3052_vm7 = vcmp.ge.f32.partialorder %v2988_v13, 0.0  ;;  %3238 = vst.msk [vmem:[%s6203_s10 + $0xd0] sm:$0xff] %vm917_vm0, %v3174_v59  ;;  %v6951_v59 = vld [vmem:[#allocation38_spill] sm:$0xff] }
 0x51f   : > { %v3117_v10 = vmul.f32 0.01, %v2989_v42  ;;  %v3177_v50 = vsel %vm3049_vm4, %v2985_v54, %v3113_v25  ;;  %v2994_v23 = vadd.f32 %v6947_v11, %v6105_v8  ;;  %vm3053_vm8 = vcmp.ge.f32.partialorder %v2989_v42, 0.0  ;;  %3239 = vst.msk [vmem:[%s6203_s10 + $0xd8] sm:$0xff] %vm917_vm0, %v3175_v36  ;;  %v6949_v8 = vld [vmem:[#allocation46_spill] sm:$0xff] }
 0x520   : > { %v3118_v2 = vmul.f32 0.01, %v2990_v3  ;;  %v3178_v19 = vsel %vm3050_vm5, %v2986_v40, %v3114_v33  ;;  %v2995_v21 = vadd.f32 %v6948_v28, %v6108_v62  ;;  %vm3054_vm9 = vcmp.ge.f32.partialorder %v2990_v3, 0.0  ;;  %3240 = vst.msk [vmem:[%s6203_s10 + $0xe0] sm:$0xff] %vm917_vm0, %v3176_v14  ;;  %v6411_v62 = vpop.permute.xlu2 %2918 }
 0x521   : > { %v3119_v60 = vmul.f32 0.01, %v2991_v37  ;;  %v3179_v54 = vsel %vm3051_vm6, %v2987_v15, %v3115_v57  ;;  %v2996_v53 = vadd.f32 %v6949_v8, %v6111_v45  ;;  %vm3055_vm10 = vcmp.ge.f32.partialorder %v2991_v37, 0.0  ;;  %3241 = vst.msk [vmem:[%s6203_s10 + $0xe8] sm:$0xff] %vm917_vm0, %v3177_v50  ;;  %v6418_v45 = vpop.permute.xlu1 %2923  ;;  %v6954_v8 = vld [vmem:[#allocation6_spill] sm:$0xff] }
 0x522   : > { %v3120_v40 = vmul.f32 0.01, %v2992_v27  ;;  %v3180_v25 = vsel %vm3052_vm7, %v2988_v13, %v3116_v51  ;;  %v2997_v15 = vadd.f32 %v6950_v6, %v6114_v56  ;;  %vm3056_vm11 = vcmp.ge.f32.partialorder %v2992_v27, 0.0  ;;  %3242 = vst.msk [vmem:[%s6203_s10 + $0xf0] sm:$0xff] %vm917_vm0, %v3178_v19  ;;  %v6952_v51 = vld [vmem:[#allocation4_spill] sm:$0xff] }
 0x523   : > { %v3121_v41 = vmul.f32 0.01, %v2993_v34  ;;  %v3181_v33 = vsel %vm3053_vm8, %v2989_v42, %v3117_v10  ;;  %v2998_v13 = vadd.f32 %v6951_v59, %v6120_v47  ;;  %vm3057_vm12 = vcmp.ge.f32.partialorder %v2993_v34, 0.0  ;;  %3243 = vst.msk [vmem:[%s6203_s10 + $0xf8] sm:$0xff] %vm917_vm0, %v3179_v54  ;;  %v6953_v10 = vld [vmem:[#allocation5_spill] sm:$0xff]  ;;  %v6957_v59 = vld [vmem:[#allocation62_spill] sm:$0xff] }
 0x524   : > { %v3122_v16 = vmul.f32 0.01, %v2994_v23  ;;  %v3182_v57 = vsel %vm3054_vm9, %v2990_v3, %v3118_v2  ;;  %v2999_v56 = vadd.f32 %v6116_v17, %v6124_v7  ;;  %vm3058_vm13 = vcmp.ge.f32.partialorder %v2994_v23, 0.0  ;;  %3244 = vst.msk [vmem:[%s6203_s10 + $0x100] sm:$0xff] %vm917_vm0, %v3180_v25  ;;  %v6955_v25 = vld [vmem:[#allocation7_spill] sm:$0xff] }
 0x525   : > { %v3123_v42 = vmul.f32 0.01, %v2995_v21  ;;  %v3183_v36 = vsel %vm3055_vm10, %v2991_v37, %v3119_v60  ;;  %v3000_v47 = vadd.f32 %v6131_v9, %v6128_v35  ;;  %vm3059_vm14 = vcmp.ge.f32.partialorder %v2995_v21, 0.0  ;;  %3245 = vst.msk [vmem:[%s6203_s10 + $0x108] sm:$0xff] %vm917_vm0, %v3181_v33  ;;  %v2929_v11 = vpop.permute.xlu0 %2928 }
 0x526   : > { %v3124_v22 = vmul.f32 0.01, %v2996_v53  ;;  %v3184_v3 = vsel %vm3056_vm11, %v2992_v27, %v3120_v40  ;;  %v3001_v17 = vadd.f32 %v6146_v30, %v6135_v26  ;;  %vm3060_vm15 = vcmp.ge.f32.partialorder %v2996_v53, 0.0  ;;  %3246 = vst.msk [vmem:[%s6203_s10 + $0x110] sm:$0xff] %vm917_vm0, %v3182_v57 }
 0x527   : > { %v3125_v7 = vmul.f32 0.01, %v2997_v15  ;;  %v3185_v37 = vsel %vm3057_vm12, %v2993_v34, %v3121_v41  ;;  %v3002_v35 = vadd.f32 %v6209_v58, %v6952_v51  ;;  %vm3061_vm1 = vcmp.ge.f32.partialorder %v2997_v15, 0.0  ;;  %3247 = vst.msk [vmem:[%s6203_s10 + $0x118] sm:$0xff] %vm917_vm0, %v3183_v36  ;;  %v6956_v41 = vld [vmem:[#allocation8_spill] sm:$0xff] }
 0x528   : > { %v3126_v9 = vmul.f32 0.01, %v2998_v13  ;;  %v3186_v27 = vsel %vm3058_vm13, %v2994_v23, %v3122_v16  ;;  %v3003_v26 = vadd.f32 %v6213_v18, %v6143_v12  ;;  %vm3062_vm2 = vcmp.ge.f32.partialorder %v2998_v13, 0.0  ;;  %3248 = vst.msk [vmem:[%s6203_s10 + $0x120] sm:$0xff] %vm917_vm0, %v3184_v3  ;;  %v2934_v2 = vpop.permute.xlu2 %2933 }
 0x529   : > { %v3127_v30 = vmul.f32 0.01, %v2999_v56  ;;  %v3187_v14 = vsel %vm3059_vm14, %v2995_v21, %v3123_v42  ;;  %v3004_v58 = vadd.f32 %v6220_v63, %v6150_v4  ;;  %vm3063_vm3 = vcmp.ge.f32.partialorder %v2999_v56, 0.0  ;;  %3249 = vst.msk [vmem:[%s6203_s10 + $0x128] sm:$0xff] %vm917_vm0, %v3185_v37 }
 0x52a   : > { %v3128_v43 = vmul.f32 0.01, %v3000_v47  ;;  %v3188_v34 = vsel %vm3060_vm15, %v2996_v53, %v3124_v22  ;;  %v3005_v50 = vadd.f32 %v6264_v31, %v6953_v10  ;;  %vm3064_vm4 = vcmp.ge.f32.partialorder %v3000_v47, 0.0  ;;  %3250 = vst.msk [vmem:[%s6203_s10 + $0x130] sm:$0xff] %vm917_vm0, %v3186_v27 }
 0x52b   : > { %v3129_v12 = vmul.f32 0.01, %v3001_v17  ;;  %v3189_v18 = vsel %vm3061_vm1, %v2997_v15, %v3125_v7  ;;  %v3006_v4 = vadd.f32 %v6271_v38, %v6158_v29  ;;  %vm3065_vm5 = vcmp.ge.f32.partialorder %v3001_v17, 0.0  ;;  %3251 = vst.msk [vmem:[%s6203_s10 + $0x138] sm:$0xff] %vm917_vm0, %v3187_v14  ;;  %v2939_v29 = vpop.permute.xlu1 %2938 }
 0x52c   : > { %v3130_v63 = vmul.f32 0.01, %v3002_v35  ;;  %v3190_v23 = vsel %vm3062_vm2, %v2998_v13, %v3126_v9  ;;  %v3007_v31 = vadd.f32 %v6280_v61, %v6163_v1  ;;  %vm3066_vm6 = vcmp.ge.f32.partialorder %v3002_v35, 0.0  ;;  %3252 = vst.msk [vmem:[%s6203_s10 + $0x140] sm:$0xff] %vm917_vm0, %v3188_v34 }
 0x52d   : > { %v3131_v19 = vmul.f32 0.01, %v3003_v26  ;;  %v3191_v28 = vsel %vm3063_vm3, %v2999_v56, %v3127_v30  ;;  %v3008_v38 = vadd.f32 %v6342_v48, %v6167_v24  ;;  %vm3067_vm7 = vcmp.ge.f32.partialorder %v3003_v26, 0.0  ;;  %3253 = vst.msk [vmem:[%s6203_s10 + $0x148] sm:$0xff] %vm917_vm0, %v3189_v18  ;;  %v2944_v42 = vpop.permute.xlu0 %2943 }
 0x52e   : > { %v3132_v21 = vmul.f32 0.01, %v3004_v58  ;;  %v3192_v60 = vsel %vm3064_vm4, %v3000_v47, %v3128_v43  ;;  %v3009_v1 = vadd.f32 %v6351_v0, %v6171_v5  ;;  %vm3068_vm8 = vcmp.ge.f32.partialorder %v3004_v58, 0.0  ;;  %3254 = vst.msk [vmem:[%s6203_s10 + $0x150] sm:$0xff] %vm917_vm0, %v3190_v23 }
 0x52f   : > { %v3133_v61 = vmul.f32 0.01, %v3005_v50  ;;  %v3193_v54 = vsel %vm3065_vm5, %v3001_v17, %v3129_v12  ;;  %v3010_v24 = vadd.f32 %v6360_v32, %v6954_v8  ;;  %vm3069_vm9 = vcmp.ge.f32.partialorder %v3005_v50, 0.0  ;;  %3255 = vst.msk [vmem:[%s6203_s10 + $0x158] sm:$0xff] %vm917_vm0, %v3191_v28 }
 0x530   : > { %v3134_v48 = vmul.f32 0.01, %v3006_v4  ;;  %v3194_v53 = vsel %vm3066_vm6, %v3002_v35, %v3130_v63  ;;  %v3011_v5 = vadd.f32 %v6404_v49, %v6180_v20  ;;  %vm3070_vm10 = vcmp.ge.f32.partialorder %v3006_v4, 0.0  ;;  %3256 = vst.msk [vmem:[%s6203_s10 + $0x160] sm:$0xff] %vm917_vm0, %v3192_v60  ;;  %v2949_v3 = vpop.permute.xlu2 %2948 }
 0x531   : > { %v3135_v0 = vmul.f32 0.01, %v3007_v31  ;;  %v3195_v40 = vsel %vm3067_vm7, %v3003_v26, %v3131_v19  ;;  %v3012_v32 = vadd.f32 %v6411_v62, %v6955_v25  ;;  %vm3071_vm11 = vcmp.ge.f32.partialorder %v3007_v31, 0.0  ;;  %3257 = vst.msk [vmem:[%s6203_s10 + $0x168] sm:$0xff] %vm917_vm0, %v3193_v54 }
 0x532   : > { %v3136_v6 = vmul.f32 0.01, %v3008_v38  ;;  %v3196_v15 = vsel %vm3068_vm8, %v3004_v58, %v3132_v21  ;;  %v3013_v20 = vadd.f32 %v6418_v45, %v6956_v41  ;;  %vm3072_vm12 = vcmp.ge.f32.partialorder %v3008_v38, 0.0  ;;  %3258 = vst.msk [vmem:[%s6203_s10 + $0x170] sm:$0xff] %vm917_vm0, %v3194_v53 }
 0x533   : > { %v3137_v49 = vmul.f32 0.01, %v3009_v1  ;;  %v3197_v33 = vsel %vm3069_vm9, %v3005_v50, %v3133_v61  ;;  %v3014_v13 = vadd.f32 %v2929_v11, %v6957_v59  ;;  %vm3073_vm13 = vcmp.ge.f32.partialorder %v3009_v1, 0.0  ;;  %3259 = vst.msk [vmem:[%s6203_s10 + $0x178] sm:$0xff] %vm917_vm0, %v3195_v40  ;;  %v2954_v37 = vpop.permute.xlu1 %2953 }
 0x534   : > { %v3138_v62 = vmul.f32 0.01, %v3010_v24  ;;  %v3198_v16 = vsel %vm3070_vm10, %v3006_v4, %v3134_v48  ;;  %v3015_v57 = vadd.f32 %v2934_v2, %v6259_v39  ;;  %vm3074_vm14 = vcmp.ge.f32.partialorder %v3010_v24, 0.0  ;;  %3260 = vst.msk [vmem:[%s6203_s10 + $0x180] sm:$0xff] %vm917_vm0, %v3196_v15 }
 0x535   : > { %v3139_v45 = vmul.f32 0.01, %v3011_v5  ;;  %v3199_v56 = vsel %vm3071_vm11, %v3007_v31, %v3135_v0  ;;  %v3016_v36 = vadd.f32 %v2939_v29, %v6275_v44  ;;  %vm3075_vm15 = vcmp.ge.f32.partialorder %v3011_v5, 0.0  ;;  %3261 = vst.msk [vmem:[%s6203_s10 + $0x188] sm:$0xff] %vm917_vm0, %v3197_v33 }
 0x536   : > { %v3140_v47 = vmul.f32 0.01, %v3012_v32  ;;  %v3200_v22 = vsel %vm3072_vm12, %v3008_v38, %v3136_v6  ;;  %v3017_v39 = vadd.f32 %v2944_v42, %v6284_v55  ;;  %vm3076_vm1 = vcmp.ge.f32.partialorder %v3012_v32, 0.0  ;;  %3262 = vst.msk [vmem:[%s6203_s10 + $0x190] sm:$0xff] %vm917_vm0, %v3198_v16 }
 0x537   : > { %v3141_v17 = vmul.f32 0.01, %v3013_v20  ;;  %v3201_v7 = vsel %vm3073_vm13, %v3009_v1, %v3137_v49  ;;  %v3018_v44 = vadd.f32 %v2949_v3, %v6291_v52  ;;  %vm3077_vm2 = vcmp.ge.f32.partialorder %v3013_v20, 0.0  ;;  %3263 = vst.msk [vmem:[%s6203_s10 + $0x198] sm:$0xff] %vm917_vm0, %v3199_v56 }
 0x538   : > { %v3142_v51 = vmul.f32 0.01, %v3014_v13  ;;  %v3202_v35 = vsel %vm3074_vm14, %v3010_v24, %v3138_v62  ;;  %v3019_v9 = vadd.f32 %v2954_v37, %v6299_v46  ;;  %vm3078_vm3 = vcmp.ge.f32.partialorder %v3014_v13, 0.0  ;;  %3264 = vst.msk [vmem:[%s6203_s10 + $0x1a0] sm:$0xff] %vm917_vm0, %v3200_v22 }
 0x539   : > { %v3143_v55 = vmul.f32 0.01, %v3015_v57  ;;  %v3203_v27 = vsel %vm3075_vm15, %v3011_v5, %v3139_v45  ;;  %vm3079_vm4 = vcmp.ge.f32.partialorder %v3015_v57, 0.0  ;;  %v3144_v26 = vmul.f32 0.01, %v3016_v36  ;;  %3265 = vst.msk [vmem:[%s6203_s10 + $0x1a8] sm:$0xff] %vm917_vm0, %v3201_v7 }
 0x53a   : > { %v3204_v52 = vsel %vm3076_vm1, %v3012_v32, %v3140_v47  ;;  %vm3080_vm5 = vcmp.ge.f32.partialorder %v3016_v36, 0.0  ;;  %v3145_v30 = vmul.f32 0.01, %v3017_v39  ;;  %v3205_v14 = vsel %vm3077_vm2, %v3013_v20, %v3141_v17  ;;  %3266 = vst.msk [vmem:[%s6203_s10 + $0x1b0] sm:$0xff] %vm917_vm0, %v3202_v35 }
 0x53b   : > { %vm3081_vm6 = vcmp.ge.f32.partialorder %v3017_v39, 0.0  ;;  %v3146_v46 = vmul.f32 0.01, %v3018_v44  ;;  %v3206_v58 = vsel %vm3078_vm3, %v3014_v13, %v3142_v51  ;;  %3267 = vst.msk [vmem:[%s6203_s10 + $0x1b8] sm:$0xff] %vm917_vm0, %v3203_v27  ;;  %vm3082_vm7 = vcmp.ge.f32.partialorder %v3018_v44, 0.0 }
 0x53c   : > { %v3147_v43 = vmul.f32 0.01, %v3019_v9  ;;  %v3207_v34 = vsel %vm3079_vm4, %v3015_v57, %v3143_v55  ;;  %3268 = vst.msk [vmem:[%s6203_s10 + $0x1c0] sm:$0xff] %vm917_vm0, %v3204_v52  ;;  %vm3083_vm8 = vcmp.ge.f32.partialorder %v3019_v9, 0.0  ;;  %v3208_v10 = vsel %vm3080_vm5, %v3016_v36, %v3144_v26 }
 0x53d   : > { %3269 = vst.msk [vmem:[%s6203_s10 + $0x1c8] sm:$0xff] %vm917_vm0, %v3205_v14  ;;  %v3209_v50 = vsel %vm3081_vm6, %v3017_v39, %v3145_v30  ;;  %v3210_v12 = vsel %vm3082_vm7, %v3018_v44, %v3146_v46 }
 0x53e   : > { %3270 = vst.msk [vmem:[%s6203_s10 + $0x1d0] sm:$0xff] %vm917_vm0, %v3206_v58  ;;  %v3211_v18 = vsel %vm3083_vm8, %v3019_v9, %v3147_v43 }
 0x53f   : > { %3271 = vst.msk [vmem:[%s6203_s10 + $0x1d8] sm:$0xff] %vm917_vm0, %v3207_v34 }
 0x540   : > { %3272 = vst.msk [vmem:[%s6203_s10 + $0x1e0] sm:$0xff] %vm917_vm0, %v3208_v10 }
 0x541   : > { %3273 = vst.msk [vmem:[%s6203_s10 + $0x1e8] sm:$0xff] %vm917_vm0, %v3209_v50 }
 0x542   : > { %3274 = vst.msk [vmem:[%s6203_s10 + $0x1f0] sm:$0xff] %vm917_vm0, %v3210_v12 }
 0x543   : > { %3275 = vst.msk [vmem:[%s6203_s10 + $0x1f8] sm:$0xff] %vm917_vm0, %v3211_v18 }
 0x544 PF: > { %s14_s15 = sadd.s32 1, %s4103_s15  }
 0x545   : > { %p11_p4 = scmp.ge.s32.totalorder %s14_s15, 4  }
 0x547   :  { %13 = sbr.rel (!%p11_p4) target bundleno = 1 (0x1), region = 69 }

</bundles_post_ra>
